<compile_context>
chip_gen: v5e
topology: v5e:2x2
jax: 0.10.0
libtpu: 0.0.40
codegen_flags: <defaults>
</compile_context>

<pallas_src>
import math

import jax
import jax.numpy as jnp
from jax.experimental import pallas as pl
from jax.experimental.pallas import tpu as pltpu

# ----------------------------- model config ---------------------------------
NTOKEN = 256
NINP = 128
NHID = 128
NHIDLAST = 128
NLAYERS = 2
NEXPERTS = 4
SEQ = 8
BATCH = 2

BPAD = 8      # batch padded to one full sublane group (vreg is 8x128)
EPAD = 128    # n_experts padded to one full lane group for lane-dense stores

assert NLAYERS == 2, "fused LSTM kernel below is written for exactly 2 layers"


def _full2(shape):
    return pl.BlockSpec(shape, lambda i: (0, 0))


def _sigmoid(x):
    # exact identity: sigmoid(x) = 0.5*(tanh(x/2)+1)  (one EUP push, not exp+recip)
    return 0.5 * jnp.tanh(0.5 * x) + 0.5


# ---------------- fused 2-layer LSTM + MoS-head kernel -----------------------
def _fused_lstm_head_kernel(
        emb_ref, wih0_ref, whh0_ref, b0_ref, w1cat_ref, b1_ref,
        h00_ref, c00_ref, h01_ref, c01_ref,
        wcat_ref, bcat_ref, wdec_ref, bdec_ref, dmat_ref,
        probs_ref, a_ref, d_ref, h0T_ref, c0T_ref, h1T_ref, c1T_ref,
        xp_ref, y_ref):
    N = emb_ref.shape[0]                  # N = T * Bp
    Bp, H0 = h00_ref.shape
    H1 = h01_ref.shape[1]
    T = N // Bp
    ninp = wdec_ref.shape[0]
    epad = a_ref.shape[1]
    L = wcat_ref.shape[1] - epad          # = n_experts * ninp
    E = L // ninp

    # ---- hoisted layer-0 input projection (one big matmul, bias folded in) ----
    xp_ref[...] = (jnp.dot(emb_ref[...].astype(jnp.bfloat16), wih0_ref[...],
                           preferred_element_type=jnp.float32) + b0_ref[...])

    # hoist loop-invariant bias broadcast out of the time loop
    b1b = jnp.broadcast_to(b1_ref[...], (Bp, 4 * H1))

    h0 = h00_ref[...]
    c0 = c00_ref[...]
    h1 = h01_ref[...]
    c1 = c01_ref[...]

    # Static unroll over time; all weights stay resident in VMEM.
    for t in range(T):
        # layer 0: only the recurrent matmul remains on the serial chain
        g0 = (xp_ref[pl.ds(t * Bp, Bp), :]
              + jnp.dot(h0.astype(jnp.bfloat16), whh0_ref[...],
                        preferred_element_type=jnp.float32))
        c0 = (_sigmoid(g0[:, H0:2 * H0]) * c0
              + _sigmoid(g0[:, 0:H0]) * jnp.tanh(g0[:, 2 * H0:3 * H0]))
        h0 = _sigmoid(g0[:, 3 * H0:4 * H0]) * jnp.tanh(c0)

        # layer 1: single K=256 matmul of [h0_t | h1_{t-1}] against [Wih1; Whh1]
        inp1 = jnp.concatenate([h0, h1], axis=1).astype(jnp.bfloat16)
        g1 = jnp.dot(inp1, w1cat_ref[...], preferred_element_type=jnp.float32) + b1b
        c1 = (_sigmoid(g1[:, H1:2 * H1]) * c1
              + _sigmoid(g1[:, 0:H1]) * jnp.tanh(g1[:, 2 * H1:3 * H1]))
        h1 = _sigmoid(g1[:, 3 * H1:4 * H1]) * jnp.tanh(c1)

        y_ref[pl.ds(t * Bp, Bp), :] = h1          # aligned (Bp, H1) store

    h0T_ref[...] = h0
    c0T_ref[...] = c0
    h1T_ref[...] = h1
    c1T_ref[...] = c1

    # ---------------- MoS head epilogue (no HBM round-trip for y) -------------
    y = y_ref[...]                                            # (N, H1)
    # one fused (N,H1)@(H1, L+EPAD) matmul covers both latent and reduce
    z = (jnp.dot(y.astype(jnp.bfloat16), wcat_ref[...],
                 preferred_element_type=jnp.float32) + bcat_ref[...])

    # reduce = Softplus(Linear(...)) + 1e-8  (PyTorch softplus, threshold=20)
    red = z[:, L:]
    sp = jnp.where(red > 20.0, red, jnp.log1p(jnp.exp(jnp.minimum(red, 20.0))))
    a_full = sp + 1e-8
    a_ref[...] = a_full                                       # lane-dense (N, EPAD)
    # stick-breaking pre-sample param: d_e = sum_{j>e} a_j == |sum(a)-cumsum(a)_e|,
    # computed as one tiny matmul with a strictly-upper-triangular mask so the
    # store stays dense (no single-lane writes).
    d_ref[...] = jnp.dot(a_full, dmat_ref[...], preferred_element_type=jnp.float32)

    # latent (tanh) for all experts, re-laid out expert-major via sublane concat,
    # then ONE decoder matmul and ONE softmax pass over all N*E rows.
    lat = jnp.tanh(z[:, :L])                                  # (N, E*ninp)
    lat2 = jnp.concatenate([lat[:, e * ninp:(e + 1) * ninp] for e in range(E)],
                           axis=0)                            # (E*N, ninp)
    logits = (jnp.dot(lat2.astype(jnp.bfloat16), wdec_ref[...],
                      preferred_element_type=jnp.float32) + bdec_ref[...])
    logits = logits - jnp.max(logits, axis=-1, keepdims=True)
    ex = jnp.exp(logits)
    denom = jnp.sum(ex, axis=-1, keepdims=True)
    probs_ref[...] = ex * pl.reciprocal(denom, approx=False)  # (E*N, V), expert-major


def fused_lstm_head(emb2, params, hidden_p):
    N = emb2.shape[0]
    wih0, whh0, b0 = params['l0']
    w1cat, b1 = params['l1']
    wcat, bcat = params['w_cat'], params['b_cat']
    wdec, bdec = params['w_dec'], params['b_dec']
    dmat = params['d_mat']
    (h00, c00), (h01, c01) = hidden_p
    Bp, H0 = h00.shape
    H1 = h01.shape[1]
    V = wdec.shape[1]

    out_shape = (
        jax.ShapeDtypeStruct((NEXPERTS * N, V), jnp.float32),   # probs (expert-major)
        jax.ShapeDtypeStruct((N, EPAD), jnp.float32),            # a
        jax.ShapeDtypeStruct((N, EPAD), jnp.float32),            # d
        jax.ShapeDtypeStruct((Bp, H0), jnp.float32),
        jax.ShapeDtypeStruct((Bp, H0), jnp.float32),
        jax.ShapeDtypeStruct((Bp, H1), jnp.float32),
        jax.ShapeDtypeStruct((Bp, H1), jnp.float32),
    )
    return pl.pallas_call(
        _fused_lstm_head_kernel,
        out_shape=out_shape,
        grid_spec=pltpu.PrefetchScalarGridSpec(
            num_scalar_prefetch=0,
            grid=(1,),
            in_specs=[_full2(emb2.shape),
                      _full2(wih0.shape), _full2(whh0.shape), _full2(b0.shape),
                      _full2(w1cat.shape), _full2(b1.shape),
                      _full2(h00.shape), _full2(c00.shape),
                      _full2(h01.shape), _full2(c01.shape),
                      _full2(wcat.shape), _full2(bcat.shape),
                      _full2(wdec.shape), _full2(bdec.shape),
                      _full2(dmat.shape)],
            out_specs=[_full2((NEXPERTS * N, V)),
                       _full2((N, EPAD)), _full2((N, EPAD)),
                       _full2((Bp, H0)), _full2((Bp, H0)),
                       _full2((Bp, H1)), _full2((Bp, H1))],
            scratch_shapes=[pltpu.VMEM((N, 4 * H0), jnp.float32),   # hoisted x@Wih0
                            pltpu.VMEM((N, H1), jnp.float32)]),     # layer-1 outputs
        compiler_params=pltpu.CompilerParams(
            dimension_semantics=("arbitrary",)),
    )(emb2, wih0, whh0, b0, w1cat, b1, h00, c00, h01, c01,
      wcat, bcat, wdec, bdec, dmat)


# ------- mixture: in-kernel stick-breaking pis + weighted sum + log (VPU) -----
def _mixture_kernel(probs_ref, sample_ref, out_ref):
    N, V = out_ref.shape
    E = probs_ref.shape[0] // N
    s = sample_ref[...]                       # (N, EPAD); real values in lanes 0:E
    remprod = jnp.ones((N, 1), jnp.float32)
    mix = jnp.zeros((N, V), jnp.float32)
    for e in range(E):
        se = s[:, e:e + 1]
        mix = mix + (remprod * se) * probs_ref[pl.ds(e * N, N), :]
        remprod = remprod * (1.0 - se)
    out_ref[...] = jnp.log(mix + 1e-8)


def mixture_logprob(probs, sample_pad):
    EN, V = probs.shape
    N = sample_pad.shape[0]
    return pl.pallas_call(
        _mixture_kernel,
        out_shape=jax.ShapeDtypeStruct((N, V), jnp.float32),
        grid_spec=pltpu.PrefetchScalarGridSpec(
            num_scalar_prefetch=0,
            grid=(1,),
            in_specs=[_full2((EN, V)), _full2((N, EPAD))],
            out_specs=_full2((N, V))),
        compiler_params=pltpu.CompilerParams(
            dimension_semantics=("arbitrary",)),
    )(probs, sample_pad)


# ----------------------------- parameters ------------------------------------
def init_params(key):
    ks = jax.random.split(key, 16)
    initrange = 0.1
    params = {}
    params['encoder'] = jax.random.uniform(
        ks[0], (NTOKEN, NINP), jnp.float32, -initrange, initrange)

    kidx = 1
    lstm_raw = []
    for l in range(NLAYERS):
        in_size = NINP if l == 0 else NHID
        hid = NHID if l != NLAYERS - 1 else NHIDLAST
        k = 1.0 / math.sqrt(hid)
        w_ih = jax.random.uniform(ks[kidx], (4 * hid, in_size), jnp.float32, -k, k); kidx += 1
        w_hh = jax.random.uniform(ks[kidx], (4 * hid, hid), jnp.float32, -k, k); kidx += 1
        b_ih = jax.random.uniform(ks[kidx], (4 * hid,), jnp.float32, -k, k); kidx += 1
        b_hh = jax.random.uniform(ks[kidx], (4 * hid,), jnp.float32, -k, k); kidx += 1
        lstm_raw.append((w_ih, w_hh, b_ih, b_hh))

    # layer 0: keep Wih / Whh separate (input projection is hoisted out of the loop)
    w_ih0, w_hh0, b_ih0, b_hh0 = lstm_raw[0]
    params['l0'] = (w_ih0.T.astype(jnp.bfloat16),
                    w_hh0.T.astype(jnp.bfloat16),
                    (b_ih0 + b_hh0)[None, :])
    # layer 1: pre-concatenate [Wih1; Whh1] -> one K=256 matmul per cell
    w_ih1, w_hh1, b_ih1, b_hh1 = lstm_raw[1]
    params['l1'] = (jnp.concatenate([w_ih1.T, w_hh1.T], axis=0).astype(jnp.bfloat16),
                    (b_ih1 + b_hh1)[None, :])

    kl = 1.0 / math.sqrt(NHIDLAST)
    w_lat_t = jax.random.uniform(
        ks[kidx], (NEXPERTS * NINP, NHIDLAST), jnp.float32, -kl, kl).T; kidx += 1
    b_lat = jax.random.uniform(
        ks[kidx], (1, NEXPERTS * NINP), jnp.float32, -kl, kl); kidx += 1
    w_red_t = jax.random.uniform(
        ks[kidx], (NEXPERTS, NHIDLAST), jnp.float32, -kl, kl).T; kidx += 1
    b_red = jax.random.uniform(
        ks[kidx], (1, NEXPERTS), jnp.float32, -kl, kl); kidx += 1

    # Fuse latent + reduce into one weight; pad reduce lanes 4 -> 128 so the
    # in-kernel "a"/"d" stores are lane-dense (real values live in the first E lanes).
    w_red_pad = jnp.pad(w_red_t, ((0, 0), (0, EPAD - NEXPERTS)))
    b_red_pad = jnp.pad(b_red, ((0, 0), (0, EPAD - NEXPERTS)))
    params['w_cat'] = jnp.concatenate([w_lat_t, w_red_pad], axis=1).astype(jnp.bfloat16)
    params['b_cat'] = jnp.concatenate([b_lat, b_red_pad], axis=1)

    # decoder: init_weights() -> weight uniform(-0.1, 0.1), bias 0
    params['w_dec'] = jax.random.uniform(
        ks[kidx], (NTOKEN, NINP), jnp.float32,
        -initrange, initrange).T.astype(jnp.bfloat16); kidx += 1
    params['b_dec'] = jnp.zeros((1, NTOKEN), jnp.float32)

    # strictly-upper-triangular mask restricted to the first NEXPERTS lanes:
    # d = a @ d_mat  ==>  d_e = sum_{j>e} a_j = |sum(a) - cumsum(a)_e|
    row = jnp.arange(EPAD)[:, None]
    col = jnp.arange(EPAD)[None, :]
    params['d_mat'] = ((row < NEXPERTS) & (col < NEXPERTS)
                       & (row > col)).astype(jnp.float32)
    return params


# ----------------------------- forward pass ----------------------------------
def rnn_model_forward(params, tokens, hidden, sample_key):
    T, B = tokens.shape
    pad = BPAD - B

    # embedded_dropout with dropout=0 -> plain embedding lookup (glue gather);
    # pad batch to a full sublane group so every kernel vector op is dense.
    tok_p = jnp.pad(tokens, ((0, 0), (0, pad)))
    emb = jnp.take(params['encoder'], tok_p, axis=0)          # (T, Bp, NINP)
    emb2 = emb.reshape(T * BPAD, NINP)                        # free reshape
    hidden_p = [(jnp.pad(h, ((0, pad), (0, 0))), jnp.pad(c, ((0, pad), (0, 0))))
                for (h, c) in hidden]

    probs, a_pad, d_pad, h0T, c0T, h1T, c1T = fused_lstm_head(emb2, params, hidden_p)
    new_hidden = [(h0T[:B], c0T[:B]), (h1T[:B], c1T[:B])]

    a = a_pad[:, :NEXPERTS]
    d = d_pad[:, :NEXPERTS]
    # TODO(synk): torch.distributions.Beta(a, d).rsample() is stochastic; the last
    # stick-breaking column has d ~ 0 (degenerate Beta -> sample ~ 1), so clamp d for
    # jax.random.beta stability.  Not sample-for-sample identical to the torch RNG.
    sample = jax.random.beta(sample_key, a, jnp.maximum(d, 1e-6))
    sample_pad = jnp.pad(sample, ((0, 0), (0, EPAD - NEXPERTS)))

    log_prob_full = mixture_logprob(probs, sample_pad)        # (T*Bp, NTOKEN)
    log_prob = log_prob_full.reshape(T, BPAD, NTOKEN)[:, :B, :]
    return log_prob, new_hidden


# --------------------------------- main ---------------------------------------
if __name__ == "__main__":
    key = jax.random.PRNGKey(0)
    kp, kt, kb = jax.random.split(key, 3)

    params = init_params(kp)
    tokens = jax.random.randint(kt, (SEQ, BATCH), 0, NTOKEN, dtype=jnp.int32)
    hidden = [(jnp.zeros((BATCH, NHID if l != NLAYERS - 1 else NHIDLAST), jnp.float32),
               jnp.zeros((BATCH, NHID if l != NLAYERS - 1 else NHIDLAST), jnp.float32))
              for l in range(NLAYERS)]

    forward = jax.jit(rnn_model_forward)
    log_prob, new_hidden = forward(params, tokens, hidden, kb)
    jax.block_until_ready(log_prob)
    for h, c in new_hidden:
        jax.block_until_ready(h)
        jax.block_until_ready(c)

    assert log_prob.shape == (SEQ, BATCH, NTOKEN)
    assert bool(jnp.all(jnp.isfinite(log_prob)))
    print("KERNEL_OK")
</pallas_src>

<mosaic_0001>
module attributes {stable_mosaic.version = 11 : i64} {
  func.func @_fused_lstm_head_kernel(%arg0: i32, %arg1: memref<64x128xf32, #tpu.memory_space<vmem>>, %arg2: memref<128x512xbf16, #tpu.memory_space<vmem>>, %arg3: memref<128x512xbf16, #tpu.memory_space<vmem>>, %arg4: memref<1x512xf32, #tpu.memory_space<vmem>>, %arg5: memref<256x512xbf16, #tpu.memory_space<vmem>>, %arg6: memref<1x512xf32, #tpu.memory_space<vmem>>, %arg7: memref<8x128xf32, #tpu.memory_space<vmem>>, %arg8: memref<8x128xf32, #tpu.memory_space<vmem>>, %arg9: memref<8x128xf32, #tpu.memory_space<vmem>>, %arg10: memref<8x128xf32, #tpu.memory_space<vmem>>, %arg11: memref<128x640xbf16, #tpu.memory_space<vmem>>, %arg12: memref<1x640xf32, #tpu.memory_space<vmem>>, %arg13: memref<128x256xbf16, #tpu.memory_space<vmem>>, %arg14: memref<1x256xf32, #tpu.memory_space<vmem>>, %arg15: memref<128x128xf32, #tpu.memory_space<vmem>>, %arg16: memref<256x256xf32, #tpu.memory_space<vmem>>, %arg17: memref<64x128xf32, #tpu.memory_space<vmem>>, %arg18: memref<64x128xf32, #tpu.memory_space<vmem>>, %arg19: memref<8x128xf32, #tpu.memory_space<vmem>>, %arg20: memref<8x128xf32, #tpu.memory_space<vmem>>, %arg21: memref<8x128xf32, #tpu.memory_space<vmem>>, %arg22: memref<8x128xf32, #tpu.memory_space<vmem>>, %arg23: memref<64x512xf32, #tpu.memory_space<vmem>>, %arg24: memref<64x128xf32, #tpu.memory_space<vmem>>) attributes {dimension_semantics = [#tpu.dimension_semantics<arbitrary>], iteration_bounds = array<i64: 1>, scalar_prefetch = 0 : i64, scratch_operands = 2 : i64, tpu.core_type = #tpu.core_type<tc>, window_params = [{pipeline_mode = #tpu.pipeline_mode<synchronous>, transform_indices = @transform_0, window_bounds = array<i64: 64, 128>}, {pipeline_mode = #tpu.pipeline_mode<synchronous>, transform_indices = @transform_1, window_bounds = array<i64: 128, 512>}, {pipeline_mode = #tpu.pipeline_mode<synchronous>, transform_indices = @transform_2, window_bounds = array<i64: 128, 512>}, {pipeline_mode = #tpu.pipeline_mode<synchronous>, transform_indices = @transform_3, window_bounds = array<i64: 1, 512>}, {pipeline_mode = #tpu.pipeline_mode<synchronous>, transform_indices = @transform_4, window_bounds = array<i64: 256, 512>}, {pipeline_mode = #tpu.pipeline_mode<synchronous>, transform_indices = @transform_5, window_bounds = array<i64: 1, 512>}, {pipeline_mode = #tpu.pipeline_mode<synchronous>, transform_indices = @transform_6, window_bounds = array<i64: 8, 128>}, {pipeline_mode = #tpu.pipeline_mode<synchronous>, transform_indices = @transform_7, window_bounds = array<i64: 8, 128>}, {pipeline_mode = #tpu.pipeline_mode<synchronous>, transform_indices = @transform_8, window_bounds = array<i64: 8, 128>}, {pipeline_mode = #tpu.pipeline_mode<synchronous>, transform_indices = @transform_9, window_bounds = array<i64: 8, 128>}, {pipeline_mode = #tpu.pipeline_mode<synchronous>, transform_indices = @transform_10, window_bounds = array<i64: 128, 640>}, {pipeline_mode = #tpu.pipeline_mode<synchronous>, transform_indices = @transform_11, window_bounds = array<i64: 1, 640>}, {pipeline_mode = #tpu.pipeline_mode<synchronous>, transform_indices = @transform_12, window_bounds = array<i64: 128, 256>}, {pipeline_mode = #tpu.pipeline_mode<synchronous>, transform_indices = @transform_13, window_bounds = array<i64: 1, 256>}, {pipeline_mode = #tpu.pipeline_mode<synchronous>, transform_indices = @transform_14, window_bounds = array<i64: 128, 128>}, {pipeline_mode = #tpu.pipeline_mode<synchronous>, transform_indices = @transform_15, window_bounds = array<i64: 256, 256>}, {pipeline_mode = #tpu.pipeline_mode<synchronous>, transform_indices = @transform_16, window_bounds = array<i64: 64, 128>}, {pipeline_mode = #tpu.pipeline_mode<synchronous>, transform_indices = @transform_17, window_bounds = array<i64: 64, 128>}, {pipeline_mode = #tpu.pipeline_mode<synchronous>, transform_indices = @transform_18, window_bounds = array<i64: 8, 128>}, {pipeline_mode = #tpu.pipeline_mode<synchronous>, transform_indices = @transform_19, window_bounds = array<i64: 8, 128>}, {pipeline_mode = #tpu.pipeline_mode<synchronous>, transform_indices = @transform_20, window_bounds = array<i64: 8, 128>}, {pipeline_mode = #tpu.pipeline_mode<synchronous>, transform_indices = @transform_21, window_bounds = array<i64: 8, 128>}]} {
    %c0 = arith.constant 0 : index
    %c0_0 = arith.constant 0 : index
    %0 = vector.load %arg1[%c0, %c0_0] : memref<64x128xf32, #tpu.memory_space<vmem>>, vector<64x128xf32>
    %1 = arith.truncf %0 : vector<64x128xf32> to vector<64x128xbf16>
    %c0_1 = arith.constant 0 : index
    %c0_2 = arith.constant 0 : index
    %2 = vector.load %arg2[%c0_1, %c0_2] : memref<128x512xbf16, #tpu.memory_space<vmem>>, vector<128x512xbf16>
    %cst = arith.constant dense<0.000000e+00> : vector<64x512xf32>
    %3 = tpu.matmul %1, %2, %cst {dimension_numbers = #tpu.dot_dimension_numbers<[1], [0], [0], [1], [0, 0, 1, 1], [], []>} : vector<64x128xbf16>, vector<128x512xbf16>, vector<64x512xf32> -> vector<64x512xf32>
    %c0_3 = arith.constant 0 : index
    %c0_4 = arith.constant 0 : index
    %4 = vector.load %arg4[%c0_3, %c0_4] : memref<1x512xf32, #tpu.memory_space<vmem>>, vector<1x512xf32>
    %5 = vector.broadcast %4 : vector<1x512xf32> to vector<64x512xf32>
    %6 = arith.addf %3, %5 : vector<64x512xf32>
    %c0_5 = arith.constant 0 : index
    %c0_6 = arith.constant 0 : index
    %7 = vector.load %arg23[%c0_5, %c0_6] : memref<64x512xf32, #tpu.memory_space<vmem>>, vector<64x512xf32>
    tpu.vector_store %arg23[%c0_5, %c0_6], %6 {strides = array<i32>} : memref<64x512xf32, #tpu.memory_space<vmem>>, vector<64x512xf32>,
    %c0_7 = arith.constant 0 : index
    %c0_8 = arith.constant 0 : index
    %8 = vector.load %arg6[%c0_7, %c0_8] : memref<1x512xf32, #tpu.memory_space<vmem>>, vector<1x512xf32>
    %9 = vector.shape_cast %8 : vector<1x512xf32> to vector<1x512xf32>
    %10 = vector.broadcast %9 : vector<1x512xf32> to vector<8x512xf32>
    %c0_9 = arith.constant 0 : index
    %c0_10 = arith.constant 0 : index
    %11 = vector.load %arg7[%c0_9, %c0_10] : memref<8x128xf32, #tpu.memory_space<vmem>>, vector<8x128xf32>
    %c0_11 = arith.constant 0 : index
    %c0_12 = arith.constant 0 : index
    %12 = vector.load %arg8[%c0_11, %c0_12] : memref<8x128xf32, #tpu.memory_space<vmem>>, vector<8x128xf32>
    %c0_13 = arith.constant 0 : index
    %c0_14 = arith.constant 0 : index
    %13 = vector.load %arg9[%c0_13, %c0_14] : memref<8x128xf32, #tpu.memory_space<vmem>>, vector<8x128xf32>
    %c0_15 = arith.constant 0 : index
    %c0_16 = arith.constant 0 : index
    %14 = vector.load %arg10[%c0_15, %c0_16] : memref<8x128xf32, #tpu.memory_space<vmem>>, vector<8x128xf32>
    %c0_17 = arith.constant 0 : index
    %c0_18 = arith.constant 0 : index
    %15 = vector.load %arg23[%c0_17, %c0_18] : memref<64x512xf32, #tpu.memory_space<vmem>>, vector<8x512xf32>
    %16 = arith.truncf %11 : vector<8x128xf32> to vector<8x128xbf16>
    %c0_19 = arith.constant 0 : index
    %c0_20 = arith.constant 0 : index
    %17 = vector.load %arg3[%c0_19, %c0_20] : memref<128x512xbf16, #tpu.memory_space<vmem>>, vector<128x512xbf16>
    %cst_21 = arith.constant dense<0.000000e+00> : vector<8x512xf32>
    %18 = tpu.matmul %16, %17, %cst_21 {dimension_numbers = #tpu.dot_dimension_numbers<[1], [0], [0], [1], [0, 0, 1, 1], [], []>} : vector<8x128xbf16>, vector<128x512xbf16>, vector<8x512xf32> -> vector<8x512xf32>
    %19 = arith.addf %15, %18 : vector<8x512xf32>
    %20 = vector.extract_strided_slice %19 {offsets = [0, 128], sizes = [8, 128], strides = [1, 1]} : vector<8x512xf32> to vector<8x128xf32>
    %cst_22 = arith.constant 5.000000e-01 : f32
    %21 = vector.broadcast %cst_22 : f32 to vector<8x128xf32>
    %22 = arith.mulf %21, %20 : vector<8x128xf32>
    %23 = math.tanh %22 : vector<8x128xf32>
    %cst_23 = arith.constant 5.000000e-01 : f32
    %24 = vector.broadcast %cst_23 : f32 to vector<8x128xf32>
    %25 = arith.mulf %24, %23 : vector<8x128xf32>
    %cst_24 = arith.constant 5.000000e-01 : f32
    %26 = vector.broadcast %cst_24 : f32 to vector<8x128xf32>
    %27 = arith.addf %25, %26 : vector<8x128xf32>
    %28 = arith.mulf %27, %12 : vector<8x128xf32>
    %29 = vector.extract_strided_slice %19 {offsets = [0, 0], sizes = [8, 128], strides = [1, 1]} : vector<8x512xf32> to vector<8x128xf32>
    %cst_25 = arith.constant 5.000000e-01 : f32
    %30 = vector.broadcast %cst_25 : f32 to vector<8x128xf32>
    %31 = arith.mulf %30, %29 : vector<8x128xf32>
    %32 = math.tanh %31 : vector<8x128xf32>
    %cst_26 = arith.constant 5.000000e-01 : f32
    %33 = vector.broadcast %cst_26 : f32 to vector<8x128xf32>
    %34 = arith.mulf %33, %32 : vector<8x128xf32>
    %cst_27 = arith.constant 5.000000e-01 : f32
    %35 = vector.broadcast %cst_27 : f32 to vector<8x128xf32>
    %36 = arith.addf %34, %35 : vector<8x128xf32>
    %37 = vector.extract_strided_slice %19 {offsets = [0, 256], sizes = [8, 128], strides = [1, 1]} : vector<8x512xf32> to vector<8x128xf32>
    %38 = math.tanh %37 : vector<8x128xf32>
    %39 = arith.mulf %36, %38 : vector<8x128xf32>
    %40 = arith.addf %28, %39 : vector<8x128xf32>
    %41 = vector.extract_strided_slice %19 {offsets = [0, 384], sizes = [8, 128], strides = [1, 1]} : vector<8x512xf32> to vector<8x128xf32>
    %cst_28 = arith.constant 5.000000e-01 : f32
    %42 = vector.broadcast %cst_28 : f32 to vector<8x128xf32>
    %43 = arith.mulf %42, %41 : vector<8x128xf32>
    %44 = math.tanh %43 : vector<8x128xf32>
    %cst_29 = arith.constant 5.000000e-01 : f32
    %45 = vector.broadcast %cst_29 : f32 to vector<8x128xf32>
    %46 = arith.mulf %45, %44 : vector<8x128xf32>
    %cst_30 = arith.constant 5.000000e-01 : f32
    %47 = vector.broadcast %cst_30 : f32 to vector<8x128xf32>
    %48 = arith.addf %46, %47 : vector<8x128xf32>
    %49 = math.tanh %40 : vector<8x128xf32>
    %50 = arith.mulf %48, %49 : vector<8x128xf32>
    %51 = tpu.concatenate %50, %13 in 1 : vector<8x128xf32>, vector<8x128xf32> -> vector<8x256xf32>
    %52 = arith.truncf %51 : vector<8x256xf32> to vector<8x256xbf16>
    %c0_31 = arith.constant 0 : index
    %c0_32 = arith.constant 0 : index
    %53 = vector.load %arg5[%c0_31, %c0_32] : memref<256x512xbf16, #tpu.memory_space<vmem>>, vector<256x512xbf16>
    %cst_33 = arith.constant dense<0.000000e+00> : vector<8x512xf32>
    %54 = tpu.matmul %52, %53, %cst_33 {dimension_numbers = #tpu.dot_dimension_numbers<[1], [0], [0], [1], [0, 0, 1, 1], [], []>} : vector<8x256xbf16>, vector<256x512xbf16>, vector<8x512xf32> -> vector<8x512xf32>
    %55 = arith.addf %54, %10 : vector<8x512xf32>
    %56 = vector.extract_strided_slice %55 {offsets = [0, 128], sizes = [8, 128], strides = [1, 1]} : vector<8x512xf32> to vector<8x128xf32>
    %cst_34 = arith.constant 5.000000e-01 : f32
    %57 = vector.broadcast %cst_34 : f32 to vector<8x128xf32>
    %58 = arith.mulf %57, %56 : vector<8x128xf32>
    %59 = math.tanh %58 : vector<8x128xf32>
    %cst_35 = arith.constant 5.000000e-01 : f32
    %60 = vector.broadcast %cst_35 : f32 to vector<8x128xf32>
    %61 = arith.mulf %60, %59 : vector<8x128xf32>
    %cst_36 = arith.constant 5.000000e-01 : f32
    %62 = vector.broadcast %cst_36 : f32 to vector<8x128xf32>
    %63 = arith.addf %61, %62 : vector<8x128xf32>
    %64 = arith.mulf %63, %14 : vector<8x128xf32>
    %65 = vector.extract_strided_slice %55 {offsets = [0, 0], sizes = [8, 128], strides = [1, 1]} : vector<8x512xf32> to vector<8x128xf32>
    %cst_37 = arith.constant 5.000000e-01 : f32
    %66 = vector.broadcast %cst_37 : f32 to vector<8x128xf32>
    %67 = arith.mulf %66, %65 : vector<8x128xf32>
    %68 = math.tanh %67 : vector<8x128xf32>
    %cst_38 = arith.constant 5.000000e-01 : f32
    %69 = vector.broadcast %cst_38 : f32 to vector<8x128xf32>
    %70 = arith.mulf %69, %68 : vector<8x128xf32>
    %cst_39 = arith.constant 5.000000e-01 : f32
    %71 = vector.broadcast %cst_39 : f32 to vector<8x128xf32>
    %72 = arith.addf %70, %71 : vector<8x128xf32>
    %73 = vector.extract_strided_slice %55 {offsets = [0, 256], sizes = [8, 128], strides = [1, 1]} : vector<8x512xf32> to vector<8x128xf32>
    %74 = math.tanh %73 : vector<8x128xf32>
    %75 = arith.mulf %72, %74 : vector<8x128xf32>
    %76 = arith.addf %64, %75 : vector<8x128xf32>
    %77 = vector.extract_strided_slice %55 {offsets = [0, 384], sizes = [8, 128], strides = [1, 1]} : vector<8x512xf32> to vector<8x128xf32>
    %cst_40 = arith.constant 5.000000e-01 : f32
    %78 = vector.broadcast %cst_40 : f32 to vector<8x128xf32>
    %79 = arith.mulf %78, %77 : vector<8x128xf32>
    %80 = math.tanh %79 : vector<8x128xf32>
    %cst_41 = arith.constant 5.000000e-01 : f32
    %81 = vector.broadcast %cst_41 : f32 to vector<8x128xf32>
    %82 = arith.mulf %81, %80 : vector<8x128xf32>
    %cst_42 = arith.constant 5.000000e-01 : f32
    %83 = vector.broadcast %cst_42 : f32 to vector<8x128xf32>
    %84 = arith.addf %82, %83 : vector<8x128xf32>
    %85 = math.tanh %76 : vector<8x128xf32>
    %86 = arith.mulf %84, %85 : vector<8x128xf32>
    %c0_43 = arith.constant 0 : index
    %c0_44 = arith.constant 0 : index
    %87 = vector.load %arg24[%c0_43, %c0_44] : memref<64x128xf32, #tpu.memory_space<vmem>>, vector<8x128xf32>
    tpu.vector_store %arg24[%c0_43, %c0_44], %86 {strides = array<i32>} : memref<64x128xf32, #tpu.memory_space<vmem>>, vector<8x128xf32>,
    %c8 = arith.constant 8 : index
    %c0_45 = arith.constant 0 : index
    %88 = vector.load %arg23[%c8, %c0_45] : memref<64x512xf32, #tpu.memory_space<vmem>>, vector<8x512xf32>
    %89 = arith.truncf %50 : vector<8x128xf32> to vector<8x128xbf16>
    %c0_46 = arith.constant 0 : index
    %c0_47 = arith.constant 0 : index
    %90 = vector.load %arg3[%c0_46, %c0_47] : memref<128x512xbf16, #tpu.memory_space<vmem>>, vector<128x512xbf16>
    %cst_48 = arith.constant dense<0.000000e+00> : vector<8x512xf32>
    %91 = tpu.matmul %89, %90, %cst_48 {dimension_numbers = #tpu.dot_dimension_numbers<[1], [0], [0], [1], [0, 0, 1, 1], [], []>} : vector<8x128xbf16>, vector<128x512xbf16>, vector<8x512xf32> -> vector<8x512xf32>
    %92 = arith.addf %88, %91 : vector<8x512xf32>
    %93 = vector.extract_strided_slice %92 {offsets = [0, 128], sizes = [8, 128], strides = [1, 1]} : vector<8x512xf32> to vector<8x128xf32>
    %cst_49 = arith.constant 5.000000e-01 : f32
    %94 = vector.broadcast %cst_49 : f32 to vector<8x128xf32>
    %95 = arith.mulf %94, %93 : vector<8x128xf32>
    %96 = math.tanh %95 : vector<8x128xf32>
    %cst_50 = arith.constant 5.000000e-01 : f32
    %97 = vector.broadcast %cst_50 : f32 to vector<8x128xf32>
    %98 = arith.mulf %97, %96 : vector<8x128xf32>
    %cst_51 = arith.constant 5.000000e-01 : f32
    %99 = vector.broadcast %cst_51 : f32 to vector<8x128xf32>
    %100 = arith.addf %98, %99 : vector<8x128xf32>
    %101 = arith.mulf %100, %40 : vector<8x128xf32>
    %102 = vector.extract_strided_slice %92 {offsets = [0, 0], sizes = [8, 128], strides = [1, 1]} : vector<8x512xf32> to vector<8x128xf32>
    %cst_52 = arith.constant 5.000000e-01 : f32
    %103 = vector.broadcast %cst_52 : f32 to vector<8x128xf32>
    %104 = arith.mulf %103, %102 : vector<8x128xf32>
    %105 = math.tanh %104 : vector<8x128xf32>
    %cst_53 = arith.constant 5.000000e-01 : f32
    %106 = vector.broadcast %cst_53 : f32 to vector<8x128xf32>
    %107 = arith.mulf %106, %105 : vector<8x128xf32>
    %cst_54 = arith.constant 5.000000e-01 : f32
    %108 = vector.broadcast %cst_54 : f32 to vector<8x128xf32>
    %109 = arith.addf %107, %108 : vector<8x128xf32>
    %110 = vector.extract_strided_slice %92 {offsets = [0, 256], sizes = [8, 128], strides = [1, 1]} : vector<8x512xf32> to vector<8x128xf32>
    %111 = math.tanh %110 : vector<8x128xf32>
    %112 = arith.mulf %109, %111 : vector<8x128xf32>
    %113 = arith.addf %101, %112 : vector<8x128xf32>
    %114 = vector.extract_strided_slice %92 {offsets = [0, 384], sizes = [8, 128], strides = [1, 1]} : vector<8x512xf32> to vector<8x128xf32>
    %cst_55 = arith.constant 5.000000e-01 : f32
    %115 = vector.broadcast %cst_55 : f32 to vector<8x128xf32>
    %116 = arith.mulf %115, %114 : vector<8x128xf32>
    %117 = math.tanh %116 : vector<8x128xf32>
    %cst_56 = arith.constant 5.000000e-01 : f32
    %118 = vector.broadcast %cst_56 : f32 to vector<8x128xf32>
    %119 = arith.mulf %118, %117 : vector<8x128xf32>
    %cst_57 = arith.constant 5.000000e-01 : f32
    %120 = vector.broadcast %cst_57 : f32 to vector<8x128xf32>
    %121 = arith.addf %119, %120 : vector<8x128xf32>
    %122 = math.tanh %113 : vector<8x128xf32>
    %123 = arith.mulf %121, %122 : vector<8x128xf32>
    %124 = tpu.concatenate %123, %86 in 1 : vector<8x128xf32>, vector<8x128xf32> -> vector<8x256xf32>
    %125 = arith.truncf %124 : vector<8x256xf32> to vector<8x256xbf16>
    %c0_58 = arith.constant 0 : index
    %c0_59 = arith.constant 0 : index
    %126 = vector.load %arg5[%c0_58, %c0_59] : memref<256x512xbf16, #tpu.memory_space<vmem>>, vector<256x512xbf16>
    %cst_60 = arith.constant dense<0.000000e+00> : vector<8x512xf32>
    %127 = tpu.matmul %125, %126, %cst_60 {dimension_numbers = #tpu.dot_dimension_numbers<[1], [0], [0], [1], [0, 0, 1, 1], [], []>} : vector<8x256xbf16>, vector<256x512xbf16>, vector<8x512xf32> -> vector<8x512xf32>
    %128 = arith.addf %127, %10 : vector<8x512xf32>
    %129 = vector.extract_strided_slice %128 {offsets = [0, 128], sizes = [8, 128], strides = [1, 1]} : vector<8x512xf32> to vector<8x128xf32>
    %cst_61 = arith.constant 5.000000e-01 : f32
    %130 = vector.broadcast %cst_61 : f32 to vector<8x128xf32>
    %131 = arith.mulf %130, %129 : vector<8x128xf32>
    %132 = math.tanh %131 : vector<8x128xf32>
    %cst_62 = arith.constant 5.000000e-01 : f32
    %133 = vector.broadcast %cst_62 : f32 to vector<8x128xf32>
    %134 = arith.mulf %133, %132 : vector<8x128xf32>
    %cst_63 = arith.constant 5.000000e-01 : f32
    %135 = vector.broadcast %cst_63 : f32 to vector<8x128xf32>
    %136 = arith.addf %134, %135 : vector<8x128xf32>
    %137 = arith.mulf %136, %76 : vector<8x128xf32>
    %138 = vector.extract_strided_slice %128 {offsets = [0, 0], sizes = [8, 128], strides = [1, 1]} : vector<8x512xf32> to vector<8x128xf32>
    %cst_64 = arith.constant 5.000000e-01 : f32
    %139 = vector.broadcast %cst_64 : f32 to vector<8x128xf32>
    %140 = arith.mulf %139, %138 : vector<8x128xf32>
    %141 = math.tanh %140 : vector<8x128xf32>
    %cst_65 = arith.constant 5.000000e-01 : f32
    %142 = vector.broadcast %cst_65 : f32 to vector<8x128xf32>
    %143 = arith.mulf %142, %141 : vector<8x128xf32>
    %cst_66 = arith.constant 5.000000e-01 : f32
    %144 = vector.broadcast %cst_66 : f32 to vector<8x128xf32>
    %145 = arith.addf %143, %144 : vector<8x128xf32>
    %146 = vector.extract_strided_slice %128 {offsets = [0, 256], sizes = [8, 128], strides = [1, 1]} : vector<8x512xf32> to vector<8x128xf32>
    %147 = math.tanh %146 : vector<8x128xf32>
    %148 = arith.mulf %145, %147 : vector<8x128xf32>
    %149 = arith.addf %137, %148 : vector<8x128xf32>
    %150 = vector.extract_strided_slice %128 {offsets = [0, 384], sizes = [8, 128], strides = [1, 1]} : vector<8x512xf32> to vector<8x128xf32>
    %cst_67 = arith.constant 5.000000e-01 : f32
    %151 = vector.broadcast %cst_67 : f32 to vector<8x128xf32>
    %152 = arith.mulf %151, %150 : vector<8x128xf32>
    %153 = math.tanh %152 : vector<8x128xf32>
    %cst_68 = arith.constant 5.000000e-01 : f32
    %154 = vector.broadcast %cst_68 : f32 to vector<8x128xf32>
    %155 = arith.mulf %154, %153 : vector<8x128xf32>
    %cst_69 = arith.constant 5.000000e-01 : f32
    %156 = vector.broadcast %cst_69 : f32 to vector<8x128xf32>
    %157 = arith.addf %155, %156 : vector<8x128xf32>
    %158 = math.tanh %149 : vector<8x128xf32>
    %159 = arith.mulf %157, %158 : vector<8x128xf32>
    %c8_70 = arith.constant 8 : index
    %c0_71 = arith.constant 0 : index
    %160 = vector.load %arg24[%c8_70, %c0_71] : memref<64x128xf32, #tpu.memory_space<vmem>>, vector<8x128xf32>
    tpu.vector_store %arg24[%c8_70, %c0_71], %159 {strides = array<i32>} : memref<64x128xf32, #tpu.memory_space<vmem>>, vector<8x128xf32>,
    %c16 = arith.constant 16 : index
    %c0_72 = arith.constant 0 : index
    %161 = vector.load %arg23[%c16, %c0_72] : memref<64x512xf32, #tpu.memory_space<vmem>>, vector<8x512xf32>
    %162 = arith.truncf %123 : vector<8x128xf32> to vector<8x128xbf16>
    %c0_73 = arith.constant 0 : index
    %c0_74 = arith.constant 0 : index
    %163 = vector.load %arg3[%c0_73, %c0_74] : memref<128x512xbf16, #tpu.memory_space<vmem>>, vector<128x512xbf16>
    %cst_75 = arith.constant dense<0.000000e+00> : vector<8x512xf32>
    %164 = tpu.matmul %162, %163, %cst_75 {dimension_numbers = #tpu.dot_dimension_numbers<[1], [0], [0], [1], [0, 0, 1, 1], [], []>} : vector<8x128xbf16>, vector<128x512xbf16>, vector<8x512xf32> -> vector<8x512xf32>
    %165 = arith.addf %161, %164 : vector<8x512xf32>
    %166 = vector.extract_strided_slice %165 {offsets = [0, 128], sizes = [8, 128], strides = [1, 1]} : vector<8x512xf32> to vector<8x128xf32>
    %cst_76 = arith.constant 5.000000e-01 : f32
    %167 = vector.broadcast %cst_76 : f32 to vector<8x128xf32>
    %168 = arith.mulf %167, %166 : vector<8x128xf32>
    %169 = math.tanh %168 : vector<8x128xf32>
    %cst_77 = arith.constant 5.000000e-01 : f32
    %170 = vector.broadcast %cst_77 : f32 to vector<8x128xf32>
    %171 = arith.mulf %170, %169 : vector<8x128xf32>
    %cst_78 = arith.constant 5.000000e-01 : f32
    %172 = vector.broadcast %cst_78 : f32 to vector<8x128xf32>
    %173 = arith.addf %171, %172 : vector<8x128xf32>
    %174 = arith.mulf %173, %113 : vector<8x128xf32>
    %175 = vector.extract_strided_slice %165 {offsets = [0, 0], sizes = [8, 128], strides = [1, 1]} : vector<8x512xf32> to vector<8x128xf32>
    %cst_79 = arith.constant 5.000000e-01 : f32
    %176 = vector.broadcast %cst_79 : f32 to vector<8x128xf32>
    %177 = arith.mulf %176, %175 : vector<8x128xf32>
    %178 = math.tanh %177 : vector<8x128xf32>
    %cst_80 = arith.constant 5.000000e-01 : f32
    %179 = vector.broadcast %cst_80 : f32 to vector<8x128xf32>
    %180 = arith.mulf %179, %178 : vector<8x128xf32>
    %cst_81 = arith.constant 5.000000e-01 : f32
    %181 = vector.broadcast %cst_81 : f32 to vector<8x128xf32>
    %182 = arith.addf %180, %181 : vector<8x128xf32>
    %183 = vector.extract_strided_slice %165 {offsets = [0, 256], sizes = [8, 128], strides = [1, 1]} : vector<8x512xf32> to vector<8x128xf32>
    %184 = math.tanh %183 : vector<8x128xf32>
    %185 = arith.mulf %182, %184 : vector<8x128xf32>
    %186 = arith.addf %174, %185 : vector<8x128xf32>
    %187 = vector.extract_strided_slice %165 {offsets = [0, 384], sizes = [8, 128], strides = [1, 1]} : vector<8x512xf32> to vector<8x128xf32>
    %cst_82 = arith.constant 5.000000e-01 : f32
    %188 = vector.broadcast %cst_82 : f32 to vector<8x128xf32>
    %189 = arith.mulf %188, %187 : vector<8x128xf32>
    %190 = math.tanh %189 : vector<8x128xf32>
    %cst_83 = arith.constant 5.000000e-01 : f32
    %191 = vector.broadcast %cst_83 : f32 to vector<8x128xf32>
    %192 = arith.mulf %191, %190 : vector<8x128xf32>
    %cst_84 = arith.constant 5.000000e-01 : f32
    %193 = vector.broadcast %cst_84 : f32 to vector<8x128xf32>
    %194 = arith.addf %192, %193 : vector<8x128xf32>
    %195 = math.tanh %186 : vector<8x128xf32>
    %196 = arith.mulf %194, %195 : vector<8x128xf32>
    %197 = tpu.concatenate %196, %159 in 1 : vector<8x128xf32>, vector<8x128xf32> -> vector<8x256xf32>
    %198 = arith.truncf %197 : vector<8x256xf32> to vector<8x256xbf16>
    %c0_85 = arith.constant 0 : index
    %c0_86 = arith.constant 0 : index
    %199 = vector.load %arg5[%c0_85, %c0_86] : memref<256x512xbf16, #tpu.memory_space<vmem>>, vector<256x512xbf16>
    %cst_87 = arith.constant dense<0.000000e+00> : vector<8x512xf32>
    %200 = tpu.matmul %198, %199, %cst_87 {dimension_numbers = #tpu.dot_dimension_numbers<[1], [0], [0], [1], [0, 0, 1, 1], [], []>} : vector<8x256xbf16>, vector<256x512xbf16>, vector<8x512xf32> -> vector<8x512xf32>
    %201 = arith.addf %200, %10 : vector<8x512xf32>
    %202 = vector.extract_strided_slice %201 {offsets = [0, 128], sizes = [8, 128], strides = [1, 1]} : vector<8x512xf32> to vector<8x128xf32>
    %cst_88 = arith.constant 5.000000e-01 : f32
    %203 = vector.broadcast %cst_88 : f32 to vector<8x128xf32>
    %204 = arith.mulf %203, %202 : vector<8x128xf32>
    %205 = math.tanh %204 : vector<8x128xf32>
    %cst_89 = arith.constant 5.000000e-01 : f32
    %206 = vector.broadcast %cst_89 : f32 to vector<8x128xf32>
    %207 = arith.mulf %206, %205 : vector<8x128xf32>
    %cst_90 = arith.constant 5.000000e-01 : f32
    %208 = vector.broadcast %cst_90 : f32 to vector<8x128xf32>
    %209 = arith.addf %207, %208 : vector<8x128xf32>
    %210 = arith.mulf %209, %149 : vector<8x128xf32>
    %211 = vector.extract_strided_slice %201 {offsets = [0, 0], sizes = [8, 128], strides = [1, 1]} : vector<8x512xf32> to vector<8x128xf32>
    %cst_91 = arith.constant 5.000000e-01 : f32
    %212 = vector.broadcast %cst_91 : f32 to vector<8x128xf32>
    %213 = arith.mulf %212, %211 : vector<8x128xf32>
    %214 = math.tanh %213 : vector<8x128xf32>
    %cst_92 = arith.constant 5.000000e-01 : f32
    %215 = vector.broadcast %cst_92 : f32 to vector<8x128xf32>
    %216 = arith.mulf %215, %214 : vector<8x128xf32>
    %cst_93 = arith.constant 5.000000e-01 : f32
    %217 = vector.broadcast %cst_93 : f32 to vector<8x128xf32>
    %218 = arith.addf %216, %217 : vector<8x128xf32>
    %219 = vector.extract_strided_slice %201 {offsets = [0, 256], sizes = [8, 128], strides = [1, 1]} : vector<8x512xf32> to vector<8x128xf32>
    %220 = math.tanh %219 : vector<8x128xf32>
    %221 = arith.mulf %218, %220 : vector<8x128xf32>
    %222 = arith.addf %210, %221 : vector<8x128xf32>
    %223 = vector.extract_strided_slice %201 {offsets = [0, 384], sizes = [8, 128], strides = [1, 1]} : vector<8x512xf32> to vector<8x128xf32>
    %cst_94 = arith.constant 5.000000e-01 : f32
    %224 = vector.broadcast %cst_94 : f32 to vector<8x128xf32>
    %225 = arith.mulf %224, %223 : vector<8x128xf32>
    %226 = math.tanh %225 : vector<8x128xf32>
    %cst_95 = arith.constant 5.000000e-01 : f32
    %227 = vector.broadcast %cst_95 : f32 to vector<8x128xf32>
    %228 = arith.mulf %227, %226 : vector<8x128xf32>
    %cst_96 = arith.constant 5.000000e-01 : f32
    %229 = vector.broadcast %cst_96 : f32 to vector<8x128xf32>
    %230 = arith.addf %228, %229 : vector<8x128xf32>
    %231 = math.tanh %222 : vector<8x128xf32>
    %232 = arith.mulf %230, %231 : vector<8x128xf32>
    %c16_97 = arith.constant 16 : index
    %c0_98 = arith.constant 0 : index
    %233 = vector.load %arg24[%c16_97, %c0_98] : memref<64x128xf32, #tpu.memory_space<vmem>>, vector<8x128xf32>
    tpu.vector_store %arg24[%c16_97, %c0_98], %232 {strides = array<i32>} : memref<64x128xf32, #tpu.memory_space<vmem>>, vector<8x128xf32>,
    %c24 = arith.constant 24 : index
    %c0_99 = arith.constant 0 : index
    %234 = vector.load %arg23[%c24, %c0_99] : memref<64x512xf32, #tpu.memory_space<vmem>>, vector<8x512xf32>
    %235 = arith.truncf %196 : vector<8x128xf32> to vector<8x128xbf16>
    %c0_100 = arith.constant 0 : index
    %c0_101 = arith.constant 0 : index
    %236 = vector.load %arg3[%c0_100, %c0_101] : memref<128x512xbf16, #tpu.memory_space<vmem>>, vector<128x512xbf16>
    %cst_102 = arith.constant dense<0.000000e+00> : vector<8x512xf32>
    %237 = tpu.matmul %235, %236, %cst_102 {dimension_numbers = #tpu.dot_dimension_numbers<[1], [0], [0], [1], [0, 0, 1, 1], [], []>} : vector<8x128xbf16>, vector<128x512xbf16>, vector<8x512xf32> -> vector<8x512xf32>
    %238 = arith.addf %234, %237 : vector<8x512xf32>
    %239 = vector.extract_strided_slice %238 {offsets = [0, 128], sizes = [8, 128], strides = [1, 1]} : vector<8x512xf32> to vector<8x128xf32>
    %cst_103 = arith.constant 5.000000e-01 : f32
    %240 = vector.broadcast %cst_103 : f32 to vector<8x128xf32>
    %241 = arith.mulf %240, %239 : vector<8x128xf32>
    %242 = math.tanh %241 : vector<8x128xf32>
    %cst_104 = arith.constant 5.000000e-01 : f32
    %243 = vector.broadcast %cst_104 : f32 to vector<8x128xf32>
    %244 = arith.mulf %243, %242 : vector<8x128xf32>
    %cst_105 = arith.constant 5.000000e-01 : f32
    %245 = vector.broadcast %cst_105 : f32 to vector<8x128xf32>
    %246 = arith.addf %244, %245 : vector<8x128xf32>
    %247 = arith.mulf %246, %186 : vector<8x128xf32>
    %248 = vector.extract_strided_slice %238 {offsets = [0, 0], sizes = [8, 128], strides = [1, 1]} : vector<8x512xf32> to vector<8x128xf32>
    %cst_106 = arith.constant 5.000000e-01 : f32
    %249 = vector.broadcast %cst_106 : f32 to vector<8x128xf32>
    %250 = arith.mulf %249, %248 : vector<8x128xf32>
    %251 = math.tanh %250 : vector<8x128xf32>
    %cst_107 = arith.constant 5.000000e-01 : f32
    %252 = vector.broadcast %cst_107 : f32 to vector<8x128xf32>
    %253 = arith.mulf %252, %251 : vector<8x128xf32>
    %cst_108 = arith.constant 5.000000e-01 : f32
    %254 = vector.broadcast %cst_108 : f32 to vector<8x128xf32>
    %255 = arith.addf %253, %254 : vector<8x128xf32>
    %256 = vector.extract_strided_slice %238 {offsets = [0, 256], sizes = [8, 128], strides = [1, 1]} : vector<8x512xf32> to vector<8x128xf32>
    %257 = math.tanh %256 : vector<8x128xf32>
    %258 = arith.mulf %255, %257 : vector<8x128xf32>
    %259 = arith.addf %247, %258 : vector<8x128xf32>
    %260 = vector.extract_strided_slice %238 {offsets = [0, 384], sizes = [8, 128], strides = [1, 1]} : vector<8x512xf32> to vector<8x128xf32>
    %cst_109 = arith.constant 5.000000e-01 : f32
    %261 = vector.broadcast %cst_109 : f32 to vector<8x128xf32>
    %262 = arith.mulf %261, %260 : vector<8x128xf32>
    %263 = math.tanh %262 : vector<8x128xf32>
    %cst_110 = arith.constant 5.000000e-01 : f32
    %264 = vector.broadcast %cst_110 : f32 to vector<8x128xf32>
    %265 = arith.mulf %264, %263 : vector<8x128xf32>
    %cst_111 = arith.constant 5.000000e-01 : f32
    %266 = vector.broadcast %cst_111 : f32 to vector<8x128xf32>
    %267 = arith.addf %265, %266 : vector<8x128xf32>
    %268 = math.tanh %259 : vector<8x128xf32>
    %269 = arith.mulf %267, %268 : vector<8x128xf32>
    %270 = tpu.concatenate %269, %232 in 1 : vector<8x128xf32>, vector<8x128xf32> -> vector<8x256xf32>
    %271 = arith.truncf %270 : vector<8x256xf32> to vector<8x256xbf16>
    %c0_112 = arith.constant 0 : index
    %c0_113 = arith.constant 0 : index
    %272 = vector.load %arg5[%c0_112, %c0_113] : memref<256x512xbf16, #tpu.memory_space<vmem>>, vector<256x512xbf16>
    %cst_114 = arith.constant dense<0.000000e+00> : vector<8x512xf32>
    %273 = tpu.matmul %271, %272, %cst_114 {dimension_numbers = #tpu.dot_dimension_numbers<[1], [0], [0], [1], [0, 0, 1, 1], [], []>} : vector<8x256xbf16>, vector<256x512xbf16>, vector<8x512xf32> -> vector<8x512xf32>
    %274 = arith.addf %273, %10 : vector<8x512xf32>
    %275 = vector.extract_strided_slice %274 {offsets = [0, 128], sizes = [8, 128], strides = [1, 1]} : vector<8x512xf32> to vector<8x128xf32>
    %cst_115 = arith.constant 5.000000e-01 : f32
    %276 = vector.broadcast %cst_115 : f32 to vector<8x128xf32>
    %277 = arith.mulf %276, %275 : vector<8x128xf32>
    %278 = math.tanh %277 : vector<8x128xf32>
    %cst_116 = arith.constant 5.000000e-01 : f32
    %279 = vector.broadcast %cst_116 : f32 to vector<8x128xf32>
    %280 = arith.mulf %279, %278 : vector<8x128xf32>
    %cst_117 = arith.constant 5.000000e-01 : f32
    %281 = vector.broadcast %cst_117 : f32 to vector<8x128xf32>
    %282 = arith.addf %280, %281 : vector<8x128xf32>
    %283 = arith.mulf %282, %222 : vector<8x128xf32>
    %284 = vector.extract_strided_slice %274 {offsets = [0, 0], sizes = [8, 128], strides = [1, 1]} : vector<8x512xf32> to vector<8x128xf32>
    %cst_118 = arith.constant 5.000000e-01 : f32
    %285 = vector.broadcast %cst_118 : f32 to vector<8x128xf32>
    %286 = arith.mulf %285, %284 : vector<8x128xf32>
    %287 = math.tanh %286 : vector<8x128xf32>
    %cst_119 = arith.constant 5.000000e-01 : f32
    %288 = vector.broadcast %cst_119 : f32 to vector<8x128xf32>
    %289 = arith.mulf %288, %287 : vector<8x128xf32>
    %cst_120 = arith.constant 5.000000e-01 : f32
    %290 = vector.broadcast %cst_120 : f32 to vector<8x128xf32>
    %291 = arith.addf %289, %290 : vector<8x128xf32>
    %292 = vector.extract_strided_slice %274 {offsets = [0, 256], sizes = [8, 128], strides = [1, 1]} : vector<8x512xf32> to vector<8x128xf32>
    %293 = math.tanh %292 : vector<8x128xf32>
    %294 = arith.mulf %291, %293 : vector<8x128xf32>
    %295 = arith.addf %283, %294 : vector<8x128xf32>
    %296 = vector.extract_strided_slice %274 {offsets = [0, 384], sizes = [8, 128], strides = [1, 1]} : vector<8x512xf32> to vector<8x128xf32>
    %cst_121 = arith.constant 5.000000e-01 : f32
    %297 = vector.broadcast %cst_121 : f32 to vector<8x128xf32>
    %298 = arith.mulf %297, %296 : vector<8x128xf32>
    %299 = math.tanh %298 : vector<8x128xf32>
    %cst_122 = arith.constant 5.000000e-01 : f32
    %300 = vector.broadcast %cst_122 : f32 to vector<8x128xf32>
    %301 = arith.mulf %300, %299 : vector<8x128xf32>
    %cst_123 = arith.constant 5.000000e-01 : f32
    %302 = vector.broadcast %cst_123 : f32 to vector<8x128xf32>
    %303 = arith.addf %301, %302 : vector<8x128xf32>
    %304 = math.tanh %295 : vector<8x128xf32>
    %305 = arith.mulf %303, %304 : vector<8x128xf32>
    %c24_124 = arith.constant 24 : index
    %c0_125 = arith.constant 0 : index
    %306 = vector.load %arg24[%c24_124, %c0_125] : memref<64x128xf32, #tpu.memory_space<vmem>>, vector<8x128xf32>
    tpu.vector_store %arg24[%c24_124, %c0_125], %305 {strides = array<i32>} : memref<64x128xf32, #tpu.memory_space<vmem>>, vector<8x128xf32>,
    %c32 = arith.constant 32 : index
    %c0_126 = arith.constant 0 : index
    %307 = vector.load %arg23[%c32, %c0_126] : memref<64x512xf32, #tpu.memory_space<vmem>>, vector<8x512xf32>
    %308 = arith.truncf %269 : vector<8x128xf32> to vector<8x128xbf16>
    %c0_127 = arith.constant 0 : index
    %c0_128 = arith.constant 0 : index
    %309 = vector.load %arg3[%c0_127, %c0_128] : memref<128x512xbf16, #tpu.memory_space<vmem>>, vector<128x512xbf16>
    %cst_129 = arith.constant dense<0.000000e+00> : vector<8x512xf32>
    %310 = tpu.matmul %308, %309, %cst_129 {dimension_numbers = #tpu.dot_dimension_numbers<[1], [0], [0], [1], [0, 0, 1, 1], [], []>} : vector<8x128xbf16>, vector<128x512xbf16>, vector<8x512xf32> -> vector<8x512xf32>
    %311 = arith.addf %307, %310 : vector<8x512xf32>
    %312 = vector.extract_strided_slice %311 {offsets = [0, 128], sizes = [8, 128], strides = [1, 1]} : vector<8x512xf32> to vector<8x128xf32>
    %cst_130 = arith.constant 5.000000e-01 : f32
    %313 = vector.broadcast %cst_130 : f32 to vector<8x128xf32>
    %314 = arith.mulf %313, %312 : vector<8x128xf32>
    %315 = math.tanh %314 : vector<8x128xf32>
    %cst_131 = arith.constant 5.000000e-01 : f32
    %316 = vector.broadcast %cst_131 : f32 to vector<8x128xf32>
    %317 = arith.mulf %316, %315 : vector<8x128xf32>
    %cst_132 = arith.constant 5.000000e-01 : f32
    %318 = vector.broadcast %cst_132 : f32 to vector<8x128xf32>
    %319 = arith.addf %317, %318 : vector<8x128xf32>
    %320 = arith.mulf %319, %259 : vector<8x128xf32>
    %321 = vector.extract_strided_slice %311 {offsets = [0, 0], sizes = [8, 128], strides = [1, 1]} : vector<8x512xf32> to vector<8x128xf32>
    %cst_133 = arith.constant 5.000000e-01 : f32
    %322 = vector.broadcast %cst_133 : f32 to vector<8x128xf32>
    %323 = arith.mulf %322, %321 : vector<8x128xf32>
    %324 = math.tanh %323 : vector<8x128xf32>
    %cst_134 = arith.constant 5.000000e-01 : f32
    %325 = vector.broadcast %cst_134 : f32 to vector<8x128xf32>
    %326 = arith.mulf %325, %324 : vector<8x128xf32>
    %cst_135 = arith.constant 5.000000e-01 : f32
    %327 = vector.broadcast %cst_135 : f32 to vector<8x128xf32>
    %328 = arith.addf %326, %327 : vector<8x128xf32>
    %329 = vector.extract_strided_slice %311 {offsets = [0, 256], sizes = [8, 128], strides = [1, 1]} : vector<8x512xf32> to vector<8x128xf32>
    %330 = math.tanh %329 : vector<8x128xf32>
    %331 = arith.mulf %328, %330 : vector<8x128xf32>
    %332 = arith.addf %320, %331 : vector<8x128xf32>
    %333 = vector.extract_strided_slice %311 {offsets = [0, 384], sizes = [8, 128], strides = [1, 1]} : vector<8x512xf32> to vector<8x128xf32>
    %cst_136 = arith.constant 5.000000e-01 : f32
    %334 = vector.broadcast %cst_136 : f32 to vector<8x128xf32>
    %335 = arith.mulf %334, %333 : vector<8x128xf32>
    %336 = math.tanh %335 : vector<8x128xf32>
    %cst_137 = arith.constant 5.000000e-01 : f32
    %337 = vector.broadcast %cst_137 : f32 to vector<8x128xf32>
    %338 = arith.mulf %337, %336 : vector<8x128xf32>
    %cst_138 = arith.constant 5.000000e-01 : f32
    %339 = vector.broadcast %cst_138 : f32 to vector<8x128xf32>
    %340 = arith.addf %338, %339 : vector<8x128xf32>
    %341 = math.tanh %332 : vector<8x128xf32>
    %342 = arith.mulf %340, %341 : vector<8x128xf32>
    %343 = tpu.concatenate %342, %305 in 1 : vector<8x128xf32>, vector<8x128xf32> -> vector<8x256xf32>
    %344 = arith.truncf %343 : vector<8x256xf32> to vector<8x256xbf16>
    %c0_139 = arith.constant 0 : index
    %c0_140 = arith.constant 0 : index
    %345 = vector.load %arg5[%c0_139, %c0_140] : memref<256x512xbf16, #tpu.memory_space<vmem>>, vector<256x512xbf16>
    %cst_141 = arith.constant dense<0.000000e+00> : vector<8x512xf32>
    %346 = tpu.matmul %344, %345, %cst_141 {dimension_numbers = #tpu.dot_dimension_numbers<[1], [0], [0], [1], [0, 0, 1, 1], [], []>} : vector<8x256xbf16>, vector<256x512xbf16>, vector<8x512xf32> -> vector<8x512xf32>
    %347 = arith.addf %346, %10 : vector<8x512xf32>
    %348 = vector.extract_strided_slice %347 {offsets = [0, 128], sizes = [8, 128], strides = [1, 1]} : vector<8x512xf32> to vector<8x128xf32>
    %cst_142 = arith.constant 5.000000e-01 : f32
    %349 = vector.broadcast %cst_142 : f32 to vector<8x128xf32>
    %350 = arith.mulf %349, %348 : vector<8x128xf32>
    %351 = math.tanh %350 : vector<8x128xf32>
    %cst_143 = arith.constant 5.000000e-01 : f32
    %352 = vector.broadcast %cst_143 : f32 to vector<8x128xf32>
    %353 = arith.mulf %352, %351 : vector<8x128xf32>
    %cst_144 = arith.constant 5.000000e-01 : f32
    %354 = vector.broadcast %cst_144 : f32 to vector<8x128xf32>
    %355 = arith.addf %353, %354 : vector<8x128xf32>
    %356 = arith.mulf %355, %295 : vector<8x128xf32>
    %357 = vector.extract_strided_slice %347 {offsets = [0, 0], sizes = [8, 128], strides = [1, 1]} : vector<8x512xf32> to vector<8x128xf32>
    %cst_145 = arith.constant 5.000000e-01 : f32
    %358 = vector.broadcast %cst_145 : f32 to vector<8x128xf32>
    %359 = arith.mulf %358, %357 : vector<8x128xf32>
    %360 = math.tanh %359 : vector<8x128xf32>
    %cst_146 = arith.constant 5.000000e-01 : f32
    %361 = vector.broadcast %cst_146 : f32 to vector<8x128xf32>
    %362 = arith.mulf %361, %360 : vector<8x128xf32>
    %cst_147 = arith.constant 5.000000e-01 : f32
    %363 = vector.broadcast %cst_147 : f32 to vector<8x128xf32>
    %364 = arith.addf %362, %363 : vector<8x128xf32>
    %365 = vector.extract_strided_slice %347 {offsets = [0, 256], sizes = [8, 128], strides = [1, 1]} : vector<8x512xf32> to vector<8x128xf32>
    %366 = math.tanh %365 : vector<8x128xf32>
    %367 = arith.mulf %364, %366 : vector<8x128xf32>
    %368 = arith.addf %356, %367 : vector<8x128xf32>
    %369 = vector.extract_strided_slice %347 {offsets = [0, 384], sizes = [8, 128], strides = [1, 1]} : vector<8x512xf32> to vector<8x128xf32>
    %cst_148 = arith.constant 5.000000e-01 : f32
    %370 = vector.broadcast %cst_148 : f32 to vector<8x128xf32>
    %371 = arith.mulf %370, %369 : vector<8x128xf32>
    %372 = math.tanh %371 : vector<8x128xf32>
    %cst_149 = arith.constant 5.000000e-01 : f32
    %373 = vector.broadcast %cst_149 : f32 to vector<8x128xf32>
    %374 = arith.mulf %373, %372 : vector<8x128xf32>
    %cst_150 = arith.constant 5.000000e-01 : f32
    %375 = vector.broadcast %cst_150 : f32 to vector<8x128xf32>
    %376 = arith.addf %374, %375 : vector<8x128xf32>
    %377 = math.tanh %368 : vector<8x128xf32>
    %378 = arith.mulf %376, %377 : vector<8x128xf32>
    %c32_151 = arith.constant 32 : index
    %c0_152 = arith.constant 0 : index
    %379 = vector.load %arg24[%c32_151, %c0_152] : memref<64x128xf32, #tpu.memory_space<vmem>>, vector<8x128xf32>
    tpu.vector_store %arg24[%c32_151, %c0_152], %378 {strides = array<i32>} : memref<64x128xf32, #tpu.memory_space<vmem>>, vector<8x128xf32>,
    %c40 = arith.constant 40 : index
    %c0_153 = arith.constant 0 : index
    %380 = vector.load %arg23[%c40, %c0_153] : memref<64x512xf32, #tpu.memory_space<vmem>>, vector<8x512xf32>
    %381 = arith.truncf %342 : vector<8x128xf32> to vector<8x128xbf16>
    %c0_154 = arith.constant 0 : index
    %c0_155 = arith.constant 0 : index
    %382 = vector.load %arg3[%c0_154, %c0_155] : memref<128x512xbf16, #tpu.memory_space<vmem>>, vector<128x512xbf16>
    %cst_156 = arith.constant dense<0.000000e+00> : vector<8x512xf32>
    %383 = tpu.matmul %381, %382, %cst_156 {dimension_numbers = #tpu.dot_dimension_numbers<[1], [0], [0], [1], [0, 0, 1, 1], [], []>} : vector<8x128xbf16>, vector<128x512xbf16>, vector<8x512xf32> -> vector<8x512xf32>
    %384 = arith.addf %380, %383 : vector<8x512xf32>
    %385 = vector.extract_strided_slice %384 {offsets = [0, 128], sizes = [8, 128], strides = [1, 1]} : vector<8x512xf32> to vector<8x128xf32>
    %cst_157 = arith.constant 5.000000e-01 : f32
    %386 = vector.broadcast %cst_157 : f32 to vector<8x128xf32>
    %387 = arith.mulf %386, %385 : vector<8x128xf32>
    %388 = math.tanh %387 : vector<8x128xf32>
    %cst_158 = arith.constant 5.000000e-01 : f32
    %389 = vector.broadcast %cst_158 : f32 to vector<8x128xf32>
    %390 = arith.mulf %389, %388 : vector<8x128xf32>
    %cst_159 = arith.constant 5.000000e-01 : f32
    %391 = vector.broadcast %cst_159 : f32 to vector<8x128xf32>
    %392 = arith.addf %390, %391 : vector<8x128xf32>
    %393 = arith.mulf %392, %332 : vector<8x128xf32>
    %394 = vector.extract_strided_slice %384 {offsets = [0, 0], sizes = [8, 128], strides = [1, 1]} : vector<8x512xf32> to vector<8x128xf32>
    %cst_160 = arith.constant 5.000000e-01 : f32
    %395 = vector.broadcast %cst_160 : f32 to vector<8x128xf32>
    %396 = arith.mulf %395, %394 : vector<8x128xf32>
    %397 = math.tanh %396 : vector<8x128xf32>
    %cst_161 = arith.constant 5.000000e-01 : f32
    %398 = vector.broadcast %cst_161 : f32 to vector<8x128xf32>
    %399 = arith.mulf %398, %397 : vector<8x128xf32>
    %cst_162 = arith.constant 5.000000e-01 : f32
    %400 = vector.broadcast %cst_162 : f32 to vector<8x128xf32>
    %401 = arith.addf %399, %400 : vector<8x128xf32>
    %402 = vector.extract_strided_slice %384 {offsets = [0, 256], sizes = [8, 128], strides = [1, 1]} : vector<8x512xf32> to vector<8x128xf32>
    %403 = math.tanh %402 : vector<8x128xf32>
    %404 = arith.mulf %401, %403 : vector<8x128xf32>
    %405 = arith.addf %393, %404 : vector<8x128xf32>
    %406 = vector.extract_strided_slice %384 {offsets = [0, 384], sizes = [8, 128], strides = [1, 1]} : vector<8x512xf32> to vector<8x128xf32>
    %cst_163 = arith.constant 5.000000e-01 : f32
    %407 = vector.broadcast %cst_163 : f32 to vector<8x128xf32>
    %408 = arith.mulf %407, %406 : vector<8x128xf32>
    %409 = math.tanh %408 : vector<8x128xf32>
    %cst_164 = arith.constant 5.000000e-01 : f32
    %410 = vector.broadcast %cst_164 : f32 to vector<8x128xf32>
    %411 = arith.mulf %410, %409 : vector<8x128xf32>
    %cst_165 = arith.constant 5.000000e-01 : f32
    %412 = vector.broadcast %cst_165 : f32 to vector<8x128xf32>
    %413 = arith.addf %411, %412 : vector<8x128xf32>
    %414 = math.tanh %405 : vector<8x128xf32>
    %415 = arith.mulf %413, %414 : vector<8x128xf32>
    %416 = tpu.concatenate %415, %378 in 1 : vector<8x128xf32>, vector<8x128xf32> -> vector<8x256xf32>
    %417 = arith.truncf %416 : vector<8x256xf32> to vector<8x256xbf16>
    %c0_166 = arith.constant 0 : index
    %c0_167 = arith.constant 0 : index
    %418 = vector.load %arg5[%c0_166, %c0_167] : memref<256x512xbf16, #tpu.memory_space<vmem>>, vector<256x512xbf16>
    %cst_168 = arith.constant dense<0.000000e+00> : vector<8x512xf32>
    %419 = tpu.matmul %417, %418, %cst_168 {dimension_numbers = #tpu.dot_dimension_numbers<[1], [0], [0], [1], [0, 0, 1, 1], [], []>} : vector<8x256xbf16>, vector<256x512xbf16>, vector<8x512xf32> -> vector<8x512xf32>
    %420 = arith.addf %419, %10 : vector<8x512xf32>
    %421 = vector.extract_strided_slice %420 {offsets = [0, 128], sizes = [8, 128], strides = [1, 1]} : vector<8x512xf32> to vector<8x128xf32>
    %cst_169 = arith.constant 5.000000e-01 : f32
    %422 = vector.broadcast %cst_169 : f32 to vector<8x128xf32>
    %423 = arith.mulf %422, %421 : vector<8x128xf32>
    %424 = math.tanh %423 : vector<8x128xf32>
    %cst_170 = arith.constant 5.000000e-01 : f32
    %425 = vector.broadcast %cst_170 : f32 to vector<8x128xf32>
    %426 = arith.mulf %425, %424 : vector<8x128xf32>
    %cst_171 = arith.constant 5.000000e-01 : f32
    %427 = vector.broadcast %cst_171 : f32 to vector<8x128xf32>
    %428 = arith.addf %426, %427 : vector<8x128xf32>
    %429 = arith.mulf %428, %368 : vector<8x128xf32>
    %430 = vector.extract_strided_slice %420 {offsets = [0, 0], sizes = [8, 128], strides = [1, 1]} : vector<8x512xf32> to vector<8x128xf32>
    %cst_172 = arith.constant 5.000000e-01 : f32
    %431 = vector.broadcast %cst_172 : f32 to vector<8x128xf32>
    %432 = arith.mulf %431, %430 : vector<8x128xf32>
    %433 = math.tanh %432 : vector<8x128xf32>
    %cst_173 = arith.constant 5.000000e-01 : f32
    %434 = vector.broadcast %cst_173 : f32 to vector<8x128xf32>
    %435 = arith.mulf %434, %433 : vector<8x128xf32>
    %cst_174 = arith.constant 5.000000e-01 : f32
    %436 = vector.broadcast %cst_174 : f32 to vector<8x128xf32>
    %437 = arith.addf %435, %436 : vector<8x128xf32>
    %438 = vector.extract_strided_slice %420 {offsets = [0, 256], sizes = [8, 128], strides = [1, 1]} : vector<8x512xf32> to vector<8x128xf32>
    %439 = math.tanh %438 : vector<8x128xf32>
    %440 = arith.mulf %437, %439 : vector<8x128xf32>
    %441 = arith.addf %429, %440 : vector<8x128xf32>
    %442 = vector.extract_strided_slice %420 {offsets = [0, 384], sizes = [8, 128], strides = [1, 1]} : vector<8x512xf32> to vector<8x128xf32>
    %cst_175 = arith.constant 5.000000e-01 : f32
    %443 = vector.broadcast %cst_175 : f32 to vector<8x128xf32>
    %444 = arith.mulf %443, %442 : vector<8x128xf32>
    %445 = math.tanh %444 : vector<8x128xf32>
    %cst_176 = arith.constant 5.000000e-01 : f32
    %446 = vector.broadcast %cst_176 : f32 to vector<8x128xf32>
    %447 = arith.mulf %446, %445 : vector<8x128xf32>
    %cst_177 = arith.constant 5.000000e-01 : f32
    %448 = vector.broadcast %cst_177 : f32 to vector<8x128xf32>
    %449 = arith.addf %447, %448 : vector<8x128xf32>
    %450 = math.tanh %441 : vector<8x128xf32>
    %451 = arith.mulf %449, %450 : vector<8x128xf32>
    %c40_178 = arith.constant 40 : index
    %c0_179 = arith.constant 0 : index
    %452 = vector.load %arg24[%c40_178, %c0_179] : memref<64x128xf32, #tpu.memory_space<vmem>>, vector<8x128xf32>
    tpu.vector_store %arg24[%c40_178, %c0_179], %451 {strides = array<i32>} : memref<64x128xf32, #tpu.memory_space<vmem>>, vector<8x128xf32>,
    %c48 = arith.constant 48 : index
    %c0_180 = arith.constant 0 : index
    %453 = vector.load %arg23[%c48, %c0_180] : memref<64x512xf32, #tpu.memory_space<vmem>>, vector<8x512xf32>
    %454 = arith.truncf %415 : vector<8x128xf32> to vector<8x128xbf16>
    %c0_181 = arith.constant 0 : index
    %c0_182 = arith.constant 0 : index
    %455 = vector.load %arg3[%c0_181, %c0_182] : memref<128x512xbf16, #tpu.memory_space<vmem>>, vector<128x512xbf16>
    %cst_183 = arith.constant dense<0.000000e+00> : vector<8x512xf32>
    %456 = tpu.matmul %454, %455, %cst_183 {dimension_numbers = #tpu.dot_dimension_numbers<[1], [0], [0], [1], [0, 0, 1, 1], [], []>} : vector<8x128xbf16>, vector<128x512xbf16>, vector<8x512xf32> -> vector<8x512xf32>
    %457 = arith.addf %453, %456 : vector<8x512xf32>
    %458 = vector.extract_strided_slice %457 {offsets = [0, 128], sizes = [8, 128], strides = [1, 1]} : vector<8x512xf32> to vector<8x128xf32>
    %cst_184 = arith.constant 5.000000e-01 : f32
    %459 = vector.broadcast %cst_184 : f32 to vector<8x128xf32>
    %460 = arith.mulf %459, %458 : vector<8x128xf32>
    %461 = math.tanh %460 : vector<8x128xf32>
    %cst_185 = arith.constant 5.000000e-01 : f32
    %462 = vector.broadcast %cst_185 : f32 to vector<8x128xf32>
    %463 = arith.mulf %462, %461 : vector<8x128xf32>
    %cst_186 = arith.constant 5.000000e-01 : f32
    %464 = vector.broadcast %cst_186 : f32 to vector<8x128xf32>
    %465 = arith.addf %463, %464 : vector<8x128xf32>
    %466 = arith.mulf %465, %405 : vector<8x128xf32>
    %467 = vector.extract_strided_slice %457 {offsets = [0, 0], sizes = [8, 128], strides = [1, 1]} : vector<8x512xf32> to vector<8x128xf32>
    %cst_187 = arith.constant 5.000000e-01 : f32
    %468 = vector.broadcast %cst_187 : f32 to vector<8x128xf32>
    %469 = arith.mulf %468, %467 : vector<8x128xf32>
    %470 = math.tanh %469 : vector<8x128xf32>
    %cst_188 = arith.constant 5.000000e-01 : f32
    %471 = vector.broadcast %cst_188 : f32 to vector<8x128xf32>
    %472 = arith.mulf %471, %470 : vector<8x128xf32>
    %cst_189 = arith.constant 5.000000e-01 : f32
    %473 = vector.broadcast %cst_189 : f32 to vector<8x128xf32>
    %474 = arith.addf %472, %473 : vector<8x128xf32>
    %475 = vector.extract_strided_slice %457 {offsets = [0, 256], sizes = [8, 128], strides = [1, 1]} : vector<8x512xf32> to vector<8x128xf32>
    %476 = math.tanh %475 : vector<8x128xf32>
    %477 = arith.mulf %474, %476 : vector<8x128xf32>
    %478 = arith.addf %466, %477 : vector<8x128xf32>
    %479 = vector.extract_strided_slice %457 {offsets = [0, 384], sizes = [8, 128], strides = [1, 1]} : vector<8x512xf32> to vector<8x128xf32>
    %cst_190 = arith.constant 5.000000e-01 : f32
    %480 = vector.broadcast %cst_190 : f32 to vector<8x128xf32>
    %481 = arith.mulf %480, %479 : vector<8x128xf32>
    %482 = math.tanh %481 : vector<8x128xf32>
    %cst_191 = arith.constant 5.000000e-01 : f32
    %483 = vector.broadcast %cst_191 : f32 to vector<8x128xf32>
    %484 = arith.mulf %483, %482 : vector<8x128xf32>
    %cst_192 = arith.constant 5.000000e-01 : f32
    %485 = vector.broadcast %cst_192 : f32 to vector<8x128xf32>
    %486 = arith.addf %484, %485 : vector<8x128xf32>
    %487 = math.tanh %478 : vector<8x128xf32>
    %488 = arith.mulf %486, %487 : vector<8x128xf32>
    %489 = tpu.concatenate %488, %451 in 1 : vector<8x128xf32>, vector<8x128xf32> -> vector<8x256xf32>
    %490 = arith.truncf %489 : vector<8x256xf32> to vector<8x256xbf16>
    %c0_193 = arith.constant 0 : index
    %c0_194 = arith.constant 0 : index
    %491 = vector.load %arg5[%c0_193, %c0_194] : memref<256x512xbf16, #tpu.memory_space<vmem>>, vector<256x512xbf16>
    %cst_195 = arith.constant dense<0.000000e+00> : vector<8x512xf32>
    %492 = tpu.matmul %490, %491, %cst_195 {dimension_numbers = #tpu.dot_dimension_numbers<[1], [0], [0], [1], [0, 0, 1, 1], [], []>} : vector<8x256xbf16>, vector<256x512xbf16>, vector<8x512xf32> -> vector<8x512xf32>
    %493 = arith.addf %492, %10 : vector<8x512xf32>
    %494 = vector.extract_strided_slice %493 {offsets = [0, 128], sizes = [8, 128], strides = [1, 1]} : vector<8x512xf32> to vector<8x128xf32>
    %cst_196 = arith.constant 5.000000e-01 : f32
    %495 = vector.broadcast %cst_196 : f32 to vector<8x128xf32>
    %496 = arith.mulf %495, %494 : vector<8x128xf32>
    %497 = math.tanh %496 : vector<8x128xf32>
    %cst_197 = arith.constant 5.000000e-01 : f32
    %498 = vector.broadcast %cst_197 : f32 to vector<8x128xf32>
    %499 = arith.mulf %498, %497 : vector<8x128xf32>
    %cst_198 = arith.constant 5.000000e-01 : f32
    %500 = vector.broadcast %cst_198 : f32 to vector<8x128xf32>
    %501 = arith.addf %499, %500 : vector<8x128xf32>
    %502 = arith.mulf %501, %441 : vector<8x128xf32>
    %503 = vector.extract_strided_slice %493 {offsets = [0, 0], sizes = [8, 128], strides = [1, 1]} : vector<8x512xf32> to vector<8x128xf32>
    %cst_199 = arith.constant 5.000000e-01 : f32
    %504 = vector.broadcast %cst_199 : f32 to vector<8x128xf32>
    %505 = arith.mulf %504, %503 : vector<8x128xf32>
    %506 = math.tanh %505 : vector<8x128xf32>
    %cst_200 = arith.constant 5.000000e-01 : f32
    %507 = vector.broadcast %cst_200 : f32 to vector<8x128xf32>
    %508 = arith.mulf %507, %506 : vector<8x128xf32>
    %cst_201 = arith.constant 5.000000e-01 : f32
    %509 = vector.broadcast %cst_201 : f32 to vector<8x128xf32>
    %510 = arith.addf %508, %509 : vector<8x128xf32>
    %511 = vector.extract_strided_slice %493 {offsets = [0, 256], sizes = [8, 128], strides = [1, 1]} : vector<8x512xf32> to vector<8x128xf32>
    %512 = math.tanh %511 : vector<8x128xf32>
    %513 = arith.mulf %510, %512 : vector<8x128xf32>
    %514 = arith.addf %502, %513 : vector<8x128xf32>
    %515 = vector.extract_strided_slice %493 {offsets = [0, 384], sizes = [8, 128], strides = [1, 1]} : vector<8x512xf32> to vector<8x128xf32>
    %cst_202 = arith.constant 5.000000e-01 : f32
    %516 = vector.broadcast %cst_202 : f32 to vector<8x128xf32>
    %517 = arith.mulf %516, %515 : vector<8x128xf32>
    %518 = math.tanh %517 : vector<8x128xf32>
    %cst_203 = arith.constant 5.000000e-01 : f32
    %519 = vector.broadcast %cst_203 : f32 to vector<8x128xf32>
    %520 = arith.mulf %519, %518 : vector<8x128xf32>
    %cst_204 = arith.constant 5.000000e-01 : f32
    %521 = vector.broadcast %cst_204 : f32 to vector<8x128xf32>
    %522 = arith.addf %520, %521 : vector<8x128xf32>
    %523 = math.tanh %514 : vector<8x128xf32>
    %524 = arith.mulf %522, %523 : vector<8x128xf32>
    %c48_205 = arith.constant 48 : index
    %c0_206 = arith.constant 0 : index
    %525 = vector.load %arg24[%c48_205, %c0_206] : memref<64x128xf32, #tpu.memory_space<vmem>>, vector<8x128xf32>
    tpu.vector_store %arg24[%c48_205, %c0_206], %524 {strides = array<i32>} : memref<64x128xf32, #tpu.memory_space<vmem>>, vector<8x128xf32>,
    %c56 = arith.constant 56 : index
    %c0_207 = arith.constant 0 : index
    %526 = vector.load %arg23[%c56, %c0_207] : memref<64x512xf32, #tpu.memory_space<vmem>>, vector<8x512xf32>
    %527 = arith.truncf %488 : vector<8x128xf32> to vector<8x128xbf16>
    %c0_208 = arith.constant 0 : index
    %c0_209 = arith.constant 0 : index
    %528 = vector.load %arg3[%c0_208, %c0_209] : memref<128x512xbf16, #tpu.memory_space<vmem>>, vector<128x512xbf16>
    %cst_210 = arith.constant dense<0.000000e+00> : vector<8x512xf32>
    %529 = tpu.matmul %527, %528, %cst_210 {dimension_numbers = #tpu.dot_dimension_numbers<[1], [0], [0], [1], [0, 0, 1, 1], [], []>} : vector<8x128xbf16>, vector<128x512xbf16>, vector<8x512xf32> -> vector<8x512xf32>
    %530 = arith.addf %526, %529 : vector<8x512xf32>
    %531 = vector.extract_strided_slice %530 {offsets = [0, 128], sizes = [8, 128], strides = [1, 1]} : vector<8x512xf32> to vector<8x128xf32>
    %cst_211 = arith.constant 5.000000e-01 : f32
    %532 = vector.broadcast %cst_211 : f32 to vector<8x128xf32>
    %533 = arith.mulf %532, %531 : vector<8x128xf32>
    %534 = math.tanh %533 : vector<8x128xf32>
    %cst_212 = arith.constant 5.000000e-01 : f32
    %535 = vector.broadcast %cst_212 : f32 to vector<8x128xf32>
    %536 = arith.mulf %535, %534 : vector<8x128xf32>
    %cst_213 = arith.constant 5.000000e-01 : f32
    %537 = vector.broadcast %cst_213 : f32 to vector<8x128xf32>
    %538 = arith.addf %536, %537 : vector<8x128xf32>
    %539 = arith.mulf %538, %478 : vector<8x128xf32>
    %540 = vector.extract_strided_slice %530 {offsets = [0, 0], sizes = [8, 128], strides = [1, 1]} : vector<8x512xf32> to vector<8x128xf32>
    %cst_214 = arith.constant 5.000000e-01 : f32
    %541 = vector.broadcast %cst_214 : f32 to vector<8x128xf32>
    %542 = arith.mulf %541, %540 : vector<8x128xf32>
    %543 = math.tanh %542 : vector<8x128xf32>
    %cst_215 = arith.constant 5.000000e-01 : f32
    %544 = vector.broadcast %cst_215 : f32 to vector<8x128xf32>
    %545 = arith.mulf %544, %543 : vector<8x128xf32>
    %cst_216 = arith.constant 5.000000e-01 : f32
    %546 = vector.broadcast %cst_216 : f32 to vector<8x128xf32>
    %547 = arith.addf %545, %546 : vector<8x128xf32>
    %548 = vector.extract_strided_slice %530 {offsets = [0, 256], sizes = [8, 128], strides = [1, 1]} : vector<8x512xf32> to vector<8x128xf32>
    %549 = math.tanh %548 : vector<8x128xf32>
    %550 = arith.mulf %547, %549 : vector<8x128xf32>
    %551 = arith.addf %539, %550 : vector<8x128xf32>
    %552 = vector.extract_strided_slice %530 {offsets = [0, 384], sizes = [8, 128], strides = [1, 1]} : vector<8x512xf32> to vector<8x128xf32>
    %cst_217 = arith.constant 5.000000e-01 : f32
    %553 = vector.broadcast %cst_217 : f32 to vector<8x128xf32>
    %554 = arith.mulf %553, %552 : vector<8x128xf32>
    %555 = math.tanh %554 : vector<8x128xf32>
    %cst_218 = arith.constant 5.000000e-01 : f32
    %556 = vector.broadcast %cst_218 : f32 to vector<8x128xf32>
    %557 = arith.mulf %556, %555 : vector<8x128xf32>
    %cst_219 = arith.constant 5.000000e-01 : f32
    %558 = vector.broadcast %cst_219 : f32 to vector<8x128xf32>
    %559 = arith.addf %557, %558 : vector<8x128xf32>
    %560 = math.tanh %551 : vector<8x128xf32>
    %561 = arith.mulf %559, %560 : vector<8x128xf32>
    %562 = tpu.concatenate %561, %524 in 1 : vector<8x128xf32>, vector<8x128xf32> -> vector<8x256xf32>
    %563 = arith.truncf %562 : vector<8x256xf32> to vector<8x256xbf16>
    %c0_220 = arith.constant 0 : index
    %c0_221 = arith.constant 0 : index
    %564 = vector.load %arg5[%c0_220, %c0_221] : memref<256x512xbf16, #tpu.memory_space<vmem>>, vector<256x512xbf16>
    %cst_222 = arith.constant dense<0.000000e+00> : vector<8x512xf32>
    %565 = tpu.matmul %563, %564, %cst_222 {dimension_numbers = #tpu.dot_dimension_numbers<[1], [0], [0], [1], [0, 0, 1, 1], [], []>} : vector<8x256xbf16>, vector<256x512xbf16>, vector<8x512xf32> -> vector<8x512xf32>
    %566 = arith.addf %565, %10 : vector<8x512xf32>
    %567 = vector.extract_strided_slice %566 {offsets = [0, 128], sizes = [8, 128], strides = [1, 1]} : vector<8x512xf32> to vector<8x128xf32>
    %cst_223 = arith.constant 5.000000e-01 : f32
    %568 = vector.broadcast %cst_223 : f32 to vector<8x128xf32>
    %569 = arith.mulf %568, %567 : vector<8x128xf32>
    %570 = math.tanh %569 : vector<8x128xf32>
    %cst_224 = arith.constant 5.000000e-01 : f32
    %571 = vector.broadcast %cst_224 : f32 to vector<8x128xf32>
    %572 = arith.mulf %571, %570 : vector<8x128xf32>
    %cst_225 = arith.constant 5.000000e-01 : f32
    %573 = vector.broadcast %cst_225 : f32 to vector<8x128xf32>
    %574 = arith.addf %572, %573 : vector<8x128xf32>
    %575 = arith.mulf %574, %514 : vector<8x128xf32>
    %576 = vector.extract_strided_slice %566 {offsets = [0, 0], sizes = [8, 128], strides = [1, 1]} : vector<8x512xf32> to vector<8x128xf32>
    %cst_226 = arith.constant 5.000000e-01 : f32
    %577 = vector.broadcast %cst_226 : f32 to vector<8x128xf32>
    %578 = arith.mulf %577, %576 : vector<8x128xf32>
    %579 = math.tanh %578 : vector<8x128xf32>
    %cst_227 = arith.constant 5.000000e-01 : f32
    %580 = vector.broadcast %cst_227 : f32 to vector<8x128xf32>
    %581 = arith.mulf %580, %579 : vector<8x128xf32>
    %cst_228 = arith.constant 5.000000e-01 : f32
    %582 = vector.broadcast %cst_228 : f32 to vector<8x128xf32>
    %583 = arith.addf %581, %582 : vector<8x128xf32>
    %584 = vector.extract_strided_slice %566 {offsets = [0, 256], sizes = [8, 128], strides = [1, 1]} : vector<8x512xf32> to vector<8x128xf32>
    %585 = math.tanh %584 : vector<8x128xf32>
    %586 = arith.mulf %583, %585 : vector<8x128xf32>
    %587 = arith.addf %575, %586 : vector<8x128xf32>
    %588 = vector.extract_strided_slice %566 {offsets = [0, 384], sizes = [8, 128], strides = [1, 1]} : vector<8x512xf32> to vector<8x128xf32>
    %cst_229 = arith.constant 5.000000e-01 : f32
    %589 = vector.broadcast %cst_229 : f32 to vector<8x128xf32>
    %590 = arith.mulf %589, %588 : vector<8x128xf32>
    %591 = math.tanh %590 : vector<8x128xf32>
    %cst_230 = arith.constant 5.000000e-01 : f32
    %592 = vector.broadcast %cst_230 : f32 to vector<8x128xf32>
    %593 = arith.mulf %592, %591 : vector<8x128xf32>
    %cst_231 = arith.constant 5.000000e-01 : f32
    %594 = vector.broadcast %cst_231 : f32 to vector<8x128xf32>
    %595 = arith.addf %593, %594 : vector<8x128xf32>
    %596 = math.tanh %587 : vector<8x128xf32>
    %597 = arith.mulf %595, %596 : vector<8x128xf32>
    %c56_232 = arith.constant 56 : index
    %c0_233 = arith.constant 0 : index
    %598 = vector.load %arg24[%c56_232, %c0_233] : memref<64x128xf32, #tpu.memory_space<vmem>>, vector<8x128xf32>
    tpu.vector_store %arg24[%c56_232, %c0_233], %597 {strides = array<i32>} : memref<64x128xf32, #tpu.memory_space<vmem>>, vector<8x128xf32>,
    %c0_234 = arith.constant 0 : index
    %c0_235 = arith.constant 0 : index
    %599 = vector.load %arg19[%c0_234, %c0_235] : memref<8x128xf32, #tpu.memory_space<vmem>>, vector<8x128xf32>
    tpu.vector_store %arg19[%c0_234, %c0_235], %561 {strides = array<i32>} : memref<8x128xf32, #tpu.memory_space<vmem>>, vector<8x128xf32>,
    %c0_236 = arith.constant 0 : index
    %c0_237 = arith.constant 0 : index
    %600 = vector.load %arg20[%c0_236, %c0_237] : memref<8x128xf32, #tpu.memory_space<vmem>>, vector<8x128xf32>
    tpu.vector_store %arg20[%c0_236, %c0_237], %551 {strides = array<i32>} : memref<8x128xf32, #tpu.memory_space<vmem>>, vector<8x128xf32>,
    %c0_238 = arith.constant 0 : index
    %c0_239 = arith.constant 0 : index
    %601 = vector.load %arg21[%c0_238, %c0_239] : memref<8x128xf32, #tpu.memory_space<vmem>>, vector<8x128xf32>
    tpu.vector_store %arg21[%c0_238, %c0_239], %597 {strides = array<i32>} : memref<8x128xf32, #tpu.memory_space<vmem>>, vector<8x128xf32>,
    %c0_240 = arith.constant 0 : index
    %c0_241 = arith.constant 0 : index
    %602 = vector.load %arg22[%c0_240, %c0_241] : memref<8x128xf32, #tpu.memory_space<vmem>>, vector<8x128xf32>
    tpu.vector_store %arg22[%c0_240, %c0_241], %587 {strides = array<i32>} : memref<8x128xf32, #tpu.memory_space<vmem>>, vector<8x128xf32>,
    %c0_242 = arith.constant 0 : index
    %c0_243 = arith.constant 0 : index
    %603 = vector.load %arg24[%c0_242, %c0_243] : memref<64x128xf32, #tpu.memory_space<vmem>>, vector<64x128xf32>
    %604 = arith.truncf %603 : vector<64x128xf32> to vector<64x128xbf16>
    %c0_244 = arith.constant 0 : index
    %c0_245 = arith.constant 0 : index
    %605 = vector.load %arg11[%c0_244, %c0_245] : memref<128x640xbf16, #tpu.memory_space<vmem>>, vector<128x640xbf16>
    %cst_246 = arith.constant dense<0.000000e+00> : vector<64x640xf32>
    %606 = tpu.matmul %604, %605, %cst_246 {dimension_numbers = #tpu.dot_dimension_numbers<[1], [0], [0], [1], [0, 0, 1, 1], [], []>} : vector<64x128xbf16>, vector<128x640xbf16>, vector<64x640xf32> -> vector<64x640xf32>
    %c0_247 = arith.constant 0 : index
    %c0_248 = arith.constant 0 : index
    %607 = vector.load %arg12[%c0_247, %c0_248] : memref<1x640xf32, #tpu.memory_space<vmem>>, vector<1x640xf32>
    %608 = vector.broadcast %607 : vector<1x640xf32> to vector<64x640xf32>
    %609 = arith.addf %606, %608 : vector<64x640xf32>
    %610 = vector.extract_strided_slice %609 {offsets = [0, 512], sizes = [64, 128], strides = [1, 1]} : vector<64x640xf32> to vector<64x128xf32>
    %cst_249 = arith.constant 2.000000e+01 : f32
    %611 = vector.broadcast %cst_249 : f32 to vector<64x128xf32>
    %612 = arith.cmpf ogt, %610, %611 : vector<64x128xf32>
    %cst_250 = arith.constant 2.000000e+01 : f32
    %613 = vector.broadcast %cst_250 : f32 to vector<64x128xf32>
    %614 = arith.minimumf %610, %613 : vector<64x128xf32>
    %615 = math.exp %614 : vector<64x128xf32>
    %616 = math.log1p %615 : vector<64x128xf32>
    %617 = arith.select %612, %610, %616 : vector<64x128xi1>, vector<64x128xf32>
    %cst_251 = arith.constant 9.99999993E-9 : f32
    %618 = vector.broadcast %cst_251 : f32 to vector<64x128xf32>
    %619 = arith.addf %617, %618 : vector<64x128xf32>
    %c0_252 = arith.constant 0 : index
    %c0_253 = arith.constant 0 : index
    %620 = vector.load %arg17[%c0_252, %c0_253] : memref<64x128xf32, #tpu.memory_space<vmem>>, vector<64x128xf32>
    tpu.vector_store %arg17[%c0_252, %c0_253], %619 {strides = array<i32>} : memref<64x128xf32, #tpu.memory_space<vmem>>, vector<64x128xf32>,
    %c0_254 = arith.constant 0 : index
    %c0_255 = arith.constant 0 : index
    %621 = vector.load %arg15[%c0_254, %c0_255] : memref<128x128xf32, #tpu.memory_space<vmem>>, vector<128x128xf32>
    %cst_256 = arith.constant dense<0.000000e+00> : vector<64x128xf32>
    %622 = tpu.matmul %619, %621, %cst_256 {dimension_numbers = #tpu.dot_dimension_numbers<[1], [0], [0], [1], [0, 0, 1, 1], [], []>} : vector<64x128xf32>, vector<128x128xf32>, vector<64x128xf32> -> vector<64x128xf32>
    %c0_257 = arith.constant 0 : index
    %c0_258 = arith.constant 0 : index
    %623 = vector.load %arg18[%c0_257, %c0_258] : memref<64x128xf32, #tpu.memory_space<vmem>>, vector<64x128xf32>
    tpu.vector_store %arg18[%c0_257, %c0_258], %622 {strides = array<i32>} : memref<64x128xf32, #tpu.memory_space<vmem>>, vector<64x128xf32>,
    %624 = vector.extract_strided_slice %609 {offsets = [0, 0], sizes = [64, 512], strides = [1, 1]} : vector<64x640xf32> to vector<64x512xf32>
    %625 = math.tanh %624 : vector<64x512xf32>
    %626 = vector.extract_strided_slice %625 {offsets = [0, 0], sizes = [64, 128], strides = [1, 1]} : vector<64x512xf32> to vector<64x128xf32>
    %627 = vector.extract_strided_slice %625 {offsets = [0, 128], sizes = [64, 128], strides = [1, 1]} : vector<64x512xf32> to vector<64x128xf32>
    %628 = vector.extract_strided_slice %625 {offsets = [0, 256], sizes = [64, 128], strides = [1, 1]} : vector<64x512xf32> to vector<64x128xf32>
    %629 = vector.extract_strided_slice %625 {offsets = [0, 384], sizes = [64, 128], strides = [1, 1]} : vector<64x512xf32> to vector<64x128xf32>
    %630 = tpu.concatenate %626, %627, %628, %629 in 0 : vector<64x128xf32>, vector<64x128xf32>, vector<64x128xf32>, vector<64x128xf32> -> vector<256x128xf32>
    %631 = arith.truncf %630 : vector<256x128xf32> to vector<256x128xbf16>
    %c0_259 = arith.constant 0 : index
    %c0_260 = arith.constant 0 : index
    %632 = vector.load %arg13[%c0_259, %c0_260] : memref<128x256xbf16, #tpu.memory_space<vmem>>, vector<128x256xbf16>
    %cst_261 = arith.constant dense<0.000000e+00> : vector<256x256xf32>
    %633 = tpu.matmul %631, %632, %cst_261 {dimension_numbers = #tpu.dot_dimension_numbers<[1], [0], [0], [1], [0, 0, 1, 1], [], []>} : vector<256x128xbf16>, vector<128x256xbf16>, vector<256x256xf32> -> vector<256x256xf32>
    %c0_262 = arith.constant 0 : index
    %c0_263 = arith.constant 0 : index
    %634 = vector.load %arg14[%c0_262, %c0_263] : memref<1x256xf32, #tpu.memory_space<vmem>>, vector<1x256xf32>
    %635 = vector.broadcast %634 : vector<1x256xf32> to vector<256x256xf32>
    %636 = arith.addf %633, %635 : vector<256x256xf32>
    %cst_264 = arith.constant dense<0xFF800000> : vector<256xf32>
    %637 = vector.multi_reduction <maximumf>, %636, %cst_264 [1] : vector<256x256xf32> to vector<256xf32>
    %638 = vector.shape_cast %637 : vector<256xf32> to vector<256x1xf32>
    %639 = vector.broadcast %638 : vector<256x1xf32> to vector<256x256xf32>
    %640 = arith.subf %636, %639 : vector<256x256xf32>
    %641 = math.exp %640 : vector<256x256xf32>
    %cst_265 = arith.constant dense<0.000000e+00> : vector<256xf32>
    %642 = vector.multi_reduction <add>, %641, %cst_265 [1] : vector<256x256xf32> to vector<256xf32>
    %643 = vector.shape_cast %642 : vector<256xf32> to vector<256x1xf32>
    %644 = tpu.reciprocal %643 : vector<256x1xf32> -> vector<256x1xf32>
    %645 = vector.broadcast %644 : vector<256x1xf32> to vector<256x256xf32>
    %646 = arith.mulf %641, %645 : vector<256x256xf32>
    %c0_266 = arith.constant 0 : index
    %c0_267 = arith.constant 0 : index
    %647 = vector.load %arg16[%c0_266, %c0_267] : memref<256x256xf32, #tpu.memory_space<vmem>>, vector<256x256xf32>
    tpu.vector_store %arg16[%c0_266, %c0_267], %646 {strides = array<i32>} : memref<256x256xf32, #tpu.memory_space<vmem>>, vector<256x256xf32>,
    return
  }
  func.func @transform_0(%arg0: i32) -> (i32, i32) {
    %c0_i32 = arith.constant 0 : i32
    %c0_i32_0 = arith.constant 0 : i32
    %c0_i32_1 = arith.constant 0 : i32
    return %c0_i32, %c0_i32_0 : i32, i32
  }
  func.func @transform_1(%arg0: i32) -> (i32, i32) {
    %c0_i32 = arith.constant 0 : i32
    %c0_i32_0 = arith.constant 0 : i32
    %c0_i32_1 = arith.constant 0 : i32
    return %c0_i32, %c0_i32_0 : i32, i32
  }
  func.func @transform_2(%arg0: i32) -> (i32, i32) {
    %c0_i32 = arith.constant 0 : i32
    %c0_i32_0 = arith.constant 0 : i32
    %c0_i32_1 = arith.constant 0 : i32
    return %c0_i32, %c0_i32_0 : i32, i32
  }
  func.func @transform_3(%arg0: i32) -> (i32, i32) {
    %c0_i32 = arith.constant 0 : i32
    %c0_i32_0 = arith.constant 0 : i32
    %c0_i32_1 = arith.constant 0 : i32
    return %c0_i32, %c0_i32_0 : i32, i32
  }
  func.func @transform_4(%arg0: i32) -> (i32, i32) {
    %c0_i32 = arith.constant 0 : i32
    %c0_i32_0 = arith.constant 0 : i32
    %c0_i32_1 = arith.constant 0 : i32
    return %c0_i32, %c0_i32_0 : i32, i32
  }
  func.func @transform_5(%arg0: i32) -> (i32, i32) {
    %c0_i32 = arith.constant 0 : i32
    %c0_i32_0 = arith.constant 0 : i32
    %c0_i32_1 = arith.constant 0 : i32
    return %c0_i32, %c0_i32_0 : i32, i32
  }
  func.func @transform_6(%arg0: i32) -> (i32, i32) {
    %c0_i32 = arith.constant 0 : i32
    %c0_i32_0 = arith.constant 0 : i32
    %c0_i32_1 = arith.constant 0 : i32
    return %c0_i32, %c0_i32_0 : i32, i32
  }
  func.func @transform_7(%arg0: i32) -> (i32, i32) {
    %c0_i32 = arith.constant 0 : i32
    %c0_i32_0 = arith.constant 0 : i32
    %c0_i32_1 = arith.constant 0 : i32
    return %c0_i32, %c0_i32_0 : i32, i32
  }
  func.func @transform_8(%arg0: i32) -> (i32, i32) {
    %c0_i32 = arith.constant 0 : i32
    %c0_i32_0 = arith.constant 0 : i32
    %c0_i32_1 = arith.constant 0 : i32
    return %c0_i32, %c0_i32_0 : i32, i32
  }
  func.func @transform_9(%arg0: i32) -> (i32, i32) {
    %c0_i32 = arith.constant 0 : i32
    %c0_i32_0 = arith.constant 0 : i32
    %c0_i32_1 = arith.constant 0 : i32
    return %c0_i32, %c0_i32_0 : i32, i32
  }
  func.func @transform_10(%arg0: i32) -> (i32, i32) {
    %c0_i32 = arith.constant 0 : i32
    %c0_i32_0 = arith.constant 0 : i32
    %c0_i32_1 = arith.constant 0 : i32
    return %c0_i32, %c0_i32_0 : i32, i32
  }
  func.func @transform_11(%arg0: i32) -> (i32, i32) {
    %c0_i32 = arith.constant 0 : i32
    %c0_i32_0 = arith.constant 0 : i32
    %c0_i32_1 = arith.constant 0 : i32
    return %c0_i32, %c0_i32_0 : i32, i32
  }
  func.func @transform_12(%arg0: i32) -> (i32, i32) {
    %c0_i32 = arith.constant 0 : i32
    %c0_i32_0 = arith.constant 0 : i32
    %c0_i32_1 = arith.constant 0 : i32
    return %c0_i32, %c0_i32_0 : i32, i32
  }
  func.func @transform_13(%arg0: i32) -> (i32, i32) {
    %c0_i32 = arith.constant 0 : i32
    %c0_i32_0 = arith.constant 0 : i32
    %c0_i32_1 = arith.constant 0 : i32
    return %c0_i32, %c0_i32_0 : i32, i32
  }
  func.func @transform_14(%arg0: i32) -> (i32, i32) {
    %c0_i32 = arith.constant 0 : i32
    %c0_i32_0 = arith.constant 0 : i32
    %c0_i32_1 = arith.constant 0 : i32
    return %c0_i32, %c0_i32_0 : i32, i32
  }
  func.func @transform_15(%arg0: i32) -> (i32, i32) {
    %c0_i32 = arith.constant 0 : i32
    %c0_i32_0 = arith.constant 0 : i32
    %c0_i32_1 = arith.constant 0 : i32
    return %c0_i32, %c0_i32_0 : i32, i32
  }
  func.func @transform_16(%arg0: i32) -> (i32, i32) {
    %c0_i32 = arith.constant 0 : i32
    %c0_i32_0 = arith.constant 0 : i32
    %c0_i32_1 = arith.constant 0 : i32
    return %c0_i32, %c0_i32_0 : i32, i32
  }
  func.func @transform_17(%arg0: i32) -> (i32, i32) {
    %c0_i32 = arith.constant 0 : i32
    %c0_i32_0 = arith.constant 0 : i32
    %c0_i32_1 = arith.constant 0 : i32
    return %c0_i32, %c0_i32_0 : i32, i32
  }
  func.func @transform_18(%arg0: i32) -> (i32, i32) {
    %c0_i32 = arith.constant 0 : i32
    %c0_i32_0 = arith.constant 0 : i32
    %c0_i32_1 = arith.constant 0 : i32
    return %c0_i32, %c0_i32_0 : i32, i32
  }
  func.func @transform_19(%arg0: i32) -> (i32, i32) {
    %c0_i32 = arith.constant 0 : i32
    %c0_i32_0 = arith.constant 0 : i32
    %c0_i32_1 = arith.constant 0 : i32
    return %c0_i32, %c0_i32_0 : i32, i32
  }
  func.func @transform_20(%arg0: i32) -> (i32, i32) {
    %c0_i32 = arith.constant 0 : i32
    %c0_i32_0 = arith.constant 0 : i32
    %c0_i32_1 = arith.constant 0 : i32
    return %c0_i32, %c0_i32_0 : i32, i32
  }
  func.func @transform_21(%arg0: i32) -> (i32, i32) {
    %c0_i32 = arith.constant 0 : i32
    %c0_i32_0 = arith.constant 0 : i32
    %c0_i32_1 = arith.constant 0 : i32
    return %c0_i32, %c0_i32_0 : i32, i32
  }
}

module attributes {stable_mosaic.version = 11 : i64} {
  func.func @_mixture_kernel(%arg0: i32, %arg1: memref<256x256xf32, #tpu.memory_space<vmem>>, %arg2: memref<64x128xf32, #tpu.memory_space<vmem>>, %arg3: memref<64x256xf32, #tpu.memory_space<vmem>>) attributes {dimension_semantics = [#tpu.dimension_semantics<arbitrary>], iteration_bounds = array<i64: 1>, scalar_prefetch = 0 : i64, scratch_operands = 0 : i64, tpu.core_type = #tpu.core_type<tc>, window_params = [{pipeline_mode = #tpu.pipeline_mode<synchronous>, transform_indices = @transform_0, window_bounds = array<i64: 256, 256>}, {pipeline_mode = #tpu.pipeline_mode<synchronous>, transform_indices = @transform_1, window_bounds = array<i64: 64, 128>}, {pipeline_mode = #tpu.pipeline_mode<synchronous>, transform_indices = @transform_2, window_bounds = array<i64: 64, 256>}]} {
    %c0 = arith.constant 0 : index
    %c0_0 = arith.constant 0 : index
    %0 = vector.load %arg2[%c0, %c0_0] : memref<64x128xf32, #tpu.memory_space<vmem>>, vector<64x128xf32>
    %cst = arith.constant 1.000000e+00 : f32
    %1 = vector.broadcast %cst : f32 to vector<64x1xf32>
    %cst_1 = arith.constant 0.000000e+00 : f32
    %2 = vector.broadcast %cst_1 : f32 to vector<64x256xf32>
    %3 = vector.extract_strided_slice %0 {offsets = [0, 0], sizes = [64, 1], strides = [1, 1]} : vector<64x128xf32> to vector<64x1xf32>
    %4 = arith.mulf %1, %3 : vector<64x1xf32>
    %c0_2 = arith.constant 0 : index
    %c0_3 = arith.constant 0 : index
    %5 = vector.load %arg1[%c0_2, %c0_3] : memref<256x256xf32, #tpu.memory_space<vmem>>, vector<64x256xf32>
    %6 = vector.broadcast %4 : vector<64x1xf32> to vector<64x256xf32>
    %7 = arith.mulf %6, %5 : vector<64x256xf32>
    %8 = arith.addf %2, %7 : vector<64x256xf32>
    %cst_4 = arith.constant 1.000000e+00 : f32
    %9 = vector.broadcast %cst_4 : f32 to vector<64x1xf32>
    %10 = arith.subf %9, %3 : vector<64x1xf32>
    %11 = arith.mulf %1, %10 : vector<64x1xf32>
    %12 = vector.extract_strided_slice %0 {offsets = [0, 1], sizes = [64, 1], strides = [1, 1]} : vector<64x128xf32> to vector<64x1xf32>
    %13 = arith.mulf %11, %12 : vector<64x1xf32>
    %c64 = arith.constant 64 : index
    %c0_5 = arith.constant 0 : index
    %14 = vector.load %arg1[%c64, %c0_5] : memref<256x256xf32, #tpu.memory_space<vmem>>, vector<64x256xf32>
    %15 = vector.broadcast %13 : vector<64x1xf32> to vector<64x256xf32>
    %16 = arith.mulf %15, %14 : vector<64x256xf32>
    %17 = arith.addf %8, %16 : vector<64x256xf32>
    %cst_6 = arith.constant 1.000000e+00 : f32
    %18 = vector.broadcast %cst_6 : f32 to vector<64x1xf32>
    %19 = arith.subf %18, %12 : vector<64x1xf32>
    %20 = arith.mulf %11, %19 : vector<64x1xf32>
    %21 = vector.extract_strided_slice %0 {offsets = [0, 2], sizes = [64, 1], strides = [1, 1]} : vector<64x128xf32> to vector<64x1xf32>
    %22 = arith.mulf %20, %21 : vector<64x1xf32>
    %c128 = arith.constant 128 : index
    %c0_7 = arith.constant 0 : index
    %23 = vector.load %arg1[%c128, %c0_7] : memref<256x256xf32, #tpu.memory_space<vmem>>, vector<64x256xf32>
    %24 = vector.broadcast %22 : vector<64x1xf32> to vector<64x256xf32>
    %25 = arith.mulf %24, %23 : vector<64x256xf32>
    %26 = arith.addf %17, %25 : vector<64x256xf32>
    %cst_8 = arith.constant 1.000000e+00 : f32
    %27 = vector.broadcast %cst_8 : f32 to vector<64x1xf32>
    %28 = arith.subf %27, %21 : vector<64x1xf32>
    %29 = arith.mulf %20, %28 : vector<64x1xf32>
    %30 = vector.extract_strided_slice %0 {offsets = [0, 3], sizes = [64, 1], strides = [1, 1]} : vector<64x128xf32> to vector<64x1xf32>
    %31 = arith.mulf %29, %30 : vector<64x1xf32>
    %c192 = arith.constant 192 : index
    %c0_9 = arith.constant 0 : index
    %32 = vector.load %arg1[%c192, %c0_9] : memref<256x256xf32, #tpu.memory_space<vmem>>, vector<64x256xf32>
    %33 = vector.broadcast %31 : vector<64x1xf32> to vector<64x256xf32>
    %34 = arith.mulf %33, %32 : vector<64x256xf32>
    %35 = arith.addf %26, %34 : vector<64x256xf32>
    %cst_10 = arith.constant 9.99999993E-9 : f32
    %36 = vector.broadcast %cst_10 : f32 to vector<64x256xf32>
    %37 = arith.addf %35, %36 : vector<64x256xf32>
    %38 = math.log %37 : vector<64x256xf32>
    %c0_11 = arith.constant 0 : index
    %c0_12 = arith.constant 0 : index
    %39 = vector.load %arg3[%c0_11, %c0_12] : memref<64x256xf32, #tpu.memory_space<vmem>>, vector<64x256xf32>
    tpu.vector_store %arg3[%c0_11, %c0_12], %38 {strides = array<i32>} : memref<64x256xf32, #tpu.memory_space<vmem>>, vector<64x256xf32>,
    return
  }
  func.func @transform_0(%arg0: i32) -> (i32, i32) {
    %c0_i32 = arith.constant 0 : i32
    %c0_i32_0 = arith.constant 0 : i32
    %c0_i32_1 = arith.constant 0 : i32
    return %c0_i32, %c0_i32_0 : i32, i32
  }
  func.func @transform_1(%arg0: i32) -> (i32, i32) {
    %c0_i32 = arith.constant 0 : i32
    %c0_i32_0 = arith.constant 0 : i32
    %c0_i32_1 = arith.constant 0 : i32
    return %c0_i32, %c0_i32_0 : i32, i32
  }
  func.func @transform_2(%arg0: i32) -> (i32, i32) {
    %c0_i32 = arith.constant 0 : i32
    %c0_i32_0 = arith.constant 0 : i32
    %c0_i32_1 = arith.constant 0 : i32
    return %c0_i32, %c0_i32_0 : i32, i32
  }
}

</mosaic_0001>

<bundles_post_ra>
// kernel: rnn_model_forward.3
= control target key start
LH: loop header
LB: loop body
LE: loop exit
PB: predicated region body
PF: predicated region fallthrough
CT: control target
= control target key end

     0   :  { %v654_v0 = vmov 0   ;;  %s655_s25 = smov 127   ;;  %s657_s26 = smov 125   ;;  %s1223_s1 = inlined_call_operand.vmem [shape: f32[64,128], index: 1, kind: input, shape index: {}]   ;;  %s1224_s0 = inlined_call_operand.vmem [shape: f32[256,256], index: 0, kind: input, shape index: {}]   ;;  %s1225_s2 = inlined_call_operand.vmem [shape: f32[64,256], index: 2, kind: output, shape index: {}]  }
   0x1   :  { %621 = vset.pattern.permute.xlu2 %v654_v0  ;;  %620 = vset.pattern.permute.xlu1 %v654_v0  ;;  %v676_v1 = vld [vmem:[%s1223_s1 + $0x20] sm:$0xff]  ;;  %v681_v2 = vld [vmem:[%s1223_s1 + $0x10] sm:$0xff]  ;;  %v694_v4 = vld [vmem:[%s1223_s1 + $0x28] sm:$0xff] }
   0x2   :  { %v686_v3 = vld [vmem:[%s1223_s1] sm:$0xff]  ;;  %619 = vset.pattern.permute.xlu0 %v654_v0  ;;  %57 = vperm.xlu2 %621, %v676_v1   ;;  %v699_v5 = vld [vmem:[%s1223_s1 + $0x18] sm:$0xff]  ;;  %v704_v6 = vld [vmem:[%s1223_s1 + $0x8] sm:$0xff]  ;;  %v736_v9 = vsub.f32 1.0, %v681_v2  ;;  %v748_v11 = vsub.f32 1.0, %v694_v4  ;;  %v751_v12 = vsub.f32 1.0, %v676_v1 }
   0x3   :  { %47 = vperm.xlu1 %620, %v681_v2   ;;  %37 = vperm.xlu0 %619, %v686_v3   ;;  %v712_v7 = vld [vmem:[%s1223_s1 + $0x38] sm:$0xff]  ;;  %v717_v8 = vld [vmem:[%s1223_s1 + $0x30] sm:$0xff]  ;;  %v739_v10 = vsub.f32 1.0, %v704_v6  ;;  %v754_v13 = vsub.f32 1.0, %v686_v3  ;;  %v766_v15 = vsub.f32 1.0, %v699_v5  ;;  %s656_s1 = smov 126  }
   0x4   :  { %v763_v14 = vsub.f32 1.0, %v712_v7  ;;  %v775_v16 = vsub.f32 1.0, %v717_v8 }
   0xa   :  { %62 = vperm.xlu2 %621, %v694_v4  }
   0xb   :  { %52 = vperm.xlu1 %620, %v699_v5   ;;  %42 = vperm.xlu0 %619, %v704_v6  }
  0x12   :  { %115 = vrot.lane.b32.xlu2 %v686_v3, %s655_s25 }
  0x13   :  { %72 = vperm.xlu1 %620, %v712_v7   ;;  %67 = vperm.xlu0 %619, %v717_v8  }
  0x1a   :  { %121 = vrot.lane.b32.xlu2 %v699_v5, %s655_s25 }
  0x1b   :  { %119 = vrot.lane.b32.xlu1 %v681_v2, %s655_s25  ;;  %117 = vrot.lane.b32.xlu0 %v704_v6, %s655_s25 }
  0x22   :  { %127 = vrot.lane.b32.xlu2 %v717_v8, %s655_s25 }
  0x23   :  { %125 = vrot.lane.b32.xlu1 %v694_v4, %s655_s25  ;;  %123 = vrot.lane.b32.xlu0 %v676_v1, %s655_s25 }
  0x2a   :  { %247 = vrot.lane.b32.xlu2 %v736_v9, %s655_s25 }
  0x2b   :  { %245 = vrot.lane.b32.xlu1 %v739_v10, %s655_s25  ;;  %129 = vrot.lane.b32.xlu0 %v712_v7, %s655_s25 }
  0x32   :  { %253 = vrot.lane.b32.xlu2 %v748_v11, %s655_s25 }
  0x33   :  { %251 = vrot.lane.b32.xlu1 %v751_v12, %s655_s25  ;;  %243 = vrot.lane.b32.xlu0 %v754_v13, %s655_s25 }
  0x3a   :  { %275 = vrot.lane.b32.xlu2 %v686_v3, %s656_s1 }
  0x3b   :  { %257 = vrot.lane.b32.xlu1 %v763_v14, %s655_s25  ;;  %249 = vrot.lane.b32.xlu0 %v766_v15, %s655_s25 }
  0x42   :  { %281 = vrot.lane.b32.xlu2 %v699_v5, %s656_s1 }
  0x43   :  { %279 = vrot.lane.b32.xlu1 %v681_v2, %s656_s1  ;;  %255 = vrot.lane.b32.xlu0 %v775_v16, %s655_s25 }
  0x4a   :  { %287 = vrot.lane.b32.xlu2 %v717_v8, %s656_s1 }
  0x4b   :  { %285 = vrot.lane.b32.xlu1 %v694_v4, %s656_s1  ;;  %277 = vrot.lane.b32.xlu0 %v704_v6, %s656_s1 }
  0x53   :  { %283 = vrot.lane.b32.xlu0 %v676_v1, %s656_s1 }
  0x5b   :  { %289 = vrot.lane.b32.xlu0 %v712_v7, %s656_s1 }
  0x5c   :  { %v793_v17 = vpop.permute.xlu2 %57 }
  0x64   :  { %v795_v18 = vpop.permute.xlu2 %62 }
  0x6c   :  { %v116_v19 = vpop.permute.xlu2 %115 }
  0x6d   :  { %v139_v20 = vmul.f32 %v116_v19, %v754_v13 }
  0x6f   :  { %165 = vperm.xlu1 %620, %v139_v20  }
  0x74   :  { %v122_v21 = vpop.permute.xlu2 %121 }
  0x75   :  { %v798_v22 = vpop.permute.xlu1 %47  ;;  %v142_v23 = vmul.f32 %v122_v21, %v766_v15  ;;  %v801_v24 = vpop.permute.xlu0 %37 }
  0x77   :  { %180 = vperm.xlu1 %620, %v142_v23  }
  0x7c   :  { %v128_v25 = vpop.permute.xlu2 %127 }
  0x7d   :  { %v803_v26 = vpop.permute.xlu1 %52  ;;  %v145_v27 = vmul.f32 %v128_v25, %v775_v16  ;;  %v806_v28 = vpop.permute.xlu0 %42 }
  0x7f   :  { %195 = vperm.xlu1 %620, %v145_v27  }
  0x84   :  { %v248_v31 = vpop.permute.xlu2 %247 }
  0x85   :  { %v808_v29 = vpop.permute.xlu1 %72  ;;  %v810_v30 = vpop.permute.xlu0 %67  ;;  %v826_v54 = vmul.f32 %v248_v31, %v736_v9 }
  0x8c   :  { %v254_v40 = vpop.permute.xlu2 %253 }
  0x8d   :  { %v120_v32 = vpop.permute.xlu1 %119  ;;  %v118_v33 = vpop.permute.xlu0 %117  ;;  %v837_v62 = vmul.f32 %v254_v40, %v748_v11 }
  0x8e   :  { %v141_v34 = vmul.f32 %v120_v32, %v736_v9  ;;  %v140_v35 = vmul.f32 %v118_v33, %v739_v10 }
  0x90   :  { %170 = vperm.xlu2 %621, %v140_v35   ;;  %175 = vperm.xlu0 %619, %v141_v34  }
  0x94   :  { %v276_v44 = vpop.permute.xlu2 %275 }
  0x95   :  { %v126_v36 = vpop.permute.xlu1 %125  ;;  %v124_v37 = vpop.permute.xlu0 %123 }
  0x96   :  { %v144_v38 = vmul.f32 %v126_v36, %v748_v11  ;;  %v143_v39 = vmul.f32 %v124_v37, %v751_v12  ;;  %v153_v36 = vld [vmem:[%s1224_s0 + $0xb0] sm:$0xff]  ;;  %v154_v37 = vld [vmem:[%s1224_s0 + $0xb8] sm:$0xff] }
  0x98   :  { %185 = vperm.xlu2 %621, %v143_v39   ;;  %190 = vperm.xlu0 %619, %v144_v38   ;;  %v149_v38 = vld [vmem:[%s1224_s0 + $0x90] sm:$0xff]  ;;  %v150_v39 = vld [vmem:[%s1224_s0 + $0x98] sm:$0xff] }
  0x9c   :  { %v282_v49 = vpop.permute.xlu2 %281 }
  0x9d   :  { %v246_v41 = vpop.permute.xlu1 %245  ;;  %v130_v42 = vpop.permute.xlu0 %129 }
  0x9e   :  { %v146_v43 = vmul.f32 %v130_v42, %v763_v14  ;;  %v834_v61 = vmul.f32 %v246_v41, %v739_v10 }
  0xa0   :  { %200 = vperm.xlu2 %621, %v146_v43  }
  0xa4   :  { %v288_v55 = vpop.permute.xlu2 %287 }
  0xa5   :  { %v252_v45 = vpop.permute.xlu1 %251  ;;  %v244_v46 = vpop.permute.xlu0 %243 }
  0xa6   :  { %v818_v47 = vmul.f32 %v244_v46, %v754_v13  ;;  %v844_v21 = vmul.f32 %v252_v45, %v751_v12 }
  0xa8   :  { %v299_v48 = vmul.f32 %v276_v44, %v818_v47 }
  0xaa   :  { %325 = vperm.xlu1 %620, %v299_v48  }
  0xad   :  { %v258_v50 = vpop.permute.xlu1 %257  ;;  %v250_v51 = vpop.permute.xlu0 %249 }
  0xae   :  { %v822_v52 = vmul.f32 %v250_v51, %v766_v15  ;;  %v852_v27 = vmul.f32 %v258_v50, %v763_v14 }
  0xb0   :  { %v302_v53 = vmul.f32 %v282_v49, %v822_v52 }
  0xb2   :  { %340 = vperm.xlu1 %620, %v302_v53  }
  0xb5   :  { %v280_v56 = vpop.permute.xlu1 %279  ;;  %v256_v57 = vpop.permute.xlu0 %255 }
  0xb6   :  { %v301_v58 = vmul.f32 %v280_v56, %v826_v54  ;;  %v830_v59 = vmul.f32 %v256_v57, %v775_v16  ;;  %v32_v56 = vld [vmem:[%s1224_s0 + $0x68] sm:$0xff]  ;;  %v159_v57 = vld [vmem:[%s1224_s0 + $0xe0] sm:$0xff] }
  0xb8   :  { %v305_v60 = vmul.f32 %v288_v55, %v830_v59  ;;  %335 = vperm.xlu0 %619, %v301_v58   ;;  %v28_v55 = vld [vmem:[%s1224_s0 + $0x48] sm:$0xff] }
  0xb9   :  { %v160_v58 = vld [vmem:[%s1224_s0 + $0xe8] sm:$0xff] }
  0xba   :  { %355 = vperm.xlu1 %620, %v305_v60   ;;  %v155_v60 = vld [vmem:[%s1224_s0 + $0xc0] sm:$0xff] }
  0xbd   :  { %v286_v63 = vpop.permute.xlu1 %285  ;;  %v278_v0 = vpop.permute.xlu0 %277 }
  0xbe   :  { %v304_v19 = vmul.f32 %v286_v63, %v837_v62  ;;  %v300_v20 = vmul.f32 %v278_v0, %v834_v61  ;;  %v156_v63 = vld [vmem:[%s1224_s0 + $0xc8] sm:$0xff] }
  0xc0   :  { %350 = vperm.xlu0 %619, %v304_v19   ;;  %330 = vperm.xlu2 %621, %v300_v20   ;;  %v88_v20 = vmul.f32 %v810_v30, %v32_v56 }
  0xc2   :  { %397 = vrot.lane.b32.xlu1 %v739_v10, %s656_s1  ;;  %v19_v10 = vld [vmem:[%s1224_s0] sm:$0xff] }
  0xc5   :  { %v284_v23 = vpop.permute.xlu0 %283 }
  0xc6   :  { %v303_v25 = vmul.f32 %v284_v23, %v844_v21 }
  0xc8   :  { %395 = vrot.lane.b32.xlu0 %v754_v13, %s656_s1  ;;  %345 = vperm.xlu2 %621, %v303_v25   ;;  %v147_v13 = vld [vmem:[%s1224_s0 + $0x80] sm:$0xff] }
  0xca   :  { %403 = vrot.lane.b32.xlu1 %v751_v12, %s656_s1  ;;  %v20_v12 = vld [vmem:[%s1224_s0 + $0x8] sm:$0xff] }
  0xcd   :  { %v290_v31 = vpop.permute.xlu0 %289 }
  0xce   :  { %v306_v32 = vmul.f32 %v290_v31, %v852_v27 }
  0xd0   :  { %401 = vrot.lane.b32.xlu0 %v766_v15, %s656_s1  ;;  %360 = vperm.xlu2 %621, %v306_v32   ;;  %v76_v15 = vmul.f32 %v801_v24, %v20_v12 }
  0xd2   :  { %409 = vrot.lane.b32.xlu1 %v763_v14, %s656_s1  ;;  %v75_v14 = vmul.f32 %v801_v24, %v19_v10  ;;  %v21_v24 = vld [vmem:[%s1224_s0 + $0x10] sm:$0xff] }
  0xd8   :  { %407 = vrot.lane.b32.xlu0 %v775_v16, %s656_s1  ;;  %399 = vrot.lane.b32.xlu2 %v736_v9, %s656_s1  ;;  %v148_v9 = vld [vmem:[%s1224_s0 + $0x88] sm:$0xff] }
  0xda   :  { %431 = vrot.lane.b32.xlu1 %v681_v2, %s657_s26 }
  0xe0   :  { %429 = vrot.lane.b32.xlu0 %v704_v6, %s657_s26  ;;  %405 = vrot.lane.b32.xlu2 %v748_v11, %s656_s1  ;;  %v25_v6 = vld [vmem:[%s1224_s0 + $0x30] sm:$0xff]  ;;  %v26_v11 = vld [vmem:[%s1224_s0 + $0x38] sm:$0xff] }
  0xe1   :  { %v166_v2 = vpop.permute.xlu1 %165  ;;  %v81_v41 = vmul.f32 %v803_v26, %v25_v6  ;;  %v82_v42 = vmul.f32 %v803_v26, %v26_v11  ;;  %v27_v26 = vld [vmem:[%s1224_s0 + $0x40] sm:$0xff] }
  0xe2   :  { %437 = vrot.lane.b32.xlu1 %v694_v4, %s657_s26  ;;  %v203_v16 = vmul.f32 %v166_v2, %v147_v13  ;;  %v204_v33 = vmul.f32 %v166_v2, %v148_v9  ;;  %v22_v4 = vld [vmem:[%s1224_s0 + $0x18] sm:$0xff] }
  0xe4   :  { %v885_v34 = vadd.f32 %v203_v16, %v75_v14  ;;  %v887_v35 = vadd.f32 %v204_v33, %v76_v15  ;;  %v33_v14 = vld [vmem:[%s1224_s0 + $0x70] sm:$0xff]  ;;  %v162_v15 = vld [vmem:[%s1224_s0 + $0xf8] sm:$0xff] }
  0xe5   :  { %v89_v33 = vmul.f32 %v808_v29, %v33_v14 }
  0xe8   :  { %435 = vrot.lane.b32.xlu0 %v676_v1, %s657_s26  ;;  %427 = vrot.lane.b32.xlu2 %v686_v3, %s657_s26  ;;  %v77_v1 = vmul.f32 %v806_v28, %v21_v24  ;;  %v78_v3 = vmul.f32 %v806_v28, %v22_v4  ;;  %v31_v28 = vld [vmem:[%s1224_s0 + $0x60] sm:$0xff] }
  0xe9   :  { %v181_v40 = vpop.permute.xlu1 %180  ;;  %v87_v19 = vmul.f32 %v810_v30, %v31_v28  ;;  %v34_v30 = vld [vmem:[%s1224_s0 + $0x78] sm:$0xff] }
  0xea   :  { %v171_v43 = vpop.permute.xlu2 %170  ;;  %v209_v44 = vmul.f32 %v181_v40, %v153_v36  ;;  %v210_v45 = vmul.f32 %v181_v40, %v154_v37  ;;  %v90_v6 = vmul.f32 %v808_v29, %v34_v30  ;;  %v24_v37 = vld [vmem:[%s1224_s0 + $0x28] sm:$0xff]  ;;  %v315_v30 = vld [vmem:[%s1224_s0 + $0x140] sm:$0xff] }
  0xeb   :  { %v205_v46 = vmul.f32 %v171_v43, %v149_v38  ;;  %v206_v48 = vmul.f32 %v171_v43, %v150_v39  ;;  %v151_v38 = vld [vmem:[%s1224_s0 + $0xa0] sm:$0xff]  ;;  %v152_v29 = vld [vmem:[%s1224_s0 + $0xa8] sm:$0xff] }
  0xec   :  { %v921_v49 = vadd.f32 %v209_v44, %v81_v41  ;;  %v923_v50 = vadd.f32 %v210_v45, %v82_v42  ;;  %v80_v41 = vmul.f32 %v798_v22, %v24_v37 }
  0xed   :  { %v925_v51 = vadd.f32 %v205_v46, %v77_v1  ;;  %v927_v53 = vadd.f32 %v206_v48, %v78_v3  ;;  %v29_v1 = vld [vmem:[%s1224_s0 + $0x50] sm:$0xff]  ;;  %v30_v3 = vld [vmem:[%s1224_s0 + $0x58] sm:$0xff] }
  0xee   :  { %v157_v46 = vld [vmem:[%s1224_s0 + $0xd0] sm:$0xff] }
  0xf0   :  { %441 = vrot.lane.b32.xlu0 %v712_v7, %s657_s26  ;;  %433 = vrot.lane.b32.xlu2 %v699_v5, %s657_s26  ;;  %v83_v7 = vmul.f32 %v793_v17, %v27_v26  ;;  %v84_v5 = vmul.f32 %v793_v17, %v28_v55  ;;  %v161_v17 = vld [vmem:[%s1224_s0 + $0xf0] sm:$0xff]  ;;  %v85_v26 = vmul.f32 %v795_v18, %v29_v1  ;;  %v320_v1 = vld [vmem:[%s1224_s0 + $0x168] sm:$0xff] }
  0xf1   :  { %v196_v0 = vpop.permute.xlu1 %195  ;;  %v86_v55 = vmul.f32 %v795_v18, %v30_v3  ;;  %v308_v18 = vld [vmem:[%s1224_s0 + $0x108] sm:$0xff] }
  0xf2   :  { %v186_v23 = vpop.permute.xlu2 %185  ;;  %v215_v25 = vmul.f32 %v196_v0, %v159_v57  ;;  %v216_v31 = vmul.f32 %v196_v0, %v160_v58 }
  0xf3   :  { %v211_v32 = vmul.f32 %v186_v23, %v155_v60  ;;  %v212_v10 = vmul.f32 %v186_v23, %v156_v63  ;;  %v309_v60 = vld [vmem:[%s1224_s0 + $0x110] sm:$0xff]  ;;  %v310_v63 = vld [vmem:[%s1224_s0 + $0x118] sm:$0xff] }
  0xf4   :  { %v961_v12 = vadd.f32 %v215_v25, %v87_v19  ;;  %v963_v13 = vadd.f32 %v216_v31, %v88_v20  ;;  %v307_v19 = vld [vmem:[%s1224_s0 + $0x100] sm:$0xff] }
  0xf5   :  { %v227_v9 = vadd.f32 %v211_v32, %v83_v7  ;;  %v228_v2 = vadd.f32 %v212_v10, %v84_v5 }
  0xf8   :  { %439 = vrot.lane.b32.xlu2 %v717_v8, %s657_s26  ;;  %v23_v8 = vld [vmem:[%s1224_s0 + $0x20] sm:$0xff] }
  0xf9   :  { %v79_v40 = vmul.f32 %v798_v22, %v23_v8  ;;  %v158_v22 = vld [vmem:[%s1224_s0 + $0xd8] sm:$0xff] }
  0xfa   :  { %v201_v16 = vpop.permute.xlu2 %200 }
  0xfb   :  { %v217_v11 = vmul.f32 %v201_v16, %v161_v17  ;;  %v218_v24 = vmul.f32 %v201_v16, %v162_v15 }
  0xfd   :  { %v981_v4 = vadd.f32 %v217_v11, %v89_v33  ;;  %v983_v36 = vadd.f32 %v218_v24, %v90_v6 }
 0x102   :  { %v176_v39 = vpop.permute.xlu0 %175 }
 0x103   :  { %v207_v42 = vmul.f32 %v176_v39, %v151_v38  ;;  %v208_v43 = vmul.f32 %v176_v39, %v152_v29  ;;  %v321_v38 = vld [vmem:[%s1224_s0 + $0x170] sm:$0xff]  ;;  %v322_v29 = vld [vmem:[%s1224_s0 + $0x178] sm:$0xff] }
 0x105   :  { %v223_v44 = vadd.f32 %v207_v42, %v79_v40  ;;  %v224_v45 = vadd.f32 %v208_v43, %v80_v41  ;;  %v319_v43 = vld [vmem:[%s1224_s0 + $0x160] sm:$0xff] }
 0x10a   :  { %v191_v48 = vpop.permute.xlu0 %190 }
 0x10b   :  { %v213_v28 = vmul.f32 %v191_v48, %v157_v46  ;;  %v214_v56 = vmul.f32 %v191_v48, %v158_v22 }
 0x10d   :  { %v229_v57 = vadd.f32 %v213_v28, %v85_v26  ;;  %v230_v58 = vadd.f32 %v214_v56, %v86_v55 }
 0x11a   :  { %v331_v0 = vpop.permute.xlu2 %330 }
 0x11b   :  { %v365_v20 = vmul.f32 %v331_v0, %v309_v60  ;;  %v366_v23 = vmul.f32 %v331_v0, %v310_v63 }
 0x11c   :  { %v326_v25 = vpop.permute.xlu1 %325 }
 0x11d   :  { %v1026_v31 = vadd.f32 %v365_v20, %v925_v51  ;;  %v1029_v7 = vadd.f32 %v366_v23, %v927_v53  ;;  %v363_v5 = vmul.f32 %v326_v25, %v307_v19  ;;  %v364_v32 = vmul.f32 %v326_v25, %v308_v18  ;;  %v316_v51 = vld [vmem:[%s1224_s0 + $0x148] sm:$0xff]  ;;  %v313_v53 = vld [vmem:[%s1224_s0 + $0x130] sm:$0xff] }
 0x11f   :  { %v1032_v10 = vadd.f32 %v363_v5, %v885_v34  ;;  %v1035_v14 = vadd.f32 %v364_v32, %v887_v35  ;;  %v314_v34 = vld [vmem:[%s1224_s0 + $0x138] sm:$0xff] }
 0x122   :  { %v346_v17 = vpop.permute.xlu2 %345 }
 0x123   :  { %v371_v15 = vmul.f32 %v346_v17, %v315_v30  ;;  %v372_v35 = vmul.f32 %v346_v17, %v316_v51 }
 0x124   :  { %v341_v16 = vpop.permute.xlu1 %340 }
 0x125   :  { %v1049_v33 = vadd.f32 %v371_v15, %v227_v9  ;;  %v1051_v6 = vadd.f32 %v372_v35, %v228_v2  ;;  %v369_v11 = vmul.f32 %v341_v16, %v313_v53  ;;  %v370_v24 = vmul.f32 %v341_v16, %v314_v34  ;;  %v311_v9 = vld [vmem:[%s1224_s0 + $0x120] sm:$0xff] }
 0x127   :  { %v1054_v8 = vadd.f32 %v369_v11, %v921_v49  ;;  %v1057_v37 = vadd.f32 %v370_v24, %v923_v50  ;;  %v312_v49 = vld [vmem:[%s1224_s0 + $0x128] sm:$0xff] }
 0x12a   :  { %v361_v2 = vpop.permute.xlu2 %360  ;;  %v336_v39 = vpop.permute.xlu0 %335 }
 0x12b   :  { %v377_v50 = vmul.f32 %v361_v2, %v321_v38  ;;  %v378_v40 = vmul.f32 %v361_v2, %v322_v29  ;;  %v367_v41 = vmul.f32 %v336_v39, %v311_v9  ;;  %v368_v42 = vmul.f32 %v336_v39, %v312_v49 }
 0x12c   :  { %v356_v3 = vpop.permute.xlu1 %355 }
 0x12d   :  { %v1078_v46 = vadd.f32 %v377_v50, %v981_v4  ;;  %v1081_v22 = vadd.f32 %v378_v40, %v983_v36  ;;  %v1083_v48 = vadd.f32 %v367_v41, %v223_v44  ;;  %v1085_v26 = vadd.f32 %v368_v42, %v224_v45  ;;  %v317_v4 = vld [vmem:[%s1224_s0 + $0x150] sm:$0xff]  ;;  %v318_v36 = vld [vmem:[%s1224_s0 + $0x158] sm:$0xff] }
 0x12e   :  { %v375_v55 = vmul.f32 %v356_v3, %v319_v43  ;;  %v376_v28 = vmul.f32 %v356_v3, %v320_v1  ;;  %v462_v40 = vld [vmem:[%s1224_s0 + $0x198] sm:$0xff] }
 0x130   :  { %v1088_v56 = vadd.f32 %v375_v55, %v961_v12  ;;  %v1091_v60 = vadd.f32 %v376_v28, %v963_v13  ;;  %v467_v55 = vld [vmem:[%s1224_s0 + $0x1c0] sm:$0xff]  ;;  %v468_v28 = vld [vmem:[%s1224_s0 + $0x1c8] sm:$0xff] }
 0x132   :  { %v400_v44 = vpop.permute.xlu2 %399  ;;  %v351_v63 = vpop.permute.xlu0 %350 }
 0x133   :  { %v373_v45 = vmul.f32 %v351_v63, %v317_v4  ;;  %v374_v0 = vmul.f32 %v351_v63, %v318_v36  ;;  %v421_v15 = vmul.f32 %v400_v44, %v826_v54  ;;  %v459_v4 = vld [vmem:[%s1224_s0 + $0x180] sm:$0xff] }
 0x134   :  { %v398_v19 = vpop.permute.xlu1 %397 }
 0x135   :  { %v1099_v18 = vadd.f32 %v373_v45, %v229_v57  ;;  %v1101_v12 = vadd.f32 %v374_v0, %v230_v58  ;;  %v420_v16 = vmul.f32 %v398_v19, %v834_v61 }
 0x13a   :  { %v406_v20 = vpop.permute.xlu2 %405  ;;  %v396_v13 = vpop.permute.xlu0 %395 }
 0x13b   :  { %v419_v25 = vmul.f32 %v396_v13, %v818_v47  ;;  %v424_v38 = vmul.f32 %v406_v20, %v837_v62  ;;  %v461_v62 = vld [vmem:[%s1224_s0 + $0x190] sm:$0xff] }
 0x13c   :  { %v404_v23 = vpop.permute.xlu1 %403 }
 0x13d   :  { %v423_v54 = vmul.f32 %v404_v23, %v844_v21 }
 0x142   :  { %v428_v5 = vpop.permute.xlu2 %427  ;;  %v402_v32 = vpop.permute.xlu0 %401 }
 0x143   :  { %v451_v30 = vmul.f32 %v428_v5, %v419_v25  ;;  %v422_v17 = vmul.f32 %v402_v32, %v822_v52  ;;  %v473_v25 = vld [vmem:[%s1224_s0 + $0x1f0] sm:$0xff] }
 0x144   :  { %v410_v51 = vpop.permute.xlu1 %409 }
 0x145   :  { %477 = vperm.xlu1 %620, %v451_v30   ;;  %v426_v61 = vmul.f32 %v410_v51, %v852_v27 }
 0x14a   :  { %v434_v53 = vpop.permute.xlu2 %433  ;;  %v408_v34 = vpop.permute.xlu0 %407 }
 0x14b   :  { %v454_v57 = vmul.f32 %v434_v53, %v422_v17  ;;  %v425_v47 = vmul.f32 %v408_v34, %v830_v59 }
 0x14c   :  { %v432_v35 = vpop.permute.xlu1 %431 }
 0x14d   :  { %v453_v58 = vmul.f32 %v432_v35, %v421_v15  ;;  %492 = vperm.xlu1 %620, %v454_v57   ;;  %v463_v35 = vld [vmem:[%s1224_s0 + $0x1a0] sm:$0xff] }
 0x14f   :  { %487 = vperm.xlu0 %619, %v453_v58  }
 0x152   :  { %v440_v11 = vpop.permute.xlu2 %439  ;;  %v430_v24 = vpop.permute.xlu0 %429 }
 0x153   :  { %v457_v29 = vmul.f32 %v440_v11, %v425_v47  ;;  %v452_v9 = vmul.f32 %v430_v24, %v420_v16  ;;  %v464_v11 = vld [vmem:[%s1224_s0 + $0x1a8] sm:$0xff] }
 0x154   :  { %v438_v52 = vpop.permute.xlu1 %437 }
 0x155   :  { %v456_v49 = vmul.f32 %v438_v52, %v424_v38  ;;  %507 = vperm.xlu1 %620, %v457_v29   ;;  %482 = vperm.xlu2 %621, %v452_v9  }
 0x157   :  { %502 = vperm.xlu0 %619, %v456_v49  }
 0x15a   :  { %v436_v2 = vpop.permute.xlu0 %435 }
 0x15b   :  { %v455_v39 = vmul.f32 %v436_v2, %v423_v54 }
 0x15d   :  { %497 = vperm.xlu2 %621, %v455_v39  }
 0x162   :  { %v442_v50 = vpop.permute.xlu0 %441 }
 0x163   :  { %v458_v59 = vmul.f32 %v442_v50, %v426_v61 }
 0x165   :  { %512 = vperm.xlu2 %621, %v458_v59  }
 0x1af   :  { %v483_v41 = vpop.permute.xlu2 %482 }
 0x1b0   :  { %v517_v42 = vmul.f32 %v483_v41, %v461_v62  ;;  %v518_v43 = vmul.f32 %v483_v41, %v462_v40 }
 0x1b2   :  { %v533_v21 = vadd.f32 %v517_v42, %v1026_v31  ;;  %v534_v1 = vadd.f32 %v518_v43, %v1029_v7  ;;  %v460_v31 = vld [vmem:[%s1224_s0 + $0x188] sm:$0xff] }
 0x1b4   :  { %v549_v3 = vadd.f32 1e-08, %v533_v21  ;;  %v550_v27 = vadd.f32 1e-08, %v534_v1 }
 0x1b6   :  { %622 = vlog2.f32 %v549_v3 }
 0x1b7   :  { %624 = vlog2.f32 %v550_v27  ;;  %v498_v7 = vpop.permute.xlu2 %497  ;;  %v478_v36 = vpop.permute.xlu1 %477  ;;  %v469_v27 = vld [vmem:[%s1224_s0 + $0x1d0] sm:$0xff] }
 0x1b8   :  { %v523_v44 = vmul.f32 %v498_v7, %v467_v55  ;;  %v524_v63 = vmul.f32 %v498_v7, %v468_v28  ;;  %v515_v45 = vmul.f32 %v478_v36, %v459_v4  ;;  %v516_v0 = vmul.f32 %v478_v36, %v460_v31  ;;  %v470_v31 = vld [vmem:[%s1224_s0 + $0x1d8] sm:$0xff] }
 0x1ba   :  { %v539_v19 = vadd.f32 %v523_v44, %v1049_v33  ;;  %v540_v20 = vadd.f32 %v524_v63, %v1051_v6  ;;  %v531_v13 = vadd.f32 %v515_v45, %v1032_v10  ;;  %v532_v23 = vadd.f32 %v516_v0, %v1035_v14  ;;  %v474_v33 = vld [vmem:[%s1224_s0 + $0x1f8] sm:$0xff]  ;;  %v465_v10 = vld [vmem:[%s1224_s0 + $0x1b0] sm:$0xff] }
 0x1bb   :  { %v466_v6 = vld [vmem:[%s1224_s0 + $0x1b8] sm:$0xff] }
 0x1bc   :  { %v623_v5 = vpop.eup %622  ;;  %v555_v32 = vadd.f32 1e-08, %v539_v19  ;;  %v556_v30 = vadd.f32 1e-08, %v540_v20  ;;  %v547_v51 = vadd.f32 1e-08, %v531_v13 }
 0x1bd   :  { %v625_v17 = vpop.eup %624  ;;  %v568_v53 = vmul.f32 0.6931472, %v623_v5  ;;  %v548_v34 = vadd.f32 1e-08, %v532_v23 }
 0x1be   :  { %v570_v14 = vmul.f32 0.6931472, %v625_v17  ;;  %626 = vlog2.f32 %v555_v32 }
 0x1bf   :  { %597 = vst [vmem:[%s1225_s2 + $0x10] sm:$0xff] %v568_v53  ;;  %628 = vlog2.f32 %v556_v30  ;;  %v513_v15 = vpop.permute.xlu2 %512  ;;  %v493_v57 = vpop.permute.xlu1 %492 }
 0x1c0   :  { %598 = vst [vmem:[%s1225_s2 + $0x18] sm:$0xff] %v570_v14  ;;  %630 = vlog2.f32 %v547_v51  ;;  %v529_v58 = vmul.f32 %v513_v15, %v473_v25  ;;  %v530_v16 = vmul.f32 %v513_v15, %v474_v33  ;;  %v521_v47 = vmul.f32 %v493_v57, %v465_v10 }
 0x1c1   :  { %632 = vlog2.f32 %v548_v34  ;;  %v522_v24 = vmul.f32 %v493_v57, %v466_v6  ;;  %v488_v38 = vpop.permute.xlu0 %487 }
 0x1c2   :  { %v545_v29 = vadd.f32 %v529_v58, %v1078_v46  ;;  %v546_v9 = vadd.f32 %v530_v16, %v1081_v22  ;;  %v537_v52 = vadd.f32 %v521_v47, %v1054_v8  ;;  %v519_v49 = vmul.f32 %v488_v38, %v463_v35  ;;  %v471_v46 = vld [vmem:[%s1224_s0 + $0x1e0] sm:$0xff]  ;;  %v472_v8 = vld [vmem:[%s1224_s0 + $0x1e8] sm:$0xff] }
 0x1c3   :  { %v538_v54 = vadd.f32 %v522_v24, %v1057_v37  ;;  %v520_v2 = vmul.f32 %v488_v38, %v464_v11 }
 0x1c4   :  { %v627_v39 = vpop.eup %626  ;;  %v561_v61 = vadd.f32 1e-08, %v545_v29  ;;  %v562_v50 = vadd.f32 1e-08, %v546_v9  ;;  %v553_v59 = vadd.f32 1e-08, %v537_v52  ;;  %v535_v62 = vadd.f32 %v519_v49, %v1083_v48 }
 0x1c5   :  { %v629_v40 = vpop.eup %628  ;;  %v580_v41 = vmul.f32 0.6931472, %v627_v39  ;;  %v554_v42 = vadd.f32 1e-08, %v538_v54  ;;  %v536_v43 = vadd.f32 %v520_v2, %v1085_v26 }
 0x1c6   :  { %v631_v37 = vpop.eup %630  ;;  %v582_v22 = vmul.f32 0.6931472, %v629_v40  ;;  %634 = vlog2.f32 %v561_v61  ;;  %v551_v21 = vadd.f32 1e-08, %v535_v62 }
 0x1c7   :  { %v633_v1 = vpop.eup %632  ;;  %603 = vst [vmem:[%s1225_s2 + $0x40] sm:$0xff] %v580_v41  ;;  %v564_v48 = vmul.f32 0.6931472, %v631_v37  ;;  %636 = vlog2.f32 %v562_v50  ;;  %v552_v26 = vadd.f32 1e-08, %v536_v43  ;;  %v508_v3 = vpop.permute.xlu1 %507 }
 0x1c8   :  { %604 = vst [vmem:[%s1225_s2 + $0x48] sm:$0xff] %v582_v22  ;;  %v566_v55 = vmul.f32 0.6931472, %v633_v1  ;;  %638 = vlog2.f32 %v553_v59  ;;  %v527_v28 = vmul.f32 %v508_v3, %v471_v46  ;;  %v528_v4 = vmul.f32 %v508_v3, %v472_v8 }
 0x1c9   :  { %595 = vst [vmem:[%s1225_s2] sm:$0xff] %v564_v48  ;;  %640 = vlog2.f32 %v554_v42  ;;  %v503_v7 = vpop.permute.xlu0 %502 }
 0x1ca   :  { %596 = vst [vmem:[%s1225_s2 + $0x8] sm:$0xff] %v566_v55  ;;  %642 = vlog2.f32 %v551_v21  ;;  %v543_v36 = vadd.f32 %v527_v28, %v1088_v56  ;;  %v544_v44 = vadd.f32 %v528_v4, %v1091_v60  ;;  %v525_v63 = vmul.f32 %v503_v7, %v469_v27 }
 0x1cb   :  { %644 = vlog2.f32 %v552_v26  ;;  %v526_v45 = vmul.f32 %v503_v7, %v470_v31 }
 0x1cc   :  { %v635_v0 = vpop.eup %634  ;;  %v559_v19 = vadd.f32 1e-08, %v543_v36  ;;  %v560_v20 = vadd.f32 1e-08, %v544_v44  ;;  %v541_v13 = vadd.f32 %v525_v63, %v1099_v18 }
 0x1cd   :  { %v637_v23 = vpop.eup %636  ;;  %v592_v25 = vmul.f32 0.6931472, %v635_v0  ;;  %v542_v5 = vadd.f32 %v526_v45, %v1101_v12 }
 0x1ce   :  { %v639_v32 = vpop.eup %638  ;;  %v594_v30 = vmul.f32 0.6931472, %v637_v23  ;;  %646 = vlog2.f32 %v559_v19  ;;  %v557_v51 = vadd.f32 1e-08, %v541_v13 }
 0x1cf   :  { %v641_v17 = vpop.eup %640  ;;  %609 = vst [vmem:[%s1225_s2 + $0x70] sm:$0xff] %v592_v25  ;;  %v576_v56 = vmul.f32 0.6931472, %v639_v32  ;;  %648 = vlog2.f32 %v560_v20  ;;  %v558_v60 = vadd.f32 1e-08, %v542_v5 }
 0x1d0   :  { %v643_v53 = vpop.eup %642  ;;  %610 = vst [vmem:[%s1225_s2 + $0x78] sm:$0xff] %v594_v30  ;;  %v578_v18 = vmul.f32 0.6931472, %v641_v17  ;;  %650 = vlog2.f32 %v557_v51 }
 0x1d1   :  { %v645_v12 = vpop.eup %644  ;;  %601 = vst [vmem:[%s1225_s2 + $0x30] sm:$0xff] %v576_v56  ;;  %v572_v34 = vmul.f32 0.6931472, %v643_v53  ;;  %652 = vlog2.f32 %v558_v60 }
 0x1d2   :  { %602 = vst [vmem:[%s1225_s2 + $0x38] sm:$0xff] %v578_v18  ;;  %v574_v33 = vmul.f32 0.6931472, %v645_v12 }
 0x1d3   :  { %599 = vst [vmem:[%s1225_s2 + $0x20] sm:$0xff] %v572_v34 }
 0x1d4   :  { %v647_v10 = vpop.eup %646  ;;  %600 = vst [vmem:[%s1225_s2 + $0x28] sm:$0xff] %v574_v33 }
 0x1d5   :  { %v649_v14 = vpop.eup %648  ;;  %v588_v6 = vmul.f32 0.6931472, %v647_v10 }
 0x1d6   :  { %v651_v15 = vpop.eup %650  ;;  %v590_v57 = vmul.f32 0.6931472, %v649_v14 }
 0x1d7   :  { %v653_v35 = vpop.eup %652  ;;  %607 = vst [vmem:[%s1225_s2 + $0x60] sm:$0xff] %v588_v6  ;;  %v584_v58 = vmul.f32 0.6931472, %v651_v15 }
 0x1d8   :  { %608 = vst [vmem:[%s1225_s2 + $0x68] sm:$0xff] %v590_v57  ;;  %v586_v16 = vmul.f32 0.6931472, %v653_v35 }
 0x1d9   :  { %605 = vst [vmem:[%s1225_s2 + $0x50] sm:$0xff] %v584_v58 }
 0x1da   :  { %606 = vst [vmem:[%s1225_s2 + $0x58] sm:$0xff] %v586_v16 }

// kernel: rnn_model_forward.2
= control target key start
LH: loop header
LB: loop body
LE: loop exit
PB: predicated region body
PF: predicated region fallthrough
CT: control target
= control target key end

     0   :  { %s18526_s0 = inlined_call_operand.vmem [shape: f32[64,128], index: 0, kind: input, shape index: {}]   ;;  %s18527_s1 = inlined_call_operand.hbm [shape: bf16[128,512], index: 1, kind: input, shape index: {}]   ;;  %s18528_s2 = inlined_call_operand.hbm [shape: bf16[128,512], index: 2, kind: input, shape index: {}]   ;;  %s18529_s3 = inlined_call_operand.vmem [shape: f32[1,512], index: 3, kind: input, shape index: {}]   ;;  %s18530_s4 = inlined_call_operand.vmem [shape: bf16[256,512], index: 4, kind: input, shape index: {}]   ;;  %s18531_s5 = inlined_call_operand.vmem [shape: f32[1,512], index: 5, kind: input, shape index: {}]   ;;  %s18532_s6 = inlined_call_operand.vmem [shape: f32[8,128], index: 6, kind: input, shape index: {}]   ;;  %s18533_s7 = inlined_call_operand.vmem [shape: f32[8,128], index: 7, kind: input, shape index: {}]   ;;  %s18534_s8 = inlined_call_operand.vmem [shape: f32[8,128], index: 8, kind: input, shape index: {}]   ;;  %s18535_s9 = inlined_call_operand.vmem [shape: f32[8,128], index: 9, kind: input, shape index: {}]   ;;  %s18536_s10 = inlined_call_operand.hbm [shape: bf16[128,640], index: 10, kind: input, shape index: {}]   ;;  %s18537_s11 = inlined_call_operand.vmem [shape: f32[1,640], index: 11, kind: input, shape index: {}]   ;;  %s18538_s12 = inlined_call_operand.vmem [shape: bf16[128,256], index: 12, kind: input, shape index: {}]   ;;  %s18539_s13 = inlined_call_operand.vmem [shape: f32[1,256], index: 13, kind: input, shape index: {}]   ;;  %s18540_s14 = inlined_call_operand.hbm [shape: f32[128,128], index: 14, kind: input, shape index: {}]   ;;  %s18541_s15 = inlined_call_operand.vmem [shape: f32[256,256], index: 15, kind: output, shape index: {0}]   ;;  %s18542_s16 = inlined_call_operand.vmem [shape: f32[64,128], index: 16, kind: output, shape index: {1}]   ;;  %s18543_s17 = inlined_call_operand.vmem [shape: f32[64,128], index: 17, kind: output, shape index: {2}]   ;;  %s18544_s18 = inlined_call_operand.vmem [shape: f32[8,128], index: 18, kind: output, shape index: {3}]   ;;  %s18545_s19 = inlined_call_operand.vmem [shape: f32[8,128], index: 19, kind: output, shape index: {4}]   ;;  %s18546_s20 = inlined_call_operand.vmem [shape: f32[8,128], index: 20, kind: output, shape index: {5}]   ;;  %s18547_s21 = inlined_call_operand.vmem [shape: f32[8,128], index: 21, kind: output, shape index: {6}]  }
   0x1   :  { %18575 = sst [smem:[#allocation34_spill]] %s18526_s0 }
   0x2   :  { %18576 = sst [smem:[#allocation35_spill]] %s18527_s1 }
   0x3   :  { %18577 = sst [smem:[#allocation36_spill]] %s18528_s2 }
   0x4   :  { %18578 = sst [smem:[#allocation37_spill]] %s18529_s3 }
   0x5   :  { %18579 = sst [smem:[#allocation38_spill]] %s18530_s4 }
   0x6   :  { %18580 = sst [smem:[#allocation39_spill]] %s18531_s5 }
   0x7   :  { %18581 = sst [smem:[#allocation40_spill]] %s18541_s15 }
   0x8   :  { %18582 = sst [smem:[#allocation41_spill]] %s18543_s17 }
   0x9   :  { %27 = vsyncpa [#allocation5], 0 }
   0xa   :  { %28 = vsyncpa [#allocation7], 0 }
   0xb   :  { %29 = vsyncpa [#allocation10], 0  ;;  %s18583_s26 = sld [smem:[#allocation36_spill]]  ;;  %s13526_s3 = smov [#allocation6]  }
   0xc   :  { %s51_s28 = sshll.u32 %s13526_s3, 4  ;;  %s18584_s4 = sld [smem:[#allocation35_spill]]  ;;  %s52_s28 = int_to_ptr.vmem [resolvable:$true] %s51_s28 }
   0xd   :  { %s13527_s5 = smov 256   ;;  %s13528_s22 = smov 16  }
   0xe   :  { %s13529_s23 = smov [#allocation4]   ;;  %s76_s17 = sshll.u32 %s18536_s10, 4  ;;  %s77_s17 = int_to_ptr.hbm [resolvable:$true] %s76_s17 }
   0xf   :  { %s38_s1 = sshll.u32 %s13529_s23, 4  ;;  %s13530_s2 = smov [#allocation8]   ;;  %s39_s1 = int_to_ptr.vmem [resolvable:$true] %s38_s1 }
  0x10   :  { %s78_s25 = sshll.u32 %s13530_s2, 4  ;;  %s95_s29 = sshll.u32 %s18540_s14, 4  ;;  %s79_s25 = int_to_ptr.vmem [resolvable:$true] %s78_s25  ;;  %s96_s29 = int_to_ptr.hbm [resolvable:$true] %s95_s29 }
  0x11   :  { %s49_s27 = sshll.u32 %s18583_s26, 4  ;;  %s13531_s0 = smov 320   ;;  %s50_s27 = int_to_ptr.hbm [resolvable:$true] %s49_s27 }
  0x12   :  { %s36_s30 = sshll.u32 %s18584_s4, 4  ;;  %s13532_s4 = smov 20   ;;  %s37_s30 = int_to_ptr.hbm [resolvable:$true] %s36_s30 }
  0x13   :  { %57 = dma.hbm_to_vmem [thread:$0]  %s50_s27, 4096, %s52_s28, [#allocation7], %s13527_s5, %s13527_s5, %s13528_s22  }
  0x14   :  { %44 = dma.hbm_to_vmem [thread:$0]  %s37_s30, 4096, %s39_s1, [#allocation5], %s13527_s5, %s13527_s5, %s13528_s22  }
  0x15   :  { %84 = dma.hbm_to_vmem [thread:$0]  %s77_s17, 5120, %s79_s25, [#allocation7], %s13531_s0, %s13531_s0, %s13532_s4  }
  0x16   :  { %s13533_s27 = smov [#allocation9]   ;;  %s13534_s23 = smov 128  }
  0x17   :  { %s97_s28 = sshll.u32 %s13533_s27, 4  ;;  %s13535_s15 = smov 8   ;;  %s98_s28 = int_to_ptr.vmem [resolvable:$true] %s97_s28 }
  0x18   :  { %103 = dma.hbm_to_vmem [thread:$0]  %s96_s29, 2048, %s98_s28, [#allocation10], %s13534_s23, %s13534_s23, %s13535_s15  }
  0x19   :  { %13520 = dma.done.wait [#allocation5], 4096  }
  0x1a   :  { %13521 = vsyncadd [#allocation5], 4294963200 }
  0x1b   :  { %13522 = dma.done.wait [#allocation7], 9216  }
  0x1c   :  { %13523 = vsyncadd [#allocation7], 4294958080 }
  0x1d   :  { %13524 = dma.done.wait [#allocation10], 2048  }
  0x1e   :  { %13525 = vsyncadd [#allocation10], 4294965248  ;;  %v8784_v0 = vld [vmem:[#allocation4 + $0xe0] sm:$0xf]  ;;  %v12124_v1 = vld [vmem:[#allocation4 + $0xec] sm:$0xf0] }
  0x1f   :  { %v12122_v2 = vld [vmem:[#allocation4 + $0xe4] sm:$0xf]  ;;  %v8785_v3 = vor.u32 %v12124_v1, %v8784_v0  ;;  %v8786_v4 = vld [vmem:[#allocation4 + $0xf0] sm:$0xf0]  ;;  %v8792_v5 = vld [vmem:[#allocation4 + $0xe8] sm:$0xf] }
  0x20   :  { %v12125_v6 = vld [vmem:[#allocation4 + $0xf4] sm:$0xf0]  ;;  %v8789_v7 = vor.u32 %v12122_v2, %v8786_v4  ;;  %v12123_v9 = vld [vmem:[#allocation4 + $0xec] sm:$0xf]  ;;  %v8794_v10 = vld [vmem:[#allocation4 + $0xf8] sm:$0xf0] }
  0x21   :  { %v8793_v8 = vor.u32 %v12125_v6, %v8792_v5  ;;  %v8768_v11 = vld [vmem:[#allocation4 + $0xc0] sm:$0xf]  ;;  %334 = vmatpush.bf16.msra.mxu0 %v8785_v3  ;;  %v8797_v12 = vor.u32 %v12123_v9, %v8794_v10  ;;  %v12120_v13 = vld [vmem:[#allocation4 + $0xcc] sm:$0xf0]  ;;  %v12118_v14 = vld [vmem:[#allocation4 + $0xc4] sm:$0xf] }
  0x22   :  { %v8770_v15 = vld [vmem:[#allocation4 + $0xd0] sm:$0xf0]  ;;  %363 = vmatpush.bf16.msra.mxu1 %v8789_v7  ;;  %v8769_v16 = vor.u32 %v12120_v13, %v8768_v11  ;;  %v8776_v18 = vld [vmem:[#allocation4 + $0xc8] sm:$0xf]  ;;  %v12121_v19 = vld [vmem:[#allocation4 + $0xd4] sm:$0xf0] }
  0x23   :  { %392 = vmatpush.bf16.msra.mxu2 %v8793_v8  ;;  %v8773_v17 = vor.u32 %v12118_v14, %v8770_v15  ;;  %v12119_v20 = vld [vmem:[#allocation4 + $0xcc] sm:$0xf]  ;;  %421 = vmatpush.bf16.msra.mxu3 %v8797_v12  ;;  %v8777_v21 = vor.u32 %v12121_v19, %v8776_v18  ;;  %v8778_v22 = vld [vmem:[#allocation4 + $0xd8] sm:$0xf0]  ;;  %v8752_v23 = vld [vmem:[#allocation4 + $0xa0] sm:$0xf] }
  0x24   :  { %v12116_v24 = vld [vmem:[#allocation4 + $0xac] sm:$0xf0]  ;;  %v8781_v25 = vor.u32 %v12119_v20, %v8778_v22  ;;  %v12114_v26 = vld [vmem:[#allocation4 + $0xa4] sm:$0xf]  ;;  %v8754_v27 = vld [vmem:[#allocation4 + $0xb0] sm:$0xf0] }
  0x25   :  { %v8760_v28 = vld [vmem:[#allocation4 + $0xa8] sm:$0xf]  ;;  %335 = vmatpush.bf16.msra.mxu0 %v8769_v16  ;;  %v8753_v29 = vor.u32 %v12116_v24, %v8752_v23  ;;  %v12117_v30 = vld [vmem:[#allocation4 + $0xb4] sm:$0xf0]  ;;  %v12115_v31 = vld [vmem:[#allocation4 + $0xac] sm:$0xf]  ;;  %v8757_v33 = vor.u32 %v12114_v26, %v8754_v27 }
  0x26   :  { %v8762_v32 = vld [vmem:[#allocation4 + $0xb8] sm:$0xf0]  ;;  %364 = vmatpush.bf16.msra.mxu1 %v8773_v17  ;;  %v8761_v34 = vor.u32 %v12117_v30, %v8760_v28  ;;  %v8736_v35 = vld [vmem:[#allocation4 + $0x80] sm:$0xf]  ;;  %v12112_v36 = vld [vmem:[#allocation4 + $0x8c] sm:$0xf0] }
  0x27   :  { %393 = vmatpush.bf16.msra.mxu2 %v8777_v21  ;;  %v12110_v37 = vld [vmem:[#allocation4 + $0x84] sm:$0xf]  ;;  %422 = vmatpush.bf16.msra.mxu3 %v8781_v25  ;;  %v8765_v38 = vor.u32 %v12115_v31, %v8762_v32  ;;  %v8738_v39 = vld [vmem:[#allocation4 + $0x90] sm:$0xf0]  ;;  %v8744_v40 = vld [vmem:[#allocation4 + $0x88] sm:$0xf]  ;;  %v8737_v44 = vor.u32 %v12112_v36, %v8736_v35 }
  0x28   :  { %v12113_v41 = vld [vmem:[#allocation4 + $0x94] sm:$0xf0]  ;;  %v12111_v42 = vld [vmem:[#allocation4 + $0x8c] sm:$0xf]  ;;  %v8746_v43 = vld [vmem:[#allocation4 + $0x98] sm:$0xf0]  ;;  %v8741_v45 = vor.u32 %v12110_v37, %v8738_v39 }
  0x29   :  { %336 = vmatpush.bf16.msra.mxu0 %v8753_v29  ;;  %v8745_v46 = vor.u32 %v12113_v41, %v8744_v40  ;;  %v8720_v47 = vld [vmem:[#allocation4 + $0x60] sm:$0xf]  ;;  %v12108_v48 = vld [vmem:[#allocation4 + $0x6c] sm:$0xf0]  ;;  %v12106_v49 = vld [vmem:[#allocation4 + $0x64] sm:$0xf]  ;;  %v8749_v50 = vor.u32 %v12111_v42, %v8746_v43 }
  0x2a   :  { %365 = vmatpush.bf16.msra.mxu1 %v8757_v33  ;;  %v8722_v51 = vld [vmem:[#allocation4 + $0x70] sm:$0xf0]  ;;  %v8728_v52 = vld [vmem:[#allocation4 + $0x68] sm:$0xf]  ;;  %v12109_v53 = vld [vmem:[#allocation4 + $0x74] sm:$0xf0]  ;;  %v8721_v56 = vor.u32 %v12108_v48, %v8720_v47 }
  0x2b   :  { %394 = vmatpush.bf16.msra.mxu2 %v8761_v34  ;;  %423 = vmatpush.bf16.msra.mxu3 %v8765_v38  ;;  %v12107_v54 = vld [vmem:[#allocation4 + $0x6c] sm:$0xf]  ;;  %v8730_v55 = vld [vmem:[#allocation4 + $0x78] sm:$0xf0]  ;;  %v8725_v57 = vor.u32 %v12106_v49, %v8722_v51  ;;  %v8729_v58 = vor.u32 %v12109_v53, %v8728_v52  ;;  %v8704_v59 = vld [vmem:[#allocation4 + $0x40] sm:$0xf] }
  0x2c   :  { %v12104_v60 = vld [vmem:[#allocation4 + $0x4c] sm:$0xf0]  ;;  %v12102_v61 = vld [vmem:[#allocation4 + $0x44] sm:$0xf]  ;;  %v8733_v62 = vor.u32 %v12107_v54, %v8730_v55  ;;  %v8706_v63 = vld [vmem:[#allocation4 + $0x50] sm:$0xf0] }
  0x2d   :  { %337 = vmatpush.bf16.msra.mxu0 %v8737_v44  ;;  %v8712_v0 = vld [vmem:[#allocation4 + $0x48] sm:$0xf]  ;;  %v12105_v1 = vld [vmem:[#allocation4 + $0x54] sm:$0xf0]  ;;  %v12103_v2 = vld [vmem:[#allocation4 + $0x4c] sm:$0xf]  ;;  %v8705_v4 = vor.u32 %v12104_v60, %v8704_v59  ;;  %v8709_v5 = vor.u32 %v12102_v61, %v8706_v63 }
  0x2e   :  { %366 = vmatpush.bf16.msra.mxu1 %v8741_v45  ;;  %v8714_v3 = vld [vmem:[#allocation4 + $0x58] sm:$0xf0]  ;;  %v8713_v6 = vor.u32 %v12105_v1, %v8712_v0  ;;  %v8688_v7 = vld [vmem:[#allocation4 + $0x20] sm:$0xf]  ;;  %v12100_v8 = vld [vmem:[#allocation4 + $0x2c] sm:$0xf0] }
  0x2f   :  { %395 = vmatpush.bf16.msra.mxu2 %v8745_v46  ;;  %424 = vmatpush.bf16.msra.mxu3 %v8749_v50  ;;  %v12098_v9 = vld [vmem:[#allocation4 + $0x24] sm:$0xf]  ;;  %v8717_v10 = vor.u32 %v12103_v2, %v8714_v3  ;;  %v8690_v11 = vld [vmem:[#allocation4 + $0x30] sm:$0xf0]  ;;  %v8696_v12 = vld [vmem:[#allocation4 + $0x28] sm:$0xf]  ;;  %v8689_v16 = vor.u32 %v12100_v8, %v8688_v7 }
  0x30   :  { %v12101_v13 = vld [vmem:[#allocation4 + $0x34] sm:$0xf0]  ;;  %v12099_v14 = vld [vmem:[#allocation4 + $0x2c] sm:$0xf]  ;;  %v8698_v15 = vld [vmem:[#allocation4 + $0x38] sm:$0xf0]  ;;  %v8693_v19 = vor.u32 %v12098_v9, %v8690_v11 }
  0x31   :  { %338 = vmatpush.bf16.msra.mxu0 %v8721_v56  ;;  %v8672_v17 = vld [vmem:[#allocation4] sm:$0xf]  ;;  %v12096_v18 = vld [vmem:[#allocation4 + $0xc] sm:$0xf0]  ;;  %v8697_v20 = vor.u32 %v12101_v13, %v8696_v12  ;;  %v12094_v21 = vld [vmem:[#allocation4 + $0x4] sm:$0xf]  ;;  %v8701_v24 = vor.u32 %v12099_v14, %v8698_v15 }
  0x32   :  { %367 = vmatpush.bf16.msra.mxu1 %v8725_v57  ;;  %v8674_v22 = vld [vmem:[#allocation4 + $0x10] sm:$0xf0]  ;;  %v8680_v23 = vld [vmem:[#allocation4 + $0x8] sm:$0xf]  ;;  %v12097_v25 = vld [vmem:[#allocation4 + $0x14] sm:$0xf0]  ;;  %v8673_v31 = vor.u32 %v12096_v18, %v8672_v17 }
  0x33   :  { %396 = vmatpush.bf16.msra.mxu2 %v8729_v58  ;;  %425 = vmatpush.bf16.msra.mxu3 %v8733_v62  ;;  %v12095_v26 = vld [vmem:[#allocation4 + $0xc] sm:$0xf]  ;;  %v8682_v27 = vld [vmem:[#allocation4 + $0x18] sm:$0xf0]  ;;  %s18585_s17 = sld [smem:[#allocation34_spill]]  ;;  %v8677_v35 = vor.u32 %v12094_v21, %v8674_v22  ;;  %v8681_v36 = vor.u32 %v12097_v25, %v8680_v23 }
  0x34   :  { %v8912_v29 = vld [vmem:[#allocation6 + $0xe0] sm:$0xf]  ;;  %v12156_v30 = vld [vmem:[#allocation6 + $0xec] sm:$0xf0]  ;;  %v12154_v33 = vld [vmem:[#allocation6 + $0xe4] sm:$0xf]  ;;  %v8685_v37 = vor.u32 %v12095_v26, %v8682_v27 }
  0x35   :  { %339 = vmatpush.bf16.msra.mxu0 %v8705_v4  ;;  %v8914_v34 = vld [vmem:[#allocation6 + $0xf0] sm:$0xf0]  ;;  %v8913_v38 = vor.u32 %v12156_v30, %v8912_v29  ;;  %v8920_v39 = vld [vmem:[#allocation6 + $0xe8] sm:$0xf]  ;;  %v12157_v40 = vld [vmem:[#allocation6 + $0xf4] sm:$0xf0] }
  0x36   :  { %368 = vmatpush.bf16.msra.mxu1 %v8709_v5  ;;  %v12155_v41 = vld [vmem:[#allocation6 + $0xec] sm:$0xf]  ;;  %v8917_v43 = vor.u32 %v12154_v33, %v8914_v34  ;;  %v8922_v44 = vld [vmem:[#allocation6 + $0xf8] sm:$0xf0]  ;;  %v8896_v45 = vld [vmem:[#allocation6 + $0xc0] sm:$0xf]  ;;  %v8921_v49 = vor.u32 %v12157_v40, %v8920_v39 }
  0x37   :  { %397 = vmatpush.bf16.msra.mxu2 %v8713_v6  ;;  %426 = vmatpush.bf16.msra.mxu3 %v8717_v10  ;;  %v12152_v46 = vld [vmem:[#allocation6 + $0xcc] sm:$0xf0]  ;;  %v12150_v47 = vld [vmem:[#allocation6 + $0xc4] sm:$0xf]  ;;  %v8898_v48 = vld [vmem:[#allocation6 + $0xd0] sm:$0xf0]  ;;  %v8925_v50 = vor.u32 %v12155_v41, %v8922_v44 }
  0x38   :  { %v8897_v51 = vor.u32 %v12152_v46, %v8896_v45  ;;  %v8904_v52 = vld [vmem:[#allocation6 + $0xc8] sm:$0xf]  ;;  %v12153_v53 = vld [vmem:[#allocation6 + $0xd4] sm:$0xf0]  ;;  %v12151_v54 = vld [vmem:[#allocation6 + $0xcc] sm:$0xf]  ;;  %v8901_v55 = vor.u32 %v12150_v47, %v8898_v48 }
  0x39   :  { %v120_v28 = vld [vmem:[%s18585_s17] sm:$0xff]  ;;  %340 = vmatpush.bf16.msra.mxu0 %v8689_v16  ;;  %v121_v32 = vld [vmem:[%s18585_s17 + $0x8] sm:$0xff]  ;;  %v8906_v56 = vld [vmem:[#allocation6 + $0xd8] sm:$0xf0]  ;;  %v8905_v61 = vor.u32 %v12153_v53, %v8904_v52  ;;  %s18586_s30 = sld [smem:[#allocation38_spill]] }
  0x3a   :  { %369 = vmatpush.bf16.msra.mxu1 %v8693_v19  ;;  %v128_v42 = vpack.c.bf16 %v121_v32, %v120_v28  ;;  %v8880_v57 = vld [vmem:[#allocation6 + $0xa0] sm:$0xf]  ;;  %v12148_v58 = vld [vmem:[#allocation6 + $0xac] sm:$0xf0]  ;;  %v12146_v59 = vld [vmem:[#allocation6 + $0xa4] sm:$0xf]  ;;  %v8909_v62 = vor.u32 %v12151_v54, %v8906_v56 }
  0x3b   :  { %398 = vmatpush.bf16.msra.mxu2 %v8697_v20  ;;  %427 = vmatpush.bf16.msra.mxu3 %v8701_v24  ;;  %v8882_v60 = vld [vmem:[#allocation6 + $0xb0] sm:$0xf0]  ;;  %v8881_v63 = vor.u32 %v12148_v58, %v8880_v57  ;;  %v8888_v0 = vld [vmem:[#allocation6 + $0xa8] sm:$0xf]  ;;  %v12149_v1 = vld [vmem:[#allocation6 + $0xb4] sm:$0xf0] }
  0x3c   :  { %v12147_v2 = vld [vmem:[#allocation6 + $0xac] sm:$0xf]  ;;  %v8885_v3 = vor.u32 %v12146_v59, %v8882_v60  ;;  %v8890_v4 = vld [vmem:[#allocation6 + $0xb8] sm:$0xf0]  ;;  %v8864_v5 = vld [vmem:[#allocation6 + $0x80] sm:$0xf]  ;;  %v8889_v9 = vor.u32 %v12149_v1, %v8888_v0 }
  0x3d   :  { %341 = vmatpush.bf16.msra.mxu0 %v8673_v31  ;;  %v12144_v6 = vld [vmem:[#allocation6 + $0x8c] sm:$0xf0]  ;;  %v12142_v7 = vld [vmem:[#allocation6 + $0x84] sm:$0xf]  ;;  %v8866_v8 = vld [vmem:[#allocation6 + $0x90] sm:$0xf0]  ;;  %v8893_v11 = vor.u32 %v12147_v2, %v8890_v4 }
  0x3e   :  { %370 = vmatpush.bf16.msra.mxu1 %v8677_v35  ;;  %v122_v10 = vld [vmem:[%s18585_s17 + $0x10] sm:$0xff]  ;;  %v8865_v12 = vor.u32 %v12144_v6, %v8864_v5  ;;  %v8872_v13 = vld [vmem:[#allocation6 + $0x88] sm:$0xf]  ;;  %v12145_v14 = vld [vmem:[#allocation6 + $0x94] sm:$0xf0]  ;;  %v8869_v16 = vor.u32 %v12142_v7, %v8866_v8  ;;  %s18587_s3 = sld [smem:[#allocation37_spill]] }
  0x3f   :  { %399 = vmatpush.bf16.msra.mxu2 %v8681_v36  ;;  %428 = vmatpush.bf16.msra.mxu3 %v8685_v37  ;;  %v12143_v15 = vld [vmem:[#allocation6 + $0x8c] sm:$0xf]  ;;  %v8874_v17 = vld [vmem:[#allocation6 + $0x98] sm:$0xf0]  ;;  %v8848_v18 = vld [vmem:[#allocation6 + $0x60] sm:$0xf]  ;;  %v8873_v23 = vor.u32 %v12145_v14, %v8872_v13 }
  0x40   :  { %342 = vmatmul.bf16.vlgmr.msra.gmra.mxu0 %v128_v42  ;;  %v12140_v19 = vld [vmem:[#allocation6 + $0x6c] sm:$0xf0]  ;;  %v123_v20 = vld [vmem:[%s18585_s17 + $0x18] sm:$0xff]  ;;  %v12138_v21 = vld [vmem:[#allocation6 + $0x64] sm:$0xf]  ;;  %v8877_v24 = vor.u32 %v12143_v15, %v8874_v17  ;;  %s18588_s14 = sld [smem:[#allocation39_spill]] }
  0x41   :  { %693 = vmatpush.bf16.msrb.mxu0 %v8913_v38  ;;  %371 = vmatmul.bf16.vlgmr.msra.gmra.mxu1 %v128_v42  ;;  %v8850_v22 = vld [vmem:[#allocation6 + $0x70] sm:$0xf0]  ;;  %v8849_v25 = vor.u32 %v12140_v19, %v8848_v18  ;;  %v8856_v26 = vld [vmem:[#allocation6 + $0x68] sm:$0xf]  ;;  %v12141_v27 = vld [vmem:[#allocation6 + $0x74] sm:$0xf0]  ;;  %v129_v29 = vpack.c.bf16 %v123_v20, %v122_v10 }
  0x42   :  { %706 = vmatpush.bf16.msrb.mxu1 %v8917_v43  ;;  %400 = vmatmul.bf16.vlgmr.msra.gmra.mxu2 %v128_v42  ;;  %v12139_v28 = vld [vmem:[#allocation6 + $0x6c] sm:$0xf]  ;;  %v8853_v30 = vor.u32 %v12138_v21, %v8850_v22  ;;  %v8858_v31 = vld [vmem:[#allocation6 + $0x78] sm:$0xf0]  ;;  %v8832_v32 = vld [vmem:[#allocation6 + $0x40] sm:$0xf]  ;;  %v8857_v36 = vor.u32 %v12141_v27, %v8856_v26 }
  0x43   :  { %429 = vmatmul.bf16.vlgmr.msra.gmra.mxu3 %v128_v42  ;;  %719 = vmatpush.bf16.msrb.mxu2 %v8921_v49  ;;  %v12136_v33 = vld [vmem:[#allocation6 + $0x4c] sm:$0xf0]  ;;  %v12134_v34 = vld [vmem:[#allocation6 + $0x44] sm:$0xf]  ;;  %v8834_v35 = vld [vmem:[#allocation6 + $0x50] sm:$0xf0]  ;;  %v8861_v37 = vor.u32 %v12139_v28, %v8858_v31 }
  0x44   :  { %732 = vmatpush.bf16.msrb.mxu3 %v8925_v50  ;;  %v8833_v38 = vor.u32 %v12136_v33, %v8832_v32  ;;  %v8840_v39 = vld [vmem:[#allocation6 + $0x48] sm:$0xf]  ;;  %v12137_v40 = vld [vmem:[#allocation6 + $0x54] sm:$0xf0]  ;;  %v8837_v41 = vor.u32 %v12134_v34, %v8834_v35  ;;  %v12135_v42 = vld [vmem:[#allocation6 + $0x4c] sm:$0xf] }
  0x45   :  { %694 = vmatpush.bf16.msrb.mxu0 %v8897_v51  ;;  %v8842_v43 = vld [vmem:[#allocation6 + $0x58] sm:$0xf0]  ;;  %v8841_v44 = vor.u32 %v12137_v40, %v8840_v39  ;;  %v8816_v45 = vld [vmem:[#allocation6 + $0x20] sm:$0xf]  ;;  %v12132_v46 = vld [vmem:[#allocation6 + $0x2c] sm:$0xf0] }
  0x46   :  { %707 = vmatpush.bf16.msrb.mxu1 %v8901_v55  ;;  %v12130_v47 = vld [vmem:[#allocation6 + $0x24] sm:$0xf]  ;;  %v8845_v48 = vor.u32 %v12135_v42, %v8842_v43  ;;  %v8817_v49 = vor.u32 %v12132_v46, %v8816_v45  ;;  %v8818_v50 = vld [vmem:[#allocation6 + $0x30] sm:$0xf0]  ;;  %v8824_v51 = vld [vmem:[#allocation6 + $0x28] sm:$0xf] }
  0x47   :  { %720 = vmatpush.bf16.msrb.mxu2 %v8905_v61  ;;  %v12133_v52 = vld [vmem:[#allocation6 + $0x34] sm:$0xf0]  ;;  %v8821_v53 = vor.u32 %v12130_v47, %v8818_v50  ;;  %v12131_v54 = vld [vmem:[#allocation6 + $0x2c] sm:$0xf]  ;;  %v8826_v55 = vld [vmem:[#allocation6 + $0x38] sm:$0xf0] }
  0x48   :  { %733 = vmatpush.bf16.msrb.mxu3 %v8909_v62  ;;  %v8800_v56 = vld [vmem:[#allocation6] sm:$0xf]  ;;  %v12128_v57 = vld [vmem:[#allocation6 + $0xc] sm:$0xf0]  ;;  %v12126_v58 = vld [vmem:[#allocation6 + $0x4] sm:$0xf]  ;;  %v8825_v60 = vor.u32 %v12133_v52, %v8824_v51  ;;  %v8829_v61 = vor.u32 %v12131_v54, %v8826_v55 }
  0x49   :  { %695 = vmatpush.bf16.msrb.mxu0 %v8881_v63  ;;  %v8802_v59 = vld [vmem:[#allocation6 + $0x10] sm:$0xf0]  ;;  %v8801_v62 = vor.u32 %v12128_v57, %v8800_v56  ;;  %v8808_v63 = vld [vmem:[#allocation6 + $0x8] sm:$0xf]  ;;  %v12129_v0 = vld [vmem:[#allocation6 + $0x14] sm:$0xf0] }
  0x4a   :  { %708 = vmatpush.bf16.msrb.mxu1 %v8885_v3  ;;  %v8805_v1 = vor.u32 %v12126_v58, %v8802_v59  ;;  %v12127_v2 = vld [vmem:[#allocation6 + $0xc] sm:$0xf]  ;;  %v8810_v3 = vld [vmem:[#allocation6 + $0x18] sm:$0xf0]  ;;  %v124_v4 = vld [vmem:[%s18585_s17 + $0x20] sm:$0xff]  ;;  %v8809_v6 = vor.u32 %v12129_v0, %v8808_v63  ;;  %s18589_s1 = sld [smem:[#allocation41_spill]] }
  0x4b   :  { %721 = vmatpush.bf16.msrb.mxu2 %v8889_v9  ;;  %v125_v5 = vld [vmem:[%s18585_s17 + $0x28] sm:$0xff]  ;;  %v8813_v7 = vor.u32 %v12127_v2, %v8810_v3  ;;  %v126_v9 = vld [vmem:[%s18585_s17 + $0x30] sm:$0xff]  ;;  %v127_v10 = vld [vmem:[%s18585_s17 + $0x38] sm:$0xff] }
  0x4c   :  { %734 = vmatpush.bf16.msrb.mxu3 %v8893_v11  ;;  %v130_v8 = vpack.c.bf16 %v125_v5, %v124_v4  ;;  %v131_v11 = vpack.c.bf16 %v127_v10, %v126_v9  ;;  %v9168_v14 = vld [vmem:[%s18586_s30 + $0x1e0] sm:$0xf]  ;;  %v12220_v15 = vld [vmem:[%s18586_s30 + $0x1ec] sm:$0xf0]  ;;  %v9170_v18 = vld [vmem:[%s18586_s30 + $0x1f0] sm:$0xf0] }
  0x4d   :  { %696 = vmatpush.bf16.msrb.mxu0 %v8865_v12  ;;  %v492_v12 = vld [vmem:[%s18532_s6] sm:$0xff]  ;;  %v9169_v17 = vor.u32 %v12220_v15, %v9168_v14  ;;  %v12216_v21 = vld [vmem:[%s18586_s30 + $0x1cc] sm:$0xf0]  ;;  %v9106_v42 = vld [vmem:[%s18586_s30 + $0x170] sm:$0xf0] }
  0x4e   :  { %709 = vmatpush.bf16.msrb.mxu1 %v8869_v16  ;;  %v500_v13 = vpack.c.bf16 %v492_v12, %v492_v12  ;;  %v12218_v16 = vld [vmem:[%s18586_s30 + $0x1e4] sm:$0xf]  ;;  %v9152_v20 = vld [vmem:[%s18586_s30 + $0x1c0] sm:$0xf]  ;;  %v12212_v27 = vld [vmem:[%s18586_s30 + $0x1ac] sm:$0xf0] }
  0x4f   :  { %722 = vmatpush.bf16.msrb.mxu2 %v8873_v23  ;;  %v9173_v19 = vor.u32 %v12218_v16, %v9170_v18  ;;  %v12214_v22 = vld [vmem:[%s18586_s30 + $0x1c4] sm:$0xf]  ;;  %v9153_v23 = vor.u32 %v12216_v21, %v9152_v20  ;;  %v9136_v26 = vld [vmem:[%s18586_s30 + $0x1a0] sm:$0xf]  ;;  %v12208_v33 = vld [vmem:[%s18586_s30 + $0x18c] sm:$0xf0] }
  0x50   :  { %735 = vmatpush.bf16.msrb.mxu3 %v8877_v24  ;;  %347 = vmatmul.bf16.gmra.mxu0 %v129_v29  ;;  %v9154_v24 = vld [vmem:[%s18586_s30 + $0x1d0] sm:$0xf0]  ;;  %v12210_v28 = vld [vmem:[%s18586_s30 + $0x1a4] sm:$0xf]  ;;  %v9120_v32 = vld [vmem:[%s18586_s30 + $0x180] sm:$0xf] }
  0x51   :  { %697 = vmatpush.bf16.msrb.mxu0 %v8849_v25  ;;  %376 = vmatmul.bf16.gmra.mxu1 %v129_v29  ;;  %v9157_v25 = vor.u32 %v12214_v22, %v9154_v24  ;;  %v12206_v34 = vld [vmem:[%s18586_s30 + $0x184] sm:$0xf]  ;;  %v9121_v35 = vor.u32 %v12208_v33, %v9120_v32  ;;  %v12204_v39 = vld [vmem:[%s18586_s30 + $0x16c] sm:$0xf0]  ;;  %v9072_v50 = vld [vmem:[%s18586_s30 + $0x120] sm:$0xf] }
  0x52   :  { %710 = vmatpush.bf16.msrb.mxu1 %v8853_v30  ;;  %405 = vmatmul.bf16.gmra.mxu2 %v129_v29  ;;  %v9138_v30 = vld [vmem:[%s18586_s30 + $0x1b0] sm:$0xf0]  ;;  %v12202_v40 = vld [vmem:[%s18586_s30 + $0x164] sm:$0xf]  ;;  %v12200_v45 = vld [vmem:[%s18586_s30 + $0x14c] sm:$0xf0] }
  0x53   :  { %434 = vmatmul.bf16.gmra.mxu3 %v129_v29  ;;  %723 = vmatpush.bf16.msrb.mxu2 %v8857_v36  ;;  %v9137_v29 = vor.u32 %v12212_v27, %v9136_v26  ;;  %v9141_v31 = vor.u32 %v12210_v28, %v9138_v30  ;;  %v9122_v36 = vld [vmem:[%s18586_s30 + $0x190] sm:$0xf0]  ;;  %v9109_v43 = vor.u32 %v12202_v40, %v9106_v42  ;;  %v12198_v46 = vld [vmem:[%s18586_s30 + $0x144] sm:$0xf]  ;;  %v12196_v51 = vld [vmem:[%s18586_s30 + $0x12c] sm:$0xf0] }
  0x54   :  { %736 = vmatpush.bf16.msrb.mxu3 %v8861_v37  ;;  %v9125_v37 = vor.u32 %v12206_v34, %v9122_v36  ;;  %v12194_v52 = vld [vmem:[%s18586_s30 + $0x124] sm:$0xf]  ;;  %v9074_v54 = vld [vmem:[%s18586_s30 + $0x130] sm:$0xf0]  ;;  %v9056_v58 = vld [vmem:[%s18586_s30 + $0x100] sm:$0xf] }
  0x55   :  { %698 = vmatpush.bf16.msrb.mxu0 %v8833_v38  ;;  %v9104_v38 = vld [vmem:[%s18586_s30 + $0x160] sm:$0xf]  ;;  %v9077_v55 = vor.u32 %v12194_v52, %v9074_v54  ;;  %v12192_v59 = vld [vmem:[%s18586_s30 + $0x10c] sm:$0xf0]  ;;  %v9176_v63 = vld [vmem:[%s18586_s30 + $0x1e8] sm:$0xf] }
  0x56   :  { %711 = vmatpush.bf16.msrb.mxu1 %v8837_v41  ;;  %v9105_v41 = vor.u32 %v12204_v39, %v9104_v38  ;;  %v12221_v0 = vld [vmem:[%s18586_s30 + $0x1f4] sm:$0xf0]  ;;  %v12219_v3 = vld [vmem:[%s18586_s30 + $0x1ec] sm:$0xf]  ;;  %v9178_v4 = vld [vmem:[%s18586_s30 + $0x1f8] sm:$0xf0] }
  0x57   :  { %724 = vmatpush.bf16.msrb.mxu2 %v8841_v44  ;;  %v9088_v44 = vld [vmem:[%s18586_s30 + $0x140] sm:$0xf]  ;;  %v9177_v2 = vor.u32 %v12221_v0, %v9176_v63  ;;  %v9181_v5 = vor.u32 %v12219_v3, %v9178_v4  ;;  %v9042_v10 = vld [vmem:[%s18586_s30 + $0xf0] sm:$0xf0]  ;;  %v12217_v12 = vld [vmem:[%s18586_s30 + $0x1d4] sm:$0xf0] }
  0x58   :  { %737 = vmatpush.bf16.msrb.mxu3 %v8845_v48  ;;  %v9089_v47 = vor.u32 %v12200_v45, %v9088_v44  ;;  %v9090_v48 = vld [vmem:[%s18586_s30 + $0x150] sm:$0xf0]  ;;  %v12215_v16 = vld [vmem:[%s18586_s30 + $0x1cc] sm:$0xf]  ;;  %v9024_v22 = vld [vmem:[%s18586_s30 + $0xc0] sm:$0xf] }
  0x59   :  { %699 = vmatpush.bf16.msrb.mxu0 %v8817_v49  ;;  %v9093_v49 = vor.u32 %v12198_v46, %v9090_v48  ;;  %v12182_v24 = vld [vmem:[%s18586_s30 + $0xc4] sm:$0xf]  ;;  %v9026_v26 = vld [vmem:[%s18586_s30 + $0xd0] sm:$0xf0]  ;;  %v9144_v27 = vld [vmem:[%s18586_s30 + $0x1a8] sm:$0xf] }
  0x5a   :  { %712 = vmatpush.bf16.msrb.mxu1 %v8821_v53  ;;  %v9073_v53 = vor.u32 %v12196_v51, %v9072_v50  ;;  %v12213_v28 = vld [vmem:[%s18586_s30 + $0x1b4] sm:$0xf0]  ;;  %v9146_v32 = vld [vmem:[%s18586_s30 + $0x1b8] sm:$0xf0]  ;;  %v164_v33 = vld [vmem:[%s18587_s3] sm:$0xf] }
  0x5b   :  { %725 = vmatpush.bf16.msrb.mxu2 %v8825_v60  ;;  %v12190_v60 = vld [vmem:[%s18586_s30 + $0x104] sm:$0xf]  ;;  %v9145_v30 = vor.u32 %v12213_v28, %v9144_v27  ;;  %v12180_v36 = vld [vmem:[%s18586_s30 + $0xac] sm:$0xf0]  ;;  %v9010_v39 = vld [vmem:[%s18586_s30 + $0xb0] sm:$0xf0] }
  0x5c   :  { %738 = vmatpush.bf16.msrb.mxu3 %v8829_v61  ;;  %v9057_v61 = vor.u32 %v12192_v59, %v9056_v58  ;;  %v9128_v40 = vld [vmem:[%s18586_s30 + $0x188] sm:$0xf]  ;;  %v13874_v42 = vperm.slane %v164_v33, 0  ;;  %v12207_v46 = vld [vmem:[%s18586_s30 + $0x18c] sm:$0xf]  ;;  %v13884_v48 = vperm.slane %v164_v33, 1 }
  0x5d   :  { %700 = vmatpush.bf16.msrb.mxu0 %v8801_v62  ;;  %v9058_v62 = vld [vmem:[%s18586_s30 + $0x110] sm:$0xf0]  ;;  %v8992_v54 = vld [vmem:[%s18586_s30 + $0x80] sm:$0xf]  ;;  %v12174_v58 = vld [vmem:[%s18586_s30 + $0x84] sm:$0xf] }
  0x5e   :  { %713 = vmatpush.bf16.msrb.mxu1 %v8805_v1  ;;  %v9061_v1 = vor.u32 %v12190_v60, %v9058_v62  ;;  %v9112_v62 = vld [vmem:[%s18586_s30 + $0x168] sm:$0xf]  ;;  %v12205_v63 = vld [vmem:[%s18586_s30 + $0x174] sm:$0xf0]  ;;  %v9114_v3 = vld [vmem:[%s18586_s30 + $0x178] sm:$0xf0] }
  0x5f   :  { %726 = vmatpush.bf16.msrb.mxu2 %v8809_v6  ;;  %v9040_v6 = vld [vmem:[%s18586_s30 + $0xe0] sm:$0xf]  ;;  %v13918_v4 = vperm.slane %v164_v33, 2 }
  0x60   :  { %739 = vmatpush.bf16.msrb.mxu3 %v8813_v7  ;;  %352 = vmatmul.bf16.gmra.mxu0 %v130_v8  ;;  %v12188_v7 = vld [vmem:[%s18586_s30 + $0xec] sm:$0xf0] }
  0x61   :  { %381 = vmatmul.bf16.gmra.mxu1 %v130_v8  ;;  %v9041_v9 = vor.u32 %v12188_v7, %v9040_v6  ;;  %v8976_v6 = vld [vmem:[%s18586_s30 + $0x60] sm:$0xf]  ;;  %v12172_v7 = vld [vmem:[%s18586_s30 + $0x6c] sm:$0xf0] }
  0x62   :  { %410 = vmatmul.bf16.gmra.mxu2 %v130_v8  ;;  %1166 = vmatpush.bf16.msra.mxu1 %v9169_v17  ;;  %v9162_v17 = vld [vmem:[%s18586_s30 + $0x1d8] sm:$0xf0] }
  0x63   :  { %439 = vmatmul.bf16.gmra.mxu3 %v130_v8  ;;  %v12186_v8 = vld [vmem:[%s18586_s30 + $0xe4] sm:$0xf]  ;;  %1153 = vmatpush.bf16.msra.mxu0 %v9041_v9  ;;  %v9165_v20 = vor.u32 %v12215_v16, %v9162_v17  ;;  %v8977_v9 = vor.u32 %v12172_v7, %v8976_v6 }
  0x64   :  { %1192 = vmatpush.bf16.msra.mxu3 %v9173_v19  ;;  %v9045_v14 = vor.u32 %v12186_v8, %v9042_v10  ;;  %v12170_v8 = vld [vmem:[%s18586_s30 + $0x64] sm:$0xf]  ;;  %v8978_v10 = vld [vmem:[%s18586_s30 + $0x70] sm:$0xf0] }
  0x65   :  { %v8981_v16 = vor.u32 %v12170_v8, %v8978_v10  ;;  %v8928_v10 = vld [vmem:[%s18586_s30] sm:$0xf] }
  0x66   :  { %1167 = vmatpush.bf16.msra.mxu1 %v9153_v23  ;;  %1179 = vmatpush.bf16.msra.mxu2 %v9045_v14  ;;  %v12184_v23 = vld [vmem:[%s18586_s30 + $0xcc] sm:$0xf0]  ;;  %v13938_v14 = vperm.slane %v164_v33, 3  ;;  %v8962_v33 = vld [vmem:[%s18586_s30 + $0x50] sm:$0xf0] }
  0x68   :  { %1193 = vmatpush.bf16.msra.mxu3 %v9157_v25  ;;  %v9025_v25 = vor.u32 %v12184_v23, %v9024_v22  ;;  %v9098_v22 = vld [vmem:[%s18586_s30 + $0x158] sm:$0xf0] }
  0x6a   :  { %1168 = vmatpush.bf16.msra.mxu1 %v9137_v29  ;;  %v9029_v29 = vor.u32 %v12182_v24, %v9026_v26  ;;  %1154 = vmatpush.bf16.msra.mxu0 %v9025_v25 }
  0x6c   :  { %1194 = vmatpush.bf16.msra.mxu3 %v9141_v31  ;;  %v12211_v31 = vld [vmem:[%s18586_s30 + $0x1ac] sm:$0xf]  ;;  %1180 = vmatpush.bf16.msra.mxu2 %v9029_v29  ;;  %v8960_v29 = vld [vmem:[%s18586_s30 + $0x40] sm:$0xf] }
  0x6d   :  { %v9149_v34 = vor.u32 %v12211_v31, %v9146_v32  ;;  %v12166_v31 = vld [vmem:[%s18586_s30 + $0x44] sm:$0xf] }
  0x6e   :  { %1169 = vmatpush.bf16.msra.mxu1 %v9121_v35  ;;  %v9008_v35 = vld [vmem:[%s18586_s30 + $0xa0] sm:$0xf] }
  0x6f   :  { %v9009_v38 = vor.u32 %v12180_v36, %v9008_v35  ;;  %v12197_v35 = vld [vmem:[%s18586_s30 + $0x134] sm:$0xf0]  ;;  %v8965_v36 = vor.u32 %v12166_v31, %v8962_v33  ;;  %v12246_v33 = vld [vmem:[#allocation6 + $0xc4] sm:$0xf] }
  0x70   :  { %357 = vmatmul.bf16.gmra.mxu0 %v131_v11  ;;  %1195 = vmatpush.bf16.msra.mxu3 %v9125_v37  ;;  %v12178_v37 = vld [vmem:[%s18586_s30 + $0xa4] sm:$0xf] }
  0x71   :  { %386 = vmatmul.bf16.gmra.mxu1 %v131_v11  ;;  %v9013_v44 = vor.u32 %v12178_v37, %v9010_v39  ;;  %1155 = vmatpush.bf16.msra.mxu0 %v9009_v38  ;;  %v12195_v38 = vld [vmem:[%s18586_s30 + $0x12c] sm:$0xf]  ;;  %v9082_v39 = vld [vmem:[%s18586_s30 + $0x138] sm:$0xf0] }
  0x72   :  { %415 = vmatmul.bf16.gmra.mxu2 %v131_v11  ;;  %1170 = vmatpush.bf16.msra.mxu1 %v9105_v41  ;;  %v12209_v41 = vld [vmem:[%s18586_s30 + $0x194] sm:$0xf0] }
  0x73   :  { %444 = vmatmul.bf16.gmra.mxu3 %v131_v11  ;;  %v9160_v11 = vld [vmem:[%s18586_s30 + $0x1c8] sm:$0xf]  ;;  %v9129_v45 = vor.u32 %v12209_v41, %v9128_v40  ;;  %1181 = vmatpush.bf16.msra.mxu2 %v9013_v44  ;;  %v9085_v40 = vor.u32 %v12195_v38, %v9082_v39  ;;  %v8944_v41 = vld [vmem:[%s18586_s30 + $0x20] sm:$0xf]  ;;  %v12164_v44 = vld [vmem:[%s18586_s30 + $0x2c] sm:$0xf0] }
  0x74   :  { %1196 = vmatpush.bf16.msra.mxu3 %v9109_v43  ;;  %v9161_v15 = vor.u32 %v12217_v12, %v9160_v11  ;;  %v9096_v11 = vld [vmem:[%s18586_s30 + $0x148] sm:$0xf]  ;;  %v12201_v12 = vld [vmem:[%s18586_s30 + $0x154] sm:$0xf0] }
  0x75   :  { %v9097_v17 = vor.u32 %v12201_v12, %v9096_v11  ;;  %v12160_v11 = vld [vmem:[%s18586_s30 + $0xc] sm:$0xf0]  ;;  %v9032_v39 = vld [vmem:[%s18586_s30 + $0xc8] sm:$0xf] }
  0x76   :  { %1171 = vmatpush.bf16.msra.mxu1 %v9089_v47  ;;  %v9130_v47 = vld [vmem:[%s18586_s30 + $0x198] sm:$0xf0] }
  0x77   :  { %v9133_v51 = vor.u32 %v12207_v46, %v9130_v47  ;;  %v8945_v46 = vor.u32 %v12164_v44, %v8944_v41  ;;  %v8946_v47 = vld [vmem:[%s18586_s30 + $0x30] sm:$0xf0]  ;;  %v12183_v41 = vld [vmem:[%s18586_s30 + $0xcc] sm:$0xf] }
  0x78   :  { %1197 = vmatpush.bf16.msra.mxu3 %v9093_v49 }
  0x7a   :  { %1172 = vmatpush.bf16.msra.mxu1 %v9073_v53 }
  0x7c   :  { %1198 = vmatpush.bf16.msra.mxu3 %v9077_v55  ;;  %v12176_v55 = vld [vmem:[%s18586_s30 + $0x8c] sm:$0xf0] }
  0x7d   :  { %v8993_v60 = vor.u32 %v12176_v55, %v8992_v54 }
  0x7e   :  { %1173 = vmatpush.bf16.msra.mxu1 %v9057_v61  ;;  %v8994_v61 = vld [vmem:[%s18586_s30 + $0x90] sm:$0xf0] }
  0x7f   :  { %v8997_v0 = vor.u32 %v12174_v58, %v8994_v61  ;;  %1156 = vmatpush.bf16.msra.mxu0 %v8993_v60  ;;  %v12193_v58 = vld [vmem:[%s18586_s30 + $0x114] sm:$0xf0]  ;;  %v12191_v60 = vld [vmem:[%s18586_s30 + $0x10c] sm:$0xf]  ;;  %v9066_v61 = vld [vmem:[%s18586_s30 + $0x118] sm:$0xf0] }
  0x80   :  { %701 = vmatmul.bf16.vlgmr.msrb.gmra.mxu0 %v500_v13  ;;  %1199 = vmatpush.bf16.msra.mxu3 %v9061_v1  ;;  %v9113_v1 = vor.u32 %v12205_v63, %v9112_v62 }
  0x81   :  { %714 = vmatmul.bf16.vlgmr.msrb.gmra.mxu1 %v500_v13  ;;  %1182 = vmatpush.bf16.msra.mxu2 %v8997_v0 }
  0x82   :  { %727 = vmatmul.bf16.vlgmr.msrb.gmra.mxu2 %v500_v13  ;;  %1218 = vmatpush.bf16.msrb.mxu1 %v9177_v2  ;;  %v12203_v2 = vld [vmem:[%s18586_s30 + $0x16c] sm:$0xf] }
  0x83   :  { %740 = vmatmul.bf16.vlgmr.msrb.gmra.mxu3 %v500_v13  ;;  %1157 = vmatpush.bf16.msra.mxu0 %v8977_v9  ;;  %v9306_v9 = vld [vmem:[#allocation6 + $0xf8] sm:$0xf0] }
  0x84   :  { %1244 = vmatpush.bf16.msrb.mxu3 %v9181_v5  ;;  %v9117_v5 = vor.u32 %v12203_v2, %v9114_v3  ;;  %v12250_v2 = vld [vmem:[#allocation6 + $0xe4] sm:$0xf]  ;;  %v9298_v3 = vld [vmem:[#allocation6 + $0xf0] sm:$0xf0] }
  0x85   :  { %1183 = vmatpush.bf16.msra.mxu2 %v8981_v16  ;;  %v9301_v8 = vor.u32 %v12250_v2, %v9298_v3  ;;  %v8929_v16 = vor.u32 %v12160_v11, %v8928_v10  ;;  %v9018_v10 = vld [vmem:[%s18586_s30 + $0xb8] sm:$0xf0]  ;;  %v12238_v11 = vld [vmem:[#allocation6 + $0x84] sm:$0xf] }
  0x86   :  { %1219 = vmatpush.bf16.msrb.mxu1 %v9161_v15 }
  0x88   :  { %1245 = vmatpush.bf16.msrb.mxu3 %v9165_v20  ;;  %v12199_v20 = vld [vmem:[%s18586_s30 + $0x14c] sm:$0xf] }
  0x89   :  { %v9101_v26 = vor.u32 %v12199_v20, %v9098_v22  ;;  %1184 = vmatpush.bf16.msra.mxu2 %v8965_v36  ;;  %v8930_v20 = vld [vmem:[%s18586_s30 + $0x10] sm:$0xf0]  ;;  %v9048_v22 = vld [vmem:[%s18586_s30 + $0xe8] sm:$0xf] }
  0x8a   :  { %1220 = vmatpush.bf16.msrb.mxu1 %v9145_v30  ;;  %v12168_v30 = vld [vmem:[%s18586_s30 + $0x4c] sm:$0xf0] }
  0x8b   :  { %v8961_v32 = vor.u32 %v12168_v30, %v8960_v29  ;;  %v12187_v29 = vld [vmem:[%s18586_s30 + $0xec] sm:$0xf]  ;;  %v9050_v30 = vld [vmem:[%s18586_s30 + $0xf8] sm:$0xf0] }
  0x8c   :  { %1246 = vmatpush.bf16.msrb.mxu3 %v9149_v34  ;;  %v9080_v34 = vld [vmem:[%s18586_s30 + $0x128] sm:$0xf] }
  0x8d   :  { %v9081_v37 = vor.u32 %v12197_v35, %v9080_v34  ;;  %1158 = vmatpush.bf16.msra.mxu0 %v8961_v32  ;;  %v9053_v32 = vor.u32 %v12187_v29, %v9050_v30  ;;  %v9282_v34 = vld [vmem:[#allocation6 + $0xd0] sm:$0xf0]  ;;  %v12247_v35 = vld [vmem:[#allocation6 + $0xcc] sm:$0xf]  ;;  %v12177_v29 = vld [vmem:[%s18586_s30 + $0x94] sm:$0xf0] }
  0x8e   :  { %1221 = vmatpush.bf16.msrb.mxu1 %v9129_v45  ;;  %v12162_v45 = vld [vmem:[%s18586_s30 + $0x24] sm:$0xf]  ;;  %v9285_v36 = vor.u32 %v12246_v33, %v9282_v34  ;;  %v9002_v33 = vld [vmem:[%s18586_s30 + $0x98] sm:$0xf0] }
  0x8f   :  { %v8949_v54 = vor.u32 %v12162_v45, %v8946_v47  ;;  %v12242_v47 = vld [vmem:[#allocation6 + $0xa4] sm:$0xf] }
  0x90   :  { %1247 = vmatpush.bf16.msrb.mxu3 %v9133_v51  ;;  %v9064_v51 = vld [vmem:[%s18586_s30 + $0x108] sm:$0xf]  ;;  %v12234_v34 = vld [vmem:[#allocation6 + $0x64] sm:$0xf] }
  0x91   :  { %1159 = vmatpush.bf16.msra.mxu0 %v8945_v46  ;;  %v9065_v0 = vor.u32 %v12193_v58, %v9064_v51  ;;  %1185 = vmatpush.bf16.msra.mxu2 %v8949_v54  ;;  %v9034_v46 = vld [vmem:[%s18586_s30 + $0xd8] sm:$0xf0] }
  0x92   :  { %1222 = vmatpush.bf16.msrb.mxu1 %v9113_v1  ;;  %v9069_v1 = vor.u32 %v12191_v60, %v9066_v61  ;;  %v9037_v60 = vor.u32 %v12183_v41, %v9034_v46 }
  0x94   :  { %1248 = vmatpush.bf16.msrb.mxu3 %v9117_v5  ;;  %v12251_v5 = vld [vmem:[#allocation6 + $0xec] sm:$0xf] }
  0x95   :  { %1160 = vmatpush.bf16.msra.mxu0 %v8929_v16 }
  0x96   :  { %1223 = vmatpush.bf16.msrb.mxu1 %v9097_v17  ;;  %v12158_v17 = vld [vmem:[%s18586_s30 + $0x4] sm:$0xf] }
  0x98   :  { %1249 = vmatpush.bf16.msrb.mxu3 %v9101_v26  ;;  %v12189_v26 = vld [vmem:[%s18586_s30 + $0xf4] sm:$0xf0] }
  0x99   :  { %v9049_v31 = vor.u32 %v12189_v26, %v9048_v22  ;;  %v9258_v22 = vld [vmem:[#allocation6 + $0x98] sm:$0xf0]  ;;  %v9000_v26 = vld [vmem:[%s18586_s30 + $0x88] sm:$0xf] }
  0x9a   :  { %1224 = vmatpush.bf16.msrb.mxu1 %v9081_v37  ;;  %v9290_v37 = vld [vmem:[#allocation6 + $0xd8] sm:$0xf0] }
  0x9b   :  { %1205 = vmatpush.bf16.msrb.mxu0 %v9049_v31  ;;  %v9293_v38 = vor.u32 %v12247_v35, %v9290_v37  ;;  %v9001_v31 = vor.u32 %v12177_v29, %v9000_v26 }
  0x9c   :  { %1250 = vmatpush.bf16.msrb.mxu3 %v9085_v40  ;;  %v12185_v40 = vld [vmem:[%s18586_s30 + $0xd4] sm:$0xf0] }
  0x9d   :  { %v9033_v45 = vor.u32 %v12185_v40, %v9032_v39  ;;  %v12235_v39 = vld [vmem:[#allocation6 + $0x6c] sm:$0xf]  ;;  %v9242_v40 = vld [vmem:[#allocation6 + $0x78] sm:$0xf0] }
  0x9e   :  { %1225 = vmatpush.bf16.msrb.mxu1 %v9065_v0  ;;  %v9274_v0 = vld [vmem:[#allocation6 + $0xb8] sm:$0xf0]  ;;  %v9245_v46 = vor.u32 %v12235_v39, %v9242_v40  ;;  %v8952_v40 = vld [vmem:[%s18586_s30 + $0x28] sm:$0xf] }
  0x9f   :  { %1206 = vmatpush.bf16.msrb.mxu0 %v9033_v45 }
  0xa0   :  { %1251 = vmatpush.bf16.msrb.mxu3 %v9069_v1 }
  0xbd   :  { %v13769_v56 = vpop.f32.mrf.mxu0 }
  0xbe   :  { %v13771_v57 = vpop.f32.mrf.mxu1 }
  0xc5   :  { %v13815_v13 = vpop.f32.mrf.mxu2  ;;  %v13825_v19 = vpop.f32.mrf.mxu0 }
  0xc6   :  { %v13823_v18 = vpop.f32.mrf.mxu3  ;;  %v13827_v21 = vpop.f32.mrf.mxu1 }
  0xcd   :  { %v13876_v43 = vpop.f32.mrf.mxu2  ;;  %v348_v50 = vpop.f32.mrf.mxu0 }
  0xce   :  { %v13886_v49 = vpop.f32.mrf.mxu3  ;;  %v13889_v52 = vadd.f32 %v348_v50, %v13874_v42  ;;  %v377_v53 = vpop.f32.mrf.mxu1  ;;  %v494_v50 = vld [vmem:[%s18534_s8] sm:$0xff] }
  0xcf   :  { %v13901_v59 = vadd.f32 %v377_v53, %v13884_v48  ;;  %v14000_v55 = vpack.c.bf16 %v494_v50, %v494_v50  ;;  %v9266_v50 = vld [vmem:[#allocation6 + $0xb0] sm:$0xf0] }
  0xd0   :  { %v9269_v61 = vor.u32 %v12242_v47, %v9266_v50  ;;  %v8984_v50 = vld [vmem:[%s18586_s30 + $0x68] sm:$0xf] }
  0xd1   :  { %1174 = vmatmul.bf16.vlgmr.msra.gmra.mxu1 %v14000_v55  ;;  %1200 = vmatmul.bf16.vlgmr.msra.gmra.mxu3 %v14000_v55 }
  0xd2   :  { %1485 = vmatpush.bf16.msra.mxu1 %v9301_v8  ;;  %v12179_v8 = vld [vmem:[%s18586_s30 + $0xac] sm:$0xf] }
  0xd3   :  { %v9021_v16 = vor.u32 %v12179_v8, %v9018_v10  ;;  %v12231_v8 = vld [vmem:[#allocation6 + $0x4c] sm:$0xf] }
  0xd5   :  { %v406_v15 = vpop.f32.mrf.mxu2  ;;  %v13949_v25 = vpop.f32.mrf.mxu0 }
  0xd6   :  { %v13947_v23 = vadd.f32 %v406_v15, %v13918_v4  ;;  %v435_v24 = vpop.f32.mrf.mxu3  ;;  %v13954_v28 = vpop.f32.mrf.mxu1  ;;  %v9309_v15 = vor.u32 %v12251_v5, %v9306_v9  ;;  %1486 = vmatpush.bf16.msra.mxu1 %v9285_v36  ;;  %v9016_v5 = vld [vmem:[%s18586_s30 + $0xa8] sm:$0xf] }
  0xd7   :  { %v13952_v27 = vadd.f32 %v435_v24, %v13938_v14  ;;  %v8933_v24 = vor.u32 %v12158_v17, %v8930_v20  ;;  %v12239_v20 = vld [vmem:[#allocation6 + $0x8c] sm:$0xf] }
  0xd8   :  { %1511 = vmatpush.bf16.msra.mxu3 %v9309_v15  ;;  %v9250_v15 = vld [vmem:[#allocation6 + $0x90] sm:$0xf0] }
  0xd9   :  { %1186 = vmatpush.bf16.msra.mxu2 %v8933_v24  ;;  %v9253_v17 = vor.u32 %v12238_v11, %v9250_v15  ;;  %v9261_v24 = vor.u32 %v12239_v20, %v9258_v22  ;;  %v12169_v11 = vld [vmem:[%s18586_s30 + $0x54] sm:$0xf0]  ;;  %v12167_v15 = vld [vmem:[%s18586_s30 + $0x4c] sm:$0xf]  ;;  %v8970_v20 = vld [vmem:[%s18586_s30 + $0x58] sm:$0xf0] }
  0xda   :  { %1487 = vmatpush.bf16.msra.mxu1 %v9269_v61  ;;  %v12226_v22 = vld [vmem:[#allocation6 + $0x24] sm:$0xf] }
  0xdc   :  { %1512 = vmatpush.bf16.msra.mxu3 %v9293_v38  ;;  %v9234_v38 = vld [vmem:[#allocation6 + $0x70] sm:$0xf0] }
  0xdd   :  { %v13998_v53 = vpop.f32.mrf.mxu2  ;;  %v353_v63 = vpop.f32.mrf.mxu0  ;;  %1231 = vmatpush.bf16.msrb.mxu2 %v9053_v32  ;;  %v12175_v32 = vld [vmem:[%s18586_s30 + $0x8c] sm:$0xf]  ;;  %v9237_v45 = vor.u32 %v12234_v34, %v9234_v38 }
  0xde   :  { %v14011_v62 = vpop.f32.mrf.mxu3  ;;  %v14014_v6 = vadd.f32 %v353_v63, %v13874_v42  ;;  %v382_v7 = vpop.f32.mrf.mxu1  ;;  %v12243_v63 = vld [vmem:[#allocation6 + $0xac] sm:$0xf]  ;;  %1488 = vmatpush.bf16.msra.mxu1 %v9253_v17  ;;  %v9005_v37 = vor.u32 %v12175_v32, %v9002_v33  ;;  %v8973_v32 = vor.u32 %v12167_v15, %v8970_v20  ;;  %v8938_v15 = vld [vmem:[%s18586_s30 + $0x18] sm:$0xf0] }
  0xdf   :  { %v14024_v12 = vadd.f32 %v382_v7, %v13884_v48  ;;  %v9277_v3 = vor.u32 %v12243_v63, %v9274_v0  ;;  %v12181_v7 = vld [vmem:[%s18586_s30 + $0xb4] sm:$0xf0]  ;;  %v8986_v63 = vld [vmem:[%s18586_s30 + $0x78] sm:$0xf0]  ;;  %v12230_v0 = vld [vmem:[#allocation6 + $0x44] sm:$0xf] }
  0xe0   :  { %v9017_v9 = vor.u32 %v12181_v7, %v9016_v5  ;;  %v12227_v34 = vld [vmem:[#allocation6 + $0x2c] sm:$0xf] }
  0xe1   :  { %1232 = vmatpush.bf16.msrb.mxu2 %v9037_v60  ;;  %1513 = vmatpush.bf16.msra.mxu3 %v9277_v3  ;;  %v12171_v60 = vld [vmem:[%s18586_s30 + $0x6c] sm:$0xf]  ;;  %v9218_v3 = vld [vmem:[#allocation6 + $0x50] sm:$0xf0] }
  0xe2   :  { %1207 = vmatpush.bf16.msrb.mxu0 %v9017_v9  ;;  %1226 = vmatmul.bf16.vlgmr.msrb.gmra.mxu1 %v14000_v55  ;;  %v8989_v5 = vor.u32 %v12171_v60, %v8986_v63  ;;  %v9221_v7 = vor.u32 %v12230_v0, %v9218_v3  ;;  %v9226_v9 = vld [vmem:[#allocation6 + $0x58] sm:$0xf0]  ;;  %v9186_v60 = vld [vmem:[#allocation6 + $0x10] sm:$0xf0]  ;;  %v12223_v0 = vld [vmem:[#allocation6 + $0xc] sm:$0xf] }
  0xe3   :  { %1252 = vmatmul.bf16.vlgmr.msrb.gmra.mxu3 %v14000_v55  ;;  %1489 = vmatpush.bf16.msra.mxu1 %v9237_v45  ;;  %v9229_v10 = vor.u32 %v12231_v8, %v9226_v9  ;;  %v8968_v55 = vld [vmem:[%s18586_s30 + $0x48] sm:$0xf]  ;;  %v12163_v45 = vld [vmem:[%s18586_s30 + $0x2c] sm:$0xf]  ;;  %v9194_v3 = vld [vmem:[#allocation6 + $0x18] sm:$0xf0] }
  0xe4   :  { %v8969_v17 = vor.u32 %v12169_v11, %v8968_v55  ;;  %v12161_v8 = vld [vmem:[%s18586_s30 + $0x14] sm:$0xf0]  ;;  %v12159_v9 = vld [vmem:[%s18586_s30 + $0xc] sm:$0xf] }
  0xe5   :  { %v411_v44 = vpop.f32.mrf.mxu2  ;;  %v14060_v58 = vpop.f32.mrf.mxu0  ;;  %1233 = vmatpush.bf16.msrb.mxu2 %v9021_v16  ;;  %1514 = vmatpush.bf16.msra.mxu3 %v9261_v24  ;;  %v9202_v24 = vld [vmem:[#allocation6 + $0x30] sm:$0xf0] }
  0xe6   :  { %v14058_v51 = vadd.f32 %v411_v44, %v13918_v4  ;;  %v440_v54 = vpop.f32.mrf.mxu3  ;;  %v14065_v2 = vpop.f32.mrf.mxu1  ;;  %1208 = vmatpush.bf16.msrb.mxu0 %v9001_v31  ;;  %v9205_v33 = vor.u32 %v12226_v22, %v9202_v24  ;;  %v8941_v22 = vor.u32 %v12159_v9, %v8938_v15 }
  0xe7   :  { %v14063_v1 = vadd.f32 %v440_v54, %v13938_v14  ;;  %v12173_v54 = vld [vmem:[%s18586_s30 + $0x74] sm:$0xf0]  ;;  %1490 = vmatpush.bf16.msra.mxu1 %v9221_v7  ;;  %v8936_v7 = vld [vmem:[%s18586_s30 + $0x8] sm:$0xf] }
  0xe8   :  { %v8985_v61 = vor.u32 %v12173_v54, %v8984_v50  ;;  %v8954_v50 = vld [vmem:[%s18586_s30 + $0x38] sm:$0xf0]  ;;  %v12222_v54 = vld [vmem:[#allocation6 + $0x4] sm:$0xf]  ;;  %v8937_v11 = vor.u32 %v12161_v8, %v8936_v7 }
  0xe9   :  { %1234 = vmatpush.bf16.msrb.mxu2 %v9005_v37  ;;  %1515 = vmatpush.bf16.msra.mxu3 %v9245_v46  ;;  %v9189_v63 = vor.u32 %v12222_v54, %v9186_v60 }
  0xea   :  { %1209 = vmatpush.bf16.msrb.mxu0 %v8985_v61  ;;  %v8957_v61 = vor.u32 %v12163_v45, %v8954_v50 }
  0xeb   :  { %1491 = vmatpush.bf16.msra.mxu1 %v9205_v33 }
  0xed   :  { %v14085_v30 = vpop.f32.mrf.mxu2  ;;  %v358_v36 = vpop.f32.mrf.mxu0  ;;  %1235 = vmatpush.bf16.msrb.mxu2 %v8989_v5  ;;  %1516 = vmatpush.bf16.msra.mxu3 %v9229_v10  ;;  %v9197_v5 = vor.u32 %v12223_v0, %v9194_v3  ;;  %v344_v10 = vadd.f32 %v13769_v56, %v13874_v42 }
  0xee   :  { %v14093_v35 = vpop.f32.mrf.mxu3  ;;  %v14096_v41 = vadd.f32 %v358_v36, %v13874_v42  ;;  %v387_v44 = vpop.f32.mrf.mxu1  ;;  %v9210_v36 = vld [vmem:[#allocation6 + $0x38] sm:$0xf0]  ;;  %1210 = vmatpush.bf16.msrb.mxu0 %v8969_v17 }
  0xef   :  { %v14100_v47 = vadd.f32 %v387_v44, %v13884_v48  ;;  %v9213_v39 = vor.u32 %v12227_v34, %v9210_v36  ;;  %v12165_v44 = vld [vmem:[%s18586_s30 + $0x34] sm:$0xf0]  ;;  %1492 = vmatpush.bf16.msra.mxu1 %v9189_v63  ;;  %v402_v34 = vadd.f32 %v13815_v13, %v13918_v4  ;;  %v493_v13 = vld [vmem:[%s18533_s7] sm:$0xff] }
  0xf0   :  { %v8953_v46 = vor.u32 %v12165_v44, %v8952_v40 }
  0xf1   :  { %1236 = vmatpush.bf16.msrb.mxu2 %v8973_v32  ;;  %1517 = vmatpush.bf16.msra.mxu3 %v9213_v39 }
  0xf2   :  { %1211 = vmatpush.bf16.msrb.mxu0 %v8953_v46 }
  0xf5   :  { %v416_v16 = vpop.f32.mrf.mxu2  ;;  %v14130_v31 = vpop.f32.mrf.mxu0  ;;  %1237 = vmatpush.bf16.msrb.mxu2 %v8957_v61  ;;  %1518 = vmatpush.bf16.msra.mxu3 %v9197_v5 }
  0xf6   :  { %v14128_v26 = vadd.f32 %v416_v16, %v13918_v4  ;;  %v445_v29 = vpop.f32.mrf.mxu3  ;;  %v14135_v38 = vpop.f32.mrf.mxu1  ;;  %v373_v16 = vadd.f32 %v13771_v57, %v13884_v48  ;;  %1212 = vmatpush.bf16.msrb.mxu0 %v8937_v11  ;;  %v431_v57 = vadd.f32 %v13823_v18, %v13938_v14 }
  0xf7   :  { %v14133_v37 = vadd.f32 %v445_v29, %v13938_v14 }
  0xf9   :  { %1238 = vmatpush.bf16.msrb.mxu2 %v8941_v22 }
  0xfd   :  { %v14160_v55 = vpop.f32.mrf.mxu2  ;;  %v702_v20 = vpop.f32.mrf.mxu0 }
  0xfe   :  { %v14167_v17 = vpop.f32.mrf.mxu3  ;;  %v745_v24 = vadd.f32 %v702_v20, %v344_v10  ;;  %v715_v29 = vpop.f32.mrf.mxu1  ;;  %v9296_v20 = vld [vmem:[#allocation6 + $0xe0] sm:$0xf] }
  0xff   :  { %v746_v32 = vadd.f32 %v715_v29, %v373_v16  ;;  %v9304_v29 = vld [vmem:[#allocation6 + $0xe8] sm:$0xf] }
 0x100   :  { %v754_v56 = vmul.f32 0.5, %v745_v24  ;;  %v12252_v24 = vld [vmem:[#allocation6 + $0xec] sm:$0xf0] }
 0x101   :  { %v749_v33 = vmul.f32 0.5, %v746_v32  ;;  %v12253_v32 = vld [vmem:[#allocation6 + $0xf4] sm:$0xf0] }
 0x102   :  { %12976 = vtanh.f32 %v754_v56 }
 0x103   :  { %12978 = vtanh.f32 %v749_v33 }
 0x105   :  { %v728_v36 = vpop.f32.mrf.mxu2  ;;  %v704_v44 = vpop.f32.mrf.mxu0 }
 0x106   :  { %v747_v39 = vadd.f32 %v728_v36, %v402_v34  ;;  %v741_v40 = vpop.f32.mrf.mxu3  ;;  %v717_v46 = vpop.f32.mrf.mxu1  ;;  %v9297_v34 = vor.u32 %v12252_v24, %v9296_v20  ;;  %v9280_v36 = vld [vmem:[#allocation6 + $0xc0] sm:$0xf]  ;;  %v12249_v44 = vld [vmem:[#allocation6 + $0xd4] sm:$0xf0] }
 0x107   :  { %v748_v45 = vadd.f32 %v741_v40, %v431_v57  ;;  %v9305_v57 = vor.u32 %v12253_v32, %v9304_v29  ;;  %v9288_v40 = vld [vmem:[#allocation6 + $0xc8] sm:$0xf]  ;;  %v9216_v24 = vld [vmem:[#allocation6 + $0x40] sm:$0xf]  ;;  %v12232_v29 = vld [vmem:[#allocation6 + $0x4c] sm:$0xf0] }
 0x108   :  { %12980 = vtanh.f32 %v747_v39  ;;  %v12977_v50 = vpop.eup %12976  ;;  %v12248_v39 = vld [vmem:[#allocation6 + $0xcc] sm:$0xf0]  ;;  %v9289_v46 = vor.u32 %v12249_v44, %v9288_v40  ;;  %v9224_v32 = vld [vmem:[#allocation6 + $0x48] sm:$0xf]  ;;  %v12229_v44 = vld [vmem:[#allocation6 + $0x34] sm:$0xf0] }
 0x109   :  { %v761_v54 = vmul.f32 0.5, %v748_v45  ;;  %v12979_v60 = vpop.eup %12978  ;;  %v756_v61 = vmul.f32 0.5, %v12977_v50  ;;  %v9281_v45 = vor.u32 %v12248_v39, %v9280_v36  ;;  %v9264_v50 = vld [vmem:[#allocation6 + $0xa0] sm:$0xf]  ;;  %v12228_v39 = vld [vmem:[#allocation6 + $0x2c] sm:$0xf0] }
 0x10a   :  { %v751_v63 = vmul.f32 0.5, %v12979_v60  ;;  %v9272_v60 = vld [vmem:[#allocation6 + $0xa8] sm:$0xf]  ;;  %v9200_v36 = vld [vmem:[#allocation6 + $0x20] sm:$0xf] }
 0x10b   :  { %12982 = vtanh.f32 %v761_v54  ;;  %v757_v0 = vadd.f32 0.5, %v756_v61  ;;  %v12244_v54 = vld [vmem:[#allocation6 + $0xac] sm:$0xf0]  ;;  %v12245_v61 = vld [vmem:[#allocation6 + $0xb4] sm:$0xf0] }
 0x10c   :  { %v752_v3 = vadd.f32 0.5, %v751_v63  ;;  %v9265_v63 = vor.u32 %v12244_v54, %v9264_v50  ;;  %v9208_v40 = vld [vmem:[#allocation6 + $0x28] sm:$0xf]  ;;  %v9184_v50 = vld [vmem:[#allocation6] sm:$0xf] }
 0x10d   :  { %v730_v18 = vpop.f32.mrf.mxu2  ;;  %v12224_v54 = vld [vmem:[#allocation6 + $0xc] sm:$0xf0] }
 0x10e   :  { %v12981_v5 = vpop.eup %12980  ;;  %v743_v7 = vpop.f32.mrf.mxu3  ;;  %v753_v8 = vmul.f32 %v752_v3, %v493_v13  ;;  %v9248_v13 = vld [vmem:[#allocation6 + $0x80] sm:$0xf]  ;;  %v12240_v3 = vld [vmem:[#allocation6 + $0x8c] sm:$0xf0]  ;;  %v9256_v18 = vld [vmem:[#allocation6 + $0x88] sm:$0xf] }
 0x10f   :  { %v759_v9 = vmul.f32 %v12981_v5, %v757_v0  ;;  %v9273_v0 = vor.u32 %v12245_v61, %v9272_v60  ;;  %v12241_v5 = vld [vmem:[#allocation6 + $0x94] sm:$0xf0]  ;;  %v9249_v7 = vor.u32 %v12240_v3, %v9248_v13  ;;  %v9192_v60 = vld [vmem:[#allocation6 + $0x8] sm:$0xf]  ;;  %v9552_v13 = vld [vmem:[%s18586_s30 + $0x1e0] sm:$0xf] }
 0x110   :  { %v12225_v61 = vld [vmem:[#allocation6 + $0x14] sm:$0xf0]  ;;  %v12316_v3 = vld [vmem:[%s18586_s30 + $0x1ec] sm:$0xf0] }
 0x111   :  { %v12983_v10 = vpop.eup %12982  ;;  %v14176_v11 = vadd.f32 %v759_v9, %v753_v8  ;;  %v9257_v8 = vor.u32 %v12241_v5, %v9256_v18  ;;  %v9232_v9 = vld [vmem:[#allocation6 + $0x60] sm:$0xf]  ;;  %v12314_v18 = vld [vmem:[%s18586_s30 + $0x1e4] sm:$0xf]  ;;  %v9553_v5 = vor.u32 %v12316_v3, %v9552_v13 }
 0x112   :  { %v763_v15 = vmul.f32 0.5, %v12983_v10  ;;  %v12236_v10 = vld [vmem:[#allocation6 + $0x6c] sm:$0xf0]  ;;  %v9488_v3 = vld [vmem:[%s18586_s30 + $0x160] sm:$0xf] }
 0x113   :  { %12984 = vtanh.f32 %v14176_v11  ;;  %v9233_v20 = vor.u32 %v12236_v10, %v9232_v9  ;;  %1945 = vmatpush.bf16.msrb.mxu1 %v9553_v5  ;;  %v12312_v9 = vld [vmem:[%s18586_s30 + $0x1cc] sm:$0xf0]  ;;  %v12310_v10 = vld [vmem:[%s18586_s30 + $0x1c4] sm:$0xf] }
 0x114   :  { %v764_v16 = vadd.f32 0.5, %v763_v15  ;;  %v9240_v15 = vld [vmem:[#allocation6 + $0x68] sm:$0xf]  ;;  %v12298_v5 = vld [vmem:[%s18586_s30 + $0x164] sm:$0xf] }
 0x119   :  { %v12985_v22 = vpop.eup %12984 }
 0x11a   :  { %v766_v56 = vmul.f32 %v12985_v22, %v764_v16  ;;  %v12237_v16 = vld [vmem:[#allocation6 + $0x74] sm:$0xf0] }
 0x11b   :  { %v9241_v22 = vor.u32 %v12237_v16, %v9240_v15  ;;  %v9538_v16 = vld [vmem:[%s18586_s30 + $0x1d0] sm:$0xf0] }
 0x11c   :  { %v14179_v33 = vpack.c.bf16 %v766_v56, %v766_v56  ;;  %v12233_v56 = vld [vmem:[#allocation6 + $0x54] sm:$0xf0] }
 0x11e   :  { %1161 = vmatmul.bf16.vlgmr.msra.gmra.mxu0 %v14179_v33  ;;  %1187 = vmatmul.bf16.vlgmr.msra.gmra.mxu2 %v14179_v33 }
 0x11f   :  { %1493 = vmatmul.bf16.vlgmr.msra.gmra.mxu1 %v14179_v33  ;;  %1519 = vmatmul.bf16.vlgmr.msra.gmra.mxu3 %v14179_v33 }
 0x120   :  { %1472 = vmatpush.bf16.msra.mxu0 %v9297_v34  ;;  %1498 = vmatpush.bf16.msra.mxu2 %v9305_v57  ;;  %v9217_v34 = vor.u32 %v12232_v29, %v9216_v24  ;;  %v9225_v57 = vor.u32 %v12233_v56, %v9224_v32  ;;  %v9541_v24 = vor.u32 %v12310_v10, %v9538_v16  ;;  %v12306_v29 = vld [vmem:[%s18586_s30 + $0x1a4] sm:$0xf]  ;;  %v9522_v32 = vld [vmem:[%s18586_s30 + $0x1b0] sm:$0xf0]  ;;  %v12284_v10 = vld [vmem:[%s18586_s30 + $0xec] sm:$0xf0] }
 0x124   :  { %1473 = vmatpush.bf16.msra.mxu0 %v9281_v45  ;;  %1499 = vmatpush.bf16.msra.mxu2 %v9289_v46  ;;  %v9201_v45 = vor.u32 %v12228_v39, %v9200_v36  ;;  %v9209_v46 = vor.u32 %v12229_v44, %v9208_v40  ;;  %v9504_v36 = vld [vmem:[%s18586_s30 + $0x180] sm:$0xf]  ;;  %v12304_v39 = vld [vmem:[%s18586_s30 + $0x18c] sm:$0xf0]  ;;  %v12302_v40 = vld [vmem:[%s18586_s30 + $0x184] sm:$0xf] }
 0x125   :  { %v9505_v44 = vor.u32 %v12304_v39, %v9504_v36  ;;  %v9408_v39 = vld [vmem:[%s18586_s30 + $0xc0] sm:$0xf] }
 0x128   :  { %1474 = vmatpush.bf16.msra.mxu0 %v9265_v63  ;;  %1500 = vmatpush.bf16.msra.mxu2 %v9273_v0  ;;  %v9185_v63 = vor.u32 %v12224_v54, %v9184_v50  ;;  %v9193_v0 = vor.u32 %v12225_v61, %v9192_v60 }
 0x12c   :  { %1475 = vmatpush.bf16.msra.mxu0 %v9249_v7  ;;  %1501 = vmatpush.bf16.msra.mxu2 %v9257_v8  ;;  %v9554_v7 = vld [vmem:[%s18586_s30 + $0x1f0] sm:$0xf0] }
 0x12d   :  { %v9557_v8 = vor.u32 %v12314_v18, %v9554_v7  ;;  %v12300_v18 = vld [vmem:[%s18586_s30 + $0x16c] sm:$0xf0] }
 0x12e   :  { %1213 = vmatmul.bf16.vlgmr.msrb.gmra.mxu0 %v14179_v33  ;;  %1239 = vmatmul.bf16.vlgmr.msrb.gmra.mxu2 %v14179_v33  ;;  %v9489_v7 = vor.u32 %v12300_v18, %v9488_v3  ;;  %v12290_v3 = vld [vmem:[%s18586_s30 + $0x124] sm:$0xf]  ;;  %v9458_v18 = vld [vmem:[%s18586_s30 + $0x130] sm:$0xf0] }
 0x12f   :  { %1971 = vmatpush.bf16.msrb.mxu3 %v9557_v8  ;;  %v9490_v8 = vld [vmem:[%s18586_s30 + $0x170] sm:$0xf0] }
 0x130   :  { %1476 = vmatpush.bf16.msra.mxu0 %v9233_v20  ;;  %1502 = vmatpush.bf16.msra.mxu2 %v9241_v22  ;;  %v9520_v20 = vld [vmem:[%s18586_s30 + $0x1a0] sm:$0xf]  ;;  %v12308_v22 = vld [vmem:[%s18586_s30 + $0x1ac] sm:$0xf0] }
 0x131   :  { %v9521_v56 = vor.u32 %v12308_v22, %v9520_v20  ;;  %v9426_v20 = vld [vmem:[%s18586_s30 + $0xf0] sm:$0xf0]  ;;  %v9472_v22 = vld [vmem:[%s18586_s30 + $0x140] sm:$0xf] }
 0x133   :  { %1972 = vmatpush.bf16.msrb.mxu3 %v9541_v24  ;;  %v12296_v24 = vld [vmem:[%s18586_s30 + $0x14c] sm:$0xf0] }
 0x134   :  { %1477 = vmatpush.bf16.msra.mxu0 %v9217_v34  ;;  %1503 = vmatpush.bf16.msra.mxu2 %v9225_v57  ;;  %v9525_v34 = vor.u32 %v12306_v29, %v9522_v32  ;;  %v9473_v32 = vor.u32 %v12296_v24, %v9472_v22  ;;  %v12286_v24 = vld [vmem:[%s18586_s30 + $0x104] sm:$0xf] }
 0x137   :  { %1973 = vmatpush.bf16.msrb.mxu3 %v9525_v34  ;;  %v9474_v34 = vld [vmem:[%s18586_s30 + $0x150] sm:$0xf0] }
 0x138   :  { %1478 = vmatpush.bf16.msra.mxu0 %v9201_v45  ;;  %1504 = vmatpush.bf16.msra.mxu2 %v9209_v46  ;;  %v9506_v45 = vld [vmem:[%s18586_s30 + $0x190] sm:$0xf0] }
 0x139   :  { %v9509_v46 = vor.u32 %v12302_v40, %v9506_v45  ;;  %v12280_v40 = vld [vmem:[%s18586_s30 + $0xcc] sm:$0xf0] }
 0x13a   :  { %v9409_v45 = vor.u32 %v12280_v40, %v9408_v39  ;;  %v9562_v39 = vld [vmem:[%s18586_s30 + $0x1f8] sm:$0xf0] }
 0x13b   :  { %1974 = vmatpush.bf16.msrb.mxu3 %v9509_v46  ;;  %v9410_v46 = vld [vmem:[%s18586_s30 + $0xd0] sm:$0xf0] }
 0x13c   :  { %1479 = vmatpush.bf16.msra.mxu0 %v9185_v63  ;;  %1505 = vmatpush.bf16.msra.mxu2 %v9193_v0 }
 0x13f   :  { %1480 = vmatmul.bf16.vlgmr.msra.gmra.mxu0 %v14179_v33  ;;  %1506 = vmatmul.bf16.vlgmr.msra.gmra.mxu2 %v14179_v33  ;;  %v9536_v33 = vld [vmem:[%s18586_s30 + $0x1c0] sm:$0xf] }
 0x140   :  { %v9537_v15 = vor.u32 %v12312_v9, %v9536_v33  ;;  %v9493_v33 = vor.u32 %v12298_v5, %v9490_v8  ;;  %v9424_v9 = vld [vmem:[%s18586_s30 + $0xe0] sm:$0xf]  ;;  %v9461_v5 = vor.u32 %v12290_v3, %v9458_v18  ;;  %v12276_v8 = vld [vmem:[%s18586_s30 + $0xac] sm:$0xf0]  ;;  %v9544_v3 = vld [vmem:[%s18586_s30 + $0x1c8] sm:$0xf] }
 0x141   :  { %v9425_v16 = vor.u32 %v12284_v10, %v9424_v9  ;;  %v9394_v10 = vld [vmem:[%s18586_s30 + $0xb0] sm:$0xf0]  ;;  %v12313_v18 = vld [vmem:[%s18586_s30 + $0x1d4] sm:$0xf0] }
 0x142   :  { %1946 = vmatpush.bf16.msrb.mxu1 %v9537_v15  ;;  %v12282_v15 = vld [vmem:[%s18586_s30 + $0xe4] sm:$0xf]  ;;  %1975 = vmatpush.bf16.msrb.mxu3 %v9493_v33 }
 0x143   :  { %v9429_v29 = vor.u32 %v12282_v15, %v9426_v20  ;;  %1932 = vmatpush.bf16.msrb.mxu0 %v9425_v16  ;;  %v12274_v33 = vld [vmem:[%s18586_s30 + $0xa4] sm:$0xf]  ;;  %v9440_v15 = vld [vmem:[%s18586_s30 + $0x100] sm:$0xf]  ;;  %v12288_v16 = vld [vmem:[%s18586_s30 + $0x10c] sm:$0xf0] }
 0x144   :  { %v9397_v20 = vor.u32 %v12274_v33, %v9394_v10  ;;  %v9441_v22 = vor.u32 %v12288_v16, %v9440_v15  ;;  %v12268_v10 = vld [vmem:[%s18586_s30 + $0x6c] sm:$0xf0]  ;;  %v12266_v15 = vld [vmem:[%s18586_s30 + $0x64] sm:$0xf] }
 0x145   :  { %1958 = vmatpush.bf16.msrb.mxu2 %v9429_v29  ;;  %v9442_v29 = vld [vmem:[%s18586_s30 + $0x110] sm:$0xf0] }
 0x146   :  { %1947 = vmatpush.bf16.msrb.mxu1 %v9521_v56  ;;  %v12294_v56 = vld [vmem:[%s18586_s30 + $0x144] sm:$0xf] }
 0x147   :  { %v9477_v36 = vor.u32 %v12294_v56, %v9474_v34  ;;  %1933 = vmatpush.bf16.msrb.mxu0 %v9409_v45  ;;  %v9445_v56 = vor.u32 %v12286_v24, %v9442_v29  ;;  %v12317_v34 = vld [vmem:[%s18586_s30 + $0x1f4] sm:$0xf0]  ;;  %v9376_v45 = vld [vmem:[%s18586_s30 + $0x80] sm:$0xf]  ;;  %v9528_v24 = vld [vmem:[%s18586_s30 + $0x1a8] sm:$0xf] }
 0x148   :  { %v12309_v29 = vld [vmem:[%s18586_s30 + $0x1b4] sm:$0xf0] }
 0x149   :  { %1976 = vmatpush.bf16.msrb.mxu3 %v9477_v36  ;;  %v12315_v36 = vld [vmem:[%s18586_s30 + $0x1ec] sm:$0xf] }
 0x14a   :  { %1948 = vmatpush.bf16.msrb.mxu1 %v9505_v44  ;;  %v12278_v44 = vld [vmem:[%s18586_s30 + $0xc4] sm:$0xf] }
 0x14d   :  { %1977 = vmatpush.bf16.msrb.mxu3 %v9461_v5  ;;  %v12311_v5 = vld [vmem:[%s18586_s30 + $0x1cc] sm:$0xf] }
 0x14e   :  { %v14225_v57 = vpop.f32.mrf.mxu1  ;;  %1949 = vmatpush.bf16.msrb.mxu1 %v9489_v7  ;;  %v9392_v7 = vld [vmem:[%s18586_s30 + $0xa0] sm:$0xf] }
 0x14f   :  { %v9393_v9 = vor.u32 %v12276_v8, %v9392_v7  ;;  %v9545_v7 = vor.u32 %v12313_v18, %v9544_v3  ;;  %v9546_v8 = vld [vmem:[%s18586_s30 + $0x1d8] sm:$0xf0]  ;;  %v12303_v3 = vld [vmem:[%s18586_s30 + $0x18c] sm:$0xf] }
 0x150   :  { %v9549_v33 = vor.u32 %v12311_v5, %v9546_v8  ;;  %v9514_v5 = vld [vmem:[%s18586_s30 + $0x198] sm:$0xf0]  ;;  %v9328_v8 = vld [vmem:[%s18586_s30 + $0x20] sm:$0xf] }
 0x151   :  { %1934 = vmatpush.bf16.msrb.mxu0 %v9393_v9  ;;  %1978 = vmatpush.bf16.msrb.mxu3 %v9445_v56  ;;  %v9360_v9 = vld [vmem:[%s18586_s30 + $0x60] sm:$0xf]  ;;  %v12307_v56 = vld [vmem:[%s18586_s30 + $0x1ac] sm:$0xf] }
 0x152   :  { %1950 = vmatpush.bf16.msrb.mxu1 %v9473_v32  ;;  %v9560_v32 = vld [vmem:[%s18586_s30 + $0x1e8] sm:$0xf]  ;;  %v9361_v16 = vor.u32 %v12268_v10, %v9360_v9  ;;  %v12258_v9 = vld [vmem:[%s18586_s30 + $0x24] sm:$0xf] }
 0x153   :  { %v9561_v40 = vor.u32 %v12317_v34, %v9560_v32  ;;  %v9529_v32 = vor.u32 %v12309_v29, %v9528_v24  ;;  %v9530_v34 = vld [vmem:[%s18586_s30 + $0x1b8] sm:$0xf0]  ;;  %v12301_v24 = vld [vmem:[%s18586_s30 + $0x174] sm:$0xf0]  ;;  %v12299_v29 = vld [vmem:[%s18586_s30 + $0x16c] sm:$0xf] }
 0x154   :  { %v14239_v50 = vpop.f32.mrf.mxu3 }
 0x156   :  { %v1177_v54 = vpop.f32.mrf.mxu1 }
 0x157   :  { %v9456_v54 = vld [vmem:[%s18586_s30 + $0x120] sm:$0xf] }
 0x15c   :  { %v1203_v60 = vpop.f32.mrf.mxu3 }
 0x15d   :  { %v12292_v60 = vld [vmem:[%s18586_s30 + $0x12c] sm:$0xf0] }
 0x15f   :  { %v14241_v61 = vpop.f32.mrf.mxu1 }
 0x166   :  { %v14243_v63 = vpop.f32.mrf.mxu3 }
 0x167   :  { %v1229_v0 = vpop.f32.mrf.mxu1 }
 0x168   :  { %v9413_v0 = vor.u32 %v12278_v44, %v9410_v46  ;;  %v9565_v44 = vor.u32 %v12315_v36, %v9562_v39  ;;  %v12272_v46 = vld [vmem:[%s18586_s30 + $0x8c] sm:$0xf0]  ;;  %v9533_v36 = vor.u32 %v12307_v56, %v9530_v34  ;;  %v9344_v39 = vld [vmem:[%s18586_s30 + $0x40] sm:$0xf]  ;;  %v9498_v34 = vld [vmem:[%s18586_s30 + $0x178] sm:$0xf0] }
 0x16a   :  { %1959 = vmatpush.bf16.msrb.mxu2 %v9413_v0  ;;  %v9378_v0 = vld [vmem:[%s18586_s30 + $0x90] sm:$0xf0]  ;;  %2023 = vmatpush.bf16.msra.mxu3 %v9565_v44  ;;  %v12262_v44 = vld [vmem:[%s18586_s30 + $0x44] sm:$0xf] }
 0x16e   :  { %v1255_v13 = vpop.f32.mrf.mxu3  ;;  %1960 = vmatpush.bf16.msrb.mxu2 %v9397_v20  ;;  %v9362_v20 = vld [vmem:[%s18586_s30 + $0x70] sm:$0xf0]  ;;  %2024 = vmatpush.bf16.msra.mxu3 %v9549_v33  ;;  %v12260_v33 = vld [vmem:[%s18586_s30 + $0x2c] sm:$0xf0] }
 0x16f   :  { %v9457_v13 = vor.u32 %v12292_v60, %v9456_v54  ;;  %v9377_v54 = vor.u32 %v12272_v46, %v9376_v45  ;;  %v12270_v60 = vld [vmem:[%s18586_s30 + $0x84] sm:$0xf]  ;;  %v14401_v45 = vld [vmem:[%s18588_s14] sm:$0xf] }
 0x170   :  { %v14428_v10 = vperm.slane %v14401_v45, 0 }
 0x171   :  { %1951 = vmatpush.bf16.msrb.mxu1 %v9457_v13  ;;  %v9381_v13 = vor.u32 %v12270_v60, %v9378_v0  ;;  %1935 = vmatpush.bf16.msrb.mxu0 %v9377_v54  ;;  %v9346_v54 = vld [vmem:[%s18586_s30 + $0x50] sm:$0xf0]  ;;  %v9512_v0 = vld [vmem:[%s18586_s30 + $0x188] sm:$0xf] }
 0x172   :  { %2025 = vmatpush.bf16.msra.mxu3 %v9533_v36  ;;  %v9349_v60 = vor.u32 %v12262_v44, %v9346_v54  ;;  %v12256_v44 = vld [vmem:[%s18586_s30 + $0xc] sm:$0xf0] }
 0x173   :  { %1961 = vmatpush.bf16.msrb.mxu2 %v9381_v13  ;;  %v12305_v13 = vld [vmem:[%s18586_s30 + $0x194] sm:$0xf0] }
 0x174   :  { %v9513_v18 = vor.u32 %v12305_v13, %v9512_v0  ;;  %v9314_v13 = vld [vmem:[%s18586_s30 + $0x10] sm:$0xf0] }
 0x175   :  { %1952 = vmatpush.bf16.msrb.mxu1 %v9441_v22  ;;  %v9365_v22 = vor.u32 %v12266_v15, %v9362_v20  ;;  %1936 = vmatpush.bf16.msrb.mxu0 %v9361_v16  ;;  %v9329_v15 = vor.u32 %v12260_v33, %v9328_v8  ;;  %v9330_v16 = vld [vmem:[%s18586_s30 + $0x30] sm:$0xf0]  ;;  %v12283_v8 = vld [vmem:[%s18586_s30 + $0xec] sm:$0xf]  ;;  %v9434_v33 = vld [vmem:[%s18586_s30 + $0xf8] sm:$0xf0] }
 0x176   :  { %v9333_v20 = vor.u32 %v12258_v9, %v9330_v16  ;;  %v9480_v9 = vld [vmem:[%s18586_s30 + $0x148] sm:$0xf]  ;;  %v12297_v16 = vld [vmem:[%s18586_s30 + $0x154] sm:$0xf0] }
 0x177   :  { %1962 = vmatpush.bf16.msrb.mxu2 %v9365_v22  ;;  %v9496_v22 = vld [vmem:[%s18586_s30 + $0x168] sm:$0xf] }
 0x178   :  { %v9497_v56 = vor.u32 %v12301_v24, %v9496_v22  ;;  %v9482_v22 = vld [vmem:[%s18586_s30 + $0x158] sm:$0xf0] }
 0x179   :  { %1997 = vmatpush.bf16.msra.mxu1 %v9561_v40  ;;  %v12264_v40 = vld [vmem:[%s18586_s30 + $0x4c] sm:$0xf0] }
 0x17a   :  { %v9345_v46 = vor.u32 %v12264_v40, %v9344_v39  ;;  %v9501_v39 = vor.u32 %v12299_v29, %v9498_v34  ;;  %v9312_v40 = vld [vmem:[%s18586_s30] sm:$0xf]  ;;  %v9481_v29 = vor.u32 %v12297_v16, %v9480_v9  ;;  %v9416_v34 = vld [vmem:[%s18586_s30 + $0xc8] sm:$0xf] }
 0x17b   :  { %1963 = vmatpush.bf16.msrb.mxu2 %v9349_v60  ;;  %v9313_v0 = vor.u32 %v12256_v44, %v9312_v40  ;;  %v9418_v44 = vld [vmem:[%s18586_s30 + $0xd8] sm:$0xf0] }
 0x17c   :  { %1937 = vmatpush.bf16.msrb.mxu0 %v9345_v46  ;;  %v12254_v46 = vld [vmem:[%s18586_s30 + $0x4] sm:$0xf] }
 0x17d   :  { %1998 = vmatpush.bf16.msra.mxu1 %v9545_v7  ;;  %v9517_v7 = vor.u32 %v12303_v3, %v9514_v5  ;;  %v9432_v3 = vld [vmem:[%s18586_s30 + $0xe8] sm:$0xf]  ;;  %v9317_v5 = vor.u32 %v12254_v46, %v9314_v13 }
 0x17e   :  { %v9464_v46 = vld [vmem:[%s18586_s30 + $0x128] sm:$0xf] }
 0x17f   :  { %2026 = vmatpush.bf16.msra.mxu3 %v9517_v7  ;;  %1964 = vmatpush.bf16.msrb.mxu2 %v9333_v20  ;;  %v12295_v20 = vld [vmem:[%s18586_s30 + $0x14c] sm:$0xf] }
 0x180   :  { %1938 = vmatpush.bf16.msrb.mxu0 %v9329_v15  ;;  %v9437_v15 = vor.u32 %v12283_v8, %v9434_v33 }
 0x181   :  { %1999 = vmatpush.bf16.msra.mxu1 %v9529_v32  ;;  %v14443_v32 = vperm.slane %v14401_v45, 1 }
 0x183   :  { %2027 = vmatpush.bf16.msra.mxu3 %v9501_v39  ;;  %1965 = vmatpush.bf16.msrb.mxu2 %v9317_v5  ;;  %v9466_v5 = vld [vmem:[%s18586_s30 + $0x138] sm:$0xf0] }
 0x184   :  { %1939 = vmatpush.bf16.msrb.mxu0 %v9313_v0 }
 0x185   :  { %2000 = vmatpush.bf16.msra.mxu1 %v9513_v18  ;;  %v12285_v18 = vld [vmem:[%s18586_s30 + $0xf4] sm:$0xf0] }
 0x186   :  { %v9433_v7 = vor.u32 %v12285_v18, %v9432_v3  ;;  %v12293_v3 = vld [vmem:[%s18586_s30 + $0x134] sm:$0xf0]  ;;  %v12291_v18 = vld [vmem:[%s18586_s30 + $0x12c] sm:$0xf] }
 0x187   :  { %2010 = vmatpush.bf16.msra.mxu2 %v9437_v15  ;;  %v9465_v33 = vor.u32 %v12293_v3, %v9464_v46  ;;  %v9469_v9 = vor.u32 %v12291_v18, %v9466_v5  ;;  %v14541_v46 = vperm.slane %v14401_v45, 2  ;;  %v9384_v3 = vld [vmem:[%s18586_s30 + $0x88] sm:$0xf]  ;;  %v12273_v18 = vld [vmem:[%s18586_s30 + $0x94] sm:$0xf0] }
 0x188   :  { %1984 = vmatpush.bf16.msra.mxu0 %v9433_v7 }
 0x189   :  { %2001 = vmatpush.bf16.msra.mxu1 %v9497_v56  ;;  %v9485_v56 = vor.u32 %v12295_v20, %v9482_v22  ;;  %v9400_v20 = vld [vmem:[%s18586_s30 + $0xa8] sm:$0xf]  ;;  %v12277_v22 = vld [vmem:[%s18586_s30 + $0xb4] sm:$0xf0] }
 0x18b   :  { %2028 = vmatpush.bf16.msra.mxu3 %v9485_v56  ;;  %v9448_v56 = vld [vmem:[%s18586_s30 + $0x108] sm:$0xf] }
 0x18d   :  { %2002 = vmatpush.bf16.msra.mxu1 %v9481_v29  ;;  %v9401_v29 = vor.u32 %v12277_v22, %v9400_v20  ;;  %v9368_v20 = vld [vmem:[%s18586_s30 + $0x68] sm:$0xf] }
 0x18f   :  { %2029 = vmatpush.bf16.msra.mxu3 %v9469_v9 }
 0x191   :  { %2003 = vmatpush.bf16.msra.mxu1 %v9465_v33  ;;  %v9386_v33 = vld [vmem:[%s18586_s30 + $0x98] sm:$0xf0] }
 0x19b   :  { %v1162_v36 = vpop.f32.mrf.mxu0 }
 0x19c   :  { %v1163_v54 = vadd.f32 %v1162_v36, %v14428_v10  ;;  %v14458_v60 = vpop.f32.mrf.mxu1  ;;  %v12281_v36 = vld [vmem:[%s18586_s30 + $0xd4] sm:$0xf0] }
 0x19d   :  { %v9417_v40 = vor.u32 %v12281_v36, %v9416_v34 }
 0x19e   :  { %v1176_v24 = vadd.f32 %v14225_v57, %v1163_v54  ;;  %v12279_v57 = vld [vmem:[%s18586_s30 + $0xcc] sm:$0xf] }
 0x19f   :  { %v9421_v13 = vor.u32 %v12279_v57, %v9418_v44  ;;  %1985 = vmatpush.bf16.msra.mxu0 %v9417_v40  ;;  %v12287_v40 = vld [vmem:[%s18586_s30 + $0x10c] sm:$0xf]  ;;  %v9450_v44 = vld [vmem:[%s18586_s30 + $0x118] sm:$0xf0] }
 0x1a0   :  { %v1262_v7 = vmul.f32 0.5, %v1176_v24  ;;  %v12275_v24 = vld [vmem:[%s18586_s30 + $0xac] sm:$0xf] }
 0x1a1   :  { %v1188_v39 = vpop.f32.mrf.mxu2  ;;  %2011 = vmatpush.bf16.msra.mxu2 %v9421_v13 }
 0x1a2   :  { %v1189_v54 = vadd.f32 %v1188_v39, %v14443_v32  ;;  %v14504_v0 = vpop.f32.mrf.mxu3  ;;  %v12289_v39 = vld [vmem:[%s18586_s30 + $0x114] sm:$0xf0]  ;;  %12986 = vtanh.f32 %v1262_v7  ;;  %v9385_v7 = vor.u32 %v12273_v18, %v9384_v3  ;;  %v12263_v18 = vld [vmem:[%s18586_s30 + $0x4c] sm:$0xf] }
 0x1a3   :  { %v1164_v8 = vpop.f32.mrf.mxu0  ;;  %1986 = vmatpush.bf16.msra.mxu0 %v9401_v29  ;;  %v9449_v57 = vor.u32 %v12289_v39, %v9448_v56  ;;  %v12267_v29 = vld [vmem:[%s18586_s30 + $0x6c] sm:$0xf] }
 0x1a4   :  { %v1202_v15 = vadd.f32 %v14239_v50, %v1189_v54  ;;  %v1496_v16 = vpop.f32.mrf.mxu1  ;;  %v9402_v50 = vld [vmem:[%s18586_s30 + $0xb8] sm:$0xf0]  ;;  %v9453_v54 = vor.u32 %v12287_v40, %v9450_v44  ;;  %v12271_v8 = vld [vmem:[%s18586_s30 + $0x8c] sm:$0xf]  ;;  %v375_v44 = vadd.f32 %v13827_v21, %v13884_v48 }
 0x1a5   :  { %v9405_v36 = vor.u32 %v12275_v24, %v9402_v50  ;;  %2004 = vmatpush.bf16.msra.mxu1 %v9449_v57  ;;  %v12269_v24 = vld [vmem:[%s18586_s30 + $0x74] sm:$0xf0]  ;;  %v9370_v50 = vld [vmem:[%s18586_s30 + $0x78] sm:$0xf0] }
 0x1a6   :  { %v1257_v34 = vmul.f32 0.5, %v1202_v15  ;;  %2030 = vmatpush.bf16.msra.mxu3 %v9453_v54  ;;  %v9389_v15 = vor.u32 %v12271_v8, %v9386_v33  ;;  %v9369_v39 = vor.u32 %v12269_v24, %v9368_v20  ;;  %v9373_v40 = vor.u32 %v12267_v29, %v9370_v50  ;;  %v9352_v54 = vld [vmem:[%s18586_s30 + $0x48] sm:$0xf]  ;;  %v9354_v21 = vld [vmem:[%s18586_s30 + $0x58] sm:$0xf0]  ;;  %v495_v33 = vld [vmem:[%s18535_s9] sm:$0xff] }
 0x1a7   :  { %2012 = vmatpush.bf16.msra.mxu2 %v9405_v36  ;;  %1987 = vmatpush.bf16.msra.mxu0 %v9385_v7  ;;  %v14570_v36 = vperm.slane %v14401_v45, 3  ;;  %v9357_v8 = vor.u32 %v12263_v18, %v9354_v21  ;;  %v9336_v20 = vld [vmem:[%s18586_s30 + $0x28] sm:$0xf]  ;;  %v9322_v18 = vld [vmem:[%s18586_s30 + $0x18] sm:$0xf0] }
 0x1a8   :  { %12988 = vtanh.f32 %v1257_v34  ;;  %v12987_v22 = vpop.eup %12986 }
 0x1a9   :  { %v1190_v13 = vpop.f32.mrf.mxu2 }
 0x1aa   :  { %v1522_v5 = vpop.f32.mrf.mxu3  ;;  %v12265_v13 = vld [vmem:[%s18586_s30 + $0x54] sm:$0xf0] }
 0x1ab   :  { %v1214_v9 = vpop.f32.mrf.mxu0  ;;  %2013 = vmatpush.bf16.msra.mxu2 %v9389_v15  ;;  %1988 = vmatpush.bf16.msra.mxu0 %v9369_v39  ;;  %v9353_v45 = vor.u32 %v12265_v13, %v9352_v54  ;;  %v1525_v5 = vadd.f32 %v14458_v60, %v375_v44  ;;  %v12261_v60 = vld [vmem:[%s18586_s30 + $0x34] sm:$0xf0]  ;;  %v9320_v44 = vld [vmem:[%s18586_s30 + $0x8] sm:$0xf]  ;;  %v12255_v13 = vld [vmem:[%s18586_s30 + $0xc] sm:$0xf] }
 0x1ac   :  { %v1215_v16 = vadd.f32 %v1214_v9, %v14541_v46  ;;  %v9337_v29 = vor.u32 %v12261_v60, %v9336_v20  ;;  %v12257_v54 = vld [vmem:[%s18586_s30 + $0x14] sm:$0xf0]  ;;  %v9325_v21 = vor.u32 %v12255_v13, %v9322_v18  ;;  %v12342_v13 = vld [vmem:[#allocation6 + $0xc4] sm:$0xf]  ;;  %v9674_v18 = vld [vmem:[#allocation6 + $0xd8] sm:$0xf0] }
 0x1ae   :  { %v12989_v56 = vpop.eup %12988  ;;  %v1228_v34 = vadd.f32 %v14241_v61, %v1215_v16  ;;  %v1264_v61 = vmul.f32 0.5, %v12987_v22  ;;  %v12259_v22 = vld [vmem:[%s18586_s30 + $0x2c] sm:$0xf] }
 0x1af   :  { %v1259_v57 = vmul.f32 0.5, %v12989_v56  ;;  %2014 = vmatpush.bf16.msra.mxu2 %v9373_v40  ;;  %1989 = vmatpush.bf16.msra.mxu0 %v9353_v45  ;;  %v1528_v56 = vmul.f32 0.5, %v1525_v5  ;;  %v9321_v45 = vor.u32 %v12257_v54, %v9320_v44  ;;  %v346_v5 = vadd.f32 %v13825_v19, %v13874_v42 }
 0x1b0   :  { %12990 = vtanh.f32 %v1228_v34  ;;  %v1265_v24 = vadd.f32 0.5, %v1264_v61  ;;  %v404_v19 = vadd.f32 %v13876_v43, %v13918_v4  ;;  %v12343_v43 = vld [vmem:[#allocation6 + $0xcc] sm:$0xf] }
 0x1b1   :  { %v1240_v3 = vpop.f32.mrf.mxu2  ;;  %v1260_v9 = vadd.f32 0.5, %v1259_v57 }
 0x1b2   :  { %v1241_v7 = vadd.f32 %v1240_v3, %v14570_v36 }
 0x1b3   :  { %v1216_v15 = vpop.f32.mrf.mxu0  ;;  %2015 = vmatpush.bf16.msra.mxu2 %v9357_v8  ;;  %v1261_v40 = vmul.f32 %v1260_v9, %v495_v33  ;;  %1990 = vmatpush.bf16.msra.mxu0 %v9337_v29  ;;  %v433_v8 = vadd.f32 %v13886_v49, %v13938_v14 }
 0x1b4   :  { %v1254_v16 = vadd.f32 %v14243_v63, %v1241_v7  ;;  %v9338_v63 = vld [vmem:[%s18586_s30 + $0x38] sm:$0xf0] }
 0x1b5   :  { %v9341_v39 = vor.u32 %v12259_v22, %v9338_v63  ;;  %v1527_v15 = vadd.f32 %v14504_v0, %v433_v8  ;;  %v12346_v22 = vld [vmem:[#allocation6 + $0xe4] sm:$0xf] }
 0x1b6   :  { %v12991_v50 = vpop.eup %12990  ;;  %v1269_v34 = vmul.f32 0.5, %v1254_v16 }
 0x1b7   :  { %v1267_v57 = vmul.f32 %v12991_v50, %v1265_v24  ;;  %2016 = vmatpush.bf16.msra.mxu2 %v9341_v39  ;;  %1991 = vmatpush.bf16.msra.mxu0 %v9321_v45  ;;  %v9682_v24 = vld [vmem:[#allocation6 + $0xf0] sm:$0xf0]  ;;  %v12347_v50 = vld [vmem:[#allocation6 + $0xec] sm:$0xf]  ;;  %v1540_v39 = vmul.f32 0.5, %v1527_v15 }
 0x1b8   :  { %12992 = vtanh.f32 %v1269_v34  ;;  %v9685_v44 = vor.u32 %v12346_v22, %v9682_v24  ;;  %v9666_v45 = vld [vmem:[#allocation6 + $0xd0] sm:$0xf0] }
 0x1b9   :  { %v14613_v61 = vadd.f32 %v1267_v57, %v1261_v40  ;;  %v1242_v3 = vpop.f32.mrf.mxu2  ;;  %12994 = vtanh.f32 %v1528_v56  ;;  %v9690_v56 = vld [vmem:[#allocation6 + $0xf8] sm:$0xf0]  ;;  %v9669_v8 = vor.u32 %v12342_v13, %v9666_v45  ;;  %v9650_v15 = vld [vmem:[#allocation6 + $0xb0] sm:$0xf0] }
 0x1ba   :  { %v9693_v54 = vor.u32 %v12347_v50, %v9690_v56  ;;  %v12334_v56 = vld [vmem:[#allocation6 + $0x84] sm:$0xf]  ;;  %v9618_v45 = vld [vmem:[#allocation6 + $0x70] sm:$0xf0] }
 0x1bb   :  { %12996 = vtanh.f32 %v14613_v61  ;;  %2017 = vmatpush.bf16.msra.mxu2 %v9325_v21 }
 0x1bc   :  { %v1481_v7 = vpop.f32.mrf.mxu0 }
 0x1bd   :  { %v1524_v33 = vadd.f32 %v1481_v7, %v346_v5 }
 0x1be   :  { %v12993_v9 = vpop.eup %12992 }
 0x1bf   :  { %v1271_v16 = vmul.f32 0.5, %v12993_v9  ;;  %v1533_v20 = vmul.f32 0.5, %v1524_v33  ;;  %v12995_v60 = vpop.eup %12994  ;;  %v9677_v33 = vor.u32 %v12343_v43, %v9674_v18  ;;  %v12338_v9 = vld [vmem:[#allocation6 + $0xa4] sm:$0xf]  ;;  %v12331_v43 = vld [vmem:[#allocation6 + $0x6c] sm:$0xf] }
 0x1c0   :  { %v1530_v49 = vmul.f32 0.5, %v12995_v60  ;;  %v9626_v18 = vld [vmem:[#allocation6 + $0x78] sm:$0xf0] }
 0x1c1   :  { %v12997_v29 = vpop.eup %12996  ;;  %v1272_v63 = vadd.f32 0.5, %v1271_v16  ;;  %12998 = vtanh.f32 %v1533_v20  ;;  %v12339_v16 = vld [vmem:[#allocation6 + $0xac] sm:$0xf]  ;;  %v9658_v20 = vld [vmem:[#allocation6 + $0xb8] sm:$0xf0] }
 0x1c2   :  { %v1507_v34 = vpop.f32.mrf.mxu2  ;;  %v1531_v5 = vadd.f32 0.5, %v1530_v49  ;;  %v9661_v50 = vor.u32 %v12339_v16, %v9658_v20  ;;  %v9634_v49 = vld [vmem:[#allocation6 + $0x90] sm:$0xf0]  ;;  %v12326_v16 = vld [vmem:[#allocation6 + $0x44] sm:$0xf] }
 0x1c3   :  { %v14626_v40 = vmul.f32 %v12997_v29, %v1272_v63  ;;  %v1526_v57 = vadd.f32 %v1507_v34, %v404_v19  ;;  %v9653_v63 = vor.u32 %v12338_v9, %v9650_v15  ;;  %v9688_v9 = vld [vmem:[#allocation6 + $0xe8] sm:$0xf]  ;;  %v12349_v15 = vld [vmem:[#allocation6 + $0xf4] sm:$0xf0] }
 0x1c4   :  { %v1483_v0 = vpop.f32.mrf.mxu0  ;;  %v1532_v29 = vmul.f32 %v1531_v5, %v14176_v11  ;;  %v12330_v11 = vld [vmem:[#allocation6 + $0x64] sm:$0xf] }
 0x1c5   :  { %13000 = vtanh.f32 %v1526_v57  ;;  %v1547_v3 = vpack.c.bf16 %v14626_v40, %v14626_v40  ;;  %v9642_v57 = vld [vmem:[#allocation6 + $0x98] sm:$0xf0]  ;;  %v9621_v5 = vor.u32 %v12330_v11, %v9618_v45  ;;  %v12323_v11 = vld [vmem:[#allocation6 + $0x2c] sm:$0xf] }
 0x1c6   :  { %13002 = vtanh.f32 %v1540_v39  ;;  %v12335_v39 = vld [vmem:[#allocation6 + $0x8c] sm:$0xf]  ;;  %v9594_v45 = vld [vmem:[#allocation6 + $0x38] sm:$0xf0] }
 0x1c7   :  { %v12999_v21 = vpop.eup %12998  ;;  %1953 = vmatmul.bf16.vlgmr.msrb.gmra.mxu1 %v1547_v3  ;;  %1979 = vmatmul.bf16.vlgmr.msrb.gmra.mxu3 %v1547_v3  ;;  %v9645_v13 = vor.u32 %v12335_v39, %v9642_v57  ;;  %v9672_v57 = vld [vmem:[#allocation6 + $0xc8] sm:$0xf] }
 0x1c8   :  { %v1535_v7 = vmul.f32 0.5, %v12999_v21  ;;  %2264 = vmatpush.bf16.msrb.mxu1 %v9685_v44  ;;  %2290 = vmatpush.bf16.msrb.mxu3 %v9693_v54  ;;  %v9637_v54 = vor.u32 %v12334_v56, %v9634_v49  ;;  %v12344_v56 = vld [vmem:[#allocation6 + $0xcc] sm:$0xf0] }
 0x1ca   :  { %v1536_v60 = vadd.f32 0.5, %v1535_v7  ;;  %v1509_v22 = vpop.f32.mrf.mxu2  ;;  %v9629_v7 = vor.u32 %v12331_v43, %v9626_v18  ;;  %v9648_v18 = vld [vmem:[#allocation6 + $0xa0] sm:$0xf] }
 0x1cb   :  { %v13001_v24 = vpop.eup %13000  ;;  %v12327_v22 = vld [vmem:[#allocation6 + $0x4c] sm:$0xf] }
 0x1cc   :  { %v1538_v19 = vmul.f32 %v13001_v24, %v1536_v60  ;;  %2265 = vmatpush.bf16.msrb.mxu1 %v9669_v8  ;;  %2291 = vmatpush.bf16.msrb.mxu3 %v9677_v33  ;;  %v13003_v34 = vpop.eup %13002  ;;  %v9680_v8 = vld [vmem:[#allocation6 + $0xe0] sm:$0xf]  ;;  %v12348_v33 = vld [vmem:[#allocation6 + $0xec] sm:$0xf0]  ;;  %v9602_v60 = vld [vmem:[#allocation6 + $0x50] sm:$0xf0] }
 0x1cd   :  { %v1542_v44 = vmul.f32 0.5, %v13003_v34  ;;  %v9610_v24 = vld [vmem:[#allocation6 + $0x58] sm:$0xf0]  ;;  %v9605_v49 = vor.u32 %v12326_v16, %v9602_v60  ;;  %v12319_v16 = vld [vmem:[#allocation6 + $0xc] sm:$0xf] }
 0x1ce   :  { %v14631_v0 = vadd.f32 %v1538_v19, %v1532_v29  ;;  %v9681_v19 = vor.u32 %v12348_v33, %v9680_v8  ;;  %v9613_v39 = vor.u32 %v12327_v22, %v9610_v24  ;;  %v9656_v8 = vld [vmem:[#allocation6 + $0xa8] sm:$0xf]  ;;  %v12341_v33 = vld [vmem:[#allocation6 + $0xb4] sm:$0xf0] }
 0x1cf   :  { %v1543_v21 = vadd.f32 0.5, %v1542_v44  ;;  %v12345_v44 = vld [vmem:[#allocation6 + $0xd4] sm:$0xf0]  ;;  %v9657_v22 = vor.u32 %v12341_v33, %v9656_v8  ;;  %v9584_v8 = vld [vmem:[#allocation6 + $0x20] sm:$0xf] }
 0x1d0   :  { %13004 = vtanh.f32 %v14631_v0  ;;  %2266 = vmatpush.bf16.msrb.mxu1 %v9653_v63  ;;  %2292 = vmatpush.bf16.msrb.mxu3 %v9661_v50  ;;  %v9689_v63 = vor.u32 %v12349_v15, %v9688_v9  ;;  %v9664_v50 = vld [vmem:[#allocation6 + $0xc0] sm:$0xf]  ;;  %v9673_v43 = vor.u32 %v12345_v44, %v9672_v57  ;;  %v12318_v9 = vld [vmem:[#allocation6 + $0x4] sm:$0xf]  ;;  %v9570_v15 = vld [vmem:[#allocation6 + $0x10] sm:$0xf0] }
 0x1d1   :  { %v9573_v24 = vor.u32 %v12318_v9, %v9570_v15  ;;  %v9616_v57 = vld [vmem:[#allocation6 + $0x60] sm:$0xf]  ;;  %v12332_v44 = vld [vmem:[#allocation6 + $0x6c] sm:$0xf0]  ;;  %v9592_v9 = vld [vmem:[#allocation6 + $0x28] sm:$0xf] }
 0x1d2   :  { %v12324_v33 = vld [vmem:[#allocation6 + $0x2c] sm:$0xf0]  ;;  %v12325_v15 = vld [vmem:[#allocation6 + $0x34] sm:$0xf0] }
 0x1d4   :  { %2267 = vmatpush.bf16.msrb.mxu1 %v9637_v54  ;;  %2293 = vmatpush.bf16.msrb.mxu3 %v9645_v13  ;;  %v12322_v54 = vld [vmem:[#allocation6 + $0x24] sm:$0xf]  ;;  %v9586_v13 = vld [vmem:[#allocation6 + $0x30] sm:$0xf0] }
 0x1d6   :  { %v13005_v20 = vpop.eup %13004 }
 0x1d7   :  { %v1545_v29 = vmul.f32 %v13005_v20, %v1543_v21  ;;  %2005 = vmatmul.bf16.vlgmr.msra.gmra.mxu1 %v1547_v3  ;;  %2031 = vmatmul.bf16.vlgmr.msra.gmra.mxu3 %v1547_v3  ;;  %v9665_v3 = vor.u32 %v12344_v56, %v9664_v50  ;;  %v12340_v21 = vld [vmem:[#allocation6 + $0xac] sm:$0xf0]  ;;  %v9578_v20 = vld [vmem:[#allocation6 + $0x18] sm:$0xf0]  ;;  %v9640_v50 = vld [vmem:[#allocation6 + $0x88] sm:$0xf] }
 0x1d8   :  { %2268 = vmatpush.bf16.msrb.mxu1 %v9621_v5  ;;  %2294 = vmatpush.bf16.msrb.mxu3 %v9629_v7  ;;  %v9589_v5 = vor.u32 %v12322_v54, %v9586_v13  ;;  %v9597_v7 = vor.u32 %v12323_v11, %v9594_v45  ;;  %v9649_v60 = vor.u32 %v12340_v21, %v9648_v18  ;;  %v12337_v56 = vld [vmem:[#allocation6 + $0x94] sm:$0xf0]  ;;  %v9624_v54 = vld [vmem:[#allocation6 + $0x68] sm:$0xf] }
 0x1d9   :  { %v14634_v34 = vpack.c.bf16 %v1545_v29, %v1545_v29  ;;  %v9581_v29 = vor.u32 %v12319_v16, %v9578_v20  ;;  %v12333_v13 = vld [vmem:[#allocation6 + $0x74] sm:$0xf0]  ;;  %v9617_v11 = vor.u32 %v12332_v44, %v9616_v57  ;;  %v9608_v18 = vld [vmem:[#allocation6 + $0x48] sm:$0xf]  ;;  %v9585_v16 = vor.u32 %v12324_v33, %v9584_v8  ;;  %v9938_v57 = vld [vmem:[%s18586_s30 + $0x1f0] sm:$0xf0] }
 0x1da   :  { %v9625_v45 = vor.u32 %v12333_v13, %v9624_v54  ;;  %v12329_v21 = vld [vmem:[#allocation6 + $0x54] sm:$0xf0]  ;;  %v9593_v20 = vor.u32 %v12325_v15, %v9592_v9  ;;  %v12408_v54 = vld [vmem:[%s18586_s30 + $0x1cc] sm:$0xf0]  ;;  %v12406_v13 = vld [vmem:[%s18586_s30 + $0x1c4] sm:$0xf] }
 0x1db   :  { %1940 = vmatmul.bf16.vlgmr.msrb.gmra.mxu0 %v14634_v34  ;;  %1966 = vmatmul.bf16.vlgmr.msrb.gmra.mxu2 %v14634_v34  ;;  %v9888_v33 = vld [vmem:[%s18586_s30 + $0x180] sm:$0xf]  ;;  %v12400_v9 = vld [vmem:[%s18586_s30 + $0x18c] sm:$0xf0]  ;;  %v12398_v15 = vld [vmem:[%s18586_s30 + $0x184] sm:$0xf] }
 0x1dc   :  { %2251 = vmatpush.bf16.msrb.mxu0 %v9681_v19  ;;  %2277 = vmatpush.bf16.msrb.mxu2 %v9689_v63  ;;  %v9632_v19 = vld [vmem:[#allocation6 + $0x80] sm:$0xf]  ;;  %v12336_v63 = vld [vmem:[#allocation6 + $0x8c] sm:$0xf0] }
 0x1dd   :  { %2269 = vmatpush.bf16.msrb.mxu1 %v9605_v49  ;;  %2295 = vmatpush.bf16.msrb.mxu3 %v9613_v39  ;;  %v9633_v49 = vor.u32 %v12336_v63, %v9632_v19  ;;  %v9641_v39 = vor.u32 %v12337_v56, %v9640_v50  ;;  %v9936_v50 = vld [vmem:[%s18586_s30 + $0x1e0] sm:$0xf]  ;;  %v12412_v56 = vld [vmem:[%s18586_s30 + $0x1ec] sm:$0xf0] }
 0x1e0   :  { %2252 = vmatpush.bf16.msrb.mxu0 %v9665_v3  ;;  %2278 = vmatpush.bf16.msrb.mxu2 %v9673_v43  ;;  %v9600_v3 = vld [vmem:[#allocation6 + $0x40] sm:$0xf]  ;;  %v12328_v43 = vld [vmem:[#allocation6 + $0x4c] sm:$0xf0] }
 0x1e1   :  { %2270 = vmatpush.bf16.msrb.mxu1 %v9589_v5  ;;  %2296 = vmatpush.bf16.msrb.mxu3 %v9597_v7  ;;  %v9601_v5 = vor.u32 %v12328_v43, %v9600_v3  ;;  %v9609_v7 = vor.u32 %v12329_v21, %v9608_v18  ;;  %v9904_v43 = vld [vmem:[%s18586_s30 + $0x1a0] sm:$0xf]  ;;  %v12404_v18 = vld [vmem:[%s18586_s30 + $0x1ac] sm:$0xf0]  ;;  %v12402_v21 = vld [vmem:[%s18586_s30 + $0x1a4] sm:$0xf] }
 0x1e4   :  { %2253 = vmatpush.bf16.msrb.mxu0 %v9649_v60  ;;  %2279 = vmatpush.bf16.msrb.mxu2 %v9657_v22  ;;  %v9568_v60 = vld [vmem:[#allocation6] sm:$0xf]  ;;  %v12320_v22 = vld [vmem:[#allocation6 + $0xc] sm:$0xf0] }
 0x1e5   :  { %2271 = vmatpush.bf16.msrb.mxu1 %v9573_v24  ;;  %2297 = vmatpush.bf16.msrb.mxu3 %v9581_v29  ;;  %v9576_v24 = vld [vmem:[#allocation6 + $0x8] sm:$0xf]  ;;  %v12321_v29 = vld [vmem:[#allocation6 + $0x14] sm:$0xf0]  ;;  %v9569_v19 = vor.u32 %v12320_v22, %v9568_v60  ;;  %v9872_v22 = vld [vmem:[%s18586_s30 + $0x160] sm:$0xf] }
 0x1e6   :  { %v9577_v63 = vor.u32 %v12321_v29, %v9576_v24  ;;  %v12396_v24 = vld [vmem:[%s18586_s30 + $0x16c] sm:$0xf0]  ;;  %v12394_v29 = vld [vmem:[%s18586_s30 + $0x164] sm:$0xf] }
 0x1e8   :  { %2254 = vmatpush.bf16.msrb.mxu0 %v9633_v49  ;;  %2272 = vmatmul.bf16.vlgmr.msrb.gmra.mxu1 %v14634_v34  ;;  %v12410_v49 = vld [vmem:[%s18586_s30 + $0x1e4] sm:$0xf] }
 0x1e9   :  { %2280 = vmatpush.bf16.msrb.mxu2 %v9641_v39  ;;  %2298 = vmatmul.bf16.vlgmr.msrb.gmra.mxu3 %v14634_v34  ;;  %v9937_v39 = vor.u32 %v12412_v56, %v9936_v50  ;;  %v9941_v44 = vor.u32 %v12410_v49, %v9938_v57  ;;  %v9808_v56 = vld [vmem:[%s18586_s30 + $0xe0] sm:$0xf]  ;;  %v12380_v49 = vld [vmem:[%s18586_s30 + $0xec] sm:$0xf0] }
 0x1ea   :  { %v9809_v57 = vor.u32 %v12380_v49, %v9808_v56  ;;  %v9778_v56 = vld [vmem:[%s18586_s30 + $0xb0] sm:$0xf0]  ;;  %v9824_v49 = vld [vmem:[%s18586_s30 + $0x100] sm:$0xf] }
 0x1eb   :  { %1992 = vmatmul.bf16.vlgmr.msra.gmra.mxu0 %v14634_v34  ;;  %2018 = vmatmul.bf16.vlgmr.msra.gmra.mxu2 %v14634_v34 }
 0x1ec   :  { %2255 = vmatpush.bf16.msrb.mxu0 %v9617_v11  ;;  %2724 = vmatpush.bf16.msra.mxu1 %v9937_v39  ;;  %v12378_v39 = vld [vmem:[%s18586_s30 + $0xe4] sm:$0xf] }
 0x1ed   :  { %2281 = vmatpush.bf16.msrb.mxu2 %v9625_v45  ;;  %2750 = vmatpush.bf16.msra.mxu3 %v9941_v44  ;;  %v9922_v45 = vld [vmem:[%s18586_s30 + $0x1d0] sm:$0xf0] }
 0x1ee   :  { %v9925_v3 = vor.u32 %v12406_v13, %v9922_v45  ;;  %v9810_v44 = vld [vmem:[%s18586_s30 + $0xf0] sm:$0xf0]  ;;  %v12390_v45 = vld [vmem:[%s18586_s30 + $0x144] sm:$0xf] }
 0x1ef   :  { %v9813_v13 = vor.u32 %v12378_v39, %v9810_v44  ;;  %v12384_v39 = vld [vmem:[%s18586_s30 + $0x10c] sm:$0xf0] }
 0x1f0   :  { %2256 = vmatpush.bf16.msrb.mxu0 %v9601_v5  ;;  %v9905_v5 = vor.u32 %v12404_v18, %v9904_v43  ;;  %v9792_v18 = vld [vmem:[%s18586_s30 + $0xc0] sm:$0xf]  ;;  %v9825_v44 = vor.u32 %v12384_v39, %v9824_v49  ;;  %v12364_v49 = vld [vmem:[%s18586_s30 + $0x6c] sm:$0xf0]  ;;  %v12362_v39 = vld [vmem:[%s18586_s30 + $0x64] sm:$0xf] }
 0x1f1   :  { %2282 = vmatpush.bf16.msrb.mxu2 %v9609_v7  ;;  %2751 = vmatpush.bf16.msra.mxu3 %v9925_v3  ;;  %v9906_v7 = vld [vmem:[%s18586_s30 + $0x1b0] sm:$0xf0] }
 0x1f2   :  { %v9909_v8 = vor.u32 %v12402_v21, %v9906_v7  ;;  %v9858_v3 = vld [vmem:[%s18586_s30 + $0x150] sm:$0xf0]  ;;  %v12376_v21 = vld [vmem:[%s18586_s30 + $0xcc] sm:$0xf0] }
 0x1f3   :  { %v9861_v43 = vor.u32 %v12390_v45, %v9858_v3  ;;  %v9793_v7 = vor.u32 %v12376_v21, %v9792_v18  ;;  %v12413_v45 = vld [vmem:[%s18586_s30 + $0x1f4] sm:$0xf0]  ;;  %v12411_v3 = vld [vmem:[%s18586_s30 + $0x1ec] sm:$0xf] }
 0x1f4   :  { %2257 = vmatpush.bf16.msrb.mxu0 %v9585_v16  ;;  %v9889_v16 = vor.u32 %v12400_v9, %v9888_v33  ;;  %v9840_v33 = vld [vmem:[%s18586_s30 + $0x120] sm:$0xf]  ;;  %v12388_v9 = vld [vmem:[%s18586_s30 + $0x12c] sm:$0xf0] }
 0x1f5   :  { %2283 = vmatpush.bf16.msrb.mxu2 %v9593_v20  ;;  %2752 = vmatpush.bf16.msra.mxu3 %v9909_v8  ;;  %v9890_v20 = vld [vmem:[%s18586_s30 + $0x190] sm:$0xf0] }
 0x1f6   :  { %v9893_v60 = vor.u32 %v12398_v15, %v9890_v20  ;;  %v9794_v8 = vld [vmem:[%s18586_s30 + $0xd0] sm:$0xf0]  ;;  %v12386_v20 = vld [vmem:[%s18586_s30 + $0x124] sm:$0xf] }
 0x1f8   :  { %2258 = vmatpush.bf16.msrb.mxu0 %v9569_v19  ;;  %v9873_v19 = vor.u32 %v12396_v24, %v9872_v22 }
 0x1f9   :  { %2284 = vmatpush.bf16.msrb.mxu2 %v9577_v63  ;;  %2753 = vmatpush.bf16.msra.mxu3 %v9893_v60  ;;  %v9874_v63 = vld [vmem:[%s18586_s30 + $0x170] sm:$0xf0] }
 0x1fa   :  { %v9877_v50 = vor.u32 %v12394_v29, %v9874_v63  ;;  %v9842_v60 = vld [vmem:[%s18586_s30 + $0x130] sm:$0xf0]  ;;  %v9776_v29 = vld [vmem:[%s18586_s30 + $0xa0] sm:$0xf]  ;;  %v12370_v63 = vld [vmem:[%s18586_s30 + $0xa4] sm:$0xf] }
 0x1fb   :  { %2259 = vmatmul.bf16.vlgmr.msrb.gmra.mxu0 %v14634_v34  ;;  %v9845_v22 = vor.u32 %v12386_v20, %v9842_v60  ;;  %v9928_v20 = vld [vmem:[%s18586_s30 + $0x1c8] sm:$0xf]  ;;  %v12409_v60 = vld [vmem:[%s18586_s30 + $0x1d4] sm:$0xf0] }
 0x1fc   :  { %2285 = vmatmul.bf16.vlgmr.msrb.gmra.mxu2 %v14634_v34  ;;  %v9920_v34 = vld [vmem:[%s18586_s30 + $0x1c0] sm:$0xf]  ;;  %2711 = vmatpush.bf16.msra.mxu0 %v9809_v57  ;;  %v9781_v57 = vor.u32 %v12370_v63, %v9778_v56 }
 0x1fd   :  { %v9921_v11 = vor.u32 %v12408_v54, %v9920_v34  ;;  %2754 = vmatpush.bf16.msra.mxu3 %v9877_v50  ;;  %v9856_v34 = vld [vmem:[%s18586_s30 + $0x140] sm:$0xf]  ;;  %v12392_v54 = vld [vmem:[%s18586_s30 + $0x14c] sm:$0xf0]  ;;  %2737 = vmatpush.bf16.msra.mxu2 %v9813_v13  ;;  %v9944_v13 = vld [vmem:[%s18586_s30 + $0x1e8] sm:$0xf] }
 0x1fe   :  { %v9945_v18 = vor.u32 %v12413_v45, %v9944_v13  ;;  %v9744_v56 = vld [vmem:[%s18586_s30 + $0x60] sm:$0xf]  ;;  %v12405_v13 = vld [vmem:[%s18586_s30 + $0x1b4] sm:$0xf0] }
 0x1ff   :  { %2725 = vmatpush.bf16.msra.mxu1 %v9921_v11  ;;  %v9857_v11 = vor.u32 %v12392_v54, %v9856_v34  ;;  %v12382_v34 = vld [vmem:[%s18586_s30 + $0x104] sm:$0xf]  ;;  %v9826_v54 = vld [vmem:[%s18586_s30 + $0x110] sm:$0xf0] }
 0x200   :  { %2712 = vmatpush.bf16.msra.mxu0 %v9793_v7  ;;  %v12368_v7 = vld [vmem:[%s18586_s30 + $0x8c] sm:$0xf0] }
 0x201   :  { %2755 = vmatpush.bf16.msra.mxu3 %v9861_v43  ;;  %v9946_v43 = vld [vmem:[%s18586_s30 + $0x1f8] sm:$0xf0] }
 0x202   :  { %v9949_v21 = vor.u32 %v12411_v3, %v9946_v43  ;;  %v9914_v3 = vld [vmem:[%s18586_s30 + $0x1b8] sm:$0xf0] }
 0x203   :  { %2726 = vmatpush.bf16.msra.mxu1 %v9905_v5  ;;  %v12374_v5 = vld [vmem:[%s18586_s30 + $0xc4] sm:$0xf] }
 0x204   :  { %v9797_v15 = vor.u32 %v12374_v5, %v9794_v8  ;;  %v9760_v5 = vld [vmem:[%s18586_s30 + $0x80] sm:$0xf]  ;;  %v12366_v8 = vld [vmem:[%s18586_s30 + $0x84] sm:$0xf] }
 0x205   :  { %2756 = vmatpush.bf16.msra.mxu3 %v9845_v22  ;;  %v12407_v22 = vld [vmem:[%s18586_s30 + $0x1cc] sm:$0xf] }
 0x206   :  { %2738 = vmatpush.bf16.msra.mxu2 %v9797_v15 }
 0x207   :  { %2727 = vmatpush.bf16.msra.mxu1 %v9889_v16  ;;  %v9841_v16 = vor.u32 %v12388_v9, %v9840_v33  ;;  %v9761_v33 = vor.u32 %v12368_v7, %v9760_v5  ;;  %v9762_v9 = vld [vmem:[%s18586_s30 + $0x90] sm:$0xf0]  ;;  %v12358_v5 = vld [vmem:[%s18586_s30 + $0x44] sm:$0xf] }
 0x20a   :  { %2739 = vmatpush.bf16.msra.mxu2 %v9781_v57  ;;  %v9745_v57 = vor.u32 %v12364_v49, %v9744_v56  ;;  %v12356_v56 = vld [vmem:[%s18586_s30 + $0x2c] sm:$0xf0]  ;;  %v12354_v49 = vld [vmem:[%s18586_s30 + $0x24] sm:$0xf] }
 0x20b   :  { %2728 = vmatpush.bf16.msra.mxu1 %v9873_v19  ;;  %v12372_v19 = vld [vmem:[%s18586_s30 + $0xac] sm:$0xf0] }
 0x20c   :  { %v9777_v50 = vor.u32 %v12372_v19, %v9776_v29  ;;  %v9929_v29 = vor.u32 %v12409_v60, %v9928_v20  ;;  %v9930_v19 = vld [vmem:[%s18586_s30 + $0x1d8] sm:$0xf0]  ;;  %v12401_v20 = vld [vmem:[%s18586_s30 + $0x194] sm:$0xf0]  ;;  %v12399_v60 = vld [vmem:[%s18586_s30 + $0x18c] sm:$0xf] }
 0x20e   :  { %2713 = vmatpush.bf16.msra.mxu0 %v9777_v50  ;;  %v9933_v50 = vor.u32 %v12407_v22, %v9930_v19 }
 0x20f   :  { %2729 = vmatpush.bf16.msra.mxu1 %v9857_v11  ;;  %v9829_v11 = vor.u32 %v12382_v34, %v9826_v54  ;;  %v9912_v54 = vld [vmem:[%s18586_s30 + $0x1a8] sm:$0xf] }
 0x210   :  { %v9913_v45 = vor.u32 %v12405_v13, %v9912_v54  ;;  %v12397_v54 = vld [vmem:[%s18586_s30 + $0x174] sm:$0xf0]  ;;  %v12395_v13 = vld [vmem:[%s18586_s30 + $0x16c] sm:$0xf] }
 0x211   :  { %2757 = vmatpush.bf16.msra.mxu3 %v9829_v11  ;;  %v12403_v11 = vld [vmem:[%s18586_s30 + $0x1ac] sm:$0xf] }
 0x212   :  { %2714 = vmatpush.bf16.msra.mxu0 %v9761_v33  ;;  %v9917_v43 = vor.u32 %v12403_v11, %v9914_v3 }
 0x213   :  { %2730 = vmatpush.bf16.msra.mxu1 %v9841_v16  ;;  %v9765_v16 = vor.u32 %v12366_v8, %v9762_v9  ;;  %v9730_v8 = vld [vmem:[%s18586_s30 + $0x50] sm:$0xf0] }
 0x214   :  { %v9733_v9 = vor.u32 %v12358_v5, %v9730_v8  ;;  %v12350_v5 = vld [vmem:[%s18586_s30 + $0x4] sm:$0xf] }
 0x215   :  { %2802 = vmatpush.bf16.msrb.mxu3 %v9949_v21  ;;  %2740 = vmatpush.bf16.msra.mxu2 %v9765_v16  ;;  %v12360_v21 = vld [vmem:[%s18586_s30 + $0x4c] sm:$0xf0]  ;;  %v9896_v16 = vld [vmem:[%s18586_s30 + $0x188] sm:$0xf] }
 0x216   :  { %2715 = vmatpush.bf16.msra.mxu0 %v9745_v57  ;;  %v9897_v22 = vor.u32 %v12401_v20, %v9896_v16  ;;  %v9714_v57 = vld [vmem:[%s18586_s30 + $0x30] sm:$0xf0]  ;;  %v12381_v16 = vld [vmem:[%s18586_s30 + $0xf4] sm:$0xf0] }
 0x217   :  { %2731 = vmatpush.bf16.msra.mxu1 %v9825_v44  ;;  %v9746_v44 = vld [vmem:[%s18586_s30 + $0x70] sm:$0xf0] }
 0x218   :  { %v9749_v34 = vor.u32 %v12362_v39, %v9746_v44  ;;  %v9717_v44 = vor.u32 %v12354_v49, %v9714_v57  ;;  %v12393_v49 = vld [vmem:[%s18586_s30 + $0x154] sm:$0xf0]  ;;  %v9866_v57 = vld [vmem:[%s18586_s30 + $0x158] sm:$0xf0] }
 0x219   :  { %2803 = vmatpush.bf16.msrb.mxu3 %v9933_v50  ;;  %v9712_v50 = vld [vmem:[%s18586_s30 + $0x20] sm:$0xf] }
 0x21a   :  { %2741 = vmatpush.bf16.msra.mxu2 %v9749_v34  ;;  %v9713_v39 = vor.u32 %v12356_v56, %v9712_v50  ;;  %v9880_v34 = vld [vmem:[%s18586_s30 + $0x168] sm:$0xf] }
 0x21b   :  { %2776 = vmatpush.bf16.msrb.mxu1 %v9945_v18  ;;  %v9728_v18 = vld [vmem:[%s18586_s30 + $0x40] sm:$0xf]  ;;  %v9881_v11 = vor.u32 %v12397_v54, %v9880_v34  ;;  %v9864_v50 = vld [vmem:[%s18586_s30 + $0x148] sm:$0xf] }
 0x21c   :  { %v9729_v7 = vor.u32 %v12360_v21, %v9728_v18  ;;  %v9696_v18 = vld [vmem:[%s18586_s30] sm:$0xf]  ;;  %v12352_v21 = vld [vmem:[%s18586_s30 + $0xc] sm:$0xf0]  ;;  %v9865_v54 = vor.u32 %v12393_v49, %v9864_v50  ;;  %v9784_v50 = vld [vmem:[%s18586_s30 + $0xa8] sm:$0xf] }
 0x21d   :  { %2804 = vmatpush.bf16.msrb.mxu3 %v9917_v43  ;;  %v9697_v8 = vor.u32 %v12352_v21, %v9696_v18  ;;  %v9802_v18 = vld [vmem:[%s18586_s30 + $0xd8] sm:$0xf0]  ;;  %v9848_v21 = vld [vmem:[%s18586_s30 + $0x128] sm:$0xf]  ;;  %v12371_v49 = vld [vmem:[%s18586_s30 + $0xac] sm:$0xf] }
 0x21e   :  { %2716 = vmatpush.bf16.msra.mxu0 %v9729_v7  ;;  %2742 = vmatpush.bf16.msra.mxu2 %v9733_v9  ;;  %v9816_v9 = vld [vmem:[%s18586_s30 + $0xe8] sm:$0xf] }
 0x21f   :  { %2777 = vmatpush.bf16.msrb.mxu1 %v9929_v29  ;;  %v9898_v29 = vld [vmem:[%s18586_s30 + $0x198] sm:$0xf0] }
 0x222   :  { %2717 = vmatpush.bf16.msra.mxu0 %v9713_v39  ;;  %2743 = vmatpush.bf16.msra.mxu2 %v9717_v44  ;;  %v12391_v39 = vld [vmem:[%s18586_s30 + $0x14c] sm:$0xf] }
 0x223   :  { %2778 = vmatpush.bf16.msrb.mxu1 %v9913_v45  ;;  %v9882_v45 = vld [vmem:[%s18586_s30 + $0x178] sm:$0xf0] }
 0x224   :  { %v9885_v43 = vor.u32 %v12395_v13, %v9882_v45  ;;  %v9869_v13 = vor.u32 %v12391_v39, %v9866_v57  ;;  %v12377_v45 = vld [vmem:[%s18586_s30 + $0xd4] sm:$0xf0] }
 0x226   :  { %2718 = vmatpush.bf16.msra.mxu0 %v9697_v8  ;;  %v12389_v8 = vld [vmem:[%s18586_s30 + $0x134] sm:$0xf0] }
 0x227   :  { %2779 = vmatpush.bf16.msrb.mxu1 %v9897_v22  ;;  %v9817_v22 = vor.u32 %v12381_v16, %v9816_v9  ;;  %v9850_v9 = vld [vmem:[%s18586_s30 + $0x138] sm:$0xf0] }
 0x22a   :  { %2763 = vmatpush.bf16.msrb.mxu0 %v9817_v22  ;;  %v9849_v22 = vor.u32 %v12389_v8, %v9848_v21  ;;  %v12369_v21 = vld [vmem:[%s18586_s30 + $0x94] sm:$0xf0]  ;;  %v12367_v8 = vld [vmem:[%s18586_s30 + $0x8c] sm:$0xf] }
 0x22b   :  { %2780 = vmatpush.bf16.msrb.mxu1 %v9881_v11  ;;  %v9800_v11 = vld [vmem:[%s18586_s30 + $0xc8] sm:$0xf] }
 0x22f   :  { %2781 = vmatpush.bf16.msrb.mxu1 %v9865_v54 }
 0x233   :  { %2782 = vmatpush.bf16.msrb.mxu1 %v9849_v22  ;;  %v9752_v22 = vld [vmem:[%s18586_s30 + $0x68] sm:$0xf] }
 0x244   :  { %v14752_v24 = vpop.f32.mrf.mxu1 }
 0x24a   :  { %v14802_v15 = vpop.f32.mrf.mxu3 }
 0x24c   :  { %v1956_v63 = vpop.f32.mrf.mxu1 }
 0x24d   :  { %v9901_v63 = vor.u32 %v12399_v60, %v9898_v29  ;;  %v12379_v29 = vld [vmem:[%s18586_s30 + $0xec] sm:$0xf] }
 0x24f   :  { %2805 = vmatpush.bf16.msrb.mxu3 %v9901_v63  ;;  %v9818_v63 = vld [vmem:[%s18586_s30 + $0xf8] sm:$0xf0] }
 0x250   :  { %v9821_v56 = vor.u32 %v12379_v29, %v9818_v63 }
 0x252   :  { %v1982_v33 = vpop.f32.mrf.mxu3 }
 0x253   :  { %v9698_v33 = vld [vmem:[%s18586_s30 + $0x10] sm:$0xf0]  ;;  %2806 = vmatpush.bf16.msrb.mxu3 %v9885_v43  ;;  %v9801_v43 = vor.u32 %v12377_v45, %v9800_v11  ;;  %v12383_v45 = vld [vmem:[%s18586_s30 + $0x10c] sm:$0xf] }
 0x254   :  { %v14864_v19 = vpop.f32.mrf.mxu1  ;;  %v9701_v60 = vor.u32 %v12350_v5, %v9698_v33  ;;  %v12387_v33 = vld [vmem:[%s18586_s30 + $0x12c] sm:$0xf] }
 0x255   :  { %2764 = vmatpush.bf16.msrb.mxu0 %v9801_v43  ;;  %v9853_v29 = vor.u32 %v12387_v33, %v9850_v9  ;;  %v9770_v33 = vld [vmem:[%s18586_s30 + $0x98] sm:$0xf0] }
 0x256   :  { %2744 = vmatpush.bf16.msra.mxu2 %v9701_v60  ;;  %v9773_v9 = vor.u32 %v12367_v8, %v9770_v33 }
 0x257   :  { %2807 = vmatpush.bf16.msrb.mxu3 %v9869_v13 }
 0x258   :  { %v1941_v3 = vpop.f32.mrf.mxu0 }
 0x259   :  { %v1942_v7 = vadd.f32 %v1941_v3, %v14428_v10 }
 0x25a   :  { %v14909_v20 = vpop.f32.mrf.mxu3  ;;  %2789 = vmatpush.bf16.msrb.mxu2 %v9821_v56  ;;  %v12373_v56 = vld [vmem:[%s18586_s30 + $0xb4] sm:$0xf0] }
 0x25b   :  { %v1955_v44 = vadd.f32 %v14752_v24, %v1942_v7  ;;  %v12375_v24 = vld [vmem:[%s18586_s30 + $0xcc] sm:$0xf]  ;;  %2808 = vmatpush.bf16.msrb.mxu3 %v9853_v29  ;;  %v9785_v57 = vor.u32 %v12373_v56, %v9784_v50  ;;  %v12365_v29 = vld [vmem:[%s18586_s30 + $0x74] sm:$0xf0] }
 0x25c   :  { %v2008_v34 = vpop.f32.mrf.mxu1  ;;  %v9805_v7 = vor.u32 %v12375_v24, %v9802_v18  ;;  %v9768_v18 = vld [vmem:[%s18586_s30 + $0x88] sm:$0xf]  ;;  %v9753_v56 = vor.u32 %v12365_v29, %v9752_v22 }
 0x25d   :  { %v2041_v16 = vmul.f32 0.5, %v1955_v44  ;;  %v9832_v44 = vld [vmem:[%s18586_s30 + $0x108] sm:$0xf]  ;;  %v12385_v34 = vld [vmem:[%s18586_s30 + $0x114] sm:$0xf0]  ;;  %2765 = vmatpush.bf16.msrb.mxu0 %v9785_v57 }
 0x25e   :  { %v1967_v3 = vpop.f32.mrf.mxu2  ;;  %2790 = vmatpush.bf16.msrb.mxu2 %v9805_v7  ;;  %v9833_v11 = vor.u32 %v12385_v34, %v9832_v44  ;;  %v9769_v7 = vor.u32 %v12369_v21, %v9768_v18  ;;  %v9738_v18 = vld [vmem:[%s18586_s30 + $0x58] sm:$0xf0] }
 0x25f   :  { %v1968_v5 = vadd.f32 %v1967_v3, %v14443_v32  ;;  %v9834_v3 = vld [vmem:[%s18586_s30 + $0x118] sm:$0xf0]  ;;  %13006 = vtanh.f32 %v2041_v16 }
 0x260   :  { %v1943_v60 = vpop.f32.mrf.mxu0  ;;  %v9837_v43 = vor.u32 %v12383_v45, %v9834_v3  ;;  %2783 = vmatpush.bf16.msrb.mxu1 %v9833_v11  ;;  %v12361_v11 = vld [vmem:[%s18586_s30 + $0x54] sm:$0xf0]  ;;  %v12359_v45 = vld [vmem:[%s18586_s30 + $0x4c] sm:$0xf] }
 0x261   :  { %v1981_v63 = vadd.f32 %v14802_v15, %v1968_v5  ;;  %v9786_v15 = vld [vmem:[%s18586_s30 + $0xb8] sm:$0xf0]  ;;  %2766 = vmatpush.bf16.msrb.mxu0 %v9769_v7  ;;  %v9741_v7 = vor.u32 %v12359_v45, %v9738_v18 }
 0x262   :  { %v2034_v39 = vpop.f32.mrf.mxu3  ;;  %v9789_v13 = vor.u32 %v12371_v49, %v9786_v15  ;;  %2809 = vmatpush.bf16.msrb.mxu3 %v9837_v43  ;;  %v9754_v49 = vld [vmem:[%s18586_s30 + $0x78] sm:$0xf0] }
 0x263   :  { %v2036_v54 = vmul.f32 0.5, %v1981_v63  ;;  %v12363_v63 = vld [vmem:[%s18586_s30 + $0x6c] sm:$0xf]  ;;  %v9706_v45 = vld [vmem:[%s18586_s30 + $0x18] sm:$0xf0] }
 0x264   :  { %2791 = vmatpush.bf16.msrb.mxu2 %v9789_v13  ;;  %v9757_v15 = vor.u32 %v12363_v63, %v9754_v49  ;;  %v9736_v13 = vld [vmem:[%s18586_s30 + $0x48] sm:$0xf] }
 0x265   :  { %13008 = vtanh.f32 %v2036_v54  ;;  %v2273_v24 = vpop.f32.mrf.mxu1  ;;  %v13007_v50 = vpop.eup %13006  ;;  %2767 = vmatpush.bf16.msrb.mxu0 %v9753_v56  ;;  %v9737_v43 = vor.u32 %v12361_v11, %v9736_v13 }
 0x266   :  { %v1969_v5 = vpop.f32.mrf.mxu2  ;;  %v2304_v21 = vadd.f32 %v2273_v24, %v13901_v59  ;;  %v12355_v59 = vld [vmem:[%s18586_s30 + $0x2c] sm:$0xf]  ;;  %v9722_v24 = vld [vmem:[%s18586_s30 + $0x38] sm:$0xf0] }
 0x267   :  { %v9725_v56 = vor.u32 %v12355_v59, %v9722_v24 }
 0x268   :  { %v1993_v16 = vpop.f32.mrf.mxu0  ;;  %2792 = vmatpush.bf16.msrb.mxu2 %v9773_v9  ;;  %v2307_v63 = vmul.f32 0.5, %v2304_v21 }
 0x269   :  { %v1994_v60 = vadd.f32 %v1993_v16, %v14541_v46  ;;  %2768 = vmatpush.bf16.msrb.mxu0 %v9737_v43  ;;  %v9720_v16 = vld [vmem:[%s18586_s30 + $0x28] sm:$0xf] }
 0x26b   :  { %v13009_v39 = vpop.eup %13008  ;;  %v2007_v57 = vadd.f32 %v14864_v19, %v1994_v60  ;;  %v2043_v19 = vmul.f32 0.5, %v13007_v50  ;;  %v12357_v60 = vld [vmem:[%s18586_s30 + $0x34] sm:$0xf0] }
 0x26c   :  { %v2038_v44 = vmul.f32 0.5, %v13009_v39  ;;  %v2299_v34 = vpop.f32.mrf.mxu3  ;;  %2793 = vmatpush.bf16.msrb.mxu2 %v9757_v15  ;;  %v9721_v29 = vor.u32 %v12357_v60, %v9720_v16  ;;  %v9704_v15 = vld [vmem:[%s18586_s30 + $0x8] sm:$0xf] }
 0x26d   :  { %13010 = vtanh.f32 %v2007_v57  ;;  %v2275_v54 = vpop.f32.mrf.mxu1  ;;  %v2044_v22 = vadd.f32 0.5, %v2043_v19 }
 0x26e   :  { %v2019_v3 = vpop.f32.mrf.mxu2  ;;  %v2039_v8 = vadd.f32 0.5, %v2038_v44  ;;  %2769 = vmatpush.bf16.msrb.mxu0 %v9721_v29  ;;  %v12353_v44 = vld [vmem:[%s18586_s30 + $0x14] sm:$0xf0]  ;;  %v12351_v54 = vld [vmem:[%s18586_s30 + $0xc] sm:$0xf] }
 0x26f   :  { %v2020_v5 = vadd.f32 %v2019_v3, %v14570_v36  ;;  %v9705_v11 = vor.u32 %v12353_v44, %v9704_v15  ;;  %v9709_v19 = vor.u32 %v12351_v54, %v9706_v45  ;;  %v10074_v29 = vld [vmem:[#allocation6 + $0xf8] sm:$0xf0]  ;;  %v12434_v45 = vld [vmem:[#allocation6 + $0xa4] sm:$0xf] }
 0x270   :  { %v1995_v33 = vpop.f32.mrf.mxu0  ;;  %2794 = vmatpush.bf16.msrb.mxu2 %v9741_v7  ;;  %v2040_v49 = vmul.f32 %v2039_v8, %v14613_v61  ;;  %v2306_v8 = vadd.f32 %v2299_v34, %v13952_v27  ;;  %v10050_v34 = vld [vmem:[#allocation6 + $0xd0] sm:$0xf0]  ;;  %v10058_v15 = vld [vmem:[#allocation6 + $0xd8] sm:$0xf0] }
 0x271   :  { %v2033_v9 = vadd.f32 %v14909_v20, %v2020_v5  ;;  %v12442_v33 = vld [vmem:[#allocation6 + $0xe4] sm:$0xf] }
 0x272   :  { %2770 = vmatpush.bf16.msrb.mxu0 %v9705_v11 }
 0x273   :  { %v13011_v20 = vpop.eup %13010  ;;  %v2048_v50 = vmul.f32 0.5, %v2033_v9  ;;  %v10066_v9 = vld [vmem:[#allocation6 + $0xf0] sm:$0xf0] }
 0x274   :  { %v2046_v39 = vmul.f32 %v13011_v20, %v2044_v22  ;;  %v2301_v57 = vpop.f32.mrf.mxu3  ;;  %2795 = vmatpush.bf16.msrb.mxu2 %v9725_v56  ;;  %v12443_v22 = vld [vmem:[#allocation6 + $0xec] sm:$0xf]  ;;  %v10069_v56 = vor.u32 %v12442_v33, %v10066_v9 }
 0x275   :  { %13012 = vtanh.f32 %v2048_v50  ;;  %v2319_v50 = vmul.f32 0.5, %v2306_v8  ;;  %v12439_v57 = vld [vmem:[#allocation6 + $0xcc] sm:$0xf] }
 0x276   :  { %v15043_v13 = vadd.f32 %v2046_v39, %v2040_v49  ;;  %v2021_v61 = vpop.f32.mrf.mxu2  ;;  %13014 = vtanh.f32 %v2307_v63  ;;  %v10077_v49 = vor.u32 %v12443_v22, %v10074_v29  ;;  %v12438_v39 = vld [vmem:[#allocation6 + $0xc4] sm:$0xf]  ;;  %v10061_v11 = vor.u32 %v12439_v57, %v10058_v15  ;;  %v12431_v22 = vld [vmem:[#allocation6 + $0x8c] sm:$0xf]  ;;  %v10026_v29 = vld [vmem:[#allocation6 + $0x98] sm:$0xf0] }
 0x277   :  { %v10064_v15 = vld [vmem:[#allocation6 + $0xe0] sm:$0xf] }
 0x278   :  { %13016 = vtanh.f32 %v15043_v13  ;;  %v2260_v3 = vpop.f32.mrf.mxu0  ;;  %2796 = vmatpush.bf16.msrb.mxu2 %v9709_v19  ;;  %v10034_v19 = vld [vmem:[#allocation6 + $0xb0] sm:$0xf0] }
 0x279   :  { %v2303_v43 = vadd.f32 %v2260_v3, %v13889_v52 }
 0x27b   :  { %v13013_v18 = vpop.eup %13012  ;;  %v2312_v21 = vmul.f32 0.5, %v2303_v43  ;;  %v12435_v43 = vld [vmem:[#allocation6 + $0xac] sm:$0xf] }
 0x27c   :  { %v2050_v5 = vmul.f32 0.5, %v13013_v18  ;;  %v13015_v7 = vpop.eup %13014  ;;  %v10042_v18 = vld [vmem:[#allocation6 + $0xb8] sm:$0xf0] }
 0x27d   :  { %13018 = vtanh.f32 %v2312_v21  ;;  %v2309_v63 = vmul.f32 0.5, %v13015_v7  ;;  %v10037_v7 = vor.u32 %v12434_v45, %v10034_v19  ;;  %v10045_v9 = vor.u32 %v12435_v43, %v10042_v18  ;;  %v9986_v19 = vld [vmem:[#allocation6 + $0x50] sm:$0xf0]  ;;  %v9994_v43 = vld [vmem:[#allocation6 + $0x58] sm:$0xf0] }
 0x27e   :  { %v13017_v16 = vpop.eup %13016  ;;  %v2051_v60 = vadd.f32 0.5, %v2050_v5 }
 0x27f   :  { %v2286_v59 = vpop.f32.mrf.mxu2  ;;  %v2310_v61 = vadd.f32 0.5, %v2309_v63  ;;  %v10029_v63 = vor.u32 %v12431_v22, %v10026_v29  ;;  %v12441_v22 = vld [vmem:[#allocation6 + $0xd4] sm:$0xf0]  ;;  %v12418_v29 = vld [vmem:[#allocation6 + $0x24] sm:$0xf] }
 0x280   :  { %v15051_v24 = vmul.f32 %v13017_v16, %v2051_v60  ;;  %v2305_v20 = vadd.f32 %v2286_v59, %v13947_v23  ;;  %v2262_v52 = vpop.f32.mrf.mxu0  ;;  %v10053_v23 = vor.u32 %v12438_v39, %v10050_v34  ;;  %v12430_v16 = vld [vmem:[#allocation6 + $0x84] sm:$0xf]  ;;  %v10018_v60 = vld [vmem:[#allocation6 + $0x90] sm:$0xf0]  ;;  %v10010_v39 = vld [vmem:[#allocation6 + $0x78] sm:$0xf0] }
 0x281   :  { %v2311_v8 = vmul.f32 %v2310_v61, %v14631_v0  ;;  %v10021_v52 = vor.u32 %v12430_v16, %v10018_v60  ;;  %v10056_v60 = vld [vmem:[#allocation6 + $0xc8] sm:$0xf] }
 0x282   :  { %13020 = vtanh.f32 %v2305_v20  ;;  %v2326_v27 = vpack.c.bf16 %v15051_v24, %v15051_v24 }
 0x283   :  { %v13019_v44 = vpop.eup %13018  ;;  %13022 = vtanh.f32 %v2319_v50  ;;  %v12426_v50 = vld [vmem:[#allocation6 + $0x64] sm:$0xf] }
 0x284   :  { %v2314_v54 = vmul.f32 0.5, %v13019_v44  ;;  %2732 = vmatmul.bf16.vlgmr.msra.gmra.mxu1 %v2326_v27  ;;  %2758 = vmatmul.bf16.vlgmr.msra.gmra.mxu3 %v2326_v27  ;;  %v12444_v44 = vld [vmem:[#allocation6 + $0xec] sm:$0xf0] }
 0x285   :  { %3043 = vmatpush.bf16.msra.mxu1 %v10069_v56  ;;  %3069 = vmatpush.bf16.msra.mxu3 %v10077_v49  ;;  %v10002_v56 = vld [vmem:[#allocation6 + $0x70] sm:$0xf0]  ;;  %v12427_v49 = vld [vmem:[#allocation6 + $0x6c] sm:$0xf] }
 0x286   :  { %v2315_v3 = vadd.f32 0.5, %v2314_v54  ;;  %v10005_v34 = vor.u32 %v12426_v50, %v10002_v56  ;;  %v10013_v57 = vor.u32 %v12427_v49, %v10010_v39  ;;  %v10072_v54 = vld [vmem:[#allocation6 + $0xe8] sm:$0xf]  ;;  %v10057_v50 = vor.u32 %v12441_v22, %v10056_v60  ;;  %v10032_v56 = vld [vmem:[#allocation6 + $0xa0] sm:$0xf] }
 0x287   :  { %v2288_v21 = vpop.f32.mrf.mxu2  ;;  %v12429_v60 = vld [vmem:[#allocation6 + $0x74] sm:$0xf0] }
 0x288   :  { %v13021_v5 = vpop.eup %13020  ;;  %v10065_v21 = vor.u32 %v12444_v44, %v10064_v15  ;;  %v12414_v15 = vld [vmem:[#allocation6 + $0x4] sm:$0xf]  ;;  %v9954_v44 = vld [vmem:[#allocation6 + $0x10] sm:$0xf0] }
 0x289   :  { %v2317_v33 = vmul.f32 %v13021_v5, %v2315_v3  ;;  %3044 = vmatpush.bf16.msra.mxu1 %v10053_v23  ;;  %3070 = vmatpush.bf16.msra.mxu3 %v10061_v11  ;;  %v13023_v59 = vpop.eup %13022  ;;  %v12445_v23 = vld [vmem:[#allocation6 + $0xf4] sm:$0xf0]  ;;  %v12422_v11 = vld [vmem:[#allocation6 + $0x44] sm:$0xf]  ;;  %v12423_v3 = vld [vmem:[#allocation6 + $0x4c] sm:$0xf] }
 0x28a   :  { %v2321_v0 = vmul.f32 0.5, %v13023_v59  ;;  %v10073_v5 = vor.u32 %v12445_v23, %v10072_v54  ;;  %v9997_v16 = vor.u32 %v12423_v3, %v9994_v43  ;;  %v9970_v59 = vld [vmem:[#allocation6 + $0x30] sm:$0xf0]  ;;  %v12415_v54 = vld [vmem:[#allocation6 + $0xc] sm:$0xf] }
 0x28b   :  { %v15057_v20 = vadd.f32 %v2317_v33, %v2311_v8  ;;  %v12440_v8 = vld [vmem:[#allocation6 + $0xcc] sm:$0xf0]  ;;  %v9973_v49 = vor.u32 %v12418_v29, %v9970_v59  ;;  %v10016_v3 = vld [vmem:[#allocation6 + $0x80] sm:$0xf] }
 0x28c   :  { %v2322_v61 = vadd.f32 0.5, %v2321_v0  ;;  %v12436_v0 = vld [vmem:[#allocation6 + $0xac] sm:$0xf0]  ;;  %v9984_v59 = vld [vmem:[#allocation6 + $0x40] sm:$0xf] }
 0x28d   :  { %13024 = vtanh.f32 %v15057_v20  ;;  %3045 = vmatpush.bf16.msra.mxu1 %v10037_v7  ;;  %3071 = vmatpush.bf16.msra.mxu3 %v10045_v9  ;;  %v10048_v7 = vld [vmem:[#allocation6 + $0xc0] sm:$0xf]  ;;  %v9989_v9 = vor.u32 %v12422_v11, %v9986_v19  ;;  %v10033_v23 = vor.u32 %v12436_v0, %v10032_v56  ;;  %v12432_v43 = vld [vmem:[#allocation6 + $0x8c] sm:$0xf0] }
 0x28e   :  { %v9968_v0 = vld [vmem:[#allocation6 + $0x20] sm:$0xf] }
 0x291   :  { %3046 = vmatpush.bf16.msra.mxu1 %v10021_v52  ;;  %3072 = vmatpush.bf16.msra.mxu3 %v10029_v63  ;;  %v12419_v52 = vld [vmem:[#allocation6 + $0x2c] sm:$0xf]  ;;  %v9978_v63 = vld [vmem:[#allocation6 + $0x38] sm:$0xf0] }
 0x292   :  { %v9981_v39 = vor.u32 %v12419_v52, %v9978_v63  ;;  %v12424_v52 = vld [vmem:[#allocation6 + $0x4c] sm:$0xf0]  ;;  %v9992_v63 = vld [vmem:[#allocation6 + $0x48] sm:$0xf] }
 0x293   :  { %v13025_v45 = vpop.eup %13024 }
 0x294   :  { %v2324_v18 = vmul.f32 %v13025_v45, %v2322_v61  ;;  %2784 = vmatmul.bf16.vlgmr.msrb.gmra.mxu1 %v2326_v27  ;;  %2810 = vmatmul.bf16.vlgmr.msrb.gmra.mxu3 %v2326_v27  ;;  %v10049_v27 = vor.u32 %v12440_v8, %v10048_v7  ;;  %v9962_v61 = vld [vmem:[#allocation6 + $0x18] sm:$0xf0]  ;;  %v9957_v45 = vor.u32 %v12414_v15, %v9954_v44  ;;  %v10000_v8 = vld [vmem:[#allocation6 + $0x60] sm:$0xf] }
 0x295   :  { %3047 = vmatpush.bf16.msra.mxu1 %v10005_v34  ;;  %3073 = vmatpush.bf16.msra.mxu3 %v10013_v57  ;;  %v10040_v34 = vld [vmem:[#allocation6 + $0xa8] sm:$0xf]  ;;  %v12437_v57 = vld [vmem:[#allocation6 + $0xb4] sm:$0xf0]  ;;  %v9965_v19 = vor.u32 %v12415_v54, %v9962_v61  ;;  %v9952_v44 = vld [vmem:[#allocation6] sm:$0xf] }
 0x296   :  { %v15060_v33 = vpack.c.bf16 %v2324_v18, %v2324_v18  ;;  %v10041_v11 = vor.u32 %v12437_v57, %v10040_v34  ;;  %v10024_v18 = vld [vmem:[#allocation6 + $0x88] sm:$0xf]  ;;  %v12421_v34 = vld [vmem:[#allocation6 + $0x34] sm:$0xf0]  ;;  %v12416_v54 = vld [vmem:[#allocation6 + $0xc] sm:$0xf0] }
 0x297   :  { %v9960_v61 = vld [vmem:[#allocation6 + $0x8] sm:$0xf] }
 0x298   :  { %2719 = vmatmul.bf16.vlgmr.msra.gmra.mxu0 %v15060_v33  ;;  %2745 = vmatmul.bf16.vlgmr.msra.gmra.mxu2 %v15060_v33 }
 0x299   :  { %3030 = vmatpush.bf16.msra.mxu0 %v10065_v21  ;;  %3056 = vmatpush.bf16.msra.mxu2 %v10073_v5  ;;  %v12433_v21 = vld [vmem:[#allocation6 + $0x94] sm:$0xf0]  ;;  %v10017_v5 = vor.u32 %v12432_v43, %v10016_v3  ;;  %v12508_v3 = vld [vmem:[%s18586_s30 + $0x1ec] sm:$0xf0]  ;;  %v12506_v43 = vld [vmem:[%s18586_s30 + $0x1e4] sm:$0xf] }
 0x29a   :  { %3048 = vmatpush.bf16.msra.mxu1 %v9989_v9  ;;  %3074 = vmatpush.bf16.msra.mxu3 %v9997_v16  ;;  %v10025_v7 = vor.u32 %v12433_v21, %v10024_v18  ;;  %v12428_v9 = vld [vmem:[#allocation6 + $0x6c] sm:$0xf0]  ;;  %v10008_v16 = vld [vmem:[#allocation6 + $0x68] sm:$0xf]  ;;  %v10322_v21 = vld [vmem:[%s18586_s30 + $0x1f0] sm:$0xf0] }
 0x29b   :  { %v10001_v22 = vor.u32 %v12428_v9, %v10000_v8  ;;  %v10009_v29 = vor.u32 %v12429_v60, %v10008_v16  ;;  %v12502_v8 = vld [vmem:[%s18586_s30 + $0x1c4] sm:$0xf]  ;;  %v10306_v16 = vld [vmem:[%s18586_s30 + $0x1d0] sm:$0xf0] }
 0x29c   :  { %v10309_v60 = vor.u32 %v12502_v8, %v10306_v16  ;;  %v10242_v8 = vld [vmem:[%s18586_s30 + $0x150] sm:$0xf0]  ;;  %v10176_v16 = vld [vmem:[%s18586_s30 + $0xc0] sm:$0xf] }
 0x29d   :  { %3031 = vmatpush.bf16.msra.mxu0 %v10049_v27  ;;  %3057 = vmatpush.bf16.msra.mxu2 %v10057_v50  ;;  %v12425_v27 = vld [vmem:[#allocation6 + $0x54] sm:$0xf0]  ;;  %v9985_v50 = vor.u32 %v12424_v52, %v9984_v59  ;;  %v12498_v59 = vld [vmem:[%s18586_s30 + $0x1a4] sm:$0xf] }
 0x29e   :  { %3049 = vmatpush.bf16.msra.mxu1 %v9973_v49  ;;  %3075 = vmatpush.bf16.msra.mxu3 %v9981_v39  ;;  %v9993_v56 = vor.u32 %v12425_v27, %v9992_v63  ;;  %v12420_v49 = vld [vmem:[#allocation6 + $0x2c] sm:$0xf0]  ;;  %v9976_v39 = vld [vmem:[#allocation6 + $0x28] sm:$0xf]  ;;  %v10290_v63 = vld [vmem:[%s18586_s30 + $0x1b0] sm:$0xf0] }
 0x29f   :  { %v9969_v57 = vor.u32 %v12420_v49, %v9968_v0  ;;  %v9977_v15 = vor.u32 %v12421_v34, %v9976_v39  ;;  %v10293_v27 = vor.u32 %v12498_v59, %v10290_v63  ;;  %v12494_v0 = vld [vmem:[%s18586_s30 + $0x184] sm:$0xf]  ;;  %v10274_v39 = vld [vmem:[%s18586_s30 + $0x190] sm:$0xf0]  ;;  %v12484_v63 = vld [vmem:[%s18586_s30 + $0x12c] sm:$0xf0] }
 0x2a0   :  { %v10277_v34 = vor.u32 %v12494_v0, %v10274_v39  ;;  %v10178_v59 = vld [vmem:[%s18586_s30 + $0xd0] sm:$0xf0] }
 0x2a1   :  { %3032 = vmatpush.bf16.msra.mxu0 %v10033_v23  ;;  %3058 = vmatpush.bf16.msra.mxu2 %v10041_v11  ;;  %v12417_v23 = vld [vmem:[#allocation6 + $0x14] sm:$0xf0]  ;;  %v9953_v11 = vor.u32 %v12416_v54, %v9952_v44  ;;  %v12490_v44 = vld [vmem:[%s18586_s30 + $0x164] sm:$0xf]  ;;  %v10226_v0 = vld [vmem:[%s18586_s30 + $0x130] sm:$0xf0] }
 0x2a2   :  { %3050 = vmatpush.bf16.msra.mxu1 %v9957_v45  ;;  %3076 = vmatpush.bf16.msra.mxu3 %v9965_v19  ;;  %v9961_v45 = vor.u32 %v12417_v23, %v9960_v61  ;;  %v10320_v19 = vld [vmem:[%s18586_s30 + $0x1e0] sm:$0xf]  ;;  %v10258_v61 = vld [vmem:[%s18586_s30 + $0x170] sm:$0xf0] }
 0x2a3   :  { %v10321_v18 = vor.u32 %v12508_v3, %v10320_v19  ;;  %v10261_v23 = vor.u32 %v12490_v44, %v10258_v61  ;;  %v12474_v19 = vld [vmem:[%s18586_s30 + $0xe4] sm:$0xf]  ;;  %v10208_v61 = vld [vmem:[%s18586_s30 + $0x100] sm:$0xf] }
 0x2a5   :  { %3033 = vmatpush.bf16.msra.mxu0 %v10017_v5  ;;  %3051 = vmatmul.bf16.vlgmr.msra.gmra.mxu1 %v15060_v33  ;;  %v10325_v5 = vor.u32 %v12506_v43, %v10322_v21  ;;  %v10194_v43 = vld [vmem:[%s18586_s30 + $0xf0] sm:$0xf0]  ;;  %v12488_v21 = vld [vmem:[%s18586_s30 + $0x14c] sm:$0xf0] }
 0x2a6   :  { %3059 = vmatpush.bf16.msra.mxu2 %v10025_v7  ;;  %3077 = vmatmul.bf16.vlgmr.msra.gmra.mxu3 %v15060_v33  ;;  %v12504_v7 = vld [vmem:[%s18586_s30 + $0x1cc] sm:$0xf0] }
 0x2a7   :  { %3503 = vmatpush.bf16.msrb.mxu1 %v10321_v18  ;;  %3529 = vmatpush.bf16.msrb.mxu3 %v10325_v5  ;;  %v10240_v18 = vld [vmem:[%s18586_s30 + $0x140] sm:$0xf]  ;;  %v10197_v5 = vor.u32 %v12474_v19, %v10194_v43  ;;  %v12478_v19 = vld [vmem:[%s18586_s30 + $0x104] sm:$0xf]  ;;  %v10328_v43 = vld [vmem:[%s18586_s30 + $0x1e8] sm:$0xf] }
 0x2a8   :  { %2771 = vmatmul.bf16.vlgmr.msrb.gmra.mxu0 %v15060_v33  ;;  %2797 = vmatmul.bf16.vlgmr.msrb.gmra.mxu2 %v15060_v33 }
 0x2a9   :  { %3034 = vmatpush.bf16.msra.mxu0 %v10001_v22  ;;  %v10288_v22 = vld [vmem:[%s18586_s30 + $0x1a0] sm:$0xf] }
 0x2aa   :  { %3060 = vmatpush.bf16.msra.mxu2 %v10009_v29  ;;  %v12500_v29 = vld [vmem:[%s18586_s30 + $0x1ac] sm:$0xf0] }
 0x2ab   :  { %3530 = vmatpush.bf16.msrb.mxu3 %v10309_v60  ;;  %v10289_v52 = vor.u32 %v12500_v29, %v10288_v22  ;;  %v12472_v60 = vld [vmem:[%s18586_s30 + $0xcc] sm:$0xf0]  ;;  %v12470_v22 = vld [vmem:[%s18586_s30 + $0xc4] sm:$0xf] }
 0x2ac   :  { %v10177_v29 = vor.u32 %v12472_v60, %v10176_v16  ;;  %v12464_v16 = vld [vmem:[%s18586_s30 + $0x8c] sm:$0xf0]  ;;  %v12462_v60 = vld [vmem:[%s18586_s30 + $0x84] sm:$0xf] }
 0x2ad   :  { %3035 = vmatpush.bf16.msra.mxu0 %v9985_v50  ;;  %v10272_v50 = vld [vmem:[%s18586_s30 + $0x180] sm:$0xf] }
 0x2ae   :  { %3061 = vmatpush.bf16.msra.mxu2 %v9993_v56  ;;  %v12496_v56 = vld [vmem:[%s18586_s30 + $0x18c] sm:$0xf0] }
 0x2af   :  { %3531 = vmatpush.bf16.msrb.mxu3 %v10293_v27  ;;  %v10273_v49 = vor.u32 %v12496_v56, %v10272_v50  ;;  %v10181_v27 = vor.u32 %v12470_v22, %v10178_v59  ;;  %v12482_v56 = vld [vmem:[%s18586_s30 + $0x124] sm:$0xf] }
 0x2b1   :  { %3036 = vmatpush.bf16.msra.mxu0 %v9969_v57  ;;  %v10256_v57 = vld [vmem:[%s18586_s30 + $0x160] sm:$0xf] }
 0x2b2   :  { %3062 = vmatpush.bf16.msra.mxu2 %v9977_v15  ;;  %v12492_v15 = vld [vmem:[%s18586_s30 + $0x16c] sm:$0xf0] }
 0x2b3   :  { %3532 = vmatpush.bf16.msrb.mxu3 %v10277_v34  ;;  %v10257_v54 = vor.u32 %v12492_v15, %v10256_v57  ;;  %v10160_v34 = vld [vmem:[%s18586_s30 + $0xa0] sm:$0xf]  ;;  %v12468_v57 = vld [vmem:[%s18586_s30 + $0xac] sm:$0xf0]  ;;  %v12466_v15 = vld [vmem:[%s18586_s30 + $0xa4] sm:$0xf] }
 0x2b4   :  { %v10161_v44 = vor.u32 %v12468_v57, %v10160_v34  ;;  %v10128_v57 = vld [vmem:[%s18586_s30 + $0x60] sm:$0xf] }
 0x2b5   :  { %3037 = vmatpush.bf16.msra.mxu0 %v9953_v11  ;;  %v10192_v11 = vld [vmem:[%s18586_s30 + $0xe0] sm:$0xf] }
 0x2b6   :  { %3063 = vmatpush.bf16.msra.mxu2 %v9961_v45  ;;  %v12476_v45 = vld [vmem:[%s18586_s30 + $0xec] sm:$0xf0] }
 0x2b7   :  { %3533 = vmatpush.bf16.msrb.mxu3 %v10261_v23  ;;  %v10193_v3 = vor.u32 %v12476_v45, %v10192_v11  ;;  %v12480_v23 = vld [vmem:[%s18586_s30 + $0x10c] sm:$0xf0] }
 0x2b8   :  { %3038 = vmatmul.bf16.vlgmr.msra.gmra.mxu0 %v15060_v33  ;;  %v10209_v45 = vor.u32 %v12480_v23, %v10208_v61  ;;  %v10130_v61 = vld [vmem:[%s18586_s30 + $0x70] sm:$0xf0] }
 0x2b9   :  { %3064 = vmatmul.bf16.vlgmr.msra.gmra.mxu2 %v15060_v33  ;;  %v10304_v33 = vld [vmem:[%s18586_s30 + $0x1c0] sm:$0xf]  ;;  %3490 = vmatpush.bf16.msrb.mxu0 %v10193_v3  ;;  %v10210_v3 = vld [vmem:[%s18586_s30 + $0x110] sm:$0xf0] }
 0x2ba   :  { %v10305_v9 = vor.u32 %v12504_v7, %v10304_v33  ;;  %v10241_v33 = vor.u32 %v12488_v21, %v10240_v18  ;;  %v12486_v7 = vld [vmem:[%s18586_s30 + $0x144] sm:$0xf]  ;;  %3516 = vmatpush.bf16.msrb.mxu2 %v10197_v5  ;;  %v10213_v18 = vor.u32 %v12478_v19, %v10210_v3  ;;  %v12509_v21 = vld [vmem:[%s18586_s30 + $0x1f4] sm:$0xf0]  ;;  %v12507_v5 = vld [vmem:[%s18586_s30 + $0x1ec] sm:$0xf] }
 0x2bb   :  { %v12499_v19 = vld [vmem:[%s18586_s30 + $0x1ac] sm:$0xf] }
 0x2bc   :  { %3504 = vmatpush.bf16.msrb.mxu1 %v10305_v9  ;;  %v10245_v9 = vor.u32 %v12486_v7, %v10242_v8  ;;  %v10329_v7 = vor.u32 %v12509_v21, %v10328_v43  ;;  %v10298_v43 = vld [vmem:[%s18586_s30 + $0x1b8] sm:$0xf0]  ;;  %v10112_v21 = vld [vmem:[%s18586_s30 + $0x40] sm:$0xf] }
 0x2bd   :  { %3491 = vmatpush.bf16.msrb.mxu0 %v10177_v29  ;;  %v10146_v29 = vld [vmem:[%s18586_s30 + $0x90] sm:$0xf0] }
 0x2be   :  { %3534 = vmatpush.bf16.msrb.mxu3 %v10245_v9  ;;  %3517 = vmatpush.bf16.msrb.mxu2 %v10181_v27  ;;  %v10144_v9 = vld [vmem:[%s18586_s30 + $0x80] sm:$0xf]  ;;  %v12505_v27 = vld [vmem:[%s18586_s30 + $0x1d4] sm:$0xf0] }
 0x2bf   :  { %v10145_v22 = vor.u32 %v12464_v16, %v10144_v9 }
 0x2c0   :  { %3505 = vmatpush.bf16.msrb.mxu1 %v10289_v52  ;;  %v10224_v52 = vld [vmem:[%s18586_s30 + $0x120] sm:$0xf] }
 0x2c1   :  { %v10225_v50 = vor.u32 %v12484_v63, %v10224_v52  ;;  %3492 = vmatpush.bf16.msrb.mxu0 %v10161_v44  ;;  %v10149_v52 = vor.u32 %v12462_v60, %v10146_v29  ;;  %v10312_v63 = vld [vmem:[%s18586_s30 + $0x1c8] sm:$0xf]  ;;  %v12458_v44 = vld [vmem:[%s18586_s30 + $0x64] sm:$0xf]  ;;  %v12495_v29 = vld [vmem:[%s18586_s30 + $0x18c] sm:$0xf] }
 0x2c2   :  { %v10133_v23 = vor.u32 %v12458_v44, %v10130_v61  ;;  %v10280_v60 = vld [vmem:[%s18586_s30 + $0x188] sm:$0xf]  ;;  %v12491_v61 = vld [vmem:[%s18586_s30 + $0x16c] sm:$0xf] }
 0x2c3   :  { %v10264_v44 = vld [vmem:[%s18586_s30 + $0x168] sm:$0xf] }
 0x2c4   :  { %3506 = vmatpush.bf16.msrb.mxu1 %v10273_v49  ;;  %v10229_v49 = vor.u32 %v12482_v56, %v10226_v0  ;;  %v10313_v56 = vor.u32 %v12505_v27, %v10312_v63  ;;  %v10314_v0 = vld [vmem:[%s18586_s30 + $0x1d8] sm:$0xf0] }
 0x2c5   :  { %3493 = vmatpush.bf16.msrb.mxu0 %v10145_v22  ;;  %v12497_v22 = vld [vmem:[%s18586_s30 + $0x194] sm:$0xf0]  ;;  %v10282_v63 = vld [vmem:[%s18586_s30 + $0x198] sm:$0xf0] }
 0x2c6   :  { %3535 = vmatpush.bf16.msrb.mxu3 %v10229_v49 }
 0x2c8   :  { %3507 = vmatpush.bf16.msrb.mxu1 %v10257_v54  ;;  %v10162_v54 = vld [vmem:[%s18586_s30 + $0xb0] sm:$0xf0] }
 0x2c9   :  { %v10165_v11 = vor.u32 %v12466_v15, %v10162_v54  ;;  %v12460_v15 = vld [vmem:[%s18586_s30 + $0x6c] sm:$0xf0] }
 0x2ca   :  { %3536 = vmatpush.bf16.msrb.mxu3 %v10213_v18  ;;  %v10129_v54 = vor.u32 %v12460_v15, %v10128_v57  ;;  %v10301_v18 = vor.u32 %v12499_v19, %v10298_v43  ;;  %v10098_v57 = vld [vmem:[%s18586_s30 + $0x30] sm:$0xf0]  ;;  %v12448_v43 = vld [vmem:[%s18586_s30 + $0xc] sm:$0xf0] }
 0x2cb   :  { %3518 = vmatpush.bf16.msrb.mxu2 %v10165_v11  ;;  %v10296_v11 = vld [vmem:[%s18586_s30 + $0x1a8] sm:$0xf] }
 0x2cc   :  { %3508 = vmatpush.bf16.msrb.mxu1 %v10241_v33  ;;  %v10330_v33 = vld [vmem:[%s18586_s30 + $0x1f8] sm:$0xf0]  ;;  %3494 = vmatpush.bf16.msrb.mxu0 %v10129_v54  ;;  %v12493_v54 = vld [vmem:[%s18586_s30 + $0x174] sm:$0xf0] }
 0x2cd   :  { %v10333_v8 = vor.u32 %v12507_v5, %v10330_v33  ;;  %v12456_v5 = vld [vmem:[%s18586_s30 + $0x4c] sm:$0xf0]  ;;  %v12454_v33 = vld [vmem:[%s18586_s30 + $0x44] sm:$0xf] }
 0x2cf   :  { %3581 = vmatpush.bf16.msra.mxu3 %v10333_v8  ;;  %3519 = vmatpush.bf16.msrb.mxu2 %v10149_v52  ;;  %v10114_v8 = vld [vmem:[%s18586_s30 + $0x50] sm:$0xf0]  ;;  %v10281_v52 = vor.u32 %v12497_v22, %v10280_v60  ;;  %v12475_v22 = vld [vmem:[%s18586_s30 + $0xec] sm:$0xf] }
 0x2d0   :  { %3509 = vmatpush.bf16.msrb.mxu1 %v10225_v50  ;;  %v12503_v50 = vld [vmem:[%s18586_s30 + $0x1cc] sm:$0xf]  ;;  %v10117_v16 = vor.u32 %v12454_v33, %v10114_v8  ;;  %v10082_v33 = vld [vmem:[%s18586_s30 + $0x10] sm:$0xf0]  ;;  %v12477_v8 = vld [vmem:[%s18586_s30 + $0xf4] sm:$0xf0] }
 0x2d1   :  { %v10317_v34 = vor.u32 %v12503_v50, %v10314_v0  ;;  %v10285_v50 = vor.u32 %v12495_v29, %v10282_v63  ;;  %v12452_v0 = vld [vmem:[%s18586_s30 + $0x2c] sm:$0xf0]  ;;  %v10202_v29 = vld [vmem:[%s18586_s30 + $0xf8] sm:$0xf0] }
 0x2d2   :  { %v10205_v63 = vor.u32 %v12475_v22, %v10202_v29  ;;  %v12469_v22 = vld [vmem:[%s18586_s30 + $0xb4] sm:$0xf0]  ;;  %v12467_v29 = vld [vmem:[%s18586_s30 + $0xac] sm:$0xf] }
 0x2d3   :  { %3582 = vmatpush.bf16.msra.mxu3 %v10317_v34  ;;  %3520 = vmatpush.bf16.msrb.mxu2 %v10133_v23  ;;  %v10265_v23 = vor.u32 %v12493_v54, %v10264_v44  ;;  %v10184_v44 = vld [vmem:[%s18586_s30 + $0xc8] sm:$0xf]  ;;  %v12473_v54 = vld [vmem:[%s18586_s30 + $0xd4] sm:$0xf0] }
 0x2d4   :  { %3510 = vmatpush.bf16.msrb.mxu1 %v10209_v45  ;;  %v12501_v45 = vld [vmem:[%s18586_s30 + $0x1b4] sm:$0xf0] }
 0x2d5   :  { %v10297_v3 = vor.u32 %v12501_v45, %v10296_v11  ;;  %v10266_v11 = vld [vmem:[%s18586_s30 + $0x178] sm:$0xf0] }
 0x2d6   :  { %v10269_v19 = vor.u32 %v12491_v61, %v10266_v11  ;;  %v10186_v11 = vld [vmem:[%s18586_s30 + $0xd8] sm:$0xf0] }
 0x2d7   :  { %3583 = vmatpush.bf16.msra.mxu3 %v10301_v18  ;;  %3521 = vmatpush.bf16.msrb.mxu2 %v10117_v16  ;;  %v12446_v18 = vld [vmem:[%s18586_s30 + $0x4] sm:$0xf] }
 0x2d8   :  { %3555 = vmatpush.bf16.msra.mxu1 %v10329_v7  ;;  %v10113_v7 = vor.u32 %v12456_v5, %v10112_v21  ;;  %v10085_v16 = vor.u32 %v12446_v18, %v10082_v33  ;;  %v12483_v18 = vld [vmem:[%s18586_s30 + $0x12c] sm:$0xf] }
 0x2da   :  { %3495 = vmatpush.bf16.msrb.mxu0 %v10113_v7  ;;  %v10200_v7 = vld [vmem:[%s18586_s30 + $0xe8] sm:$0xf] }
 0x2db   :  { %3584 = vmatpush.bf16.msra.mxu3 %v10285_v50  ;;  %v10201_v60 = vor.u32 %v12477_v8, %v10200_v7  ;;  %v12489_v50 = vld [vmem:[%s18586_s30 + $0x154] sm:$0xf0] }
 0x2dc   :  { %3556 = vmatpush.bf16.msra.mxu1 %v10313_v56  ;;  %v10096_v56 = vld [vmem:[%s18586_s30 + $0x20] sm:$0xf] }
 0x2dd   :  { %v10097_v34 = vor.u32 %v12452_v0, %v10096_v56  ;;  %v12487_v56 = vld [vmem:[%s18586_s30 + $0x14c] sm:$0xf]  ;;  %v10250_v0 = vld [vmem:[%s18586_s30 + $0x158] sm:$0xf0] }
 0x2df   :  { %3496 = vmatpush.bf16.msrb.mxu0 %v10097_v34  ;;  %3585 = vmatpush.bf16.msra.mxu3 %v10269_v19 }
 0x2e0   :  { %3557 = vmatpush.bf16.msra.mxu1 %v10297_v3  ;;  %v10080_v3 = vld [vmem:[%s18586_s30] sm:$0xf] }
 0x2e1   :  { %v10081_v5 = vor.u32 %v12448_v43, %v10080_v3  ;;  %v12485_v43 = vld [vmem:[%s18586_s30 + $0x134] sm:$0xf0] }
 0x2e3   :  { %3497 = vmatpush.bf16.msrb.mxu0 %v10081_v5 }
 0x2e4   :  { %3558 = vmatpush.bf16.msra.mxu1 %v10281_v52  ;;  %v10248_v52 = vld [vmem:[%s18586_s30 + $0x148] sm:$0xf] }
 0x2e7   :  { %3542 = vmatpush.bf16.msra.mxu0 %v10201_v60  ;;  %v10168_v60 = vld [vmem:[%s18586_s30 + $0xa8] sm:$0xf] }
 0x2e8   :  { %3559 = vmatpush.bf16.msra.mxu1 %v10265_v23  ;;  %v10185_v23 = vor.u32 %v12473_v54, %v10184_v44 }
 0x2eb   :  { %3543 = vmatpush.bf16.msra.mxu0 %v10185_v23  ;;  %v12465_v23 = vld [vmem:[%s18586_s30 + $0x94] sm:$0xf0] }
 0x301   :  { %v15178_v39 = vpop.f32.mrf.mxu1 }
 0x307   :  { %v15228_v59 = vpop.f32.mrf.mxu3 }
 0x309   :  { %v2735_v49 = vpop.f32.mrf.mxu1 }
 0x30a   :  { %v12450_v49 = vld [vmem:[%s18586_s30 + $0x24] sm:$0xf] }
 0x30b   :  { %v10101_v15 = vor.u32 %v12450_v49, %v10098_v57  ;;  %v10249_v57 = vor.u32 %v12489_v50, %v10248_v52  ;;  %v10216_v50 = vld [vmem:[%s18586_s30 + $0x108] sm:$0xf] }
 0x30d   :  { %3522 = vmatpush.bf16.msrb.mxu2 %v10101_v15  ;;  %v10253_v15 = vor.u32 %v12487_v56, %v10250_v0  ;;  %3560 = vmatpush.bf16.msra.mxu1 %v10249_v57  ;;  %v12481_v56 = vld [vmem:[%s18586_s30 + $0x114] sm:$0xf0]  ;;  %v12479_v57 = vld [vmem:[%s18586_s30 + $0x10c] sm:$0xf] }
 0x30f   :  { %v2761_v9 = vpop.f32.mrf.mxu3  ;;  %3586 = vmatpush.bf16.msra.mxu3 %v10253_v15  ;;  %v10218_v15 = vld [vmem:[%s18586_s30 + $0x118] sm:$0xf0] }
 0x310   :  { %v10221_v44 = vor.u32 %v12479_v57, %v10218_v15 }
 0x311   :  { %v15290_v27 = vpop.f32.mrf.mxu1  ;;  %3523 = vmatpush.bf16.msrb.mxu2 %v10085_v16 }
 0x315   :  { %v2720_v45 = vpop.f32.mrf.mxu0  ;;  %3568 = vmatpush.bf16.msra.mxu2 %v10205_v63  ;;  %v10169_v63 = vor.u32 %v12469_v22, %v10168_v60 }
 0x316   :  { %v2721_v21 = vadd.f32 %v2720_v45, %v14428_v10  ;;  %v10232_v45 = vld [vmem:[%s18586_s30 + $0x128] sm:$0xf] }
 0x317   :  { %v15335_v9 = vpop.f32.mrf.mxu3  ;;  %v10233_v7 = vor.u32 %v12485_v43, %v10232_v45  ;;  %3544 = vmatpush.bf16.msra.mxu0 %v10169_v63  ;;  %v12463_v45 = vld [vmem:[%s18586_s30 + $0x8c] sm:$0xf] }
 0x318   :  { %v2734_v49 = vadd.f32 %v15178_v39, %v2721_v21  ;;  %v12471_v39 = vld [vmem:[%s18586_s30 + $0xcc] sm:$0xf]  ;;  %v10234_v21 = vld [vmem:[%s18586_s30 + $0x138] sm:$0xf0] }
 0x319   :  { %v2787_v34 = vpop.f32.mrf.mxu1  ;;  %v10189_v3 = vor.u32 %v12471_v39, %v10186_v11  ;;  %v10237_v8 = vor.u32 %v12483_v18, %v10234_v21  ;;  %3561 = vmatpush.bf16.msra.mxu1 %v10233_v7  ;;  %v10136_v21 = vld [vmem:[%s18586_s30 + $0x68] sm:$0xf] }
 0x31a   :  { %v2820_v5 = vmul.f32 0.5, %v2734_v49  ;;  %v10217_v34 = vor.u32 %v12481_v56, %v10216_v50  ;;  %v10120_v56 = vld [vmem:[%s18586_s30 + $0x48] sm:$0xf] }
 0x31b   :  { %v2746_v61 = vpop.f32.mrf.mxu2  ;;  %3569 = vmatpush.bf16.msra.mxu2 %v10189_v3  ;;  %3587 = vmatpush.bf16.msra.mxu3 %v10237_v8 }
 0x31c   :  { %v2747_v19 = vadd.f32 %v2746_v61, %v14443_v32  ;;  %13026 = vtanh.f32 %v2820_v5  ;;  %v10152_v61 = vld [vmem:[%s18586_s30 + $0x88] sm:$0xf]  ;;  %v12461_v5 = vld [vmem:[%s18586_s30 + $0x74] sm:$0xf0] }
 0x31d   :  { %v2722_v33 = vpop.f32.mrf.mxu0  ;;  %3562 = vmatpush.bf16.msra.mxu1 %v10217_v34  ;;  %v10153_v11 = vor.u32 %v12465_v23, %v10152_v61  ;;  %v10137_v8 = vor.u32 %v12461_v5, %v10136_v21 }
 0x31e   :  { %v2760_v16 = vadd.f32 %v15228_v59, %v2747_v19  ;;  %v10170_v59 = vld [vmem:[%s18586_s30 + $0xb8] sm:$0xf0]  ;;  %v12459_v33 = vld [vmem:[%s18586_s30 + $0x6c] sm:$0xf] }
 0x31f   :  { %v2813_v52 = vpop.f32.mrf.mxu3  ;;  %v10173_v49 = vor.u32 %v12467_v29, %v10170_v59  ;;  %3588 = vmatpush.bf16.msra.mxu3 %v10221_v44  ;;  %v10154_v19 = vld [vmem:[%s18586_s30 + $0x98] sm:$0xf0]  ;;  %3545 = vmatpush.bf16.msra.mxu0 %v10153_v11  ;;  %v380_v59 = vadd.f32 %v13954_v28, %v13884_v48 }
 0x320   :  { %v2815_v0 = vmul.f32 0.5, %v2760_v16  ;;  %v10157_v3 = vor.u32 %v12463_v45, %v10154_v19  ;;  %v10138_v16 = vld [vmem:[%s18586_s30 + $0x78] sm:$0xf0]  ;;  %v10104_v45 = vld [vmem:[%s18586_s30 + $0x28] sm:$0xf] }
 0x321   :  { %3570 = vmatpush.bf16.msra.mxu2 %v10173_v49  ;;  %v10141_v29 = vor.u32 %v12459_v33, %v10138_v16  ;;  %v10122_v28 = vld [vmem:[%s18586_s30 + $0x58] sm:$0xf0]  ;;  %v12453_v19 = vld [vmem:[%s18586_s30 + $0x34] sm:$0xf0] }
 0x322   :  { %13028 = vtanh.f32 %v2815_v0  ;;  %v3052_v54 = vpop.f32.mrf.mxu1  ;;  %v13027_v7 = vpop.eup %13026  ;;  %v12457_v0 = vld [vmem:[%s18586_s30 + $0x54] sm:$0xf0] }
 0x323   :  { %v2748_v39 = vpop.f32.mrf.mxu2  ;;  %3546 = vmatpush.bf16.msra.mxu0 %v10137_v8  ;;  %v2822_v49 = vmul.f32 0.5, %v13027_v7  ;;  %v10121_v57 = vor.u32 %v12457_v0, %v10120_v56  ;;  %v3083_v15 = vadd.f32 %v3052_v54, %v380_v59  ;;  %v12451_v54 = vld [vmem:[%s18586_s30 + $0x2c] sm:$0xf]  ;;  %v351_v56 = vadd.f32 %v13949_v25, %v13874_v42 }
 0x325   :  { %v2772_v43 = vpop.f32.mrf.mxu0  ;;  %3571 = vmatpush.bf16.msra.mxu2 %v10157_v3  ;;  %v2823_v3 = vadd.f32 0.5, %v2822_v49  ;;  %v3086_v21 = vmul.f32 0.5, %v3083_v15 }
 0x326   :  { %v2773_v18 = vadd.f32 %v2772_v43, %v14541_v46  ;;  %v10105_v43 = vor.u32 %v12453_v19, %v10104_v45  ;;  %v12539_v19 = vld [vmem:[#allocation6 + $0xec] sm:$0xf] }
 0x327   :  { %3547 = vmatpush.bf16.msra.mxu0 %v10121_v57  ;;  %v438_v57 = vadd.f32 %v14011_v62, %v13938_v14 }
 0x328   :  { %v13029_v60 = vpop.eup %13028  ;;  %v2786_v22 = vadd.f32 %v15290_v27, %v2773_v18  ;;  %v12455_v27 = vld [vmem:[%s18586_s30 + $0x4c] sm:$0xf]  ;;  %v10106_v18 = vld [vmem:[%s18586_s30 + $0x38] sm:$0xf0] }
 0x329   :  { %v2817_v52 = vmul.f32 0.5, %v13029_v60  ;;  %v3078_v63 = vpop.f32.mrf.mxu3  ;;  %3572 = vmatpush.bf16.msra.mxu2 %v10141_v29  ;;  %v10125_v61 = vor.u32 %v12455_v27, %v10122_v28  ;;  %v10109_v33 = vor.u32 %v12451_v54, %v10106_v18  ;;  %v10088_v60 = vld [vmem:[%s18586_s30 + $0x8] sm:$0xf]  ;;  %v12447_v29 = vld [vmem:[%s18586_s30 + $0xc] sm:$0xf] }
 0x32a   :  { %13030 = vtanh.f32 %v2786_v22  ;;  %v3054_v50 = vpop.f32.mrf.mxu1  ;;  %v12449_v22 = vld [vmem:[%s18586_s30 + $0x14] sm:$0xf0] }
 0x32b   :  { %v2798_v34 = vpop.f32.mrf.mxu2  ;;  %v2818_v23 = vadd.f32 0.5, %v2817_v52  ;;  %3548 = vmatpush.bf16.msra.mxu0 %v10105_v43  ;;  %v10089_v59 = vor.u32 %v12449_v22, %v10088_v60  ;;  %v10090_v50 = vld [vmem:[%s18586_s30 + $0x18] sm:$0xf0] }
 0x32c   :  { %v2799_v44 = vadd.f32 %v2798_v34, %v14570_v36  ;;  %v10093_v0 = vor.u32 %v12447_v29, %v10090_v50  ;;  %v12530_v50 = vld [vmem:[#allocation6 + $0xa4] sm:$0xf] }
 0x32d   :  { %v2774_v39 = vpop.f32.mrf.mxu0  ;;  %3573 = vmatpush.bf16.msra.mxu2 %v10125_v61  ;;  %v2819_v7 = vmul.f32 %v2818_v23, %v15043_v13  ;;  %v3085_v61 = vadd.f32 %v3078_v63, %v438_v57  ;;  %v12538_v23 = vld [vmem:[#allocation6 + $0xe4] sm:$0xf] }
 0x32e   :  { %v2812_v11 = vadd.f32 %v15335_v9, %v2799_v44  ;;  %v10450_v39 = vld [vmem:[#allocation6 + $0xf0] sm:$0xf0]  ;;  %v12534_v63 = vld [vmem:[#allocation6 + $0xc4] sm:$0xf] }
 0x32f   :  { %3549 = vmatpush.bf16.msra.mxu0 %v10089_v59 }
 0x330   :  { %v13031_v9 = vpop.eup %13030  ;;  %v2827_v5 = vmul.f32 0.5, %v2812_v11  ;;  %v409_v11 = vadd.f32 %v13998_v53, %v13918_v4  ;;  %v10442_v53 = vld [vmem:[#allocation6 + $0xd8] sm:$0xf0] }
 0x331   :  { %v2825_v8 = vmul.f32 %v13031_v9, %v2823_v3  ;;  %v3080_v16 = vpop.f32.mrf.mxu3  ;;  %3574 = vmatpush.bf16.msra.mxu2 %v10109_v33  ;;  %v10458_v3 = vld [vmem:[#allocation6 + $0xf8] sm:$0xf0] }
 0x332   :  { %13032 = vtanh.f32 %v2827_v5  ;;  %v10453_v5 = vor.u32 %v12538_v23, %v10450_v39  ;;  %v10461_v33 = vor.u32 %v12539_v19, %v10458_v3  ;;  %v12535_v16 = vld [vmem:[#allocation6 + $0xcc] sm:$0xf]  ;;  %v12526_v23 = vld [vmem:[#allocation6 + $0x84] sm:$0xf]  ;;  %v10402_v39 = vld [vmem:[#allocation6 + $0x90] sm:$0xf0] }
 0x333   :  { %v15470_v52 = vadd.f32 %v2825_v8, %v2819_v7  ;;  %v2800_v13 = vpop.f32.mrf.mxu2  ;;  %13034 = vtanh.f32 %v3086_v21  ;;  %v3098_v21 = vmul.f32 0.5, %v3085_v61  ;;  %v10434_v8 = vld [vmem:[#allocation6 + $0xd0] sm:$0xf0]  ;;  %v10445_v59 = vor.u32 %v12535_v16, %v10442_v53  ;;  %v10456_v16 = vld [vmem:[#allocation6 + $0xe8] sm:$0xf] }
 0x334   :  { %v10437_v13 = vor.u32 %v12534_v63, %v10434_v8  ;;  %v10405_v3 = vor.u32 %v12526_v23, %v10402_v39  ;;  %v10448_v63 = vld [vmem:[#allocation6 + $0xe0] sm:$0xf]  ;;  %v12540_v8 = vld [vmem:[#allocation6 + $0xec] sm:$0xf0]  ;;  %v12514_v23 = vld [vmem:[#allocation6 + $0x24] sm:$0xf] }
 0x335   :  { %13036 = vtanh.f32 %v15470_v52  ;;  %v3039_v27 = vpop.f32.mrf.mxu0  ;;  %3575 = vmatpush.bf16.msra.mxu2 %v10093_v0  ;;  %v10354_v39 = vld [vmem:[#allocation6 + $0x30] sm:$0xf0] }
 0x336   :  { %v3082_v49 = vadd.f32 %v3039_v27, %v351_v56  ;;  %v10418_v56 = vld [vmem:[#allocation6 + $0xb0] sm:$0xf0]  ;;  %v12531_v27 = vld [vmem:[#allocation6 + $0xac] sm:$0xf] }
 0x338   :  { %v13033_v34 = vpop.eup %13032  ;;  %v3091_v28 = vmul.f32 0.5, %v3082_v49  ;;  %v10426_v49 = vld [vmem:[#allocation6 + $0xb8] sm:$0xf0] }
 0x339   :  { %v2829_v15 = vmul.f32 0.5, %v13033_v34  ;;  %v13035_v44 = vpop.eup %13034  ;;  %v10429_v61 = vor.u32 %v12531_v27, %v10426_v49  ;;  %v10432_v49 = vld [vmem:[#allocation6 + $0xc0] sm:$0xf] }
 0x33a   :  { %13038 = vtanh.f32 %v3091_v28  ;;  %v3088_v62 = vmul.f32 0.5, %v13035_v44  ;;  %v10421_v28 = vor.u32 %v12530_v50, %v10418_v56  ;;  %v10378_v50 = vld [vmem:[#allocation6 + $0x58] sm:$0xf0] }
 0x33b   :  { %v13037_v25 = vpop.eup %13036  ;;  %v2830_v45 = vadd.f32 0.5, %v2829_v15 }
 0x33c   :  { %v3065_v43 = vpop.f32.mrf.mxu2  ;;  %v3089_v29 = vadd.f32 0.5, %v3088_v62  ;;  %v12523_v62 = vld [vmem:[#allocation6 + $0x6c] sm:$0xf] }
 0x33d   :  { %v15482_v54 = vmul.f32 %v13037_v25, %v2830_v45  ;;  %v3084_v18 = vadd.f32 %v3065_v43, %v409_v11  ;;  %v3041_v9 = vpop.f32.mrf.mxu0  ;;  %v12527_v25 = vld [vmem:[#allocation6 + $0x8c] sm:$0xf]  ;;  %v10410_v11 = vld [vmem:[#allocation6 + $0x98] sm:$0xf0] }
 0x33e   :  { %v3090_v15 = vmul.f32 %v3089_v29, %v15057_v20  ;;  %v10413_v43 = vor.u32 %v12527_v25, %v10410_v11  ;;  %v10386_v9 = vld [vmem:[#allocation6 + $0x70] sm:$0xf0]  ;;  %v12515_v25 = vld [vmem:[#allocation6 + $0x2c] sm:$0xf]  ;;  %v10362_v11 = vld [vmem:[#allocation6 + $0x38] sm:$0xf0] }
 0x33f   :  { %v3105_v7 = vpack.c.bf16 %v15482_v54, %v15482_v54  ;;  %13040 = vtanh.f32 %v3084_v18  ;;  %v12522_v18 = vld [vmem:[#allocation6 + $0x64] sm:$0xf] }
 0x340   :  { %v13039_v60 = vpop.eup %13038  ;;  %13042 = vtanh.f32 %v3098_v21  ;;  %v10394_v21 = vld [vmem:[#allocation6 + $0x78] sm:$0xf0] }
 0x341   :  { %v3093_v22 = vmul.f32 0.5, %v13039_v60  ;;  %3511 = vmatmul.bf16.vlgmr.msrb.gmra.mxu1 %v3105_v7  ;;  %3537 = vmatmul.bf16.vlgmr.msrb.gmra.mxu3 %v3105_v7  ;;  %v12541_v60 = vld [vmem:[#allocation6 + $0xf4] sm:$0xf0] }
 0x342   :  { %3822 = vmatpush.bf16.msrb.mxu1 %v10453_v5  ;;  %3848 = vmatpush.bf16.msrb.mxu3 %v10461_v33  ;;  %v10389_v5 = vor.u32 %v12522_v18, %v10386_v9  ;;  %v10397_v33 = vor.u32 %v12523_v62, %v10394_v21  ;;  %v10457_v27 = vor.u32 %v12541_v60, %v10456_v16  ;;  %v12533_v62 = vld [vmem:[#allocation6 + $0xb4] sm:$0xf0]  ;;  %v12510_v21 = vld [vmem:[#allocation6 + $0x4] sm:$0xf] }
 0x343   :  { %v3094_v0 = vadd.f32 0.5, %v3093_v22  ;;  %v12518_v22 = vld [vmem:[#allocation6 + $0x44] sm:$0xf]  ;;  %v10357_v18 = vor.u32 %v12514_v23, %v10354_v39  ;;  %v10365_v9 = vor.u32 %v12515_v25, %v10362_v11  ;;  %v10376_v23 = vld [vmem:[#allocation6 + $0x48] sm:$0xf] }
 0x344   :  { %v3067_v34 = vpop.f32.mrf.mxu2  ;;  %v12521_v39 = vld [vmem:[#allocation6 + $0x54] sm:$0xf0] }
 0x345   :  { %v13041_v57 = vpop.eup %13040  ;;  %v12536_v34 = vld [vmem:[#allocation6 + $0xcc] sm:$0xf0]  ;;  %v10377_v11 = vor.u32 %v12521_v39, %v10376_v23  ;;  %v12590_v39 = vld [vmem:[%s18586_s30 + $0x184] sm:$0xf] }
 0x346   :  { %v3096_v44 = vmul.f32 %v13041_v57, %v3094_v0  ;;  %3823 = vmatpush.bf16.msrb.mxu1 %v10437_v13  ;;  %3849 = vmatpush.bf16.msrb.mxu3 %v10445_v59  ;;  %v13043_v45 = vpop.eup %13042  ;;  %v10370_v13 = vld [vmem:[#allocation6 + $0x50] sm:$0xf0]  ;;  %v12519_v59 = vld [vmem:[#allocation6 + $0x4c] sm:$0xf]  ;;  %v10449_v0 = vor.u32 %v12540_v8, %v10448_v63  ;;  %v10346_v63 = vld [vmem:[#allocation6 + $0x18] sm:$0xf0] }
 0x347   :  { %v3100_v20 = vmul.f32 0.5, %v13043_v45  ;;  %v12592_v23 = vld [vmem:[%s18586_s30 + $0x18c] sm:$0xf0] }
 0x348   :  { %v15487_v19 = vadd.f32 %v3096_v44, %v3090_v15  ;;  %v10381_v15 = vor.u32 %v12519_v59, %v10378_v50  ;;  %v10440_v44 = vld [vmem:[#allocation6 + $0xc8] sm:$0xf]  ;;  %v12529_v59 = vld [vmem:[#allocation6 + $0x94] sm:$0xf0] }
 0x349   :  { %v3101_v53 = vadd.f32 0.5, %v3100_v20  ;;  %v10424_v20 = vld [vmem:[#allocation6 + $0xa8] sm:$0xf] }
 0x34a   :  { %13044 = vtanh.f32 %v15487_v19  ;;  %3824 = vmatpush.bf16.msrb.mxu1 %v10421_v28  ;;  %3850 = vmatpush.bf16.msrb.mxu3 %v10429_v61  ;;  %v10373_v28 = vor.u32 %v12518_v22, %v10370_v13  ;;  %v12537_v61 = vld [vmem:[#allocation6 + $0xd4] sm:$0xf0]  ;;  %v10425_v16 = vor.u32 %v12533_v62, %v10424_v20  ;;  %v10400_v22 = vld [vmem:[#allocation6 + $0x80] sm:$0xf]  ;;  %v10408_v13 = vld [vmem:[#allocation6 + $0x88] sm:$0xf] }
 0x34b   :  { %v10441_v45 = vor.u32 %v12537_v61, %v10440_v44  ;;  %v10368_v44 = vld [vmem:[#allocation6 + $0x40] sm:$0xf]  ;;  %v12520_v61 = vld [vmem:[#allocation6 + $0x4c] sm:$0xf0] }
 0x34c   :  { %v10369_v25 = vor.u32 %v12520_v61, %v10368_v44  ;;  %v10336_v20 = vld [vmem:[#allocation6] sm:$0xf]  ;;  %v12512_v62 = vld [vmem:[#allocation6 + $0xc] sm:$0xf0] }
 0x34d   :  { %v10656_v61 = vld [vmem:[%s18586_s30 + $0x180] sm:$0xf] }
 0x34e   :  { %3825 = vmatpush.bf16.msrb.mxu1 %v10405_v3  ;;  %3851 = vmatpush.bf16.msrb.mxu3 %v10413_v43  ;;  %v10416_v3 = vld [vmem:[#allocation6 + $0xa0] sm:$0xf]  ;;  %v12532_v43 = vld [vmem:[#allocation6 + $0xac] sm:$0xf0] }
 0x34f   :  { %v10417_v8 = vor.u32 %v12532_v43, %v10416_v3  ;;  %v10360_v3 = vld [vmem:[#allocation6 + $0x28] sm:$0xf]  ;;  %v12517_v43 = vld [vmem:[#allocation6 + $0x34] sm:$0xf0] }
 0x350   :  { %v13045_v29 = vpop.eup %13044 }
 0x351   :  { %v3103_v56 = vmul.f32 %v13045_v29, %v3101_v53  ;;  %3563 = vmatmul.bf16.vlgmr.msra.gmra.mxu1 %v3105_v7  ;;  %3589 = vmatmul.bf16.vlgmr.msra.gmra.mxu3 %v3105_v7  ;;  %v10433_v7 = vor.u32 %v12536_v34, %v10432_v49  ;;  %v12528_v29 = vld [vmem:[#allocation6 + $0x8c] sm:$0xf0]  ;;  %v10392_v49 = vld [vmem:[#allocation6 + $0x68] sm:$0xf]  ;;  %v12525_v34 = vld [vmem:[#allocation6 + $0x74] sm:$0xf0] }
 0x352   :  { %3826 = vmatpush.bf16.msrb.mxu1 %v10389_v5  ;;  %3852 = vmatpush.bf16.msrb.mxu3 %v10397_v33  ;;  %v10338_v5 = vld [vmem:[#allocation6 + $0x10] sm:$0xf0]  ;;  %v12511_v33 = vld [vmem:[#allocation6 + $0xc] sm:$0xf]  ;;  %v10401_v50 = vor.u32 %v12528_v29, %v10400_v22 }
 0x353   :  { %v15490_v57 = vpack.c.bf16 %v3103_v56, %v3103_v56  ;;  %v10341_v53 = vor.u32 %v12510_v21, %v10338_v5  ;;  %v10349_v60 = vor.u32 %v12511_v33, %v10346_v63  ;;  %v10409_v56 = vor.u32 %v12529_v59, %v10408_v13  ;;  %v10344_v21 = vld [vmem:[#allocation6 + $0x8] sm:$0xf]  ;;  %v12513_v5 = vld [vmem:[#allocation6 + $0x14] sm:$0xf0]  ;;  %v10706_v22 = vld [vmem:[%s18586_s30 + $0x1f0] sm:$0xf0] }
 0x354   :  { %v10337_v33 = vor.u32 %v12512_v62, %v10336_v20  ;;  %v10345_v63 = vor.u32 %v12513_v5, %v10344_v21  ;;  %v12600_v13 = vld [vmem:[%s18586_s30 + $0x1cc] sm:$0xf0]  ;;  %v12598_v59 = vld [vmem:[%s18586_s30 + $0x1c4] sm:$0xf]  ;;  %v10576_v62 = vld [vmem:[%s18586_s30 + $0xe0] sm:$0xf] }
 0x355   :  { %3498 = vmatmul.bf16.vlgmr.msrb.gmra.mxu0 %v15490_v57  ;;  %3524 = vmatmul.bf16.vlgmr.msrb.gmra.mxu2 %v15490_v57  ;;  %v12572_v21 = vld [vmem:[%s18586_s30 + $0xec] sm:$0xf0]  ;;  %v12570_v5 = vld [vmem:[%s18586_s30 + $0xe4] sm:$0xf] }
 0x356   :  { %3809 = vmatpush.bf16.msrb.mxu0 %v10449_v0  ;;  %3835 = vmatpush.bf16.msrb.mxu2 %v10457_v27  ;;  %v10384_v0 = vld [vmem:[#allocation6 + $0x60] sm:$0xf]  ;;  %v12524_v27 = vld [vmem:[#allocation6 + $0x6c] sm:$0xf0] }
 0x357   :  { %3827 = vmatpush.bf16.msrb.mxu1 %v10373_v28  ;;  %3853 = vmatpush.bf16.msrb.mxu3 %v10381_v15  ;;  %v10385_v28 = vor.u32 %v12524_v27, %v10384_v0  ;;  %v10393_v15 = vor.u32 %v12525_v34, %v10392_v49  ;;  %v10672_v27 = vld [vmem:[%s18586_s30 + $0x1a0] sm:$0xf]  ;;  %v12596_v49 = vld [vmem:[%s18586_s30 + $0x1ac] sm:$0xf0]  ;;  %v12594_v34 = vld [vmem:[%s18586_s30 + $0x1a4] sm:$0xf] }
 0x35a   :  { %3810 = vmatpush.bf16.msrb.mxu0 %v10433_v7  ;;  %3836 = vmatpush.bf16.msrb.mxu2 %v10441_v45  ;;  %v10352_v7 = vld [vmem:[#allocation6 + $0x20] sm:$0xf]  ;;  %v12516_v45 = vld [vmem:[#allocation6 + $0x2c] sm:$0xf0] }
 0x35b   :  { %3828 = vmatpush.bf16.msrb.mxu1 %v10357_v18  ;;  %3854 = vmatpush.bf16.msrb.mxu3 %v10365_v9  ;;  %v10353_v18 = vor.u32 %v12516_v45, %v10352_v7  ;;  %v10361_v9 = vor.u32 %v12517_v43, %v10360_v3  ;;  %v10640_v45 = vld [vmem:[%s18586_s30 + $0x160] sm:$0xf]  ;;  %v12588_v3 = vld [vmem:[%s18586_s30 + $0x16c] sm:$0xf0]  ;;  %v12586_v43 = vld [vmem:[%s18586_s30 + $0x164] sm:$0xf] }
 0x35e   :  { %3811 = vmatpush.bf16.msrb.mxu0 %v10417_v8  ;;  %3837 = vmatpush.bf16.msrb.mxu2 %v10425_v16  ;;  %v10704_v8 = vld [vmem:[%s18586_s30 + $0x1e0] sm:$0xf]  ;;  %v12604_v16 = vld [vmem:[%s18586_s30 + $0x1ec] sm:$0xf0] }
 0x35f   :  { %3829 = vmatpush.bf16.msrb.mxu1 %v10341_v53  ;;  %3855 = vmatpush.bf16.msrb.mxu3 %v10349_v60  ;;  %v12602_v53 = vld [vmem:[%s18586_s30 + $0x1e4] sm:$0xf]  ;;  %v10705_v60 = vor.u32 %v12604_v16, %v10704_v8  ;;  %v10624_v8 = vld [vmem:[%s18586_s30 + $0x140] sm:$0xf]  ;;  %v12584_v16 = vld [vmem:[%s18586_s30 + $0x14c] sm:$0xf0] }
 0x360   :  { %v10709_v29 = vor.u32 %v12602_v53, %v10706_v22  ;;  %v12582_v22 = vld [vmem:[%s18586_s30 + $0x144] sm:$0xf] }
 0x362   :  { %3812 = vmatpush.bf16.msrb.mxu0 %v10401_v50  ;;  %3830 = vmatmul.bf16.vlgmr.msrb.gmra.mxu1 %v15490_v57 }
 0x363   :  { %3838 = vmatpush.bf16.msrb.mxu2 %v10409_v56  ;;  %3856 = vmatmul.bf16.vlgmr.msrb.gmra.mxu3 %v15490_v57  ;;  %v10690_v56 = vld [vmem:[%s18586_s30 + $0x1d0] sm:$0xf0] }
 0x364   :  { %4282 = vmatpush.bf16.msra.mxu1 %v10705_v60  ;;  %4308 = vmatpush.bf16.msra.mxu3 %v10709_v29  ;;  %v10693_v0 = vor.u32 %v12598_v59, %v10690_v56  ;;  %v10625_v60 = vor.u32 %v12584_v16, %v10624_v8  ;;  %v10626_v29 = vld [vmem:[%s18586_s30 + $0x150] sm:$0xf0]  ;;  %v12568_v59 = vld [vmem:[%s18586_s30 + $0xcc] sm:$0xf0]  ;;  %v10714_v8 = vld [vmem:[%s18586_s30 + $0x1f8] sm:$0xf0] }
 0x365   :  { %3550 = vmatmul.bf16.vlgmr.msra.gmra.mxu0 %v15490_v57  ;;  %3576 = vmatmul.bf16.vlgmr.msra.gmra.mxu2 %v15490_v57 }
 0x366   :  { %3813 = vmatpush.bf16.msrb.mxu0 %v10385_v28  ;;  %v10673_v28 = vor.u32 %v12596_v49, %v10672_v27  ;;  %v10608_v27 = vld [vmem:[%s18586_s30 + $0x120] sm:$0xf]  ;;  %v12580_v49 = vld [vmem:[%s18586_s30 + $0x12c] sm:$0xf0] }
 0x367   :  { %3839 = vmatpush.bf16.msrb.mxu2 %v10393_v15  ;;  %v10674_v15 = vld [vmem:[%s18586_s30 + $0x1b0] sm:$0xf0] }
 0x368   :  { %4309 = vmatpush.bf16.msra.mxu3 %v10693_v0  ;;  %v10677_v44 = vor.u32 %v12594_v34, %v10674_v15  ;;  %v10562_v0 = vld [vmem:[%s18586_s30 + $0xd0] sm:$0xf0]  ;;  %v12578_v15 = vld [vmem:[%s18586_s30 + $0x124] sm:$0xf] }
 0x36a   :  { %3814 = vmatpush.bf16.msrb.mxu0 %v10369_v25  ;;  %v10657_v25 = vor.u32 %v12592_v23, %v10656_v61 }
 0x36b   :  { %3840 = vmatpush.bf16.msrb.mxu2 %v10377_v11  ;;  %v10658_v11 = vld [vmem:[%s18586_s30 + $0x190] sm:$0xf0] }
 0x36c   :  { %4310 = vmatpush.bf16.msra.mxu3 %v10677_v44  ;;  %v10661_v7 = vor.u32 %v12590_v39, %v10658_v11  ;;  %v10610_v44 = vld [vmem:[%s18586_s30 + $0x130] sm:$0xf0]  ;;  %v10544_v39 = vld [vmem:[%s18586_s30 + $0xa0] sm:$0xf]  ;;  %v12562_v11 = vld [vmem:[%s18586_s30 + $0xa4] sm:$0xf] }
 0x36d   :  { %v10613_v61 = vor.u32 %v12578_v15, %v10610_v44  ;;  %v10512_v44 = vld [vmem:[%s18586_s30 + $0x60] sm:$0xf] }
 0x36e   :  { %3815 = vmatpush.bf16.msrb.mxu0 %v10353_v18  ;;  %v10641_v18 = vor.u32 %v12588_v3, %v10640_v45  ;;  %v10546_v45 = vld [vmem:[%s18586_s30 + $0xb0] sm:$0xf0]  ;;  %v10592_v3 = vld [vmem:[%s18586_s30 + $0x100] sm:$0xf] }
 0x36f   :  { %3841 = vmatpush.bf16.msrb.mxu2 %v10361_v9  ;;  %v10642_v9 = vld [vmem:[%s18586_s30 + $0x170] sm:$0xf0] }
 0x370   :  { %4311 = vmatpush.bf16.msra.mxu3 %v10661_v7  ;;  %v10645_v20 = vor.u32 %v12586_v43, %v10642_v9  ;;  %v12576_v43 = vld [vmem:[%s18586_s30 + $0x10c] sm:$0xf0] }
 0x371   :  { %v10593_v9 = vor.u32 %v12576_v43, %v10592_v3  ;;  %v12597_v3 = vld [vmem:[%s18586_s30 + $0x1b4] sm:$0xf0]  ;;  %v12595_v43 = vld [vmem:[%s18586_s30 + $0x1ac] sm:$0xf] }
 0x372   :  { %3816 = vmatpush.bf16.msrb.mxu0 %v10337_v33  ;;  %v10577_v33 = vor.u32 %v12572_v21, %v10576_v62  ;;  %v10594_v62 = vld [vmem:[%s18586_s30 + $0x110] sm:$0xf0]  ;;  %v10712_v21 = vld [vmem:[%s18586_s30 + $0x1e8] sm:$0xf] }
 0x373   :  { %3842 = vmatpush.bf16.msrb.mxu2 %v10345_v63  ;;  %v10578_v63 = vld [vmem:[%s18586_s30 + $0xf0] sm:$0xf0] }
 0x374   :  { %4312 = vmatpush.bf16.msra.mxu3 %v10645_v20  ;;  %v10581_v53 = vor.u32 %v12570_v5, %v10578_v63  ;;  %v12574_v20 = vld [vmem:[%s18586_s30 + $0x104] sm:$0xf]  ;;  %v12603_v63 = vld [vmem:[%s18586_s30 + $0x1ec] sm:$0xf] }
 0x375   :  { %3817 = vmatmul.bf16.vlgmr.msrb.gmra.mxu0 %v15490_v57  ;;  %v10597_v5 = vor.u32 %v12574_v20, %v10594_v62  ;;  %v10496_v62 = vld [vmem:[%s18586_s30 + $0x40] sm:$0xf] }
 0x376   :  { %3843 = vmatmul.bf16.vlgmr.msrb.gmra.mxu2 %v15490_v57  ;;  %v10688_v57 = vld [vmem:[%s18586_s30 + $0x1c0] sm:$0xf]  ;;  %4269 = vmatpush.bf16.msra.mxu0 %v10577_v33  ;;  %v12605_v33 = vld [vmem:[%s18586_s30 + $0x1f4] sm:$0xf0] }
 0x377   :  { %v10689_v50 = vor.u32 %v12600_v13, %v10688_v57  ;;  %v10629_v57 = vor.u32 %v12582_v22, %v10626_v29  ;;  %4295 = vmatpush.bf16.msra.mxu2 %v10581_v53  ;;  %v10560_v13 = vld [vmem:[%s18586_s30 + $0xc0] sm:$0xf]  ;;  %v10713_v16 = vor.u32 %v12605_v33, %v10712_v21  ;;  %v10717_v53 = vor.u32 %v12603_v63, %v10714_v8  ;;  %v12560_v22 = vld [vmem:[%s18586_s30 + $0x8c] sm:$0xf0]  ;;  %v12558_v29 = vld [vmem:[%s18586_s30 + $0x84] sm:$0xf] }
 0x378   :  { %v10561_v56 = vor.u32 %v12568_v59, %v10560_v13  ;;  %v10530_v13 = vld [vmem:[%s18586_s30 + $0x90] sm:$0xf0]  ;;  %v12552_v21 = vld [vmem:[%s18586_s30 + $0x4c] sm:$0xf0] }
 0x379   :  { %4283 = vmatpush.bf16.msra.mxu1 %v10689_v50  ;;  %v12566_v50 = vld [vmem:[%s18586_s30 + $0xc4] sm:$0xf]  ;;  %4313 = vmatpush.bf16.msra.mxu3 %v10629_v57  ;;  %v10497_v33 = vor.u32 %v12552_v21, %v10496_v62  ;;  %v10498_v63 = vld [vmem:[%s18586_s30 + $0x50] sm:$0xf0]  ;;  %v10584_v62 = vld [vmem:[%s18586_s30 + $0xe8] sm:$0xf] }
 0x37a   :  { %v10565_v34 = vor.u32 %v12566_v50, %v10562_v0  ;;  %4270 = vmatpush.bf16.msra.mxu0 %v10561_v56  ;;  %v10533_v50 = vor.u32 %v12558_v29, %v10530_v13  ;;  %v10696_v56 = vld [vmem:[%s18586_s30 + $0x1c8] sm:$0xf]  ;;  %v12601_v0 = vld [vmem:[%s18586_s30 + $0x1d4] sm:$0xf0] }
 0x37b   :  { %v12573_v21 = vld [vmem:[%s18586_s30 + $0xf4] sm:$0xf0] }
 0x37c   :  { %4296 = vmatpush.bf16.msra.mxu2 %v10565_v34  ;;  %v10698_v34 = vld [vmem:[%s18586_s30 + $0x1d8] sm:$0xf0] }
 0x37d   :  { %4284 = vmatpush.bf16.msra.mxu1 %v10673_v28  ;;  %v10609_v28 = vor.u32 %v12580_v49, %v10608_v27  ;;  %4314 = vmatpush.bf16.msra.mxu3 %v10613_v61  ;;  %v12599_v27 = vld [vmem:[%s18586_s30 + $0x1cc] sm:$0xf]  ;;  %v10697_v49 = vor.u32 %v12601_v0, %v10696_v56  ;;  %v12556_v61 = vld [vmem:[%s18586_s30 + $0x6c] sm:$0xf0]  ;;  %v10480_v56 = vld [vmem:[%s18586_s30 + $0x20] sm:$0xf] }
 0x37e   :  { %v10701_v15 = vor.u32 %v12599_v27, %v10698_v34  ;;  %v12548_v0 = vld [vmem:[%s18586_s30 + $0x2c] sm:$0xf0]  ;;  %v12546_v27 = vld [vmem:[%s18586_s30 + $0x24] sm:$0xf]  ;;  %v10482_v34 = vld [vmem:[%s18586_s30 + $0x30] sm:$0xf0] }
 0x381   :  { %4285 = vmatpush.bf16.msra.mxu1 %v10657_v25  ;;  %v12564_v25 = vld [vmem:[%s18586_s30 + $0xac] sm:$0xf0]  ;;  %4315 = vmatpush.bf16.msra.mxu3 %v10597_v5  ;;  %v12550_v5 = vld [vmem:[%s18586_s30 + $0x44] sm:$0xf] }
 0x382   :  { %v10545_v7 = vor.u32 %v12564_v25, %v10544_v39  ;;  %v12554_v39 = vld [vmem:[%s18586_s30 + $0x64] sm:$0xf]  ;;  %v10513_v25 = vor.u32 %v12556_v61, %v10512_v44  ;;  %v12589_v44 = vld [vmem:[%s18586_s30 + $0x174] sm:$0xf0]  ;;  %v12587_v61 = vld [vmem:[%s18586_s30 + $0x16c] sm:$0xf] }
 0x384   :  { %4271 = vmatpush.bf16.msra.mxu0 %v10545_v7 }
 0x385   :  { %4286 = vmatpush.bf16.msra.mxu1 %v10641_v18  ;;  %v10549_v18 = vor.u32 %v12562_v11, %v10546_v45  ;;  %4360 = vmatpush.bf16.msrb.mxu3 %v10717_v53  ;;  %v10514_v11 = vld [vmem:[%s18586_s30 + $0x70] sm:$0xf0]  ;;  %v10680_v45 = vld [vmem:[%s18586_s30 + $0x1a8] sm:$0xf] }
 0x386   :  { %v10517_v7 = vor.u32 %v12554_v39, %v10514_v11  ;;  %v10664_v53 = vld [vmem:[%s18586_s30 + $0x188] sm:$0xf] }
 0x387   :  { %4297 = vmatpush.bf16.msra.mxu2 %v10549_v18  ;;  %v10681_v18 = vor.u32 %v12597_v3, %v10680_v45  ;;  %v10464_v45 = vld [vmem:[%s18586_s30] sm:$0xf]  ;;  %v12544_v3 = vld [vmem:[%s18586_s30 + $0xc] sm:$0xf0] }
 0x389   :  { %4287 = vmatpush.bf16.msra.mxu1 %v10625_v60  ;;  %v10528_v60 = vld [vmem:[%s18586_s30 + $0x80] sm:$0xf]  ;;  %4361 = vmatpush.bf16.msrb.mxu3 %v10701_v15  ;;  %v10648_v15 = vld [vmem:[%s18586_s30 + $0x168] sm:$0xf] }
 0x38a   :  { %v10529_v57 = vor.u32 %v12560_v22, %v10528_v60  ;;  %v12593_v60 = vld [vmem:[%s18586_s30 + $0x194] sm:$0xf0]  ;;  %v12591_v22 = vld [vmem:[%s18586_s30 + $0x18c] sm:$0xf]  ;;  %v10649_v39 = vor.u32 %v12589_v44, %v10648_v15  ;;  %v10570_v44 = vld [vmem:[%s18586_s30 + $0xd8] sm:$0xf0] }
 0x38b   :  { %4298 = vmatpush.bf16.msra.mxu2 %v10533_v50  ;;  %v10665_v29 = vor.u32 %v12593_v60, %v10664_v53  ;;  %v10632_v53 = vld [vmem:[%s18586_s30 + $0x148] sm:$0xf] }
 0x38c   :  { %4272 = vmatpush.bf16.msra.mxu0 %v10529_v57  ;;  %v10666_v57 = vld [vmem:[%s18586_s30 + $0x198] sm:$0xf0] }
 0x38d   :  { %4288 = vmatpush.bf16.msra.mxu1 %v10609_v28  ;;  %v10669_v50 = vor.u32 %v12591_v22, %v10666_v57  ;;  %v12585_v22 = vld [vmem:[%s18586_s30 + $0x154] sm:$0xf0]  ;;  %v10634_v57 = vld [vmem:[%s18586_s30 + $0x158] sm:$0xf0] }
 0x38f   :  { %4299 = vmatpush.bf16.msra.mxu2 %v10517_v7 }
 0x390   :  { %4273 = vmatpush.bf16.msra.mxu0 %v10513_v25  ;;  %v10650_v25 = vld [vmem:[%s18586_s30 + $0x178] sm:$0xf0] }
 0x391   :  { %4289 = vmatpush.bf16.msra.mxu1 %v10593_v9  ;;  %v10682_v9 = vld [vmem:[%s18586_s30 + $0x1b8] sm:$0xf0]  ;;  %v10653_v7 = vor.u32 %v12587_v61, %v10650_v25  ;;  %v10616_v61 = vld [vmem:[%s18586_s30 + $0x128] sm:$0xf] }
 0x392   :  { %v10685_v20 = vor.u32 %v12595_v43, %v10682_v9  ;;  %v12542_v43 = vld [vmem:[%s18586_s30 + $0x4] sm:$0xf]  ;;  %v10465_v9 = vor.u32 %v12544_v3, %v10464_v45  ;;  %v10618_v45 = vld [vmem:[%s18586_s30 + $0x138] sm:$0xf0] }
 0x394   :  { %4362 = vmatpush.bf16.msrb.mxu3 %v10685_v20  ;;  %4274 = vmatpush.bf16.msra.mxu0 %v10497_v33  ;;  %v10466_v20 = vld [vmem:[%s18586_s30 + $0x10] sm:$0xf0] }
 0x395   :  { %4334 = vmatpush.bf16.msrb.mxu1 %v10713_v16  ;;  %v10501_v16 = vor.u32 %v12550_v5, %v10498_v63  ;;  %v10469_v33 = vor.u32 %v12542_v43, %v10466_v20  ;;  %v10585_v63 = vor.u32 %v12573_v21, %v10584_v62  ;;  %v10552_v62 = vld [vmem:[%s18586_s30 + $0xa8] sm:$0xf]  ;;  %v12565_v21 = vld [vmem:[%s18586_s30 + $0xb4] sm:$0xf0] }
 0x397   :  { %4300 = vmatpush.bf16.msra.mxu2 %v10501_v16  ;;  %v10586_v16 = vld [vmem:[%s18586_s30 + $0xf8] sm:$0xf0] }
 0x398   :  { %4363 = vmatpush.bf16.msrb.mxu3 %v10669_v50 }
 0x399   :  { %4335 = vmatpush.bf16.msrb.mxu1 %v10697_v49  ;;  %v10481_v49 = vor.u32 %v12548_v0, %v10480_v56  ;;  %v10633_v0 = vor.u32 %v12585_v22, %v10632_v53  ;;  %v12577_v53 = vld [vmem:[%s18586_s30 + $0x114] sm:$0xf0] }
 0x39b   :  { %4275 = vmatpush.bf16.msra.mxu0 %v10481_v49  ;;  %v10568_v49 = vld [vmem:[%s18586_s30 + $0xc8] sm:$0xf] }
 0x39c   :  { %4364 = vmatpush.bf16.msrb.mxu3 %v10653_v7  ;;  %v12579_v7 = vld [vmem:[%s18586_s30 + $0x12c] sm:$0xf] }
 0x39d   :  { %4336 = vmatpush.bf16.msrb.mxu1 %v10681_v18 }
 0x39f   :  { %4276 = vmatpush.bf16.msra.mxu0 %v10465_v9  ;;  %v10621_v9 = vor.u32 %v12579_v7, %v10618_v45  ;;  %v12555_v7 = vld [vmem:[%s18586_s30 + $0x6c] sm:$0xf] }
 0x3a1   :  { %4337 = vmatpush.bf16.msrb.mxu1 %v10665_v29  ;;  %v12583_v29 = vld [vmem:[%s18586_s30 + $0x14c] sm:$0xf] }
 0x3a3   :  { %4321 = vmatpush.bf16.msrb.mxu0 %v10585_v63 }
 0x3a5   :  { %4338 = vmatpush.bf16.msrb.mxu1 %v10649_v39 }
 0x3a9   :  { %4339 = vmatpush.bf16.msrb.mxu1 %v10633_v0 }
 0x3be   :  { %v15608_v23 = vpop.f32.mrf.mxu1 }
 0x3c4   :  { %v15658_v59 = vpop.f32.mrf.mxu3 }
 0x3c6   :  { %v3514_v28 = vpop.f32.mrf.mxu1 }
 0x3c7   :  { %v10485_v28 = vor.u32 %v12546_v27, %v10482_v34  ;;  %v10637_v27 = vor.u32 %v12583_v29, %v10634_v57  ;;  %v12569_v34 = vld [vmem:[%s18586_s30 + $0xd4] sm:$0xf0]  ;;  %v12575_v57 = vld [vmem:[%s18586_s30 + $0x10c] sm:$0xf] }
 0x3c8   :  { %v10569_v15 = vor.u32 %v12569_v34, %v10568_v49  ;;  %v12561_v49 = vld [vmem:[%s18586_s30 + $0x94] sm:$0xf0] }
 0x3c9   :  { %4301 = vmatpush.bf16.msra.mxu2 %v10485_v28  ;;  %4365 = vmatpush.bf16.msrb.mxu3 %v10637_v27  ;;  %v10536_v27 = vld [vmem:[%s18586_s30 + $0x88] sm:$0xf] }
 0x3ca   :  { %4322 = vmatpush.bf16.msrb.mxu0 %v10569_v15  ;;  %v12559_v15 = vld [vmem:[%s18586_s30 + $0x8c] sm:$0xf] }
 0x3cc   :  { %v3540_v8 = vpop.f32.mrf.mxu3 }
 0x3cd   :  { %v12571_v8 = vld [vmem:[%s18586_s30 + $0xec] sm:$0xf]  ;;  %4302 = vmatpush.bf16.msra.mxu2 %v10469_v33  ;;  %4366 = vmatpush.bf16.msrb.mxu3 %v10621_v9 }
 0x3ce   :  { %v15720_v13 = vpop.f32.mrf.mxu1  ;;  %v10589_v60 = vor.u32 %v12571_v8, %v10586_v16  ;;  %v12563_v33 = vld [vmem:[%s18586_s30 + $0xac] sm:$0xf]  ;;  %v10553_v8 = vor.u32 %v12565_v21, %v10552_v62  ;;  %v10600_v16 = vld [vmem:[%s18586_s30 + $0x108] sm:$0xf] }
 0x3cf   :  { %v10601_v29 = vor.u32 %v12577_v53, %v10600_v16 }
 0x3d0   :  { %4323 = vmatpush.bf16.msrb.mxu0 %v10553_v8  ;;  %v12553_v8 = vld [vmem:[%s18586_s30 + $0x54] sm:$0xf0] }
 0x3d1   :  { %4347 = vmatpush.bf16.msrb.mxu2 %v10589_v60 }
 0x3d2   :  { %v3499_v11 = vpop.f32.mrf.mxu0 }
 0x3d3   :  { %v3500_v18 = vadd.f32 %v3499_v11, %v14428_v10  ;;  %v12581_v11 = vld [vmem:[%s18586_s30 + $0x134] sm:$0xf0] }
 0x3d4   :  { %v15765_v5 = vpop.f32.mrf.mxu3 }
 0x3d5   :  { %v3513_v50 = vadd.f32 %v15608_v23, %v3500_v18  ;;  %v12567_v23 = vld [vmem:[%s18586_s30 + $0xcc] sm:$0xf]  ;;  %v10617_v18 = vor.u32 %v12581_v11, %v10616_v61  ;;  %v12557_v11 = vld [vmem:[%s18586_s30 + $0x74] sm:$0xf0] }
 0x3d6   :  { %v3566_v56 = vpop.f32.mrf.mxu1  ;;  %v10573_v25 = vor.u32 %v12567_v23, %v10570_v44  ;;  %v10538_v23 = vld [vmem:[%s18586_s30 + $0x98] sm:$0xf0] }
 0x3d7   :  { %v3599_v3 = vmul.f32 0.5, %v3513_v50  ;;  %4340 = vmatpush.bf16.msrb.mxu1 %v10617_v18  ;;  %v10602_v50 = vld [vmem:[%s18586_s30 + $0x118] sm:$0xf0]  ;;  %v10541_v44 = vor.u32 %v12559_v15, %v10538_v23 }
 0x3d8   :  { %v3525_v28 = vpop.f32.mrf.mxu2  ;;  %4348 = vmatpush.bf16.msrb.mxu2 %v10573_v25  ;;  %v10605_v56 = vor.u32 %v12575_v57, %v10602_v50  ;;  %v10520_v25 = vld [vmem:[%s18586_s30 + $0x68] sm:$0xf] }
 0x3d9   :  { %v3526_v39 = vadd.f32 %v3525_v28, %v14443_v32  ;;  %13046 = vtanh.f32 %v3599_v3  ;;  %v10537_v28 = vor.u32 %v12561_v49, %v10536_v27  ;;  %v10521_v3 = vor.u32 %v12557_v11, %v10520_v25  ;;  %v10488_v49 = vld [vmem:[%s18586_s30 + $0x28] sm:$0xf] }
 0x3da   :  { %v3501_v43 = vpop.f32.mrf.mxu0  ;;  %4367 = vmatpush.bf16.msrb.mxu3 %v10605_v56 }
 0x3db   :  { %v3539_v20 = vadd.f32 %v15658_v59, %v3526_v39  ;;  %v10554_v59 = vld [vmem:[%s18586_s30 + $0xb8] sm:$0xf0]  ;;  %4341 = vmatpush.bf16.msrb.mxu1 %v10601_v29  ;;  %4324 = vmatpush.bf16.msrb.mxu0 %v10537_v28 }
 0x3dc   :  { %v3592_v63 = vpop.f32.mrf.mxu3  ;;  %v10557_v22 = vor.u32 %v12563_v33, %v10554_v59  ;;  %v10522_v43 = vld [vmem:[%s18586_s30 + $0x78] sm:$0xf0]  ;;  %v12551_v59 = vld [vmem:[%s18586_s30 + $0x4c] sm:$0xf] }
 0x3dd   :  { %v3594_v60 = vmul.f32 0.5, %v3539_v20  ;;  %v10525_v20 = vor.u32 %v12555_v7, %v10522_v43  ;;  %v10504_v63 = vld [vmem:[%s18586_s30 + $0x48] sm:$0xf] }
 0x3de   :  { %4349 = vmatpush.bf16.msrb.mxu2 %v10557_v22  ;;  %v10505_v53 = vor.u32 %v12553_v8, %v10504_v63  ;;  %v10472_v7 = vld [vmem:[%s18586_s30 + $0x8] sm:$0xf] }
 0x3df   :  { %13048 = vtanh.f32 %v3594_v60  ;;  %v3831_v0 = vpop.f32.mrf.mxu1  ;;  %v13047_v45 = vpop.eup %13046  ;;  %4325 = vmatpush.bf16.msrb.mxu0 %v10521_v3  ;;  %v10506_v60 = vld [vmem:[%s18586_s30 + $0x58] sm:$0xf0]  ;;  %v12543_v3 = vld [vmem:[%s18586_s30 + $0xc] sm:$0xf] }
 0x3e0   :  { %v3527_v34 = vpop.f32.mrf.mxu2  ;;  %v3862_v22 = vadd.f32 %v3831_v0, %v14024_v12  ;;  %v10509_v57 = vor.u32 %v12551_v59, %v10506_v60  ;;  %v12547_v12 = vld [vmem:[%s18586_s30 + $0x2c] sm:$0xf]  ;;  %v10490_v0 = vld [vmem:[%s18586_s30 + $0x38] sm:$0xf0]  ;;  %v10834_v60 = vld [vmem:[#allocation6 + $0xf0] sm:$0xf0] }
 0x3e1   :  { %v12549_v34 = vld [vmem:[%s18586_s30 + $0x34] sm:$0xf0] }
 0x3e2   :  { %v3551_v61 = vpop.f32.mrf.mxu0  ;;  %4350 = vmatpush.bf16.msrb.mxu2 %v10541_v44  ;;  %v10489_v15 = vor.u32 %v12549_v34, %v10488_v49  ;;  %v3865_v23 = vmul.f32 0.5, %v3862_v22 }
 0x3e3   :  { %v3552_v39 = vadd.f32 %v3551_v61, %v14541_v46  ;;  %4326 = vmatpush.bf16.msrb.mxu0 %v10505_v53  ;;  %v10493_v61 = vor.u32 %v12547_v12, %v10490_v0  ;;  %v12634_v53 = vld [vmem:[#allocation6 + $0xe4] sm:$0xf] }
 0x3e4   :  { %v12630_v0 = vld [vmem:[#allocation6 + $0xc4] sm:$0xf] }
 0x3e5   :  { %v13049_v18 = vpop.eup %13048  ;;  %v3565_v9 = vadd.f32 %v15720_v13, %v3552_v39  ;;  %v3601_v13 = vmul.f32 0.5, %v13047_v45  ;;  %v12545_v45 = vld [vmem:[%s18586_s30 + $0x14] sm:$0xf0] }
 0x3e6   :  { %v3596_v62 = vmul.f32 0.5, %v13049_v18  ;;  %v3857_v21 = vpop.f32.mrf.mxu3  ;;  %4351 = vmatpush.bf16.msrb.mxu2 %v10525_v20  ;;  %v10473_v18 = vor.u32 %v12545_v45, %v10472_v7  ;;  %v10802_v7 = vld [vmem:[#allocation6 + $0xb0] sm:$0xf0] }
 0x3e7   :  { %13050 = vtanh.f32 %v3565_v9  ;;  %v3833_v33 = vpop.f32.mrf.mxu1  ;;  %v3602_v28 = vadd.f32 0.5, %v3601_v13  ;;  %4327 = vmatpush.bf16.msrb.mxu0 %v10489_v15  ;;  %v10474_v9 = vld [vmem:[%s18586_s30 + $0x18] sm:$0xf0]  ;;  %v10837_v15 = vor.u32 %v12634_v53, %v10834_v60 }
 0x3e8   :  { %v3577_v16 = vpop.f32.mrf.mxu2  ;;  %v3597_v50 = vadd.f32 0.5, %v3596_v62  ;;  %v10477_v20 = vor.u32 %v12543_v3, %v10474_v9  ;;  %v12627_v3 = vld [vmem:[#allocation6 + $0xac] sm:$0xf] }
 0x3e9   :  { %v3578_v29 = vadd.f32 %v3577_v16, %v14570_v36  ;;  %v3864_v16 = vadd.f32 %v3857_v21, %v14063_v1  ;;  %v10818_v21 = vld [vmem:[#allocation6 + $0xd0] sm:$0xf0] }
 0x3ea   :  { %v3553_v56 = vpop.f32.mrf.mxu0  ;;  %4352 = vmatpush.bf16.msrb.mxu2 %v10509_v57  ;;  %v3598_v39 = vmul.f32 %v3597_v50, %v15470_v52  ;;  %v12635_v57 = vld [vmem:[#allocation6 + $0xec] sm:$0xf]  ;;  %v10842_v50 = vld [vmem:[#allocation6 + $0xf8] sm:$0xf0] }
 0x3eb   :  { %v3591_v27 = vadd.f32 %v15765_v5, %v3578_v29  ;;  %4328 = vmatpush.bf16.msrb.mxu0 %v10473_v18  ;;  %v10845_v12 = vor.u32 %v12635_v57, %v10842_v50  ;;  %v12618_v57 = vld [vmem:[#allocation6 + $0x64] sm:$0xf]  ;;  %v10770_v50 = vld [vmem:[#allocation6 + $0x70] sm:$0xf0] }
 0x3ed   :  { %v13051_v5 = vpop.eup %13050  ;;  %v3606_v44 = vmul.f32 0.5, %v3591_v27 }
 0x3ee   :  { %v3604_v25 = vmul.f32 %v13051_v5, %v3602_v28  ;;  %v3859_v11 = vpop.f32.mrf.mxu3  ;;  %4353 = vmatpush.bf16.msrb.mxu2 %v10493_v61  ;;  %v3877_v28 = vmul.f32 0.5, %v3864_v16  ;;  %v12631_v5 = vld [vmem:[#allocation6 + $0xcc] sm:$0xf]  ;;  %v10794_v16 = vld [vmem:[#allocation6 + $0x98] sm:$0xf0] }
 0x3ef   :  { %13052 = vtanh.f32 %v3606_v44  ;;  %v12626_v11 = vld [vmem:[#allocation6 + $0xa4] sm:$0xf] }
 0x3f0   :  { %v15899_v43 = vadd.f32 %v3604_v25, %v3598_v39  ;;  %v3579_v52 = vpop.f32.mrf.mxu2  ;;  %13054 = vtanh.f32 %v3865_v23  ;;  %v10826_v23 = vld [vmem:[#allocation6 + $0xd8] sm:$0xf0] }
 0x3f1   :  { %v10829_v25 = vor.u32 %v12631_v5, %v10826_v23  ;;  %v10810_v52 = vld [vmem:[#allocation6 + $0xb8] sm:$0xf0]  ;;  %v12614_v5 = vld [vmem:[#allocation6 + $0x44] sm:$0xf] }
 0x3f2   :  { %13056 = vtanh.f32 %v15899_v43  ;;  %v3818_v62 = vpop.f32.mrf.mxu0  ;;  %4354 = vmatpush.bf16.msrb.mxu2 %v10477_v20  ;;  %v10805_v20 = vor.u32 %v12626_v11, %v10802_v7  ;;  %v10816_v7 = vld [vmem:[#allocation6 + $0xc0] sm:$0xf] }
 0x3f3   :  { %v3861_v33 = vadd.f32 %v3818_v62, %v14014_v6 }
 0x3f5   :  { %v13053_v63 = vpop.eup %13052  ;;  %v3870_v8 = vmul.f32 0.5, %v3861_v33 }
 0x3f6   :  { %v3608_v59 = vmul.f32 0.5, %v13053_v63  ;;  %v13055_v13 = vpop.eup %13054  ;;  %v10813_v63 = vor.u32 %v12627_v3, %v10810_v52 }
 0x3f7   :  { %13058 = vtanh.f32 %v3870_v8  ;;  %v3867_v34 = vmul.f32 0.5, %v13055_v13  ;;  %v12622_v8 = vld [vmem:[#allocation6 + $0x84] sm:$0xf]  ;;  %v12623_v13 = vld [vmem:[#allocation6 + $0x8c] sm:$0xf] }
 0x3f8   :  { %v13057_v22 = vpop.eup %13056  ;;  %v3609_v29 = vadd.f32 0.5, %v3608_v59  ;;  %v10786_v59 = vld [vmem:[#allocation6 + $0x90] sm:$0xf0] }
 0x3f9   :  { %v3844_v56 = vpop.f32.mrf.mxu2  ;;  %v3868_v39 = vadd.f32 0.5, %v3867_v34 }
 0x3fa   :  { %v15907_v27 = vmul.f32 %v13057_v22, %v3609_v29  ;;  %v3863_v49 = vadd.f32 %v3844_v56, %v14058_v51  ;;  %v3820_v6 = vpop.f32.mrf.mxu0  ;;  %v10821_v51 = vor.u32 %v12630_v0, %v10818_v21  ;;  %v10789_v22 = vor.u32 %v12622_v8, %v10786_v59  ;;  %v12619_v56 = vld [vmem:[#allocation6 + $0x6c] sm:$0xf]  ;;  %v12637_v21 = vld [vmem:[#allocation6 + $0xf4] sm:$0xf0]  ;;  %v10746_v8 = vld [vmem:[#allocation6 + $0x38] sm:$0xf0] }
 0x3fb   :  { %v3869_v62 = vmul.f32 %v3868_v39, %v15487_v19  ;;  %v10797_v29 = vor.u32 %v12623_v13, %v10794_v16  ;;  %v10773_v6 = vor.u32 %v12618_v57, %v10770_v50  ;;  %v10762_v39 = vld [vmem:[#allocation6 + $0x58] sm:$0xf0]  ;;  %v10800_v13 = vld [vmem:[#allocation6 + $0xa0] sm:$0xf]  ;;  %v12628_v16 = vld [vmem:[#allocation6 + $0xac] sm:$0xf0] }
 0x3fc   :  { %v3884_v1 = vpack.c.bf16 %v15907_v27, %v15907_v27  ;;  %13060 = vtanh.f32 %v3863_v49  ;;  %v10778_v49 = vld [vmem:[#allocation6 + $0x78] sm:$0xf0]  ;;  %v12629_v57 = vld [vmem:[#allocation6 + $0xb4] sm:$0xf0]  ;;  %v12606_v50 = vld [vmem:[#allocation6 + $0x4] sm:$0xf] }
 0x3fd   :  { %v13059_v44 = vpop.eup %13058  ;;  %13062 = vtanh.f32 %v3877_v28  ;;  %v10781_v34 = vor.u32 %v12619_v56, %v10778_v49  ;;  %v10832_v28 = vld [vmem:[#allocation6 + $0xe0] sm:$0xf]  ;;  %v12607_v56 = vld [vmem:[#allocation6 + $0xc] sm:$0xf]  ;;  %v10730_v49 = vld [vmem:[#allocation6 + $0x18] sm:$0xf0] }
 0x3fe   :  { %v3872_v61 = vmul.f32 0.5, %v13059_v44  ;;  %4290 = vmatmul.bf16.vlgmr.msra.gmra.mxu1 %v3884_v1  ;;  %4316 = vmatmul.bf16.vlgmr.msra.gmra.mxu3 %v3884_v1  ;;  %v10754_v44 = vld [vmem:[#allocation6 + $0x50] sm:$0xf0] }
 0x3ff   :  { %4601 = vmatpush.bf16.msra.mxu1 %v10837_v15  ;;  %4627 = vmatpush.bf16.msra.mxu3 %v10845_v12  ;;  %v12636_v15 = vld [vmem:[#allocation6 + $0xec] sm:$0xf0]  ;;  %v10840_v12 = vld [vmem:[#allocation6 + $0xe8] sm:$0xf]  ;;  %v10757_v52 = vor.u32 %v12614_v5, %v10754_v44  ;;  %v12625_v5 = vld [vmem:[#allocation6 + $0x94] sm:$0xf0] }
 0x400   :  { %v3873_v45 = vadd.f32 0.5, %v3872_v61  ;;  %v12615_v61 = vld [vmem:[#allocation6 + $0x4c] sm:$0xf]  ;;  %v10841_v11 = vor.u32 %v12637_v21, %v10840_v12  ;;  %v10784_v12 = vld [vmem:[#allocation6 + $0x80] sm:$0xf] }
 0x401   :  { %v3846_v18 = vpop.f32.mrf.mxu2  ;;  %v10792_v21 = vld [vmem:[#allocation6 + $0x88] sm:$0xf] }
 0x402   :  { %v13061_v9 = vpop.eup %13060  ;;  %v10765_v18 = vor.u32 %v12615_v61, %v10762_v39  ;;  %v10793_v44 = vor.u32 %v12625_v5, %v10792_v21  ;;  %v10768_v61 = vld [vmem:[#allocation6 + $0x60] sm:$0xf]  ;;  %v12620_v39 = vld [vmem:[#allocation6 + $0x6c] sm:$0xf0]  ;;  %v11074_v21 = vld [vmem:[%s18586_s30 + $0x1d0] sm:$0xf0] }
 0x403   :  { %v3875_v33 = vmul.f32 %v13061_v9, %v3873_v45  ;;  %4602 = vmatpush.bf16.msra.mxu1 %v10821_v51  ;;  %4628 = vmatpush.bf16.msra.mxu3 %v10829_v25  ;;  %v13063_v53 = vpop.eup %13062  ;;  %v10833_v25 = vor.u32 %v12636_v15, %v10832_v28  ;;  %v12632_v45 = vld [vmem:[#allocation6 + $0xcc] sm:$0xf0]  ;;  %v10824_v9 = vld [vmem:[#allocation6 + $0xc8] sm:$0xf]  ;;  %v10733_v15 = vor.u32 %v12607_v56, %v10730_v49  ;;  %v12698_v49 = vld [vmem:[%s18586_s30 + $0x1e4] sm:$0xf] }
 0x404   :  { %v3879_v19 = vmul.f32 0.5, %v13063_v53  ;;  %v12700_v56 = vld [vmem:[%s18586_s30 + $0x1ec] sm:$0xf0] }
 0x405   :  { %v15913_v60 = vadd.f32 %v3875_v33, %v3869_v62  ;;  %v12610_v62 = vld [vmem:[#allocation6 + $0x24] sm:$0xf]  ;;  %v10738_v33 = vld [vmem:[#allocation6 + $0x30] sm:$0xf0] }
 0x406   :  { %v3880_v0 = vadd.f32 0.5, %v3879_v19  ;;  %v10741_v53 = vor.u32 %v12610_v62, %v10738_v33  ;;  %v10722_v19 = vld [vmem:[#allocation6 + $0x10] sm:$0xf0]  ;;  %v10736_v33 = vld [vmem:[#allocation6 + $0x20] sm:$0xf] }
 0x407   :  { %13064 = vtanh.f32 %v15913_v60  ;;  %4603 = vmatpush.bf16.msra.mxu1 %v10805_v20  ;;  %4629 = vmatpush.bf16.msra.mxu3 %v10813_v63  ;;  %v12633_v20 = vld [vmem:[#allocation6 + $0xd4] sm:$0xf0]  ;;  %v12611_v63 = vld [vmem:[#allocation6 + $0x2c] sm:$0xf]  ;;  %v10725_v28 = vor.u32 %v12606_v50, %v10722_v19  ;;  %v11088_v19 = vld [vmem:[%s18586_s30 + $0x1e0] sm:$0xf] }
 0x408   :  { %v10825_v59 = vor.u32 %v12633_v20, %v10824_v9  ;;  %v12617_v9 = vld [vmem:[#allocation6 + $0x54] sm:$0xf0] }
 0x40b   :  { %4604 = vmatpush.bf16.msra.mxu1 %v10789_v22  ;;  %4630 = vmatpush.bf16.msra.mxu3 %v10797_v29  ;;  %v10749_v22 = vor.u32 %v12611_v63, %v10746_v8  ;;  %v10808_v29 = vld [vmem:[#allocation6 + $0xa8] sm:$0xf]  ;;  %v12612_v63 = vld [vmem:[#allocation6 + $0x2c] sm:$0xf0] }
 0x40c   :  { %v10744_v8 = vld [vmem:[#allocation6 + $0x28] sm:$0xf] }
 0x40d   :  { %v13065_v23 = vpop.eup %13064 }
 0x40e   :  { %v3882_v51 = vmul.f32 %v13065_v23, %v3880_v0  ;;  %4342 = vmatmul.bf16.vlgmr.msrb.gmra.mxu1 %v3884_v1  ;;  %4368 = vmatmul.bf16.vlgmr.msrb.gmra.mxu3 %v3884_v1  ;;  %v10817_v1 = vor.u32 %v12632_v45, %v10816_v7  ;;  %v12624_v0 = vld [vmem:[#allocation6 + $0x8c] sm:$0xf0]  ;;  %v10752_v45 = vld [vmem:[#allocation6 + $0x40] sm:$0xf] }
 0x40f   :  { %4605 = vmatpush.bf16.msra.mxu1 %v10773_v6  ;;  %4631 = vmatpush.bf16.msra.mxu3 %v10781_v34  ;;  %v10801_v6 = vor.u32 %v12628_v16, %v10800_v13  ;;  %v10809_v34 = vor.u32 %v12629_v57, %v10808_v29  ;;  %v10785_v23 = vor.u32 %v12624_v0, %v10784_v12  ;;  %v10720_v16 = vld [vmem:[#allocation6] sm:$0xf]  ;;  %v12609_v29 = vld [vmem:[#allocation6 + $0x14] sm:$0xf0]  ;;  %v12694_v12 = vld [vmem:[%s18586_s30 + $0x1c4] sm:$0xf] }
 0x410   :  { %v15916_v3 = vpack.c.bf16 %v3882_v51, %v3882_v51  ;;  %v10776_v51 = vld [vmem:[#allocation6 + $0x68] sm:$0xf]  ;;  %v11077_v5 = vor.u32 %v12694_v12, %v11074_v21  ;;  %v10946_v12 = vld [vmem:[%s18586_s30 + $0xd0] sm:$0xf0]  ;;  %v12676_v21 = vld [vmem:[%s18586_s30 + $0x12c] sm:$0xf0] }
 0x412   :  { %4277 = vmatmul.bf16.vlgmr.msra.gmra.mxu0 %v15916_v3  ;;  %4303 = vmatmul.bf16.vlgmr.msra.gmra.mxu2 %v15916_v3 }
 0x413   :  { %4588 = vmatpush.bf16.msra.mxu0 %v10833_v25  ;;  %4614 = vmatpush.bf16.msra.mxu2 %v10841_v11  ;;  %v12621_v25 = vld [vmem:[#allocation6 + $0x74] sm:$0xf0]  ;;  %v10769_v11 = vor.u32 %v12620_v39, %v10768_v61  ;;  %v12690_v61 = vld [vmem:[%s18586_s30 + $0x1a4] sm:$0xf] }
 0x414   :  { %4606 = vmatpush.bf16.msra.mxu1 %v10757_v52  ;;  %4632 = vmatpush.bf16.msra.mxu3 %v10765_v18  ;;  %v10777_v7 = vor.u32 %v12621_v25, %v10776_v51  ;;  %v12616_v52 = vld [vmem:[#allocation6 + $0x4c] sm:$0xf0]  ;;  %v10760_v18 = vld [vmem:[#allocation6 + $0x48] sm:$0xf]  ;;  %v11058_v51 = vld [vmem:[%s18586_s30 + $0x1b0] sm:$0xf0] }
 0x415   :  { %v10753_v20 = vor.u32 %v12616_v52, %v10752_v45  ;;  %v10761_v62 = vor.u32 %v12617_v9, %v10760_v18  ;;  %v11061_v25 = vor.u32 %v12690_v61, %v11058_v51  ;;  %v12686_v45 = vld [vmem:[%s18586_s30 + $0x184] sm:$0xf]  ;;  %v11042_v18 = vld [vmem:[%s18586_s30 + $0x190] sm:$0xf0] }
 0x416   :  { %v11045_v9 = vor.u32 %v12686_v45, %v11042_v18  ;;  %v10994_v61 = vld [vmem:[%s18586_s30 + $0x130] sm:$0xf0]  ;;  %v10976_v18 = vld [vmem:[%s18586_s30 + $0x100] sm:$0xf] }
 0x417   :  { %4589 = vmatpush.bf16.msra.mxu0 %v10817_v1  ;;  %4615 = vmatpush.bf16.msra.mxu2 %v10825_v59  ;;  %v12613_v1 = vld [vmem:[#allocation6 + $0x34] sm:$0xf0]  ;;  %v10737_v59 = vor.u32 %v12612_v63, %v10736_v33  ;;  %v12682_v33 = vld [vmem:[%s18586_s30 + $0x164] sm:$0xf] }
 0x418   :  { %4607 = vmatpush.bf16.msra.mxu1 %v10741_v53  ;;  %4633 = vmatpush.bf16.msra.mxu3 %v10749_v22  ;;  %v10745_v13 = vor.u32 %v12613_v1, %v10744_v8  ;;  %v12608_v53 = vld [vmem:[#allocation6 + $0xc] sm:$0xf0]  ;;  %v10728_v22 = vld [vmem:[#allocation6 + $0x8] sm:$0xf]  ;;  %v11026_v8 = vld [vmem:[%s18586_s30 + $0x170] sm:$0xf0] }
 0x419   :  { %v10721_v57 = vor.u32 %v12608_v53, %v10720_v16  ;;  %v10729_v50 = vor.u32 %v12609_v29, %v10728_v22  ;;  %v11029_v1 = vor.u32 %v12682_v33, %v11026_v8  ;;  %v12666_v16 = vld [vmem:[%s18586_s30 + $0xe4] sm:$0xf]  ;;  %v10962_v22 = vld [vmem:[%s18586_s30 + $0xf0] sm:$0xf0]  ;;  %v11008_v29 = vld [vmem:[%s18586_s30 + $0x140] sm:$0xf] }
 0x41a   :  { %v12670_v33 = vld [vmem:[%s18586_s30 + $0x104] sm:$0xf]  ;;  %v11096_v8 = vld [vmem:[%s18586_s30 + $0x1e8] sm:$0xf] }
 0x41b   :  { %4590 = vmatpush.bf16.msra.mxu0 %v10801_v6  ;;  %4616 = vmatpush.bf16.msra.mxu2 %v10809_v34  ;;  %v11089_v6 = vor.u32 %v12700_v56, %v11088_v19  ;;  %v11090_v34 = vld [vmem:[%s18586_s30 + $0x1f0] sm:$0xf0]  ;;  %v12678_v56 = vld [vmem:[%s18586_s30 + $0x144] sm:$0xf] }
 0x41c   :  { %4608 = vmatpush.bf16.msra.mxu1 %v10725_v28  ;;  %4634 = vmatpush.bf16.msra.mxu3 %v10733_v15  ;;  %v11093_v28 = vor.u32 %v12698_v49, %v11090_v34  ;;  %v12696_v15 = vld [vmem:[%s18586_s30 + $0x1cc] sm:$0xf0]  ;;  %v11010_v49 = vld [vmem:[%s18586_s30 + $0x150] sm:$0xf0]  ;;  %v10944_v34 = vld [vmem:[%s18586_s30 + $0xc0] sm:$0xf] }
 0x41f   :  { %4591 = vmatpush.bf16.msra.mxu0 %v10785_v23  ;;  %4609 = vmatmul.bf16.vlgmr.msra.gmra.mxu1 %v15916_v3  ;;  %v11056_v23 = vld [vmem:[%s18586_s30 + $0x1a0] sm:$0xf] }
 0x420   :  { %4617 = vmatpush.bf16.msra.mxu2 %v10793_v44  ;;  %4635 = vmatmul.bf16.vlgmr.msra.gmra.mxu3 %v15916_v3  ;;  %v12692_v44 = vld [vmem:[%s18586_s30 + $0x1ac] sm:$0xf0] }
 0x421   :  { %5061 = vmatpush.bf16.msrb.mxu1 %v11089_v6  ;;  %5087 = vmatpush.bf16.msrb.mxu3 %v11093_v28  ;;  %v11057_v39 = vor.u32 %v12692_v44, %v11056_v23  ;;  %v11013_v6 = vor.u32 %v12678_v56, %v11010_v49  ;;  %v12664_v28 = vld [vmem:[%s18586_s30 + $0xcc] sm:$0xf0]  ;;  %v12674_v44 = vld [vmem:[%s18586_s30 + $0x124] sm:$0xf]  ;;  %v10914_v56 = vld [vmem:[%s18586_s30 + $0x90] sm:$0xf0] }
 0x422   :  { %4329 = vmatmul.bf16.vlgmr.msrb.gmra.mxu0 %v15916_v3  ;;  %4355 = vmatmul.bf16.vlgmr.msrb.gmra.mxu2 %v15916_v3 }
 0x423   :  { %4592 = vmatpush.bf16.msra.mxu0 %v10769_v11  ;;  %v11040_v11 = vld [vmem:[%s18586_s30 + $0x180] sm:$0xf] }
 0x424   :  { %4618 = vmatpush.bf16.msra.mxu2 %v10777_v7  ;;  %v12688_v7 = vld [vmem:[%s18586_s30 + $0x18c] sm:$0xf0] }
 0x425   :  { %5088 = vmatpush.bf16.msrb.mxu3 %v11077_v5  ;;  %v11041_v52 = vor.u32 %v12688_v7, %v11040_v11  ;;  %v12660_v11 = vld [vmem:[%s18586_s30 + $0xac] sm:$0xf0]  ;;  %v12658_v7 = vld [vmem:[%s18586_s30 + $0xa4] sm:$0xf] }
 0x427   :  { %4593 = vmatpush.bf16.msra.mxu0 %v10753_v20  ;;  %v11024_v20 = vld [vmem:[%s18586_s30 + $0x160] sm:$0xf] }
 0x428   :  { %4619 = vmatpush.bf16.msra.mxu2 %v10761_v62  ;;  %v12684_v62 = vld [vmem:[%s18586_s30 + $0x16c] sm:$0xf0] }
 0x429   :  { %5089 = vmatpush.bf16.msrb.mxu3 %v11061_v25  ;;  %v11025_v63 = vor.u32 %v12684_v62, %v11024_v20  ;;  %v10928_v25 = vld [vmem:[%s18586_s30 + $0xa0] sm:$0xf] }
 0x42a   :  { %v10929_v45 = vor.u32 %v12660_v11, %v10928_v25  ;;  %v11064_v11 = vld [vmem:[%s18586_s30 + $0x1a8] sm:$0xf] }
 0x42b   :  { %4594 = vmatpush.bf16.msra.mxu0 %v10737_v59  ;;  %v10960_v59 = vld [vmem:[%s18586_s30 + $0xe0] sm:$0xf] }
 0x42c   :  { %4620 = vmatpush.bf16.msra.mxu2 %v10745_v13  ;;  %v12668_v13 = vld [vmem:[%s18586_s30 + $0xec] sm:$0xf0] }
 0x42d   :  { %5090 = vmatpush.bf16.msrb.mxu3 %v11045_v9  ;;  %v10961_v53 = vor.u32 %v12668_v13, %v10960_v59  ;;  %v12672_v9 = vld [vmem:[%s18586_s30 + $0x10c] sm:$0xf0]  ;;  %v12701_v59 = vld [vmem:[%s18586_s30 + $0x1f4] sm:$0xf0]  ;;  %v12699_v13 = vld [vmem:[%s18586_s30 + $0x1ec] sm:$0xf] }
 0x42e   :  { %v10977_v62 = vor.u32 %v12672_v9, %v10976_v18  ;;  %v11066_v18 = vld [vmem:[%s18586_s30 + $0x1b8] sm:$0xf0] }
 0x42f   :  { %4595 = vmatpush.bf16.msra.mxu0 %v10721_v57  ;;  %v12680_v57 = vld [vmem:[%s18586_s30 + $0x14c] sm:$0xf0] }
 0x430   :  { %4621 = vmatpush.bf16.msra.mxu2 %v10729_v50  ;;  %v10965_v50 = vor.u32 %v12666_v16, %v10962_v22  ;;  %v11009_v19 = vor.u32 %v12680_v57, %v11008_v29  ;;  %v11098_v16 = vld [vmem:[%s18586_s30 + $0x1f8] sm:$0xf0]  ;;  %v10912_v29 = vld [vmem:[%s18586_s30 + $0x80] sm:$0xf]  ;;  %v12656_v57 = vld [vmem:[%s18586_s30 + $0x8c] sm:$0xf0] }
 0x431   :  { %5091 = vmatpush.bf16.msrb.mxu3 %v11029_v1  ;;  %v11101_v22 = vor.u32 %v12699_v13, %v11098_v16  ;;  %v11048_v13 = vld [vmem:[%s18586_s30 + $0x188] sm:$0xf]  ;;  %v12689_v16 = vld [vmem:[%s18586_s30 + $0x194] sm:$0xf0] }
 0x432   :  { %4596 = vmatmul.bf16.vlgmr.msra.gmra.mxu0 %v15916_v3 }
 0x433   :  { %4622 = vmatmul.bf16.vlgmr.msra.gmra.mxu2 %v15916_v3  ;;  %v11072_v3 = vld [vmem:[%s18586_s30 + $0x1c0] sm:$0xf]  ;;  %5048 = vmatpush.bf16.msrb.mxu0 %v10961_v53  ;;  %v11097_v53 = vor.u32 %v12701_v59, %v11096_v8  ;;  %v10882_v8 = vld [vmem:[%s18586_s30 + $0x50] sm:$0xf0] }
 0x434   :  { %v11073_v0 = vor.u32 %v12696_v15, %v11072_v3  ;;  %5074 = vmatpush.bf16.msrb.mxu2 %v10965_v50  ;;  %v12662_v3 = vld [vmem:[%s18586_s30 + $0xc4] sm:$0xf]  ;;  %v10945_v15 = vor.u32 %v12664_v28, %v10944_v34  ;;  %v11080_v34 = vld [vmem:[%s18586_s30 + $0x1c8] sm:$0xf]  ;;  %v12697_v28 = vld [vmem:[%s18586_s30 + $0x1d4] sm:$0xf0] }
 0x435   :  { %5092 = vmatpush.bf16.msrb.mxu3 %v11013_v6  ;;  %v10949_v5 = vor.u32 %v12662_v3, %v10946_v12  ;;  %v12654_v50 = vld [vmem:[%s18586_s30 + $0x84] sm:$0xf]  ;;  %v12695_v3 = vld [vmem:[%s18586_s30 + $0x1cc] sm:$0xf]  ;;  %v11082_v12 = vld [vmem:[%s18586_s30 + $0x1d8] sm:$0xf0] }
 0x436   :  { %5062 = vmatpush.bf16.msrb.mxu1 %v11073_v0  ;;  %v10992_v0 = vld [vmem:[%s18586_s30 + $0x120] sm:$0xf]  ;;  %v10917_v6 = vor.u32 %v12654_v50, %v10914_v56  ;;  %v12644_v56 = vld [vmem:[%s18586_s30 + $0x2c] sm:$0xf0] }
 0x437   :  { %v10993_v23 = vor.u32 %v12676_v21, %v10992_v0  ;;  %5049 = vmatpush.bf16.msrb.mxu0 %v10945_v15  ;;  %v11081_v15 = vor.u32 %v12697_v28, %v11080_v34  ;;  %v11085_v21 = vor.u32 %v12695_v3, %v11082_v12  ;;  %v10866_v28 = vld [vmem:[%s18586_s30 + $0x30] sm:$0xf0]  ;;  %v12685_v12 = vld [vmem:[%s18586_s30 + $0x174] sm:$0xf0] }
 0x438   :  { %5075 = vmatpush.bf16.msrb.mxu2 %v10949_v5  ;;  %v10896_v5 = vld [vmem:[%s18586_s30 + $0x60] sm:$0xf] }
 0x43a   :  { %5063 = vmatpush.bf16.msrb.mxu1 %v11057_v39  ;;  %v10997_v39 = vor.u32 %v12674_v44, %v10994_v61  ;;  %v12650_v44 = vld [vmem:[%s18586_s30 + $0x64] sm:$0xf] }
 0x43b   :  { %5050 = vmatpush.bf16.msrb.mxu0 %v10929_v45  ;;  %v12691_v45 = vld [vmem:[%s18586_s30 + $0x1ac] sm:$0xf] }
 0x43c   :  { %5093 = vmatpush.bf16.msrb.mxu3 %v10997_v39  ;;  %v10898_v39 = vld [vmem:[%s18586_s30 + $0x70] sm:$0xf0]  ;;  %v11069_v9 = vor.u32 %v12691_v45, %v11066_v18  ;;  %v12669_v18 = vld [vmem:[%s18586_s30 + $0xf4] sm:$0xf0] }
 0x43d   :  { %v10901_v25 = vor.u32 %v12650_v44, %v10898_v39  ;;  %v12640_v39 = vld [vmem:[%s18586_s30 + $0xc] sm:$0xf0]  ;;  %v10850_v45 = vld [vmem:[%s18586_s30 + $0x10] sm:$0xf0] }
 0x43e   :  { %5064 = vmatpush.bf16.msrb.mxu1 %v11041_v52  ;;  %v10930_v52 = vld [vmem:[%s18586_s30 + $0xb0] sm:$0xf0] }
 0x43f   :  { %v10933_v20 = vor.u32 %v12658_v7, %v10930_v52  ;;  %v12693_v7 = vld [vmem:[%s18586_s30 + $0x1b4] sm:$0xf0] }
 0x440   :  { %v11065_v52 = vor.u32 %v12693_v7, %v11064_v11 }
 0x441   :  { %5076 = vmatpush.bf16.msrb.mxu2 %v10933_v20  ;;  %v10880_v20 = vld [vmem:[%s18586_s30 + $0x40] sm:$0xf] }
 0x442   :  { %5065 = vmatpush.bf16.msrb.mxu1 %v11025_v63  ;;  %v10978_v63 = vld [vmem:[%s18586_s30 + $0x110] sm:$0xf0] }
 0x443   :  { %v10981_v1 = vor.u32 %v12670_v33, %v10978_v63  ;;  %v12646_v33 = vld [vmem:[%s18586_s30 + $0x44] sm:$0xf] }
 0x444   :  { %v10885_v59 = vor.u32 %v12646_v33, %v10882_v8  ;;  %v12667_v33 = vld [vmem:[%s18586_s30 + $0xec] sm:$0xf]  ;;  %v11016_v8 = vld [vmem:[%s18586_s30 + $0x148] sm:$0xf] }
 0x445   :  { %5094 = vmatpush.bf16.msrb.mxu3 %v10981_v1  ;;  %5077 = vmatpush.bf16.msrb.mxu2 %v10917_v6  ;;  %v12642_v6 = vld [vmem:[%s18586_s30 + $0x24] sm:$0xf] }
 0x446   :  { %5066 = vmatpush.bf16.msrb.mxu1 %v11009_v19  ;;  %v10913_v19 = vor.u32 %v12656_v57, %v10912_v29  ;;  %v11050_v29 = vld [vmem:[%s18586_s30 + $0x198] sm:$0xf0]  ;;  %v10869_v3 = vor.u32 %v12642_v6, %v10866_v28 }
 0x447   :  { %v10954_v28 = vld [vmem:[%s18586_s30 + $0xd8] sm:$0xf0] }
 0x448   :  { %5051 = vmatpush.bf16.msrb.mxu0 %v10913_v19  ;;  %v10864_v19 = vld [vmem:[%s18586_s30 + $0x20] sm:$0xf] }
 0x449   :  { %5139 = vmatpush.bf16.msra.mxu3 %v11101_v22  ;;  %5078 = vmatpush.bf16.msrb.mxu2 %v10901_v25  ;;  %v11049_v22 = vor.u32 %v12689_v16, %v11048_v13  ;;  %v10865_v34 = vor.u32 %v12644_v56, %v10864_v19  ;;  %v12638_v25 = vld [vmem:[%s18586_s30 + $0x4] sm:$0xf]  ;;  %v12679_v13 = vld [vmem:[%s18586_s30 + $0x14c] sm:$0xf]  ;;  %v11018_v16 = vld [vmem:[%s18586_s30 + $0x158] sm:$0xf0] }
 0x44a   :  { %5067 = vmatpush.bf16.msrb.mxu1 %v10993_v23  ;;  %v12652_v23 = vld [vmem:[%s18586_s30 + $0x6c] sm:$0xf0]  ;;  %v10952_v19 = vld [vmem:[%s18586_s30 + $0xc8] sm:$0xf]  ;;  %v12665_v56 = vld [vmem:[%s18586_s30 + $0xd4] sm:$0xf0] }
 0x44b   :  { %v10897_v61 = vor.u32 %v12652_v23, %v10896_v5  ;;  %v11034_v5 = vld [vmem:[%s18586_s30 + $0x178] sm:$0xf0] }
 0x44d   :  { %5140 = vmatpush.bf16.msra.mxu3 %v11085_v21  ;;  %5052 = vmatpush.bf16.msrb.mxu0 %v10897_v61  ;;  %v10848_v61 = vld [vmem:[%s18586_s30] sm:$0xf] }
 0x44e   :  { %5068 = vmatpush.bf16.msrb.mxu1 %v10977_v62  ;;  %v12648_v62 = vld [vmem:[%s18586_s30 + $0x4c] sm:$0xf0]  ;;  %5079 = vmatpush.bf16.msrb.mxu2 %v10885_v59  ;;  %v10849_v7 = vor.u32 %v12640_v39, %v10848_v61  ;;  %v12681_v59 = vld [vmem:[%s18586_s30 + $0x154] sm:$0xf0] }
 0x44f   :  { %v10881_v63 = vor.u32 %v12648_v62, %v10880_v20  ;;  %v10853_v20 = vor.u32 %v12638_v25, %v10850_v45  ;;  %v12659_v45 = vld [vmem:[%s18586_s30 + $0xac] sm:$0xf] }
 0x451   :  { %5141 = vmatpush.bf16.msra.mxu3 %v11069_v9  ;;  %5053 = vmatpush.bf16.msrb.mxu0 %v10881_v63  ;;  %v10970_v63 = vld [vmem:[%s18586_s30 + $0xf8] sm:$0xf0] }
 0x452   :  { %5113 = vmatpush.bf16.msra.mxu1 %v11097_v53  ;;  %v12687_v53 = vld [vmem:[%s18586_s30 + $0x18c] sm:$0xf]  ;;  %5080 = vmatpush.bf16.msrb.mxu2 %v10869_v3  ;;  %v11000_v3 = vld [vmem:[%s18586_s30 + $0x128] sm:$0xf] }
 0x453   :  { %v11053_v50 = vor.u32 %v12687_v53, %v11050_v29  ;;  %v11017_v29 = vor.u32 %v12681_v59, %v11016_v8  ;;  %v10986_v59 = vld [vmem:[%s18586_s30 + $0x118] sm:$0xf0] }
 0x455   :  { %5142 = vmatpush.bf16.msra.mxu3 %v11053_v50  ;;  %5054 = vmatpush.bf16.msrb.mxu0 %v10865_v34  ;;  %v11021_v50 = vor.u32 %v12679_v13, %v11018_v16  ;;  %v10953_v34 = vor.u32 %v12665_v56, %v10952_v19  ;;  %v12655_v19 = vld [vmem:[%s18586_s30 + $0x8c] sm:$0xf]  ;;  %v10922_v56 = vld [vmem:[%s18586_s30 + $0x98] sm:$0xf0] }
 0x456   :  { %5114 = vmatpush.bf16.msra.mxu1 %v11081_v15  ;;  %v11032_v15 = vld [vmem:[%s18586_s30 + $0x168] sm:$0xf]  ;;  %5081 = vmatpush.bf16.msrb.mxu2 %v10853_v20 }
 0x457   :  { %v11033_v21 = vor.u32 %v12685_v12, %v11032_v15  ;;  %v10984_v20 = vld [vmem:[%s18586_s30 + $0x108] sm:$0xf] }
 0x459   :  { %5055 = vmatpush.bf16.msrb.mxu0 %v10849_v7  ;;  %v12661_v7 = vld [vmem:[%s18586_s30 + $0xb4] sm:$0xf0] }
 0x45a   :  { %5115 = vmatpush.bf16.msra.mxu1 %v11065_v52  ;;  %v10968_v52 = vld [vmem:[%s18586_s30 + $0xe8] sm:$0xf] }
 0x45b   :  { %v10969_v62 = vor.u32 %v12669_v18, %v10968_v52 }
 0x45d   :  { %5100 = vmatpush.bf16.msra.mxu0 %v10969_v62  ;;  %v12673_v62 = vld [vmem:[%s18586_s30 + $0x114] sm:$0xf0] }
 0x45e   :  { %5116 = vmatpush.bf16.msra.mxu1 %v11049_v22  ;;  %v10985_v8 = vor.u32 %v12673_v62, %v10984_v20 }
 0x461   :  { %5101 = vmatpush.bf16.msra.mxu0 %v10953_v34 }
 0x462   :  { %5117 = vmatpush.bf16.msra.mxu1 %v11033_v21  ;;  %v12675_v21 = vld [vmem:[%s18586_s30 + $0x12c] sm:$0xf] }
 0x466   :  { %5118 = vmatpush.bf16.msra.mxu1 %v11017_v29 }
 0x47b   :  { %v16034_v51 = vpop.f32.mrf.mxu1 }
 0x481   :  { %v16084_v49 = vpop.f32.mrf.mxu3 }
 0x483   :  { %v4293_v0 = vpop.f32.mrf.mxu1 }
 0x484   :  { %v12683_v0 = vld [vmem:[%s18586_s30 + $0x16c] sm:$0xf] }
 0x485   :  { %v11037_v44 = vor.u32 %v12683_v0, %v11034_v5  ;;  %v12677_v0 = vld [vmem:[%s18586_s30 + $0x134] sm:$0xf0]  ;;  %v11002_v5 = vld [vmem:[%s18586_s30 + $0x138] sm:$0xf0] }
 0x486   :  { %v11001_v61 = vor.u32 %v12677_v0, %v11000_v3  ;;  %v11005_v39 = vor.u32 %v12675_v21, %v11002_v5  ;;  %v12653_v3 = vld [vmem:[%s18586_s30 + $0x74] sm:$0xf0]  ;;  %v10906_v21 = vld [vmem:[%s18586_s30 + $0x78] sm:$0xf0] }
 0x487   :  { %5143 = vmatpush.bf16.msra.mxu3 %v11037_v44 }
 0x488   :  { %5119 = vmatpush.bf16.msra.mxu1 %v11001_v61 }
 0x489   :  { %v4319_v1 = vpop.f32.mrf.mxu3 }
 0x48a   :  { %v10973_v1 = vor.u32 %v12667_v33, %v10970_v63 }
 0x48b   :  { %v16146_v57 = vpop.f32.mrf.mxu1  ;;  %5144 = vmatpush.bf16.msra.mxu3 %v11021_v50 }
 0x48c   :  { %5126 = vmatpush.bf16.msra.mxu2 %v10973_v1  ;;  %v12671_v1 = vld [vmem:[%s18586_s30 + $0x10c] sm:$0xf]  ;;  %5120 = vmatpush.bf16.msra.mxu1 %v10985_v8 }
 0x48d   :  { %v10989_v13 = vor.u32 %v12671_v1, %v10986_v59  ;;  %v10872_v59 = vld [vmem:[%s18586_s30 + $0x28] sm:$0xf] }
 0x48f   :  { %v4278_v23 = vpop.f32.mrf.mxu0  ;;  %5145 = vmatpush.bf16.msra.mxu3 %v11005_v39 }
 0x490   :  { %v4279_v11 = vadd.f32 %v4278_v23, %v14428_v10 }
 0x491   :  { %v16191_v9 = vpop.f32.mrf.mxu3 }
 0x492   :  { %v4292_v53 = vadd.f32 %v16034_v51, %v4279_v11  ;;  %v12663_v51 = vld [vmem:[%s18586_s30 + $0xcc] sm:$0xf]  ;;  %v10936_v11 = vld [vmem:[%s18586_s30 + $0xa8] sm:$0xf] }
 0x493   :  { %v4345_v22 = vpop.f32.mrf.mxu1  ;;  %v10957_v12 = vor.u32 %v12663_v51, %v10954_v28  ;;  %v10937_v18 = vor.u32 %v12661_v7, %v10936_v11  ;;  %5146 = vmatpush.bf16.msra.mxu3 %v10989_v13  ;;  %v10904_v28 = vld [vmem:[%s18586_s30 + $0x68] sm:$0xf]  ;;  %v12645_v13 = vld [vmem:[%s18586_s30 + $0x34] sm:$0xf0] }
 0x494   :  { %v4378_v23 = vmul.f32 0.5, %v4292_v53  ;;  %v10920_v53 = vld [vmem:[%s18586_s30 + $0x88] sm:$0xf]  ;;  %v12657_v22 = vld [vmem:[%s18586_s30 + $0x94] sm:$0xf0]  ;;  %v10905_v0 = vor.u32 %v12653_v3, %v10904_v28 }
 0x495   :  { %v4304_v6 = vpop.f32.mrf.mxu2  ;;  %5127 = vmatpush.bf16.msra.mxu2 %v10957_v12  ;;  %5102 = vmatpush.bf16.msra.mxu0 %v10937_v18  ;;  %v10921_v50 = vor.u32 %v12657_v22, %v10920_v53  ;;  %v10888_v7 = vld [vmem:[%s18586_s30 + $0x48] sm:$0xf]  ;;  %v10873_v22 = vor.u32 %v12645_v13, %v10872_v59  ;;  %v12641_v3 = vld [vmem:[%s18586_s30 + $0x14] sm:$0xf0] }
 0x496   :  { %v4305_v15 = vadd.f32 %v4304_v6, %v14443_v32  ;;  %13066 = vtanh.f32 %v4378_v23  ;;  %v10925_v6 = vor.u32 %v12655_v19, %v10922_v56  ;;  %v10856_v28 = vld [vmem:[%s18586_s30 + $0x8] sm:$0xf] }
 0x497   :  { %v4280_v44 = vpop.f32.mrf.mxu0 }
 0x498   :  { %v4318_v25 = vadd.f32 %v16084_v49, %v4305_v15  ;;  %v10938_v49 = vld [vmem:[%s18586_s30 + $0xb8] sm:$0xf0]  ;;  %v12651_v15 = vld [vmem:[%s18586_s30 + $0x6c] sm:$0xf] }
 0x499   :  { %v4371_v52 = vpop.f32.mrf.mxu3  ;;  %v10941_v63 = vor.u32 %v12659_v45, %v10938_v49  ;;  %5103 = vmatpush.bf16.msra.mxu0 %v10921_v50  ;;  %v10909_v44 = vor.u32 %v12651_v15, %v10906_v21  ;;  %v12649_v45 = vld [vmem:[%s18586_s30 + $0x54] sm:$0xf0]  ;;  %v12639_v15 = vld [vmem:[%s18586_s30 + $0xc] sm:$0xf]  ;;  %v10858_v21 = vld [vmem:[%s18586_s30 + $0x18] sm:$0xf0] }
 0x49a   :  { %v4373_v33 = vmul.f32 0.5, %v4318_v25  ;;  %v385_v25 = vadd.f32 %v14065_v2, %v13884_v48  ;;  %v10889_v49 = vor.u32 %v12649_v45, %v10888_v7  ;;  %v10890_v2 = vld [vmem:[%s18586_s30 + $0x58] sm:$0xf0] }
 0x49b   :  { %5128 = vmatpush.bf16.msra.mxu2 %v10941_v63 }
 0x49c   :  { %13068 = vtanh.f32 %v4373_v33  ;;  %v4610_v16 = vpop.f32.mrf.mxu1  ;;  %v13067_v12 = vpop.eup %13066 }
 0x49d   :  { %v4306_v29 = vpop.f32.mrf.mxu2  ;;  %5104 = vmatpush.bf16.msra.mxu0 %v10905_v0  ;;  %v4380_v52 = vmul.f32 0.5, %v13067_v12  ;;  %v4641_v20 = vadd.f32 %v4610_v16, %v385_v25  ;;  %v12643_v16 = vld [vmem:[%s18586_s30 + $0x2c] sm:$0xf]  ;;  %v10857_v0 = vor.u32 %v12641_v3, %v10856_v28  ;;  %v11186_v28 = vld [vmem:[#allocation6 + $0xb0] sm:$0xf0] }
 0x49e   :  { %v10874_v29 = vld [vmem:[%s18586_s30 + $0x38] sm:$0xf0] }
 0x49f   :  { %v4330_v34 = vpop.f32.mrf.mxu0  ;;  %5129 = vmatpush.bf16.msra.mxu2 %v10925_v6  ;;  %v4381_v53 = vadd.f32 0.5, %v4380_v52  ;;  %v4644_v50 = vmul.f32 0.5, %v4641_v20  ;;  %v10877_v56 = vor.u32 %v12643_v16, %v10874_v29  ;;  %v11202_v29 = vld [vmem:[#allocation6 + $0xd0] sm:$0xf0] }
 0x4a0   :  { %v4331_v51 = vadd.f32 %v4330_v34, %v14541_v46 }
 0x4a1   :  { %5105 = vmatpush.bf16.msra.mxu0 %v10889_v49  ;;  %v11218_v49 = vld [vmem:[#allocation6 + $0xf0] sm:$0xf0] }
 0x4a2   :  { %v13069_v5 = vpop.eup %13068  ;;  %v4344_v23 = vadd.f32 %v16146_v57, %v4331_v51  ;;  %v12647_v57 = vld [vmem:[%s18586_s30 + $0x4c] sm:$0xf] }
 0x4a3   :  { %v4375_v61 = vmul.f32 0.5, %v13069_v5  ;;  %v4636_v39 = vpop.f32.mrf.mxu3  ;;  %5130 = vmatpush.bf16.msra.mxu2 %v10909_v44  ;;  %v10893_v33 = vor.u32 %v12647_v57, %v10890_v2  ;;  %v356_v5 = vadd.f32 %v14060_v58, %v13874_v42  ;;  %v414_v2 = vadd.f32 %v14085_v30, %v13918_v4  ;;  %v11210_v30 = vld [vmem:[#allocation6 + $0xd8] sm:$0xf0] }
 0x4a4   :  { %13070 = vtanh.f32 %v4344_v23  ;;  %v4612_v11 = vpop.f32.mrf.mxu1  ;;  %v10861_v23 = vor.u32 %v12639_v15, %v10858_v21  ;;  %v12723_v15 = vld [vmem:[#allocation6 + $0xac] sm:$0xf] }
 0x4a5   :  { %v4356_v18 = vpop.f32.mrf.mxu2  ;;  %v4376_v63 = vadd.f32 0.5, %v4375_v61  ;;  %5106 = vmatpush.bf16.msra.mxu0 %v10873_v22  ;;  %v443_v11 = vadd.f32 %v14093_v35, %v13938_v14 }
 0x4a6   :  { %v4357_v62 = vadd.f32 %v4356_v18, %v14570_v36  ;;  %v12730_v18 = vld [vmem:[#allocation6 + $0xe4] sm:$0xf] }
 0x4a7   :  { %v4332_v8 = vpop.f32.mrf.mxu0  ;;  %5131 = vmatpush.bf16.msra.mxu2 %v10893_v33  ;;  %v4377_v6 = vmul.f32 %v4376_v63, %v15899_v43  ;;  %v4643_v52 = vadd.f32 %v4636_v39, %v443_v11  ;;  %v11226_v33 = vld [vmem:[#allocation6 + $0xf8] sm:$0xf0]  ;;  %v12726_v39 = vld [vmem:[#allocation6 + $0xc4] sm:$0xf]  ;;  %v11170_v11 = vld [vmem:[#allocation6 + $0x90] sm:$0xf0] }
 0x4a8   :  { %v4370_v1 = vadd.f32 %v16191_v9, %v4357_v62  ;;  %v12731_v62 = vld [vmem:[#allocation6 + $0xec] sm:$0xf] }
 0x4a9   :  { %5107 = vmatpush.bf16.msra.mxu0 %v10857_v0  ;;  %v4656_v13 = vmul.f32 0.5, %v4643_v52  ;;  %v11229_v22 = vor.u32 %v12731_v62, %v11226_v33  ;;  %v11162_v62 = vld [vmem:[#allocation6 + $0x78] sm:$0xf0] }
 0x4aa   :  { %v13071_v9 = vpop.eup %13070  ;;  %v4385_v19 = vmul.f32 0.5, %v4370_v1 }
 0x4ab   :  { %v4383_v34 = vmul.f32 %v13071_v9, %v4381_v53  ;;  %v4638_v51 = vpop.f32.mrf.mxu3  ;;  %5132 = vmatpush.bf16.msra.mxu2 %v10877_v56  ;;  %v11221_v53 = vor.u32 %v12730_v18, %v11218_v49  ;;  %v12727_v9 = vld [vmem:[#allocation6 + $0xcc] sm:$0xf] }
 0x4ac   :  { %13072 = vtanh.f32 %v4385_v19  ;;  %v12722_v51 = vld [vmem:[#allocation6 + $0xa4] sm:$0xf] }
 0x4ad   :  { %v16326_v12 = vadd.f32 %v4383_v34, %v4377_v6  ;;  %v4358_v43 = vpop.f32.mrf.mxu2  ;;  %13074 = vtanh.f32 %v4644_v50  ;;  %v11205_v6 = vor.u32 %v12726_v39, %v11202_v29  ;;  %v11213_v34 = vor.u32 %v12727_v9, %v11210_v30  ;;  %v11138_v29 = vld [vmem:[#allocation6 + $0x50] sm:$0xf0]  ;;  %v12711_v9 = vld [vmem:[#allocation6 + $0x4c] sm:$0xf]  ;;  %v11146_v30 = vld [vmem:[#allocation6 + $0x58] sm:$0xf0] }
 0x4ae   :  { %v11194_v43 = vld [vmem:[#allocation6 + $0xb8] sm:$0xf0] }
 0x4af   :  { %13076 = vtanh.f32 %v16326_v12  ;;  %v4597_v44 = vpop.f32.mrf.mxu0  ;;  %5133 = vmatpush.bf16.msra.mxu2 %v10861_v23 }
 0x4b0   :  { %v4640_v61 = vadd.f32 %v4597_v44, %v356_v5  ;;  %v11189_v5 = vor.u32 %v12722_v51, %v11186_v28 }
 0x4b2   :  { %v13073_v25 = vpop.eup %13072  ;;  %v4649_v7 = vmul.f32 0.5, %v4640_v61  ;;  %v11197_v61 = vor.u32 %v12723_v15, %v11194_v43  ;;  %v11208_v15 = vld [vmem:[#allocation6 + $0xc8] sm:$0xf]  ;;  %v12729_v43 = vld [vmem:[#allocation6 + $0xd4] sm:$0xf0] }
 0x4b3   :  { %v4387_v45 = vmul.f32 0.5, %v13073_v25  ;;  %v13075_v57 = vpop.eup %13074  ;;  %v12718_v25 = vld [vmem:[#allocation6 + $0x84] sm:$0xf] }
 0x4b4   :  { %13078 = vtanh.f32 %v4649_v7  ;;  %v4646_v35 = vmul.f32 0.5, %v13075_v57  ;;  %v12719_v7 = vld [vmem:[#allocation6 + $0x8c] sm:$0xf]  ;;  %v11173_v18 = vor.u32 %v12718_v25, %v11170_v11  ;;  %v12724_v25 = vld [vmem:[#allocation6 + $0xac] sm:$0xf0] }
 0x4b5   :  { %v13077_v58 = vpop.eup %13076  ;;  %v4388_v20 = vadd.f32 0.5, %v4387_v45  ;;  %v11178_v45 = vld [vmem:[#allocation6 + $0x98] sm:$0xf0] }
 0x4b6   :  { %v4623_v63 = vpop.f32.mrf.mxu2  ;;  %v4647_v56 = vadd.f32 0.5, %v4646_v35  ;;  %v11181_v49 = vor.u32 %v12719_v7, %v11178_v45  ;;  %v11224_v35 = vld [vmem:[#allocation6 + $0xe8] sm:$0xf] }
 0x4b7   :  { %v16338_v8 = vmul.f32 %v13077_v58, %v4388_v20  ;;  %v4642_v1 = vadd.f32 %v4623_v63, %v414_v2  ;;  %v4599_v59 = vpop.f32.mrf.mxu0  ;;  %v12714_v58 = vld [vmem:[#allocation6 + $0x64] sm:$0xf]  ;;  %v11154_v2 = vld [vmem:[#allocation6 + $0x70] sm:$0xf0]  ;;  %v12715_v20 = vld [vmem:[#allocation6 + $0x6c] sm:$0xf] }
 0x4b8   :  { %v4648_v23 = vmul.f32 %v4647_v56, %v15913_v60  ;;  %v11157_v33 = vor.u32 %v12714_v58, %v11154_v2  ;;  %v11165_v63 = vor.u32 %v12715_v20, %v11162_v62  ;;  %v12732_v59 = vld [vmem:[#allocation6 + $0xec] sm:$0xf0]  ;;  %v11192_v45 = vld [vmem:[#allocation6 + $0xa8] sm:$0xf]  ;;  %v12703_v58 = vld [vmem:[#allocation6 + $0xc] sm:$0xf] }
 0x4b9   :  { %v4663_v16 = vpack.c.bf16 %v16338_v8, %v16338_v8  ;;  %13080 = vtanh.f32 %v4642_v1  ;;  %v11216_v1 = vld [vmem:[#allocation6 + $0xe0] sm:$0xf]  ;;  %v11114_v2 = vld [vmem:[#allocation6 + $0x18] sm:$0xf0] }
 0x4ba   :  { %v13079_v50 = vpop.eup %13078  ;;  %13082 = vtanh.f32 %v4656_v13 }
 0x4bb   :  { %v4651_v19 = vmul.f32 0.5, %v13079_v50  ;;  %5069 = vmatmul.bf16.vlgmr.msrb.gmra.mxu1 %v4663_v16  ;;  %5095 = vmatmul.bf16.vlgmr.msrb.gmra.mxu3 %v4663_v16 }
 0x4bc   :  { %5380 = vmatpush.bf16.msrb.mxu1 %v11221_v53  ;;  %5406 = vmatpush.bf16.msrb.mxu3 %v11229_v22  ;;  %v12733_v53 = vld [vmem:[#allocation6 + $0xf4] sm:$0xf0]  ;;  %v12710_v22 = vld [vmem:[#allocation6 + $0x44] sm:$0xf] }
 0x4bd   :  { %v4652_v3 = vadd.f32 0.5, %v4651_v19  ;;  %v11217_v19 = vor.u32 %v12732_v59, %v11216_v1  ;;  %v11225_v56 = vor.u32 %v12733_v53, %v11224_v35  ;;  %v11141_v28 = vor.u32 %v12710_v22, %v11138_v29  ;;  %v12720_v1 = vld [vmem:[#allocation6 + $0x8c] sm:$0xf0]  ;;  %v11176_v59 = vld [vmem:[#allocation6 + $0x88] sm:$0xf] }
 0x4be   :  { %v4625_v0 = vpop.f32.mrf.mxu2  ;;  %v12721_v35 = vld [vmem:[#allocation6 + $0x94] sm:$0xf0]  ;;  %v11152_v22 = vld [vmem:[#allocation6 + $0x60] sm:$0xf]  ;;  %v11160_v29 = vld [vmem:[#allocation6 + $0x68] sm:$0xf] }
 0x4bf   :  { %v13081_v21 = vpop.eup %13080  ;;  %v12706_v0 = vld [vmem:[#allocation6 + $0x24] sm:$0xf]  ;;  %v11177_v53 = vor.u32 %v12721_v35, %v11176_v59  ;;  %v12788_v59 = vld [vmem:[%s18586_s30 + $0x1ac] sm:$0xf0] }
 0x4c0   :  { %v4654_v44 = vmul.f32 %v13081_v21, %v4652_v3  ;;  %5381 = vmatpush.bf16.msrb.mxu1 %v11205_v6  ;;  %5407 = vmatpush.bf16.msrb.mxu3 %v11213_v34  ;;  %v13083_v57 = vpop.eup %13082  ;;  %v11200_v6 = vld [vmem:[#allocation6 + $0xc0] sm:$0xf]  ;;  %v12728_v34 = vld [vmem:[#allocation6 + $0xcc] sm:$0xf0]  ;;  %v11149_v3 = vor.u32 %v12711_v9, %v11146_v30  ;;  %v11122_v21 = vld [vmem:[#allocation6 + $0x30] sm:$0xf0] }
 0x4c1   :  { %v4658_v60 = vmul.f32 0.5, %v13083_v57  ;;  %v11125_v11 = vor.u32 %v12706_v0, %v11122_v21  ;;  %v12725_v57 = vld [vmem:[#allocation6 + $0xb4] sm:$0xf0]  ;;  %v11128_v0 = vld [vmem:[#allocation6 + $0x28] sm:$0xf] }
 0x4c2   :  { %v16343_v52 = vadd.f32 %v4654_v44, %v4648_v23  ;;  %v11130_v23 = vld [vmem:[#allocation6 + $0x38] sm:$0xf0]  ;;  %v11209_v44 = vor.u32 %v12729_v43, %v11208_v15  ;;  %v11193_v20 = vor.u32 %v12725_v57, %v11192_v45  ;;  %v12717_v9 = vld [vmem:[#allocation6 + $0x74] sm:$0xf0]  ;;  %v11120_v15 = vld [vmem:[#allocation6 + $0x20] sm:$0xf] }
 0x4c3   :  { %v4659_v13 = vadd.f32 0.5, %v4658_v60  ;;  %v12708_v43 = vld [vmem:[#allocation6 + $0x2c] sm:$0xf0]  ;;  %v12709_v21 = vld [vmem:[#allocation6 + $0x34] sm:$0xf0] }
 0x4c4   :  { %13084 = vtanh.f32 %v16343_v52  ;;  %5382 = vmatpush.bf16.msrb.mxu1 %v11189_v5  ;;  %5408 = vmatpush.bf16.msrb.mxu3 %v11197_v61  ;;  %v12707_v5 = vld [vmem:[#allocation6 + $0x2c] sm:$0xf]  ;;  %v11184_v61 = vld [vmem:[#allocation6 + $0xa0] sm:$0xf]  ;;  %v12796_v57 = vld [vmem:[%s18586_s30 + $0x1ec] sm:$0xf0] }
 0x4c5   :  { %v11133_v7 = vor.u32 %v12707_v5, %v11130_v23  ;;  %v11185_v60 = vor.u32 %v12724_v25, %v11184_v61  ;;  %v11121_v5 = vor.u32 %v12708_v43, %v11120_v15  ;;  %v11129_v23 = vor.u32 %v12709_v21, %v11128_v0  ;;  %v11112_v61 = vld [vmem:[#allocation6 + $0x8] sm:$0xf]  ;;  %v12705_v25 = vld [vmem:[#allocation6 + $0x14] sm:$0xf0]  ;;  %v11472_v45 = vld [vmem:[%s18586_s30 + $0x1e0] sm:$0xf] }
 0x4c6   :  { %v12786_v35 = vld [vmem:[%s18586_s30 + $0x1a4] sm:$0xf]  ;;  %v11344_v43 = vld [vmem:[%s18586_s30 + $0xe0] sm:$0xf]  ;;  %v12764_v0 = vld [vmem:[%s18586_s30 + $0xec] sm:$0xf0] }
 0x4c7   :  { %v12762_v21 = vld [vmem:[%s18586_s30 + $0xe4] sm:$0xf] }
 0x4c8   :  { %5383 = vmatpush.bf16.msrb.mxu1 %v11173_v18  ;;  %5409 = vmatpush.bf16.msrb.mxu3 %v11181_v49  ;;  %v12702_v18 = vld [vmem:[#allocation6 + $0x4] sm:$0xf]  ;;  %v11106_v49 = vld [vmem:[#allocation6 + $0x10] sm:$0xf0] }
 0x4c9   :  { %v11109_v62 = vor.u32 %v12702_v18, %v11106_v49  ;;  %v12794_v18 = vld [vmem:[%s18586_s30 + $0x1e4] sm:$0xf]  ;;  %v11473_v49 = vor.u32 %v12796_v57, %v11472_v45  ;;  %v11328_v57 = vld [vmem:[%s18586_s30 + $0xc0] sm:$0xf] }
 0x4ca   :  { %v13085_v39 = vpop.eup %13084 }
 0x4cb   :  { %v4661_v50 = vmul.f32 %v13085_v39, %v4659_v13  ;;  %5121 = vmatmul.bf16.vlgmr.msra.gmra.mxu1 %v4663_v16  ;;  %5147 = vmatmul.bf16.vlgmr.msra.gmra.mxu3 %v4663_v16  ;;  %v11201_v16 = vor.u32 %v12728_v34, %v11200_v6  ;;  %v12716_v39 = vld [vmem:[#allocation6 + $0x6c] sm:$0xf0]  ;;  %v11144_v6 = vld [vmem:[#allocation6 + $0x48] sm:$0xf]  ;;  %v12713_v34 = vld [vmem:[#allocation6 + $0x54] sm:$0xf0] }
 0x4cc   :  { %5384 = vmatpush.bf16.msrb.mxu1 %v11157_v33  ;;  %5410 = vmatpush.bf16.msrb.mxu3 %v11165_v63  ;;  %v11117_v33 = vor.u32 %v12703_v58, %v11114_v2  ;;  %v11168_v63 = vld [vmem:[#allocation6 + $0x80] sm:$0xf]  ;;  %v11153_v30 = vor.u32 %v12716_v39, %v11152_v22  ;;  %v11474_v58 = vld [vmem:[%s18586_s30 + $0x1f0] sm:$0xf0] }
 0x4cd   :  { %v16346_v51 = vpack.c.bf16 %v4661_v50, %v4661_v50  ;;  %v11169_v13 = vor.u32 %v12720_v1, %v11168_v63  ;;  %v11161_v50 = vor.u32 %v12717_v9, %v11160_v29  ;;  %v11477_v2 = vor.u32 %v12794_v18, %v11474_v58  ;;  %v11440_v1 = vld [vmem:[%s18586_s30 + $0x1a0] sm:$0xf]  ;;  %v12784_v29 = vld [vmem:[%s18586_s30 + $0x18c] sm:$0xf0]  ;;  %v12782_v9 = vld [vmem:[%s18586_s30 + $0x184] sm:$0xf] }
 0x4ce   :  { %v11424_v39 = vld [vmem:[%s18586_s30 + $0x180] sm:$0xf]  ;;  %v12760_v18 = vld [vmem:[%s18586_s30 + $0xcc] sm:$0xf0] }
 0x4cf   :  { %5056 = vmatmul.bf16.vlgmr.msrb.gmra.mxu0 %v16346_v51  ;;  %5082 = vmatmul.bf16.vlgmr.msrb.gmra.mxu2 %v16346_v51  ;;  %v11329_v58 = vor.u32 %v12760_v18, %v11328_v57  ;;  %v11466_v18 = vld [vmem:[%s18586_s30 + $0x1d8] sm:$0xf0] }
 0x4d0   :  { %5367 = vmatpush.bf16.msrb.mxu0 %v11217_v19  ;;  %5393 = vmatpush.bf16.msrb.mxu2 %v11225_v56  ;;  %v11136_v19 = vld [vmem:[#allocation6 + $0x40] sm:$0xf]  ;;  %v12712_v56 = vld [vmem:[#allocation6 + $0x4c] sm:$0xf0] }
 0x4d1   :  { %5385 = vmatpush.bf16.msrb.mxu1 %v11141_v28  ;;  %5411 = vmatpush.bf16.msrb.mxu3 %v11149_v3  ;;  %v11137_v28 = vor.u32 %v12712_v56, %v11136_v19  ;;  %v11145_v3 = vor.u32 %v12713_v34, %v11144_v6  ;;  %v11408_v56 = vld [vmem:[%s18586_s30 + $0x160] sm:$0xf]  ;;  %v12780_v6 = vld [vmem:[%s18586_s30 + $0x16c] sm:$0xf0]  ;;  %v12778_v34 = vld [vmem:[%s18586_s30 + $0x164] sm:$0xf] }
 0x4d4   :  { %5368 = vmatpush.bf16.msrb.mxu0 %v11201_v16  ;;  %5394 = vmatpush.bf16.msrb.mxu2 %v11209_v44  ;;  %v11104_v16 = vld [vmem:[#allocation6] sm:$0xf]  ;;  %v12704_v44 = vld [vmem:[#allocation6 + $0xc] sm:$0xf0] }
 0x4d5   :  { %5386 = vmatpush.bf16.msrb.mxu1 %v11125_v11  ;;  %5412 = vmatpush.bf16.msrb.mxu3 %v11133_v7  ;;  %v11105_v11 = vor.u32 %v12704_v44, %v11104_v16  ;;  %v11113_v7 = vor.u32 %v12705_v25, %v11112_v61  ;;  %v11392_v16 = vld [vmem:[%s18586_s30 + $0x140] sm:$0xf]  ;;  %v12776_v44 = vld [vmem:[%s18586_s30 + $0x14c] sm:$0xf0] }
 0x4d6   :  { %v11393_v25 = vor.u32 %v12776_v44, %v11392_v16  ;;  %v11298_v44 = vld [vmem:[%s18586_s30 + $0x90] sm:$0xf0] }
 0x4d8   :  { %5369 = vmatpush.bf16.msrb.mxu0 %v11185_v60  ;;  %5395 = vmatpush.bf16.msrb.mxu2 %v11193_v20  ;;  %v12792_v60 = vld [vmem:[%s18586_s30 + $0x1cc] sm:$0xf0]  ;;  %v12790_v20 = vld [vmem:[%s18586_s30 + $0x1c4] sm:$0xf] }
 0x4d9   :  { %5387 = vmatpush.bf16.msrb.mxu1 %v11109_v62  ;;  %5413 = vmatpush.bf16.msrb.mxu3 %v11117_v33  ;;  %v11458_v33 = vld [vmem:[%s18586_s30 + $0x1d0] sm:$0xf0] }
 0x4da   :  { %v11461_v63 = vor.u32 %v12790_v20, %v11458_v33  ;;  %v12770_v33 = vld [vmem:[%s18586_s30 + $0x124] sm:$0xf] }
 0x4dc   :  { %5370 = vmatpush.bf16.msrb.mxu0 %v11169_v13  ;;  %5388 = vmatmul.bf16.vlgmr.msrb.gmra.mxu1 %v16346_v51  ;;  %v11441_v13 = vor.u32 %v12788_v59, %v11440_v1 }
 0x4dd   :  { %5396 = vmatpush.bf16.msrb.mxu2 %v11177_v53  ;;  %5414 = vmatmul.bf16.vlgmr.msrb.gmra.mxu3 %v16346_v51  ;;  %v11442_v53 = vld [vmem:[%s18586_s30 + $0x1b0] sm:$0xf0] }
 0x4de   :  { %5840 = vmatpush.bf16.msra.mxu1 %v11473_v49  ;;  %5866 = vmatpush.bf16.msra.mxu3 %v11477_v2  ;;  %v11445_v22 = vor.u32 %v12786_v35, %v11442_v53  ;;  %v12758_v49 = vld [vmem:[%s18586_s30 + $0xc4] sm:$0xf]  ;;  %v11330_v2 = vld [vmem:[%s18586_s30 + $0xd0] sm:$0xf0]  ;;  %v11312_v35 = vld [vmem:[%s18586_s30 + $0xa0] sm:$0xf] }
 0x4df   :  { %5108 = vmatmul.bf16.vlgmr.msra.gmra.mxu0 %v16346_v51  ;;  %5134 = vmatmul.bf16.vlgmr.msra.gmra.mxu2 %v16346_v51  ;;  %v11333_v20 = vor.u32 %v12758_v49, %v11330_v2  ;;  %v12754_v53 = vld [vmem:[%s18586_s30 + $0xa4] sm:$0xf]  ;;  %v11280_v2 = vld [vmem:[%s18586_s30 + $0x60] sm:$0xf] }
 0x4e0   :  { %5371 = vmatpush.bf16.msrb.mxu0 %v11153_v30  ;;  %v11425_v30 = vor.u32 %v12784_v29, %v11424_v39  ;;  %v11314_v39 = vld [vmem:[%s18586_s30 + $0xb0] sm:$0xf0]  ;;  %v11360_v29 = vld [vmem:[%s18586_s30 + $0x100] sm:$0xf] }
 0x4e1   :  { %5397 = vmatpush.bf16.msrb.mxu2 %v11161_v50  ;;  %v11426_v50 = vld [vmem:[%s18586_s30 + $0x190] sm:$0xf0] }
 0x4e2   :  { %5867 = vmatpush.bf16.msra.mxu3 %v11461_v63  ;;  %v11429_v19 = vor.u32 %v12782_v9, %v11426_v50  ;;  %v11378_v63 = vld [vmem:[%s18586_s30 + $0x130] sm:$0xf0]  ;;  %v12768_v9 = vld [vmem:[%s18586_s30 + $0x10c] sm:$0xf0] }
 0x4e3   :  { %v11381_v1 = vor.u32 %v12770_v33, %v11378_v63  ;;  %v11361_v50 = vor.u32 %v12768_v9, %v11360_v29  ;;  %v11448_v63 = vld [vmem:[%s18586_s30 + $0x1a8] sm:$0xf]  ;;  %v12744_v29 = vld [vmem:[%s18586_s30 + $0x4c] sm:$0xf0]  ;;  %v12742_v9 = vld [vmem:[%s18586_s30 + $0x44] sm:$0xf] }
 0x4e4   :  { %5372 = vmatpush.bf16.msrb.mxu0 %v11137_v28  ;;  %v11409_v28 = vor.u32 %v12780_v6, %v11408_v56  ;;  %v11362_v56 = vld [vmem:[%s18586_s30 + $0x110] sm:$0xf0]  ;;  %v11480_v6 = vld [vmem:[%s18586_s30 + $0x1e8] sm:$0xf] }
 0x4e5   :  { %5398 = vmatpush.bf16.msrb.mxu2 %v11145_v3  ;;  %v11410_v3 = vld [vmem:[%s18586_s30 + $0x170] sm:$0xf0] }
 0x4e6   :  { %5868 = vmatpush.bf16.msra.mxu3 %v11445_v22  ;;  %v11413_v15 = vor.u32 %v12778_v34, %v11410_v3  ;;  %v12795_v3 = vld [vmem:[%s18586_s30 + $0x1ec] sm:$0xf] }
 0x4e8   :  { %5373 = vmatpush.bf16.msrb.mxu0 %v11121_v5  ;;  %v11345_v5 = vor.u32 %v12764_v0, %v11344_v43 }
 0x4e9   :  { %5399 = vmatpush.bf16.msrb.mxu2 %v11129_v23  ;;  %v11346_v23 = vld [vmem:[%s18586_s30 + $0xf0] sm:$0xf0] }
 0x4ea   :  { %5869 = vmatpush.bf16.msra.mxu3 %v11429_v19  ;;  %v11349_v61 = vor.u32 %v12762_v21, %v11346_v23  ;;  %v12766_v19 = vld [vmem:[%s18586_s30 + $0x104] sm:$0xf]  ;;  %v11296_v21 = vld [vmem:[%s18586_s30 + $0x80] sm:$0xf] }
 0x4eb   :  { %v11365_v34 = vor.u32 %v12766_v19, %v11362_v56  ;;  %v12750_v23 = vld [vmem:[%s18586_s30 + $0x84] sm:$0xf] }
 0x4ec   :  { %5374 = vmatpush.bf16.msrb.mxu0 %v11105_v11  ;;  %v12774_v11 = vld [vmem:[%s18586_s30 + $0x144] sm:$0xf] }
 0x4ed   :  { %5400 = vmatpush.bf16.msrb.mxu2 %v11113_v7  ;;  %v11394_v7 = vld [vmem:[%s18586_s30 + $0x150] sm:$0xf0] }
 0x4ee   :  { %5870 = vmatpush.bf16.msra.mxu3 %v11413_v15  ;;  %v11397_v45 = vor.u32 %v12774_v11, %v11394_v7  ;;  %v11482_v15 = vld [vmem:[%s18586_s30 + $0x1f8] sm:$0xf0]  ;;  %v11464_v11 = vld [vmem:[%s18586_s30 + $0x1c8] sm:$0xf]  ;;  %v12793_v7 = vld [vmem:[%s18586_s30 + $0x1d4] sm:$0xf0] }
 0x4ef   :  { %5375 = vmatmul.bf16.vlgmr.msrb.gmra.mxu0 %v16346_v51  ;;  %v11485_v0 = vor.u32 %v12795_v3, %v11482_v15  ;;  %v11465_v57 = vor.u32 %v12793_v7, %v11464_v11  ;;  %v11434_v15 = vld [vmem:[%s18586_s30 + $0x198] sm:$0xf0]  ;;  %v11416_v11 = vld [vmem:[%s18586_s30 + $0x168] sm:$0xf]  ;;  %v12781_v7 = vld [vmem:[%s18586_s30 + $0x174] sm:$0xf0] }
 0x4f0   :  { %5401 = vmatmul.bf16.vlgmr.msrb.gmra.mxu2 %v16346_v51  ;;  %v11456_v51 = vld [vmem:[%s18586_s30 + $0x1c0] sm:$0xf]  ;;  %5827 = vmatpush.bf16.msra.mxu0 %v11345_v5  ;;  %v12752_v5 = vld [vmem:[%s18586_s30 + $0x8c] sm:$0xf0] }
 0x4f1   :  { %v11457_v62 = vor.u32 %v12792_v60, %v11456_v51  ;;  %5853 = vmatpush.bf16.msra.mxu2 %v11349_v61  ;;  %v11376_v51 = vld [vmem:[%s18586_s30 + $0x120] sm:$0xf]  ;;  %v12772_v60 = vld [vmem:[%s18586_s30 + $0x12c] sm:$0xf0]  ;;  %v11297_v16 = vor.u32 %v12752_v5, %v11296_v21 }
 0x4f2   :  { %5871 = vmatpush.bf16.msra.mxu3 %v11397_v45  ;;  %v12791_v45 = vld [vmem:[%s18586_s30 + $0x1cc] sm:$0xf]  ;;  %v11248_v21 = vld [vmem:[%s18586_s30 + $0x20] sm:$0xf]  ;;  %v12740_v5 = vld [vmem:[%s18586_s30 + $0x2c] sm:$0xf0] }
 0x4f3   :  { %5841 = vmatpush.bf16.msra.mxu1 %v11457_v62  ;;  %v11377_v62 = vor.u32 %v12772_v60, %v11376_v51  ;;  %v12748_v51 = vld [vmem:[%s18586_s30 + $0x6c] sm:$0xf0]  ;;  %v12746_v60 = vld [vmem:[%s18586_s30 + $0x64] sm:$0xf] }
 0x4f4   :  { %5828 = vmatpush.bf16.msra.mxu0 %v11329_v58  ;;  %v11469_v58 = vor.u32 %v12791_v45, %v11466_v18  ;;  %v12779_v45 = vld [vmem:[%s18586_s30 + $0x16c] sm:$0xf]  ;;  %v11418_v18 = vld [vmem:[%s18586_s30 + $0x178] sm:$0xf0] }
 0x4f5   :  { %5854 = vmatpush.bf16.msra.mxu2 %v11333_v20  ;;  %v11281_v20 = vor.u32 %v12748_v51, %v11280_v2  ;;  %v11232_v2 = vld [vmem:[%s18586_s30] sm:$0xf]  ;;  %v12736_v51 = vld [vmem:[%s18586_s30 + $0xc] sm:$0xf0] }
 0x4f6   :  { %5872 = vmatpush.bf16.msra.mxu3 %v11381_v1  ;;  %v12789_v1 = vld [vmem:[%s18586_s30 + $0x1b4] sm:$0xf0] }
 0x4f7   :  { %5842 = vmatpush.bf16.msra.mxu1 %v11441_v13  ;;  %v12756_v13 = vld [vmem:[%s18586_s30 + $0xac] sm:$0xf0] }
 0x4f8   :  { %v11313_v22 = vor.u32 %v12756_v13, %v11312_v35  ;;  %v12787_v35 = vld [vmem:[%s18586_s30 + $0x1ac] sm:$0xf]  ;;  %v11449_v13 = vor.u32 %v12789_v1, %v11448_v63  ;;  %v11352_v63 = vld [vmem:[%s18586_s30 + $0xe8] sm:$0xf]  ;;  %v12765_v1 = vld [vmem:[%s18586_s30 + $0xf4] sm:$0xf0] }
 0x4fa   :  { %5829 = vmatpush.bf16.msra.mxu0 %v11313_v22  ;;  %5873 = vmatpush.bf16.msra.mxu3 %v11365_v34  ;;  %v12785_v34 = vld [vmem:[%s18586_s30 + $0x194] sm:$0xf0] }
 0x4fb   :  { %5843 = vmatpush.bf16.msra.mxu1 %v11425_v30  ;;  %v11317_v30 = vor.u32 %v12754_v53, %v11314_v39  ;;  %v11450_v53 = vld [vmem:[%s18586_s30 + $0x1b8] sm:$0xf0]  ;;  %v11264_v39 = vld [vmem:[%s18586_s30 + $0x40] sm:$0xf] }
 0x4fc   :  { %v11453_v22 = vor.u32 %v12787_v35, %v11450_v53  ;;  %v11353_v53 = vor.u32 %v12765_v1, %v11352_v63  ;;  %v12769_v63 = vld [vmem:[%s18586_s30 + $0x114] sm:$0xf0] }
 0x4fd   :  { %5855 = vmatpush.bf16.msra.mxu2 %v11317_v30  ;;  %v11265_v30 = vor.u32 %v12744_v29, %v11264_v39  ;;  %v11354_v39 = vld [vmem:[%s18586_s30 + $0xf8] sm:$0xf0]  ;;  %v11400_v29 = vld [vmem:[%s18586_s30 + $0x148] sm:$0xf] }
 0x4fe   :  { %5918 = vmatpush.bf16.msrb.mxu3 %v11485_v0  ;;  %5830 = vmatpush.bf16.msra.mxu0 %v11297_v16  ;;  %v11249_v16 = vor.u32 %v12740_v5, %v11248_v21  ;;  %v11338_v5 = vld [vmem:[%s18586_s30 + $0xd8] sm:$0xf0] }
 0x4ff   :  { %5844 = vmatpush.bf16.msra.mxu1 %v11409_v28  ;;  %v12797_v28 = vld [vmem:[%s18586_s30 + $0x1f4] sm:$0xf0] }
 0x500   :  { %v11481_v43 = vor.u32 %v12797_v28, %v11480_v6  ;;  %v11432_v6 = vld [vmem:[%s18586_s30 + $0x188] sm:$0xf]  ;;  %v12783_v28 = vld [vmem:[%s18586_s30 + $0x18c] sm:$0xf] }
 0x501   :  { %v11433_v3 = vor.u32 %v12785_v34, %v11432_v6  ;;  %v11437_v0 = vor.u32 %v12783_v28, %v11434_v15  ;;  %v12761_v15 = vld [vmem:[%s18586_s30 + $0xd4] sm:$0xf0] }
 0x502   :  { %5919 = vmatpush.bf16.msrb.mxu3 %v11469_v58  ;;  %5831 = vmatpush.bf16.msra.mxu0 %v11281_v20  ;;  %v11421_v58 = vor.u32 %v12779_v45, %v11418_v18 }
 0x503   :  { %5845 = vmatpush.bf16.msra.mxu1 %v11393_v25  ;;  %v11301_v25 = vor.u32 %v12750_v23, %v11298_v44  ;;  %v12738_v23 = vld [vmem:[%s18586_s30 + $0x24] sm:$0xf]  ;;  %v11250_v44 = vld [vmem:[%s18586_s30 + $0x30] sm:$0xf0] }
 0x505   :  { %5856 = vmatpush.bf16.msra.mxu2 %v11301_v25  ;;  %v11253_v25 = vor.u32 %v12738_v23, %v11250_v44  ;;  %v11384_v23 = vld [vmem:[%s18586_s30 + $0x128] sm:$0xf] }
 0x506   :  { %5920 = vmatpush.bf16.msrb.mxu3 %v11453_v22  ;;  %5832 = vmatpush.bf16.msra.mxu0 %v11265_v30  ;;  %v12763_v22 = vld [vmem:[%s18586_s30 + $0xec] sm:$0xf]  ;;  %v12777_v30 = vld [vmem:[%s18586_s30 + $0x154] sm:$0xf0] }
 0x507   :  { %5846 = vmatpush.bf16.msra.mxu1 %v11377_v62  ;;  %v11282_v62 = vld [vmem:[%s18586_s30 + $0x70] sm:$0xf0]  ;;  %v11401_v34 = vor.u32 %v12777_v30, %v11400_v29  ;;  %v11304_v30 = vld [vmem:[%s18586_s30 + $0x88] sm:$0xf] }
 0x508   :  { %v11285_v33 = vor.u32 %v12746_v60, %v11282_v62  ;;  %v12734_v60 = vld [vmem:[%s18586_s30 + $0x4] sm:$0xf]  ;;  %v11233_v62 = vor.u32 %v12736_v51, %v11232_v2  ;;  %v11320_v2 = vld [vmem:[%s18586_s30 + $0xa8] sm:$0xf]  ;;  %v12757_v51 = vld [vmem:[%s18586_s30 + $0xb4] sm:$0xf0] }
 0x50a   :  { %5857 = vmatpush.bf16.msra.mxu2 %v11285_v33  ;;  %5921 = vmatpush.bf16.msrb.mxu3 %v11437_v0  ;;  %v11234_v33 = vld [vmem:[%s18586_s30 + $0x10] sm:$0xf0] }
 0x50b   :  { %5847 = vmatpush.bf16.msra.mxu1 %v11361_v50  ;;  %v11266_v50 = vld [vmem:[%s18586_s30 + $0x50] sm:$0xf0]  ;;  %5833 = vmatpush.bf16.msra.mxu0 %v11249_v16 }
 0x50c   :  { %v11269_v56 = vor.u32 %v12742_v9, %v11266_v50  ;;  %v11357_v9 = vor.u32 %v12763_v22, %v11354_v39  ;;  %v12775_v50 = vld [vmem:[%s18586_s30 + $0x14c] sm:$0xf]  ;;  %v11370_v39 = vld [vmem:[%s18586_s30 + $0x118] sm:$0xf0] }
 0x50d   :  { %v12767_v22 = vld [vmem:[%s18586_s30 + $0x10c] sm:$0xf] }
 0x50e   :  { %5858 = vmatpush.bf16.msra.mxu2 %v11269_v56  ;;  %5922 = vmatpush.bf16.msrb.mxu3 %v11421_v58  ;;  %v11373_v29 = vor.u32 %v12767_v22, %v11370_v39 }
 0x50f   :  { %5892 = vmatpush.bf16.msrb.mxu1 %v11481_v43  ;;  %5834 = vmatpush.bf16.msra.mxu0 %v11233_v62  ;;  %v11321_v62 = vor.u32 %v12757_v51, %v11320_v2 }
 0x512   :  { %5859 = vmatpush.bf16.msra.mxu2 %v11253_v25  ;;  %v12773_v25 = vld [vmem:[%s18586_s30 + $0x134] sm:$0xf0] }
 0x513   :  { %5893 = vmatpush.bf16.msrb.mxu1 %v11465_v57  ;;  %v11417_v57 = vor.u32 %v12781_v7, %v11416_v11  ;;  %5879 = vmatpush.bf16.msrb.mxu0 %v11353_v53  ;;  %v12771_v11 = vld [vmem:[%s18586_s30 + $0x12c] sm:$0xf]  ;;  %v11386_v7 = vld [vmem:[%s18586_s30 + $0x138] sm:$0xf0]  ;;  %v11385_v18 = vor.u32 %v12773_v25, %v11384_v23 }
 0x517   :  { %5894 = vmatpush.bf16.msrb.mxu1 %v11449_v13  ;;  %v11237_v13 = vor.u32 %v12734_v60, %v11234_v33  ;;  %v12755_v60 = vld [vmem:[%s18586_s30 + $0xac] sm:$0xf]  ;;  %v11368_v33 = vld [vmem:[%s18586_s30 + $0x108] sm:$0xf] }
 0x518   :  { %v11369_v53 = vor.u32 %v12769_v63, %v11368_v33 }
 0x519   :  { %5860 = vmatpush.bf16.msra.mxu2 %v11237_v13 }
 0x51b   :  { %5895 = vmatpush.bf16.msrb.mxu1 %v11433_v3  ;;  %v11336_v3 = vld [vmem:[%s18586_s30 + $0xc8] sm:$0xf] }
 0x51c   :  { %v11337_v21 = vor.u32 %v12761_v15, %v11336_v3 }
 0x51d   :  { %5905 = vmatpush.bf16.msrb.mxu2 %v11357_v9 }
 0x51e   :  { %5880 = vmatpush.bf16.msrb.mxu0 %v11337_v21  ;;  %v12749_v21 = vld [vmem:[%s18586_s30 + $0x74] sm:$0xf0] }
 0x51f   :  { %5896 = vmatpush.bf16.msrb.mxu1 %v11417_v57 }
 0x522   :  { %5881 = vmatpush.bf16.msrb.mxu0 %v11321_v62 }
 0x523   :  { %5897 = vmatpush.bf16.msrb.mxu1 %v11401_v34  ;;  %v11306_v34 = vld [vmem:[%s18586_s30 + $0x98] sm:$0xf0] }
 0x527   :  { %5898 = vmatpush.bf16.msrb.mxu1 %v11385_v18  ;;  %v11272_v18 = vld [vmem:[%s18586_s30 + $0x48] sm:$0xf] }
 0x52b   :  { %5899 = vmatpush.bf16.msrb.mxu1 %v11369_v53  ;;  %v12741_v53 = vld [vmem:[%s18586_s30 + $0x34] sm:$0xf0] }
 0x538   :  { %v16464_v59 = vpop.f32.mrf.mxu1 }
 0x53e   :  { %v16514_v61 = vpop.f32.mrf.mxu3 }
 0x540   :  { %v5072_v49 = vpop.f32.mrf.mxu1 }
 0x546   :  { %v5098_v19 = vpop.f32.mrf.mxu3 }
 0x547   :  { %v11402_v19 = vld [vmem:[%s18586_s30 + $0x158] sm:$0xf0] }
 0x548   :  { %v16576_v43 = vpop.f32.mrf.mxu1  ;;  %v11405_v28 = vor.u32 %v12775_v50, %v11402_v19  ;;  %v12753_v50 = vld [vmem:[%s18586_s30 + $0x94] sm:$0xf0] }
 0x54a   :  { %5923 = vmatpush.bf16.msrb.mxu3 %v11405_v28 }
 0x54c   :  { %v5057_v49 = vpop.f32.mrf.mxu0 }
 0x54d   :  { %v5058_v20 = vadd.f32 %v5057_v49, %v14428_v10  ;;  %v11389_v49 = vor.u32 %v12771_v11, %v11386_v7 }
 0x54e   :  { %v16621_v35 = vpop.f32.mrf.mxu3 }
 0x54f   :  { %v5071_v56 = vadd.f32 %v16464_v59, %v5058_v20  ;;  %v12759_v59 = vld [vmem:[%s18586_s30 + $0xcc] sm:$0xf]  ;;  %5924 = vmatpush.bf16.msrb.mxu3 %v11389_v49  ;;  %v12745_v49 = vld [vmem:[%s18586_s30 + $0x54] sm:$0xf0] }
 0x550   :  { %v5124_v6 = vpop.f32.mrf.mxu1  ;;  %v11341_v44 = vor.u32 %v12759_v59, %v11338_v5  ;;  %v12747_v59 = vld [vmem:[%s18586_s30 + $0x6c] sm:$0xf]  ;;  %v11273_v51 = vor.u32 %v12745_v49, %v11272_v18  ;;  %v11602_v18 = vld [vmem:[#allocation6 + $0xf0] sm:$0xf0] }
 0x551   :  { %v5157_v45 = vmul.f32 0.5, %v5071_v56  ;;  %v11305_v56 = vor.u32 %v12753_v50, %v11304_v30  ;;  %v12751_v6 = vld [vmem:[%s18586_s30 + $0x8c] sm:$0xf] }
 0x552   :  { %v5083_v0 = vpop.f32.mrf.mxu2  ;;  %5906 = vmatpush.bf16.msrb.mxu2 %v11341_v44  ;;  %v11309_v28 = vor.u32 %v12751_v6, %v11306_v34  ;;  %v11240_v34 = vld [vmem:[%s18586_s30 + $0x8] sm:$0xf] }
 0x553   :  { %v5084_v16 = vadd.f32 %v5083_v0, %v14443_v32  ;;  %13086 = vtanh.f32 %v5157_v45  ;;  %5925 = vmatpush.bf16.msrb.mxu3 %v11373_v29  ;;  %5882 = vmatpush.bf16.msrb.mxu0 %v11305_v56  ;;  %v11288_v0 = vld [vmem:[%s18586_s30 + $0x68] sm:$0xf]  ;;  %v11258_v29 = vld [vmem:[%s18586_s30 + $0x38] sm:$0xf0] }
 0x554   :  { %v5059_v57 = vpop.f32.mrf.mxu0  ;;  %v11289_v23 = vor.u32 %v12749_v21, %v11288_v0  ;;  %v11242_v21 = vld [vmem:[%s18586_s30 + $0x18] sm:$0xf0] }
 0x555   :  { %v5097_v58 = vadd.f32 %v16514_v61, %v5084_v16  ;;  %v11322_v61 = vld [vmem:[%s18586_s30 + $0xb8] sm:$0xf0] }
 0x556   :  { %v5150_v20 = vpop.f32.mrf.mxu3  ;;  %v11325_v13 = vor.u32 %v12755_v60, %v11322_v61  ;;  %v11290_v16 = vld [vmem:[%s18586_s30 + $0x78] sm:$0xf0] }
 0x557   :  { %v5152_v1 = vmul.f32 0.5, %v5097_v58  ;;  %v11293_v11 = vor.u32 %v12747_v59, %v11290_v16  ;;  %5883 = vmatpush.bf16.msrb.mxu0 %v11289_v23  ;;  %v12743_v58 = vld [vmem:[%s18586_s30 + $0x4c] sm:$0xf]  ;;  %v11274_v60 = vld [vmem:[%s18586_s30 + $0x58] sm:$0xf0] }
 0x558   :  { %5907 = vmatpush.bf16.msrb.mxu2 %v11325_v13  ;;  %v11277_v61 = vor.u32 %v12743_v58, %v11274_v60  ;;  %v11256_v13 = vld [vmem:[%s18586_s30 + $0x28] sm:$0xf] }
 0x559   :  { %13088 = vtanh.f32 %v5152_v1  ;;  %v5389_v9 = vpop.f32.mrf.mxu1  ;;  %v13087_v5 = vpop.eup %13086  ;;  %v11257_v39 = vor.u32 %v12741_v53, %v11256_v13  ;;  %v12823_v13 = vld [vmem:[#allocation6 + $0xcc] sm:$0xf]  ;;  %v11594_v53 = vld [vmem:[#allocation6 + $0xd8] sm:$0xf0] }
 0x55a   :  { %v5085_v19 = vpop.f32.mrf.mxu2  ;;  %v5420_v20 = vadd.f32 %v5389_v9, %v14100_v47  ;;  %v12739_v47 = vld [vmem:[%s18586_s30 + $0x2c] sm:$0xf] }
 0x55b   :  { %5884 = vmatpush.bf16.msrb.mxu0 %v11273_v51  ;;  %v11261_v50 = vor.u32 %v12739_v47, %v11258_v29  ;;  %v11597_v29 = vor.u32 %v12823_v13, %v11594_v53 }
 0x55c   :  { %v5109_v3 = vpop.f32.mrf.mxu0  ;;  %5908 = vmatpush.bf16.msrb.mxu2 %v11309_v28  ;;  %v5423_v9 = vmul.f32 0.5, %v5420_v20  ;;  %v12737_v28 = vld [vmem:[%s18586_s30 + $0x14] sm:$0xf0] }
 0x55d   :  { %v5110_v15 = vadd.f32 %v5109_v3, %v14541_v46  ;;  %v12735_v3 = vld [vmem:[%s18586_s30 + $0xc] sm:$0xf]  ;;  %v11241_v0 = vor.u32 %v12737_v28, %v11240_v34 }
 0x55e   :  { %v11245_v59 = vor.u32 %v12735_v3, %v11242_v21  ;;  %v11554_v21 = vld [vmem:[#allocation6 + $0x90] sm:$0xf0] }
 0x55f   :  { %v13089_v44 = vpop.eup %13088  ;;  %v5123_v25 = vadd.f32 %v16576_v43, %v5110_v15  ;;  %v5159_v43 = vmul.f32 0.5, %v13087_v5  ;;  %5885 = vmatpush.bf16.msrb.mxu0 %v11257_v39 }
 0x560   :  { %v5154_v7 = vmul.f32 0.5, %v13089_v44  ;;  %v5415_v45 = vpop.f32.mrf.mxu3  ;;  %5909 = vmatpush.bf16.msrb.mxu2 %v11293_v11 }
 0x561   :  { %13090 = vtanh.f32 %v5123_v25  ;;  %v5391_v57 = vpop.f32.mrf.mxu1  ;;  %v5160_v22 = vadd.f32 0.5, %v5159_v43  ;;  %v12827_v43 = vld [vmem:[#allocation6 + $0xec] sm:$0xf] }
 0x562   :  { %v5135_v2 = vpop.f32.mrf.mxu2  ;;  %v5155_v33 = vadd.f32 0.5, %v5154_v7  ;;  %v5422_v7 = vadd.f32 %v5415_v45, %v14133_v37  ;;  %v12826_v57 = vld [vmem:[#allocation6 + $0xe4] sm:$0xf]  ;;  %v11586_v45 = vld [vmem:[#allocation6 + $0xd0] sm:$0xf0] }
 0x563   :  { %v5136_v62 = vadd.f32 %v5135_v2, %v14570_v36  ;;  %5886 = vmatpush.bf16.msrb.mxu0 %v11241_v0  ;;  %v11610_v2 = vld [vmem:[#allocation6 + $0xf8] sm:$0xf0]  ;;  %v12814_v0 = vld [vmem:[#allocation6 + $0x84] sm:$0xf] }
 0x564   :  { %v5111_v63 = vpop.f32.mrf.mxu0  ;;  %5910 = vmatpush.bf16.msrb.mxu2 %v11277_v61  ;;  %v5156_v19 = vmul.f32 %v5155_v33, %v16326_v12  ;;  %v5435_v61 = vmul.f32 0.5, %v5422_v7  ;;  %v11605_v33 = vor.u32 %v12826_v57, %v11602_v18  ;;  %v11538_v7 = vld [vmem:[#allocation6 + $0x70] sm:$0xf0]  ;;  %v12811_v57 = vld [vmem:[#allocation6 + $0x6c] sm:$0xf] }
 0x565   :  { %v5149_v1 = vadd.f32 %v16621_v35, %v5136_v62  ;;  %v11613_v63 = vor.u32 %v12827_v43, %v11610_v2  ;;  %v11546_v18 = vld [vmem:[#allocation6 + $0x78] sm:$0xf0]  ;;  %v11600_v43 = vld [vmem:[#allocation6 + $0xe0] sm:$0xf]  ;;  %v12828_v2 = vld [vmem:[#allocation6 + $0xec] sm:$0xf0] }
 0x566   :  { %v11601_v13 = vor.u32 %v12828_v2, %v11600_v43 }
 0x567   :  { %v13091_v35 = vpop.eup %13090  ;;  %v5164_v30 = vmul.f32 0.5, %v5149_v1  ;;  %v12822_v1 = vld [vmem:[#allocation6 + $0xc4] sm:$0xf] }
 0x568   :  { %v5162_v56 = vmul.f32 %v13091_v35, %v5160_v22  ;;  %v5417_v6 = vpop.f32.mrf.mxu3  ;;  %5911 = vmatpush.bf16.msrb.mxu2 %v11261_v50  ;;  %v12818_v35 = vld [vmem:[#allocation6 + $0xa4] sm:$0xf]  ;;  %v12819_v50 = vld [vmem:[#allocation6 + $0xac] sm:$0xf] }
 0x569   :  { %13092 = vtanh.f32 %v5164_v30 }
 0x56a   :  { %v16755_v15 = vadd.f32 %v5162_v56, %v5156_v19  ;;  %v5137_v12 = vpop.f32.mrf.mxu2  ;;  %13094 = vtanh.f32 %v5423_v9  ;;  %v11570_v9 = vld [vmem:[#allocation6 + $0xb0] sm:$0xf0]  ;;  %v11578_v19 = vld [vmem:[#allocation6 + $0xb8] sm:$0xf0] }
 0x56b   :  { %v11573_v34 = vor.u32 %v12818_v35, %v11570_v9  ;;  %v11581_v12 = vor.u32 %v12819_v50, %v11578_v19  ;;  %v11592_v35 = vld [vmem:[#allocation6 + $0xc8] sm:$0xf]  ;;  %v12825_v9 = vld [vmem:[#allocation6 + $0xd4] sm:$0xf0]  ;;  %v11506_v50 = vld [vmem:[#allocation6 + $0x30] sm:$0xf0] }
 0x56c   :  { %13096 = vtanh.f32 %v16755_v15  ;;  %v5376_v5 = vpop.f32.mrf.mxu0  ;;  %5912 = vmatpush.bf16.msrb.mxu2 %v11245_v59  ;;  %v12815_v59 = vld [vmem:[#allocation6 + $0x8c] sm:$0xf] }
 0x56d   :  { %v5419_v23 = vadd.f32 %v5376_v5, %v14096_v41  ;;  %v11562_v5 = vld [vmem:[#allocation6 + $0x98] sm:$0xf0]  ;;  %v12803_v19 = vld [vmem:[#allocation6 + $0x2c] sm:$0xf] }
 0x56f   :  { %v13093_v16 = vpop.eup %13092  ;;  %v5428_v44 = vmul.f32 0.5, %v5419_v23 }
 0x570   :  { %v5166_v25 = vmul.f32 0.5, %v13093_v16  ;;  %v13095_v11 = vpop.eup %13094 }
 0x571   :  { %13098 = vtanh.f32 %v5428_v44  ;;  %v5425_v62 = vmul.f32 0.5, %v13095_v11  ;;  %v11557_v44 = vor.u32 %v12814_v0, %v11554_v21  ;;  %v12810_v11 = vld [vmem:[#allocation6 + $0x64] sm:$0xf]  ;;  %v11576_v0 = vld [vmem:[#allocation6 + $0xa8] sm:$0xf] }
 0x572   :  { %v13097_v49 = vpop.eup %13096  ;;  %v5167_v58 = vadd.f32 0.5, %v5166_v25  ;;  %v11565_v25 = vor.u32 %v12815_v59, %v11562_v5  ;;  %v12821_v21 = vld [vmem:[#allocation6 + $0xb4] sm:$0xf0]  ;;  %v12798_v59 = vld [vmem:[#allocation6 + $0x4] sm:$0xf] }
 0x573   :  { %v5402_v51 = vpop.f32.mrf.mxu2  ;;  %v5426_v47 = vadd.f32 0.5, %v5425_v62  ;;  %v12806_v62 = vld [vmem:[#allocation6 + $0x44] sm:$0xf]  ;;  %v11490_v5 = vld [vmem:[#allocation6 + $0x10] sm:$0xf0] }
 0x574   :  { %v16763_v60 = vmul.f32 %v13097_v49, %v5167_v58  ;;  %v5421_v20 = vadd.f32 %v5402_v51, %v14128_v26  ;;  %v5378_v41 = vpop.f32.mrf.mxu0  ;;  %v11589_v26 = vor.u32 %v12822_v1, %v11586_v45  ;;  %v11541_v49 = vor.u32 %v12810_v11, %v11538_v7  ;;  %v11608_v51 = vld [vmem:[#allocation6 + $0xe8] sm:$0xf]  ;;  %v11530_v1 = vld [vmem:[#allocation6 + $0x58] sm:$0xf0] }
 0x575   :  { %v5427_v28 = vmul.f32 %v5426_v47, %v16343_v52  ;;  %v11549_v58 = vor.u32 %v12811_v57, %v11546_v18  ;;  %v12829_v41 = vld [vmem:[#allocation6 + $0xf4] sm:$0xf0]  ;;  %v11577_v11 = vor.u32 %v12821_v21, %v11576_v0  ;;  %v11493_v7 = vor.u32 %v12798_v59, %v11490_v5  ;;  %v11552_v57 = vld [vmem:[#allocation6 + $0x80] sm:$0xf]  ;;  %v12816_v18 = vld [vmem:[#allocation6 + $0x8c] sm:$0xf0] }
 0x576   :  { %v5442_v37 = vpack.c.bf16 %v16763_v60, %v16763_v60  ;;  %13100 = vtanh.f32 %v5421_v20  ;;  %v11609_v53 = vor.u32 %v12829_v41, %v11608_v51  ;;  %v11553_v43 = vor.u32 %v12816_v18, %v11552_v57  ;;  %v11536_v51 = vld [vmem:[#allocation6 + $0x60] sm:$0xf]  ;;  %v11544_v41 = vld [vmem:[#allocation6 + $0x68] sm:$0xf]  ;;  %v11858_v21 = vld [vmem:[%s18586_s30 + $0x1f0] sm:$0xf0] }
 0x577   :  { %v13099_v22 = vpop.eup %13098  ;;  %13102 = vtanh.f32 %v5435_v61  ;;  %v12888_v5 = vld [vmem:[%s18586_s30 + $0x1cc] sm:$0xf0]  ;;  %v12882_v57 = vld [vmem:[%s18586_s30 + $0x1a4] sm:$0xf] }
 0x578   :  { %v5430_v39 = vmul.f32 0.5, %v13099_v22  ;;  %5848 = vmatmul.bf16.vlgmr.msra.gmra.mxu1 %v5442_v37  ;;  %5874 = vmatmul.bf16.vlgmr.msra.gmra.mxu3 %v5442_v37  ;;  %v11584_v22 = vld [vmem:[#allocation6 + $0xc0] sm:$0xf] }
 0x579   :  { %6159 = vmatpush.bf16.msra.mxu1 %v11605_v33  ;;  %6185 = vmatpush.bf16.msra.mxu3 %v11613_v63  ;;  %v11522_v33 = vld [vmem:[#allocation6 + $0x50] sm:$0xf0]  ;;  %v12807_v63 = vld [vmem:[#allocation6 + $0x4c] sm:$0xf] }
 0x57a   :  { %v5431_v30 = vadd.f32 0.5, %v5430_v39  ;;  %v12824_v39 = vld [vmem:[#allocation6 + $0xcc] sm:$0xf0] }
 0x57b   :  { %v5404_v56 = vpop.f32.mrf.mxu2 }
 0x57c   :  { %v13101_v6 = vpop.eup %13100  ;;  %v11514_v56 = vld [vmem:[#allocation6 + $0x38] sm:$0xf0] }
 0x57d   :  { %v5433_v3 = vmul.f32 %v13101_v6, %v5431_v30  ;;  %6160 = vmatpush.bf16.msra.mxu1 %v11589_v26  ;;  %6186 = vmatpush.bf16.msra.mxu3 %v11597_v29  ;;  %v13103_v23 = vpop.eup %13102  ;;  %v11525_v26 = vor.u32 %v12806_v62, %v11522_v33  ;;  %v11533_v29 = vor.u32 %v12807_v63, %v11530_v1  ;;  %v12802_v30 = vld [vmem:[#allocation6 + $0x24] sm:$0xf]  ;;  %v12813_v62 = vld [vmem:[#allocation6 + $0x74] sm:$0xf0]  ;;  %v11520_v63 = vld [vmem:[#allocation6 + $0x40] sm:$0xf] }
 0x57e   :  { %v5437_v52 = vmul.f32 0.5, %v13103_v23  ;;  %v11593_v6 = vor.u32 %v12825_v9, %v11592_v35  ;;  %v12799_v23 = vld [vmem:[#allocation6 + $0xc] sm:$0xf]  ;;  %v11545_v33 = vor.u32 %v12813_v62, %v11544_v41  ;;  %v12808_v1 = vld [vmem:[#allocation6 + $0x4c] sm:$0xf0] }
 0x57f   :  { %v16769_v16 = vadd.f32 %v5433_v3, %v5427_v28  ;;  %v12820_v28 = vld [vmem:[#allocation6 + $0xac] sm:$0xf0]  ;;  %v11509_v3 = vor.u32 %v12802_v30, %v11506_v50  ;;  %v12805_v35 = vld [vmem:[#allocation6 + $0x34] sm:$0xf0]  ;;  %v11488_v50 = vld [vmem:[#allocation6] sm:$0xf] }
 0x580   :  { %v5438_v20 = vadd.f32 0.5, %v5437_v52  ;;  %v11810_v41 = vld [vmem:[%s18586_s30 + $0x190] sm:$0xf0] }
 0x581   :  { %13104 = vtanh.f32 %v16769_v16  ;;  %6161 = vmatpush.bf16.msra.mxu1 %v11573_v34  ;;  %6187 = vmatpush.bf16.msra.mxu3 %v11581_v12  ;;  %v11568_v34 = vld [vmem:[#allocation6 + $0xa0] sm:$0xf]  ;;  %v11517_v12 = vor.u32 %v12803_v19, %v11514_v56  ;;  %v12800_v19 = vld [vmem:[#allocation6 + $0xc] sm:$0xf0]  ;;  %v11496_v56 = vld [vmem:[#allocation6 + $0x8] sm:$0xf] }
 0x585   :  { %6162 = vmatpush.bf16.msra.mxu1 %v11557_v44  ;;  %6188 = vmatpush.bf16.msra.mxu3 %v11565_v25  ;;  %v11498_v44 = vld [vmem:[#allocation6 + $0x18] sm:$0xf0]  ;;  %v11569_v25 = vor.u32 %v12820_v28, %v11568_v34  ;;  %v11856_v28 = vld [vmem:[%s18586_s30 + $0x1e0] sm:$0xf] }
 0x586   :  { %v11501_v52 = vor.u32 %v12799_v23, %v11498_v44  ;;  %v12886_v23 = vld [vmem:[%s18586_s30 + $0x1c4] sm:$0xf] }
 0x587   :  { %v13105_v61 = vpop.eup %13104 }
 0x588   :  { %v5440_v45 = vmul.f32 %v13105_v61, %v5438_v20  ;;  %5900 = vmatmul.bf16.vlgmr.msrb.gmra.mxu1 %v5442_v37  ;;  %5926 = vmatmul.bf16.vlgmr.msrb.gmra.mxu3 %v5442_v37  ;;  %v11585_v37 = vor.u32 %v12824_v39, %v11584_v22  ;;  %v12812_v20 = vld [vmem:[#allocation6 + $0x6c] sm:$0xf0]  ;;  %v11504_v39 = vld [vmem:[#allocation6 + $0x20] sm:$0xf] }
 0x589   :  { %6163 = vmatpush.bf16.msra.mxu1 %v11541_v49  ;;  %6189 = vmatpush.bf16.msra.mxu3 %v11549_v58  ;;  %v11560_v49 = vld [vmem:[#allocation6 + $0x88] sm:$0xf]  ;;  %v12817_v58 = vld [vmem:[#allocation6 + $0x94] sm:$0xf0]  ;;  %v11537_v61 = vor.u32 %v12812_v20, %v11536_v51  ;;  %v12878_v51 = vld [vmem:[%s18586_s30 + $0x184] sm:$0xf] }
 0x58a   :  { %v16772_v47 = vpack.c.bf16 %v5440_v45, %v5440_v45  ;;  %v11561_v2 = vor.u32 %v12817_v58, %v11560_v49  ;;  %v11528_v45 = vld [vmem:[#allocation6 + $0x48] sm:$0xf]  ;;  %v11826_v49 = vld [vmem:[%s18586_s30 + $0x1b0] sm:$0xf0]  ;;  %v11813_v62 = vor.u32 %v12878_v51, %v11810_v41  ;;  %v12862_v51 = vld [vmem:[%s18586_s30 + $0x104] sm:$0xf] }
 0x58b   :  { %v11829_v58 = vor.u32 %v12882_v57, %v11826_v49  ;;  %v11744_v49 = vld [vmem:[%s18586_s30 + $0x100] sm:$0xf]  ;;  %v11864_v41 = vld [vmem:[%s18586_s30 + $0x1e8] sm:$0xf] }
 0x58c   :  { %5835 = vmatmul.bf16.vlgmr.msra.gmra.mxu0 %v16772_v47  ;;  %5861 = vmatmul.bf16.vlgmr.msra.gmra.mxu2 %v16772_v47 }
 0x58d   :  { %6146 = vmatpush.bf16.msra.mxu0 %v11601_v13  ;;  %6172 = vmatpush.bf16.msra.mxu2 %v11609_v53  ;;  %v12809_v13 = vld [vmem:[#allocation6 + $0x54] sm:$0xf0]  ;;  %v11521_v53 = vor.u32 %v12808_v1, %v11520_v63  ;;  %v12874_v63 = vld [vmem:[%s18586_s30 + $0x164] sm:$0xf] }
 0x58e   :  { %6164 = vmatpush.bf16.msra.mxu1 %v11525_v26  ;;  %6190 = vmatpush.bf16.msra.mxu3 %v11533_v29  ;;  %v11529_v22 = vor.u32 %v12809_v13, %v11528_v45  ;;  %v12804_v26 = vld [vmem:[#allocation6 + $0x2c] sm:$0xf0]  ;;  %v11512_v29 = vld [vmem:[#allocation6 + $0x28] sm:$0xf]  ;;  %v11794_v45 = vld [vmem:[%s18586_s30 + $0x170] sm:$0xf0] }
 0x58f   :  { %v11505_v9 = vor.u32 %v12804_v26, %v11504_v39  ;;  %v11513_v30 = vor.u32 %v12805_v35, %v11512_v29  ;;  %v11797_v13 = vor.u32 %v12874_v63, %v11794_v45  ;;  %v12858_v39 = vld [vmem:[%s18586_s30 + $0xe4] sm:$0xf]  ;;  %v11730_v29 = vld [vmem:[%s18586_s30 + $0xf0] sm:$0xf0]  ;;  %v11776_v35 = vld [vmem:[%s18586_s30 + $0x140] sm:$0xf] }
 0x590   :  { %v11866_v63 = vld [vmem:[%s18586_s30 + $0x1f8] sm:$0xf0] }
 0x591   :  { %6147 = vmatpush.bf16.msra.mxu0 %v11585_v37  ;;  %6173 = vmatpush.bf16.msra.mxu2 %v11593_v6  ;;  %v12801_v37 = vld [vmem:[#allocation6 + $0x14] sm:$0xf0]  ;;  %v11489_v6 = vor.u32 %v12800_v19, %v11488_v50  ;;  %v12870_v19 = vld [vmem:[%s18586_s30 + $0x144] sm:$0xf] }
 0x592   :  { %6165 = vmatpush.bf16.msra.mxu1 %v11509_v3  ;;  %6191 = vmatpush.bf16.msra.mxu3 %v11517_v12  ;;  %v11497_v34 = vor.u32 %v12801_v37, %v11496_v56  ;;  %v12892_v3 = vld [vmem:[%s18586_s30 + $0x1ec] sm:$0xf0]  ;;  %v12890_v12 = vld [vmem:[%s18586_s30 + $0x1e4] sm:$0xf]  ;;  %v11778_v56 = vld [vmem:[%s18586_s30 + $0x150] sm:$0xf0] }
 0x593   :  { %v11857_v0 = vor.u32 %v12892_v3, %v11856_v28  ;;  %v11861_v59 = vor.u32 %v12890_v12, %v11858_v21  ;;  %v11781_v37 = vor.u32 %v12870_v19, %v11778_v56  ;;  %v12854_v28 = vld [vmem:[%s18586_s30 + $0xc4] sm:$0xf]  ;;  %v11714_v12 = vld [vmem:[%s18586_s30 + $0xd0] sm:$0xf0]  ;;  %v12868_v21 = vld [vmem:[%s18586_s30 + $0x12c] sm:$0xf0] }
 0x594   :  { %v11850_v56 = vld [vmem:[%s18586_s30 + $0x1d8] sm:$0xf0] }
 0x595   :  { %6148 = vmatpush.bf16.msra.mxu0 %v11569_v25  ;;  %6174 = vmatpush.bf16.msra.mxu2 %v11577_v11  ;;  %v11842_v25 = vld [vmem:[%s18586_s30 + $0x1d0] sm:$0xf0] }
 0x596   :  { %6166 = vmatpush.bf16.msra.mxu1 %v11493_v7  ;;  %6192 = vmatpush.bf16.msra.mxu3 %v11501_v52  ;;  %v11845_v11 = vor.u32 %v12886_v23, %v11842_v25  ;;  %v11824_v7 = vld [vmem:[%s18586_s30 + $0x1a0] sm:$0xf]  ;;  %v12884_v52 = vld [vmem:[%s18586_s30 + $0x1ac] sm:$0xf0]  ;;  %v11762_v23 = vld [vmem:[%s18586_s30 + $0x130] sm:$0xf0] }
 0x597   :  { %v11825_v18 = vor.u32 %v12884_v52, %v11824_v7  ;;  %v12852_v7 = vld [vmem:[%s18586_s30 + $0xac] sm:$0xf0]  ;;  %v12850_v52 = vld [vmem:[%s18586_s30 + $0xa4] sm:$0xf] }
 0x599   :  { %6149 = vmatpush.bf16.msra.mxu0 %v11553_v43  ;;  %6167 = vmatmul.bf16.vlgmr.msra.gmra.mxu1 %v16772_v47  ;;  %v11808_v43 = vld [vmem:[%s18586_s30 + $0x180] sm:$0xf] }
 0x59a   :  { %6175 = vmatpush.bf16.msra.mxu2 %v11561_v2  ;;  %6193 = vmatmul.bf16.vlgmr.msra.gmra.mxu3 %v16772_v47  ;;  %v12880_v2 = vld [vmem:[%s18586_s30 + $0x18c] sm:$0xf0] }
 0x59b   :  { %6619 = vmatpush.bf16.msrb.mxu1 %v11857_v0  ;;  %6645 = vmatpush.bf16.msrb.mxu3 %v11861_v59  ;;  %v11809_v20 = vor.u32 %v12880_v2, %v11808_v43  ;;  %v11760_v0 = vld [vmem:[%s18586_s30 + $0x120] sm:$0xf]  ;;  %v11717_v59 = vor.u32 %v12854_v28, %v11714_v12  ;;  %v12844_v28 = vld [vmem:[%s18586_s30 + $0x6c] sm:$0xf0] }
 0x59c   :  { %5887 = vmatmul.bf16.vlgmr.msrb.gmra.mxu0 %v16772_v47  ;;  %5913 = vmatmul.bf16.vlgmr.msrb.gmra.mxu2 %v16772_v47 }
 0x59d   :  { %6150 = vmatpush.bf16.msra.mxu0 %v11537_v61  ;;  %v11792_v61 = vld [vmem:[%s18586_s30 + $0x160] sm:$0xf] }
 0x59e   :  { %6176 = vmatpush.bf16.msra.mxu2 %v11545_v33  ;;  %v12876_v33 = vld [vmem:[%s18586_s30 + $0x16c] sm:$0xf0] }
 0x59f   :  { %6646 = vmatpush.bf16.msrb.mxu3 %v11845_v11  ;;  %v11793_v1 = vor.u32 %v12876_v33, %v11792_v61  ;;  %v11696_v11 = vld [vmem:[%s18586_s30 + $0xa0] sm:$0xf]  ;;  %v12893_v61 = vld [vmem:[%s18586_s30 + $0x1f4] sm:$0xf0]  ;;  %v12891_v33 = vld [vmem:[%s18586_s30 + $0x1ec] sm:$0xf] }
 0x5a0   :  { %v11697_v57 = vor.u32 %v12852_v7, %v11696_v11  ;;  %v11869_v45 = vor.u32 %v12891_v33, %v11866_v63  ;;  %v11648_v7 = vld [vmem:[%s18586_s30 + $0x40] sm:$0xf] }
 0x5a1   :  { %6151 = vmatpush.bf16.msra.mxu0 %v11521_v53  ;;  %v11728_v53 = vld [vmem:[%s18586_s30 + $0xe0] sm:$0xf] }
 0x5a2   :  { %6177 = vmatpush.bf16.msra.mxu2 %v11529_v22  ;;  %v12860_v22 = vld [vmem:[%s18586_s30 + $0xec] sm:$0xf0]  ;;  %v11632_v63 = vld [vmem:[%s18586_s30 + $0x20] sm:$0xf] }
 0x5a3   :  { %6647 = vmatpush.bf16.msrb.mxu3 %v11829_v58  ;;  %v11729_v26 = vor.u32 %v12860_v22, %v11728_v53  ;;  %v12864_v58 = vld [vmem:[%s18586_s30 + $0x10c] sm:$0xf0]  ;;  %v12846_v22 = vld [vmem:[%s18586_s30 + $0x84] sm:$0xf] }
 0x5a4   :  { %v11745_v2 = vor.u32 %v12864_v58, %v11744_v49  ;;  %v12848_v53 = vld [vmem:[%s18586_s30 + $0x8c] sm:$0xf0]  ;;  %v11650_v49 = vld [vmem:[%s18586_s30 + $0x50] sm:$0xf0] }
 0x5a5   :  { %6152 = vmatpush.bf16.msra.mxu0 %v11505_v9  ;;  %v12872_v9 = vld [vmem:[%s18586_s30 + $0x14c] sm:$0xf0] }
 0x5a6   :  { %6178 = vmatpush.bf16.msra.mxu2 %v11513_v30  ;;  %v11733_v30 = vor.u32 %v12858_v39, %v11730_v29  ;;  %v11777_v50 = vor.u32 %v12872_v9, %v11776_v35  ;;  %v11848_v9 = vld [vmem:[%s18586_s30 + $0x1c8] sm:$0xf] }
 0x5a7   :  { %6648 = vmatpush.bf16.msrb.mxu3 %v11813_v62 }
 0x5a9   :  { %6153 = vmatpush.bf16.msra.mxu0 %v11489_v6  ;;  %v11712_v6 = vld [vmem:[%s18586_s30 + $0xc0] sm:$0xf] }
 0x5aa   :  { %6179 = vmatpush.bf16.msra.mxu2 %v11497_v34  ;;  %v12856_v34 = vld [vmem:[%s18586_s30 + $0xcc] sm:$0xf0] }
 0x5ab   :  { %6649 = vmatpush.bf16.msrb.mxu3 %v11797_v13  ;;  %v11713_v3 = vor.u32 %v12856_v34, %v11712_v6  ;;  %v11680_v13 = vld [vmem:[%s18586_s30 + $0x80] sm:$0xf] }
 0x5ac   :  { %6154 = vmatmul.bf16.vlgmr.msra.gmra.mxu0 %v16772_v47  ;;  %v11681_v39 = vor.u32 %v12848_v53, %v11680_v13  ;;  %v11664_v34 = vld [vmem:[%s18586_s30 + $0x60] sm:$0xf]  ;;  %v11634_v53 = vld [vmem:[%s18586_s30 + $0x30] sm:$0xf0] }
 0x5ad   :  { %6180 = vmatmul.bf16.vlgmr.msra.gmra.mxu2 %v16772_v47  ;;  %v11840_v47 = vld [vmem:[%s18586_s30 + $0x1c0] sm:$0xf]  ;;  %6606 = vmatpush.bf16.msrb.mxu0 %v11729_v26  ;;  %v11682_v26 = vld [vmem:[%s18586_s30 + $0x90] sm:$0xf0]  ;;  %v11665_v12 = vor.u32 %v12844_v28, %v11664_v34 }
 0x5ae   :  { %v11841_v44 = vor.u32 %v12888_v5, %v11840_v47  ;;  %6632 = vmatpush.bf16.msrb.mxu2 %v11733_v30  ;;  %v11761_v47 = vor.u32 %v12868_v21, %v11760_v0  ;;  %v12866_v5 = vld [vmem:[%s18586_s30 + $0x124] sm:$0xf]  ;;  %v11685_v35 = vor.u32 %v12846_v22, %v11682_v26  ;;  %v12889_v30 = vld [vmem:[%s18586_s30 + $0x1d4] sm:$0xf0]  ;;  %v11666_v0 = vld [vmem:[%s18586_s30 + $0x70] sm:$0xf0] }
 0x5af   :  { %6650 = vmatpush.bf16.msrb.mxu3 %v11781_v37  ;;  %v11849_v19 = vor.u32 %v12889_v30, %v11848_v9  ;;  %v12877_v26 = vld [vmem:[%s18586_s30 + $0x174] sm:$0xf0]  ;;  %v11802_v30 = vld [vmem:[%s18586_s30 + $0x178] sm:$0xf0] }
 0x5b0   :  { %6620 = vmatpush.bf16.msrb.mxu1 %v11841_v44  ;;  %v11765_v44 = vor.u32 %v12866_v5, %v11762_v23  ;;  %v12883_v5 = vld [vmem:[%s18586_s30 + $0x1ac] sm:$0xf] }
 0x5b1   :  { %6607 = vmatpush.bf16.msrb.mxu0 %v11713_v3  ;;  %v12842_v3 = vld [vmem:[%s18586_s30 + $0x64] sm:$0xf] }
 0x5b2   :  { %6633 = vmatpush.bf16.msrb.mxu2 %v11717_v59  ;;  %v11669_v21 = vor.u32 %v12842_v3, %v11666_v0  ;;  %v11832_v59 = vld [vmem:[%s18586_s30 + $0x1a8] sm:$0xf]  ;;  %v11618_v3 = vld [vmem:[%s18586_s30 + $0x10] sm:$0xf0]  ;;  %v12861_v0 = vld [vmem:[%s18586_s30 + $0xf4] sm:$0xf0] }
 0x5b3   :  { %6651 = vmatpush.bf16.msrb.mxu3 %v11765_v44  ;;  %v11834_v44 = vld [vmem:[%s18586_s30 + $0x1b8] sm:$0xf0] }
 0x5b4   :  { %6621 = vmatpush.bf16.msrb.mxu1 %v11825_v18  ;;  %v11698_v18 = vld [vmem:[%s18586_s30 + $0xb0] sm:$0xf0]  ;;  %v11837_v11 = vor.u32 %v12883_v5, %v11834_v44  ;;  %v12859_v5 = vld [vmem:[%s18586_s30 + $0xec] sm:$0xf]  ;;  %v11784_v44 = vld [vmem:[%s18586_s30 + $0x148] sm:$0xf] }
 0x5b5   :  { %v11701_v43 = vor.u32 %v12850_v52, %v11698_v18  ;;  %6608 = vmatpush.bf16.msrb.mxu0 %v11697_v57  ;;  %v12840_v52 = vld [vmem:[%s18586_s30 + $0x4c] sm:$0xf0]  ;;  %v12838_v57 = vld [vmem:[%s18586_s30 + $0x44] sm:$0xf] }
 0x5b6   :  { %v11649_v18 = vor.u32 %v12840_v52, %v11648_v7  ;;  %v12873_v7 = vld [vmem:[%s18586_s30 + $0x154] sm:$0xf0]  ;;  %v12871_v52 = vld [vmem:[%s18586_s30 + $0x14c] sm:$0xf] }
 0x5b7   :  { %6634 = vmatpush.bf16.msrb.mxu2 %v11701_v43  ;;  %v11653_v43 = vor.u32 %v12838_v57, %v11650_v49  ;;  %v11786_v57 = vld [vmem:[%s18586_s30 + $0x158] sm:$0xf0] }
 0x5b8   :  { %6622 = vmatpush.bf16.msrb.mxu1 %v11809_v20  ;;  %v11746_v20 = vld [vmem:[%s18586_s30 + $0x110] sm:$0xf0] }
 0x5b9   :  { %v11749_v62 = vor.u32 %v12862_v51, %v11746_v20  ;;  %6609 = vmatpush.bf16.msrb.mxu0 %v11681_v39  ;;  %v12881_v51 = vld [vmem:[%s18586_s30 + $0x194] sm:$0xf0]  ;;  %v12879_v20 = vld [vmem:[%s18586_s30 + $0x18c] sm:$0xf]  ;;  %v11800_v39 = vld [vmem:[%s18586_s30 + $0x168] sm:$0xf] }
 0x5ba   :  { %v11801_v9 = vor.u32 %v12877_v26, %v11800_v39 }
 0x5bb   :  { %6652 = vmatpush.bf16.msrb.mxu3 %v11749_v62  ;;  %6635 = vmatpush.bf16.msrb.mxu2 %v11685_v35  ;;  %v11818_v62 = vld [vmem:[%s18586_s30 + $0x198] sm:$0xf0]  ;;  %v12875_v35 = vld [vmem:[%s18586_s30 + $0x16c] sm:$0xf] }
 0x5bc   :  { %6623 = vmatpush.bf16.msrb.mxu1 %v11793_v1  ;;  %v11865_v1 = vor.u32 %v12893_v61, %v11864_v41  ;;  %v11821_v33 = vor.u32 %v12879_v20, %v11818_v62  ;;  %v11722_v62 = vld [vmem:[%s18586_s30 + $0xd8] sm:$0xf0] }
 0x5bd   :  { %6610 = vmatpush.bf16.msrb.mxu0 %v11665_v12  ;;  %v11736_v12 = vld [vmem:[%s18586_s30 + $0xe8] sm:$0xf] }
 0x5bf   :  { %6697 = vmatpush.bf16.msra.mxu3 %v11869_v45  ;;  %6636 = vmatpush.bf16.msrb.mxu2 %v11669_v21  ;;  %v12834_v45 = vld [vmem:[%s18586_s30 + $0x24] sm:$0xf] }
 0x5c0   :  { %6624 = vmatpush.bf16.msrb.mxu1 %v11777_v50  ;;  %v12887_v50 = vld [vmem:[%s18586_s30 + $0x1cc] sm:$0xf]  ;;  %v11637_v22 = vor.u32 %v12834_v45, %v11634_v53  ;;  %v12869_v45 = vld [vmem:[%s18586_s30 + $0x134] sm:$0xf0]  ;;  %v11770_v53 = vld [vmem:[%s18586_s30 + $0x138] sm:$0xf0] }
 0x5c1   :  { %v11853_v6 = vor.u32 %v12887_v50, %v11850_v56  ;;  %6611 = vmatpush.bf16.msrb.mxu0 %v11649_v18  ;;  %v11616_v56 = vld [vmem:[%s18586_s30] sm:$0xf] }
 0x5c3   :  { %6698 = vmatpush.bf16.msra.mxu3 %v11853_v6  ;;  %6637 = vmatpush.bf16.msrb.mxu2 %v11653_v43  ;;  %v12830_v6 = vld [vmem:[%s18586_s30 + $0x4] sm:$0xf]  ;;  %v11789_v43 = vor.u32 %v12871_v52, %v11786_v57  ;;  %v12847_v52 = vld [vmem:[%s18586_s30 + $0x8c] sm:$0xf]  ;;  %v11690_v57 = vld [vmem:[%s18586_s30 + $0x98] sm:$0xf0] }
 0x5c4   :  { %6625 = vmatpush.bf16.msrb.mxu1 %v11761_v47  ;;  %v12885_v47 = vld [vmem:[%s18586_s30 + $0x1b4] sm:$0xf0] }
 0x5c5   :  { %v11833_v23 = vor.u32 %v12885_v47, %v11832_v59  ;;  %v11621_v59 = vor.u32 %v12830_v6, %v11618_v3  ;;  %v11737_v47 = vor.u32 %v12861_v0, %v11736_v12  ;;  %v11752_v6 = vld [vmem:[%s18586_s30 + $0x108] sm:$0xf]  ;;  %v12863_v0 = vld [vmem:[%s18586_s30 + $0x10c] sm:$0xf] }
 0x5c7   :  { %6699 = vmatpush.bf16.msra.mxu3 %v11837_v11  ;;  %6638 = vmatpush.bf16.msrb.mxu2 %v11637_v22 }
 0x5c8   :  { %6626 = vmatpush.bf16.msrb.mxu1 %v11745_v2  ;;  %v11816_v2 = vld [vmem:[%s18586_s30 + $0x188] sm:$0xf] }
 0x5c9   :  { %v11817_v41 = vor.u32 %v12881_v51, %v11816_v2  ;;  %v11720_v2 = vld [vmem:[%s18586_s30 + $0xc8] sm:$0xf]  ;;  %v12857_v51 = vld [vmem:[%s18586_s30 + $0xd4] sm:$0xf0] }
 0x5cb   :  { %6700 = vmatpush.bf16.msra.mxu3 %v11821_v33  ;;  %6639 = vmatpush.bf16.msrb.mxu2 %v11621_v59  ;;  %v11768_v33 = vld [vmem:[%s18586_s30 + $0x128] sm:$0xf]  ;;  %v11754_v59 = vld [vmem:[%s18586_s30 + $0x118] sm:$0xf0] }
 0x5cc   :  { %6671 = vmatpush.bf16.msra.mxu1 %v11865_v1  ;;  %v12836_v1 = vld [vmem:[%s18586_s30 + $0x2c] sm:$0xf0]  ;;  %v11769_v26 = vor.u32 %v12869_v45, %v11768_v33 }
 0x5cd   :  { %v11633_v13 = vor.u32 %v12836_v1, %v11632_v63 }
 0x5cf   :  { %6612 = vmatpush.bf16.msrb.mxu0 %v11633_v13  ;;  %v12867_v13 = vld [vmem:[%s18586_s30 + $0x12c] sm:$0xf] }
 0x5d0   :  { %6672 = vmatpush.bf16.msra.mxu1 %v11849_v19  ;;  %v11805_v19 = vor.u32 %v12875_v35, %v11802_v30  ;;  %v11773_v35 = vor.u32 %v12867_v13, %v11770_v53  ;;  %v11704_v30 = vld [vmem:[%s18586_s30 + $0xa8] sm:$0xf]  ;;  %v390_v13 = vadd.f32 %v14135_v38, %v13884_v48  ;;  %v11658_v48 = vld [vmem:[%s18586_s30 + $0x58] sm:$0xf0] }
 0x5d2   :  { %6701 = vmatpush.bf16.msra.mxu3 %v11805_v19  ;;  %v12851_v19 = vld [vmem:[%s18586_s30 + $0xac] sm:$0xf] }
 0x5d4   :  { %6673 = vmatpush.bf16.msra.mxu1 %v11833_v23  ;;  %v11738_v23 = vld [vmem:[%s18586_s30 + $0xf8] sm:$0xf0] }
 0x5d5   :  { %v11741_v11 = vor.u32 %v12859_v5, %v11738_v23  ;;  %v11688_v23 = vld [vmem:[%s18586_s30 + $0x88] sm:$0xf] }
 0x5d6   :  { %6702 = vmatpush.bf16.msra.mxu3 %v11789_v43  ;;  %v11672_v43 = vld [vmem:[%s18586_s30 + $0x68] sm:$0xf] }
 0x5d7   :  { %6684 = vmatpush.bf16.msra.mxu2 %v11741_v11 }
 0x5d8   :  { %6674 = vmatpush.bf16.msra.mxu1 %v11817_v41  ;;  %v11721_v41 = vor.u32 %v12857_v51, %v11720_v2  ;;  %v12845_v2 = vld [vmem:[%s18586_s30 + $0x74] sm:$0xf0]  ;;  %v12843_v51 = vld [vmem:[%s18586_s30 + $0x6c] sm:$0xf] }
 0x5da   :  { %6703 = vmatpush.bf16.msra.mxu3 %v11773_v35 }
 0x5dc   :  { %6675 = vmatpush.bf16.msra.mxu1 %v11801_v9 }
 0x5f5   :  { %v16890_v25 = vpop.f32.mrf.mxu1 }
 0x5fb   :  { %v16940_v29 = vpop.f32.mrf.mxu3 }
 0x5fd   :  { %v5851_v37 = vpop.f32.mrf.mxu1 }
 0x5fe   :  { %v12832_v37 = vld [vmem:[%s18586_s30 + $0xc] sm:$0xf0] }
 0x5ff   :  { %v11617_v28 = vor.u32 %v12832_v37, %v11616_v56 }
 0x601   :  { %6613 = vmatpush.bf16.msrb.mxu0 %v11617_v28 }
 0x603   :  { %v5877_v58 = vpop.f32.mrf.mxu3 }
 0x604   :  { %v11785_v58 = vor.u32 %v12873_v7, %v11784_v44  ;;  %v12849_v44 = vld [vmem:[%s18586_s30 + $0x94] sm:$0xf0] }
 0x605   :  { %v17002_v61 = vpop.f32.mrf.mxu1  ;;  %6658 = vmatpush.bf16.msra.mxu0 %v11737_v47  ;;  %v11757_v47 = vor.u32 %v12863_v0, %v11754_v59  ;;  %v11689_v7 = vor.u32 %v12849_v44, %v11688_v23 }
 0x606   :  { %6676 = vmatpush.bf16.msra.mxu1 %v11785_v58 }
 0x607   :  { %6704 = vmatpush.bf16.msra.mxu3 %v11757_v47 }
 0x609   :  { %v5836_v50 = vpop.f32.mrf.mxu0  ;;  %6659 = vmatpush.bf16.msra.mxu0 %v11721_v41  ;;  %v11673_v41 = vor.u32 %v12845_v2, %v11672_v43 }
 0x60a   :  { %v5837_v34 = vadd.f32 %v5836_v50, %v14428_v10  ;;  %v12853_v50 = vld [vmem:[%s18586_s30 + $0xb4] sm:$0xf0]  ;;  %6677 = vmatpush.bf16.msra.mxu1 %v11769_v26 }
 0x60b   :  { %v17047_v21 = vpop.f32.mrf.mxu3  ;;  %v11705_v37 = vor.u32 %v12853_v50, %v11704_v30 }
 0x60c   :  { %v5850_v18 = vadd.f32 %v16890_v25, %v5837_v34  ;;  %v12855_v25 = vld [vmem:[%s18586_s30 + $0xcc] sm:$0xf]  ;;  %v12865_v34 = vld [vmem:[%s18586_s30 + $0x114] sm:$0xf0] }
 0x60d   :  { %v5903_v49 = vpop.f32.mrf.mxu1  ;;  %v11725_v1 = vor.u32 %v12855_v25, %v11722_v62  ;;  %v11753_v12 = vor.u32 %v12865_v34, %v11752_v6  ;;  %6660 = vmatpush.bf16.msra.mxu0 %v11705_v37  ;;  %v11674_v25 = vld [vmem:[%s18586_s30 + $0x78] sm:$0xf0]  ;;  %v12837_v6 = vld [vmem:[%s18586_s30 + $0x34] sm:$0xf0] }
 0x60e   :  { %v5936_v22 = vmul.f32 0.5, %v5850_v18  ;;  %v11693_v18 = vor.u32 %v12847_v52, %v11690_v57  ;;  %v12831_v52 = vld [vmem:[%s18586_s30 + $0xc] sm:$0xf] }
 0x60f   :  { %v5862_v20 = vpop.f32.mrf.mxu2  ;;  %6685 = vmatpush.bf16.msra.mxu2 %v11725_v1  ;;  %6678 = vmatpush.bf16.msra.mxu1 %v11753_v12  ;;  %v11642_v12 = vld [vmem:[%s18586_s30 + $0x38] sm:$0xf0] }
 0x610   :  { %v5863_v63 = vadd.f32 %v5862_v20, %v14443_v32  ;;  %13106 = vtanh.f32 %v5936_v22  ;;  %v11656_v22 = vld [vmem:[%s18586_s30 + $0x48] sm:$0xf] }
 0x611   :  { %v5838_v39 = vpop.f32.mrf.mxu0  ;;  %6661 = vmatpush.bf16.msra.mxu0 %v11689_v7  ;;  %v12833_v7 = vld [vmem:[%s18586_s30 + $0x14] sm:$0xf0] }
 0x612   :  { %v5876_v9 = vadd.f32 %v16940_v29, %v5863_v63  ;;  %v11706_v29 = vld [vmem:[%s18586_s30 + $0xb8] sm:$0xf0]  ;;  %v11677_v63 = vor.u32 %v12843_v51, %v11674_v25  ;;  %v12841_v39 = vld [vmem:[%s18586_s30 + $0x54] sm:$0xf0] }
 0x613   :  { %v5929_v56 = vpop.f32.mrf.mxu3  ;;  %v11709_v3 = vor.u32 %v12851_v19, %v11706_v29  ;;  %v11640_v29 = vld [vmem:[%s18586_s30 + $0x28] sm:$0xf] }
 0x614   :  { %v5931_v28 = vmul.f32 0.5, %v5876_v9  ;;  %v11657_v9 = vor.u32 %v12841_v39, %v11656_v22  ;;  %v12930_v22 = vld [vmem:[#allocation8 + $0x124] sm:$0xf]  ;;  %v12022_v39 = vld [vmem:[#allocation8 + $0x134] sm:$0xf0] }
 0x615   :  { %6686 = vmatpush.bf16.msra.mxu2 %v11709_v3  ;;  %6662 = vmatpush.bf16.msra.mxu0 %v11673_v41  ;;  %v12835_v3 = vld [vmem:[%s18586_s30 + $0x2c] sm:$0xf]  ;;  %v448_v41 = vadd.f32 %v14167_v17, %v13938_v14 }
 0x616   :  { %13108 = vtanh.f32 %v5931_v28  ;;  %v6168_v5 = vpop.f32.mrf.mxu1  ;;  %v13107_v20 = vpop.eup %13106  ;;  %v11641_v28 = vor.u32 %v12837_v6, %v11640_v29  ;;  %v11645_v47 = vor.u32 %v12835_v3, %v11642_v12  ;;  %v12920_v12 = vld [vmem:[#allocation8 + $0xd4] sm:$0xf] }
 0x617   :  { %v5864_v11 = vpop.f32.mrf.mxu2  ;;  %v5938_v26 = vmul.f32 0.5, %v13107_v20  ;;  %v6199_v38 = vadd.f32 %v6168_v5, %v390_v13  ;;  %v12014_v13 = vld [vmem:[#allocation8 + $0x12c] sm:$0xf0] }
 0x618   :  { %v11624_v11 = vld [vmem:[%s18586_s30 + $0x8] sm:$0xf] }
 0x619   :  { %v5888_v49 = vpop.f32.mrf.mxu0  ;;  %6687 = vmatpush.bf16.msra.mxu2 %v11693_v18  ;;  %6663 = vmatpush.bf16.msra.mxu0 %v11657_v9  ;;  %v5939_v34 = vadd.f32 0.5, %v5938_v26  ;;  %v6202_v0 = vmul.f32 0.5, %v6199_v38  ;;  %v11625_v18 = vor.u32 %v12833_v7, %v11624_v11  ;;  %v12025_v38 = vor.u32 %v12930_v22, %v12022_v39  ;;  %v12914_v11 = vld [vmem:[#allocation8 + $0xa4] sm:$0xf]  ;;  %v11954_v7 = vld [vmem:[#allocation8 + $0xb4] sm:$0xf0] }
 0x61a   :  { %v5889_v58 = vadd.f32 %v5888_v49, %v14541_v46  ;;  %v11626_v49 = vld [vmem:[%s18586_s30 + $0x18] sm:$0xf0]  ;;  %v11914_v22 = vld [vmem:[#allocation8 + $0x64] sm:$0xf0] }
 0x61b   :  { %v11629_v43 = vor.u32 %v12831_v52, %v11626_v49  ;;  %v12915_v52 = vld [vmem:[#allocation8 + $0xac] sm:$0xf]  ;;  %v12905_v39 = vld [vmem:[#allocation8 + $0x5c] sm:$0xf] }
 0x61c   :  { %v13109_v62 = vpop.eup %13108  ;;  %v5902_v33 = vadd.f32 %v17002_v61, %v5889_v58  ;;  %v12839_v61 = vld [vmem:[%s18586_s30 + $0x4c] sm:$0xf]  ;;  %v361_v58 = vadd.f32 %v14130_v31, %v13874_v42  ;;  %v419_v31 = vadd.f32 %v14160_v55, %v13918_v4  ;;  %v12002_v4 = vld [vmem:[#allocation8 + $0x10c] sm:$0xf0]  ;;  %s18601_s30 = sld [smem:[#allocation40_spill]] }
 0x61d   :  { %v5933_v1 = vmul.f32 0.5, %v13109_v62  ;;  %v6194_v45 = vpop.f32.mrf.mxu3  ;;  %6688 = vmatpush.bf16.msra.mxu2 %v11677_v63  ;;  %v11661_v50 = vor.u32 %v12839_v61, %v11658_v48  ;;  %6664 = vmatpush.bf16.msra.mxu0 %v11641_v28  ;;  %v11974_v28 = vld [vmem:[#allocation8 + $0xdc] sm:$0xf0] }
 0x61e   :  { %13110 = vtanh.f32 %v5902_v33  ;;  %v6170_v53 = vpop.f32.mrf.mxu1  ;;  %v6201_v63 = vadd.f32 %v6194_v45, %v448_v41  ;;  %v12924_v45 = vld [vmem:[#allocation8 + $0xf4] sm:$0xf]  ;;  %v11942_v41 = vld [vmem:[#allocation8 + $0x94] sm:$0xf0] }
 0x61f   :  { %v5914_v35 = vpop.f32.mrf.mxu2  ;;  %v5934_v19 = vadd.f32 0.5, %v5933_v1  ;;  %v12929_v1 = vld [vmem:[#allocation8 + $0x11c] sm:$0xf] }
 0x620   :  { %v5915_v30 = vadd.f32 %v5914_v35, %v14570_v36  ;;  %v6214_v17 = vmul.f32 0.5, %v6201_v63  ;;  %v12017_v48 = vor.u32 %v12929_v1, %v12014_v13  ;;  %v12931_v63 = vld [vmem:[#allocation8 + $0x128] sm:$0xf0]  ;;  %v12020_v1 = vld [vmem:[#allocation8 + $0x120] sm:$0xf] }
 0x621   :  { %v5890_v56 = vpop.f32.mrf.mxu0  ;;  %6689 = vmatpush.bf16.msra.mxu2 %v11661_v50  ;;  %v5935_v5 = vmul.f32 %v5934_v19, %v16755_v15  ;;  %6665 = vmatpush.bf16.msra.mxu0 %v11625_v18  ;;  %v11994_v50 = vld [vmem:[#allocation8 + $0x104] sm:$0xf0]  ;;  %v12925_v19 = vld [vmem:[#allocation8 + $0xfc] sm:$0xf] }
 0x622   :  { %v5928_v37 = vadd.f32 %v17047_v21, %v5915_v30  ;;  %v11997_v29 = vor.u32 %v12924_v45, %v11994_v50  ;;  %v12005_v6 = vor.u32 %v12925_v19, %v12002_v4  ;;  %v12000_v19 = vld [vmem:[#allocation8 + $0xf8] sm:$0xf]  ;;  %v12927_v4 = vld [vmem:[#allocation8 + $0x108] sm:$0xf0] }
 0x624   :  { %v13111_v21 = vpop.eup %13110  ;;  %v5943_v59 = vmul.f32 0.5, %v5928_v37 }
 0x625   :  { %v5941_v23 = vmul.f32 %v13111_v21, %v5939_v34  ;;  %v6196_v44 = vpop.f32.mrf.mxu3  ;;  %6690 = vmatpush.bf16.msra.mxu2 %v11645_v47  ;;  %v12919_v34 = vld [vmem:[#allocation8 + $0xcc] sm:$0xf]  ;;  %v11982_v21 = vld [vmem:[#allocation8 + $0xe4] sm:$0xf0] }
 0x626   :  { %13112 = vtanh.f32 %v5943_v59  ;;  %v11977_v47 = vor.u32 %v12919_v34, %v11974_v28  ;;  %v11985_v44 = vor.u32 %v12920_v12, %v11982_v21  ;;  %v11972_v34 = vld [vmem:[#allocation8 + $0xc8] sm:$0xf]  ;;  %v12921_v28 = vld [vmem:[#allocation8 + $0xd8] sm:$0xf0]  ;;  %v11980_v21 = vld [vmem:[#allocation8 + $0xd0] sm:$0xf] }
 0x627   :  { %v17182_v57 = vadd.f32 %v5941_v23, %v5935_v5  ;;  %v5916_v15 = vpop.f32.mrf.mxu2  ;;  %13114 = vtanh.f32 %v6202_v0 }
 0x628   :  { %v11962_v15 = vld [vmem:[#allocation8 + $0xbc] sm:$0xf0] }
 0x629   :  { %13116 = vtanh.f32 %v17182_v57  ;;  %v6155_v2 = vpop.f32.mrf.mxu0  ;;  %6691 = vmatpush.bf16.msra.mxu2 %v11629_v43  ;;  %v11965_v43 = vor.u32 %v12915_v52, %v11962_v15  ;;  %v11952_v15 = vld [vmem:[#allocation8 + $0xa0] sm:$0xf] }
 0x62a   :  { %v6198_v51 = vadd.f32 %v6155_v2, %v361_v58  ;;  %v11957_v58 = vor.u32 %v12914_v11, %v11954_v7  ;;  %v11934_v2 = vld [vmem:[#allocation8 + $0x8c] sm:$0xf0] }
 0x62c   :  { %v13113_v20 = vpop.eup %13112  ;;  %v6207_v25 = vmul.f32 0.5, %v6198_v51 }
 0x62d   :  { %v5945_v62 = vmul.f32 0.5, %v13113_v20  ;;  %v13115_v33 = vpop.eup %13114  ;;  %v12910_v20 = vld [vmem:[#allocation8 + $0x84] sm:$0xf] }
 0x62e   :  { %13118 = vtanh.f32 %v6207_v25  ;;  %v6204_v14 = vmul.f32 0.5, %v13115_v33  ;;  %v12012_v33 = vld [vmem:[#allocation8 + $0x118] sm:$0xf] }
 0x62f   :  { %v13117_v42 = vpop.eup %13116  ;;  %v5946_v53 = vadd.f32 0.5, %v5945_v62  ;;  %v11945_v62 = vor.u32 %v12910_v20, %v11942_v41  ;;  %v17207_v20 = vpack.c.bf16 %v15051_v24, %v14626_v40  ;;  %v11940_v41 = vld [vmem:[#allocation8 + $0x80] sm:$0xf]  ;;  %v11892_v24 = vld [vmem:[#allocation8 + $0x28] sm:$0xf] }
 0x630   :  { %v6181_v61 = vpop.f32.mrf.mxu2  ;;  %v6205_v37 = vadd.f32 0.5, %v6204_v14 }
 0x631   :  { %v17194_v26 = vmul.f32 %v13117_v42, %v5946_v53  ;;  %v6200_v35 = vadd.f32 %v6181_v61, %v419_v31  ;;  %v6157_v9 = vpop.f32.mrf.mxu0  ;;  %v12932_v42 = vld [vmem:[#allocation8 + $0x130] sm:$0xf0]  ;;  %v11922_v61 = vld [vmem:[#allocation8 + $0x6c] sm:$0xf0] }
 0x632   :  { %v6206_v5 = vmul.f32 %v6205_v37, %v16769_v16  ;;  %v12909_v16 = vld [vmem:[#allocation8 + $0x7c] sm:$0xf]  ;;  %v12904_v31 = vld [vmem:[#allocation8 + $0x54] sm:$0xf]  ;;  %v12013_v9 = vor.u32 %v12931_v63, %v12012_v33  ;;  %v12021_v14 = vor.u32 %v12932_v42, %v12020_v1  ;;  %v11925_v50 = vor.u32 %v12905_v39, %v11922_v61  ;;  %v11912_v63 = vld [vmem:[#allocation8 + $0x50] sm:$0xf] }
 0x633   :  { %v6221_v30 = vpack.c.bf16 %v17194_v26, %v17194_v26  ;;  %13120 = vtanh.f32 %v6200_v35  ;;  %v11937_v25 = vor.u32 %v12909_v16, %v11934_v2  ;;  %v11917_v45 = vor.u32 %v12904_v31, %v11914_v22  ;;  %v12900_v37 = vld [vmem:[#allocation8 + $0x34] sm:$0xf]  ;;  %v11932_v2 = vld [vmem:[#allocation8 + $0x78] sm:$0xf]  ;;  %v12906_v1 = vld [vmem:[#allocation8 + $0x60] sm:$0xf0] }
 0x634   :  { %v13119_v55 = vpop.eup %13118  ;;  %13122 = vtanh.f32 %v6214_v17  ;;  %v11992_v17 = vld [vmem:[#allocation8 + $0xf0] sm:$0xf]  ;;  %v12907_v42 = vld [vmem:[#allocation8 + $0x68] sm:$0xf0]  ;;  %v11913_v31 = vor.u32 %v12906_v1, %v11912_v63  ;;  %v12902_v39 = vld [vmem:[#allocation8 + $0x40] sm:$0xf0] }
 0x635   :  { %v6209_v56 = vmul.f32 0.5, %v13119_v55  ;;  %6627 = vmatmul.bf16.vlgmr.msrb.gmra.mxu1 %v6221_v30  ;;  %6653 = vmatmul.bf16.vlgmr.msrb.gmra.mxu3 %v6221_v30  ;;  %v12899_v55 = vld [vmem:[#allocation8 + $0x2c] sm:$0xf]  ;;  %v11900_v22 = vld [vmem:[#allocation8 + $0x30] sm:$0xf] }
 0x636   :  { %7042 = vmatpush.bf16.msrb.mxu1 %v12017_v48  ;;  %7100 = vmatpush.bf16.msrb.mxu3 %v12025_v38  ;;  %v12926_v48 = vld [vmem:[#allocation8 + $0x100] sm:$0xf0]  ;;  %v12072_v63 = vld [vmem:[%s18538_s12 + $0x50] sm:$0xf]  ;;  %v12945_v1 = vld [vmem:[%s18538_s12 + $0x54] sm:$0xf0] }
 0x637   :  { %v6210_v3 = vadd.f32 0.5, %v6209_v56  ;;  %v11894_v56 = vld [vmem:[#allocation8 + $0x3c] sm:$0xf0] }
 0x638   :  { %v6183_v0 = vpop.f32.mrf.mxu2 }
 0x639   :  { %v13121_v59 = vpop.eup %13120  ;;  %v12922_v0 = vld [vmem:[#allocation8 + $0xe0] sm:$0xf0] }
 0x63a   :  { %v6212_v23 = vmul.f32 %v13121_v59, %v6210_v3  ;;  %7043 = vmatpush.bf16.msrb.mxu1 %v11997_v29  ;;  %7101 = vmatpush.bf16.msrb.mxu3 %v12005_v6  ;;  %v13123_v18 = vpop.eup %13122  ;;  %v11993_v29 = vor.u32 %v12926_v48, %v11992_v17  ;;  %v12001_v6 = vor.u32 %v12927_v4, %v12000_v19  ;;  %v12894_v59 = vld [vmem:[#allocation8 + $0x4] sm:$0xf]  ;;  %v11880_v17 = vld [vmem:[#allocation8 + $0x8] sm:$0xf]  ;;  %v12897_v48 = vld [vmem:[#allocation8 + $0x18] sm:$0xf0] }
 0x63b   :  { %v6216_v51 = vmul.f32 0.5, %v13123_v18  ;;  %v11897_v3 = vor.u32 %v12899_v55, %v11894_v56  ;;  %v11981_v11 = vor.u32 %v12922_v0, %v11980_v21  ;;  %v12916_v18 = vld [vmem:[#allocation8 + $0xb0] sm:$0xf0]  ;;  %v17221_v19 = vpack.c.bf16 %v16763_v60, %v16338_v8  ;;  %v12008_v56 = vld [vmem:[#allocation8 + $0x100] sm:$0xf] }
 0x63c   :  { %v6213_v49 = vadd.f32 %v6212_v23, %v6206_v5  ;;  %v12895_v5 = vld [vmem:[#allocation8 + $0xc] sm:$0xf]  ;;  %v11882_v23 = vld [vmem:[#allocation8 + $0x1c] sm:$0xf0]  ;;  %v12928_v8 = vld [vmem:[#allocation8 + $0x110] sm:$0xf0] }
 0x63d   :  { %v6217_v13 = vadd.f32 0.5, %v6216_v51  ;;  %v11885_v52 = vor.u32 %v12895_v5, %v11882_v23  ;;  %v12911_v51 = vld [vmem:[#allocation8 + $0x88] sm:$0xf0]  ;;  %v12009_v60 = vor.u32 %v12928_v8, %v12008_v56  ;;  %v12090_v21 = vld [vmem:[%s18538_s12 + $0x78] sm:$0xf0] }
 0x63e   :  { %13124 = vtanh.f32 %v6213_v49  ;;  %6730 = vst [vmem:[%s18545_s19] sm:$0xff] %v6213_v49  ;;  %7044 = vmatpush.bf16.msrb.mxu1 %v11977_v47  ;;  %7102 = vmatpush.bf16.msrb.mxu3 %v11985_v44  ;;  %v11874_v47 = vld [vmem:[#allocation8 + $0x14] sm:$0xf0]  ;;  %v11973_v44 = vor.u32 %v12921_v28, %v11972_v34  ;;  %v11960_v49 = vld [vmem:[#allocation8 + $0xa8] sm:$0xf]  ;;  %v12088_v34 = vld [vmem:[%s18538_s12 + $0x70] sm:$0xf] }
 0x63f   :  { %v11877_v7 = vor.u32 %v12894_v59, %v11874_v47  ;;  %v12056_v8 = vld [vmem:[%s18538_s12 + $0x30] sm:$0xf] }
 0x642   :  { %7045 = vmatpush.bf16.msrb.mxu1 %v11957_v58  ;;  %7103 = vmatpush.bf16.msrb.mxu3 %v11965_v43  ;;  %v12917_v58 = vld [vmem:[#allocation8 + $0xb8] sm:$0xf0]  ;;  %v11953_v43 = vor.u32 %v12916_v18, %v11952_v15 }
 0x643   :  { %v11961_v16 = vor.u32 %v12917_v58, %v11960_v49  ;;  %v12080_v58 = vld [vmem:[%s18538_s12 + $0x60] sm:$0xf] }
 0x644   :  { %v13125_v53 = vpop.eup %13124 }
 0x645   :  { %6679 = vmatmul.bf16.vlgmr.msra.gmra.mxu1 %v6221_v30  ;;  %6705 = vmatmul.bf16.vlgmr.msra.gmra.mxu3 %v6221_v30  ;;  %v6219_v35 = vmul.f32 %v13125_v53, %v6217_v13  ;;  %v11902_v30 = vld [vmem:[#allocation8 + $0x44] sm:$0xf0]  ;;  %v11920_v13 = vld [vmem:[#allocation8 + $0x58] sm:$0xf]  ;;  %v12901_v53 = vld [vmem:[#allocation8 + $0x38] sm:$0xf0] }
 0x646   :  { %7046 = vmatpush.bf16.msrb.mxu1 %v11937_v25  ;;  %7104 = vmatpush.bf16.msrb.mxu3 %v11945_v62  ;;  %v11905_v12 = vor.u32 %v12900_v37, %v11902_v30  ;;  %v12912_v25 = vld [vmem:[#allocation8 + $0x90] sm:$0xf0]  ;;  %v11933_v62 = vor.u32 %v12911_v51, %v11932_v2  ;;  %v11921_v40 = vor.u32 %v12907_v42, %v11920_v13 }
 0x647   :  { %v6220_v38 = vpack.c.bf16 %v6219_v35, %v6219_v35  ;;  %6729 = vst [vmem:[%s18544_s18] sm:$0xff] %v6219_v35  ;;  %v11941_v33 = vor.u32 %v12912_v25, %v11940_v41  ;;  %v11893_v61 = vor.u32 %v12901_v53, %v11892_v24  ;;  %v11901_v35 = vor.u32 %v12902_v39, %v11900_v22  ;;  %v12944_v13 = vld [vmem:[%s18538_s12 + $0x54] sm:$0xf]  ;;  %v11948_v24 = vld [vmem:[#allocation8 + $0x88] sm:$0xf]  ;;  %v12913_v53 = vld [vmem:[#allocation8 + $0x98] sm:$0xf0] }
 0x648   :  { %v11928_v39 = vld [vmem:[#allocation8 + $0x60] sm:$0xf] }
 0x649   :  { %6614 = vmatmul.bf16.vlgmr.msrb.gmra.mxu0 %v6220_v38  ;;  %6640 = vmatmul.bf16.vlgmr.msrb.gmra.mxu2 %v6220_v38 }
 0x64a   :  { %7013 = vmatpush.bf16.msrb.mxu0 %v12013_v9  ;;  %7071 = vmatpush.bf16.msrb.mxu2 %v12021_v14  ;;  %v11872_v9 = vld [vmem:[#allocation8] sm:$0xf]  ;;  %v12896_v14 = vld [vmem:[#allocation8 + $0x10] sm:$0xf0] }
 0x64b   :  { %7047 = vmatpush.bf16.msrb.mxu1 %v11917_v45  ;;  %7105 = vmatpush.bf16.msrb.mxu3 %v11925_v50  ;;  %v11873_v45 = vor.u32 %v12896_v14, %v11872_v9  ;;  %v17213_v50 = vpack.c.bf16 %v15907_v27, %v15482_v54  ;;  %v12028_v54 = vld [vmem:[#allocation8 + $0x128] sm:$0xf]  ;;  %v12933_v27 = vld [vmem:[#allocation8 + $0x138] sm:$0xf0]  ;;  %v12908_v9 = vld [vmem:[#allocation8 + $0x70] sm:$0xf0] }
 0x64c   :  { %v12029_v4 = vor.u32 %v12933_v27, %v12028_v54  ;;  %v12064_v14 = vld [vmem:[%s18538_s12 + $0x40] sm:$0xf]  ;;  %v11929_v54 = vor.u32 %v12908_v9, %v11928_v39  ;;  %v12935_v9 = vld [vmem:[%s18538_s12 + $0x4] sm:$0xf0] }
 0x64e   :  { %7014 = vmatpush.bf16.msrb.mxu0 %v11993_v29  ;;  %7072 = vmatpush.bf16.msrb.mxu2 %v12001_v6  ;;  %v11988_v29 = vld [vmem:[#allocation8 + $0xd8] sm:$0xf]  ;;  %v12923_v6 = vld [vmem:[#allocation8 + $0xe8] sm:$0xf0] }
 0x64f   :  { %7048 = vmatpush.bf16.msrb.mxu1 %v11897_v3  ;;  %7106 = vmatpush.bf16.msrb.mxu3 %v11905_v12  ;;  %v11989_v28 = vor.u32 %v12923_v6, %v11988_v29  ;;  %v12949_v3 = vld [vmem:[%s18538_s12 + $0x74] sm:$0xf0]  ;;  %v12948_v12 = vld [vmem:[%s18538_s12 + $0x74] sm:$0xf]  ;;  %v12058_v6 = vld [vmem:[%s18538_s12 + $0x38] sm:$0xf0] }
 0x650   :  { %v17241_v59 = vor.u32 %v12949_v3, %v12088_v34  ;;  %v17243_v47 = vor.u32 %v12948_v12, %v12090_v21  ;;  %v12940_v29 = vld [vmem:[%s18538_s12 + $0x34] sm:$0xf]  ;;  %v12903_v3 = vld [vmem:[#allocation8 + $0x48] sm:$0xf0] }
 0x651   :  { %v17324_v12 = vor.u32 %v12940_v29, %v12058_v6  ;;  %v17398_v6 = vld [vmem:[%s18537_s11] sm:$0x1f] }
 0x652   :  { %7015 = vmatpush.bf16.msrb.mxu0 %v11973_v44  ;;  %7073 = vmatpush.bf16.msrb.mxu2 %v11981_v11  ;;  %v11968_v44 = vld [vmem:[#allocation8 + $0xb0] sm:$0xf]  ;;  %v12918_v11 = vld [vmem:[#allocation8 + $0xc0] sm:$0xf0] }
 0x653   :  { %7049 = vmatpush.bf16.msrb.mxu1 %v11877_v7  ;;  %7107 = vmatpush.bf16.msrb.mxu3 %v11885_v52  ;;  %v11969_v52 = vor.u32 %v12918_v11, %v11968_v44  ;;  %v12048_v44 = vld [vmem:[%s18538_s12 + $0x20] sm:$0xf]  ;;  %v12939_v11 = vld [vmem:[%s18538_s12 + $0x24] sm:$0xf0] }
 0x656   :  { %7016 = vmatpush.bf16.msrb.mxu0 %v11953_v43  ;;  %7050 = vmatmul.bf16.vlgmr.msrb.gmra.mxu1 %v17207_v20  ;;  %v12947_v43 = vld [vmem:[%s18538_s12 + $0x64] sm:$0xf0] }
 0x657   :  { %7074 = vmatpush.bf16.msrb.mxu2 %v11961_v16  ;;  %7108 = vmatmul.bf16.vlgmr.msrb.gmra.mxu3 %v17207_v20  ;;  %v12946_v16 = vld [vmem:[%s18538_s12 + $0x64] sm:$0xf]  ;;  %v17261_v2 = vor.u32 %v12947_v43, %v12080_v58 }
 0x658   :  { %12958 = vmatpush.bf16.msra.mxu3 %v17243_v47 }
 0x659   :  { %6666 = vmatmul.bf16.vlgmr.msra.gmra.mxu0 %v6220_v38  ;;  %6692 = vmatmul.bf16.vlgmr.msra.gmra.mxu2 %v6220_v38  ;;  %v11881_v38 = vor.u32 %v12897_v48, %v11880_v17  ;;  %v12943_v17 = vld [vmem:[%s18538_s12 + $0x44] sm:$0xf0]  ;;  %v12942_v48 = vld [vmem:[%s18538_s12 + $0x44] sm:$0xf] }
 0x65a   :  { %7017 = vmatpush.bf16.msrb.mxu0 %v11933_v62  ;;  %v17303_v27 = vor.u32 %v12943_v17, %v12064_v14  ;;  %v12934_v14 = vld [vmem:[%s18538_s12 + $0x4] sm:$0xf] }
 0x65b   :  { %7075 = vmatpush.bf16.msrb.mxu2 %v11941_v33 }
 0x65e   :  { %7018 = vmatpush.bf16.msrb.mxu0 %v11913_v31  ;;  %v17280_v31 = vor.u32 %v12945_v1, %v12072_v63  ;;  %v12040_v63 = vld [vmem:[%s18538_s12 + $0x10] sm:$0xf]  ;;  %v12937_v1 = vld [vmem:[%s18538_s12 + $0x14] sm:$0xf0] }
 0x65f   :  { %7076 = vmatpush.bf16.msrb.mxu2 %v11921_v40 }
 0x662   :  { %7019 = vmatpush.bf16.msrb.mxu0 %v11893_v61 }
 0x663   :  { %7077 = vmatpush.bf16.msrb.mxu2 %v11901_v35  ;;  %v11949_v35 = vor.u32 %v12913_v53, %v11948_v24 }
 0x666   :  { %7020 = vmatpush.bf16.msrb.mxu0 %v11873_v45  ;;  %7055 = vmatmul.bf16.gmra.mxu1 %v17213_v50  ;;  %v12066_v45 = vld [vmem:[%s18538_s12 + $0x48] sm:$0xf0] }
 0x667   :  { %7078 = vmatpush.bf16.msrb.mxu2 %v11881_v38  ;;  %7113 = vmatmul.bf16.gmra.mxu3 %v17213_v50 }
 0x669   :  { %7021 = vmatmul.bf16.vlgmr.msrb.gmra.mxu0 %v17207_v20 }
 0x66a   :  { %7079 = vmatmul.bf16.vlgmr.msrb.gmra.mxu2 %v17207_v20  ;;  %7129 = vmatpush.bf16.msra.mxu0 %v12029_v4  ;;  %v17305_v4 = vor.u32 %v12942_v48, %v12066_v45 }
 0x66b   :  { %12950 = vmatpush.bf16.msra.mxu2 %v17241_v59 }
 0x66e   :  { %7130 = vmatpush.bf16.msra.mxu0 %v12009_v60  ;;  %v12941_v60 = vld [vmem:[%s18538_s12 + $0x34] sm:$0xf0] }
 0x66f   :  { %12951 = vmatpush.bf16.msra.mxu2 %v17261_v2 }
 0x672   :  { %7131 = vmatpush.bf16.msra.mxu0 %v11989_v28  ;;  %v11908_v28 = vld [vmem:[#allocation8 + $0x38] sm:$0xf] }
 0x673   :  { %12952 = vmatpush.bf16.msra.mxu2 %v17280_v31 }
 0x676   :  { %7060 = vmatmul.bf16.gmra.mxu1 %v17221_v19  ;;  %7132 = vmatpush.bf16.msra.mxu0 %v11969_v52  ;;  %v12049_v52 = vor.u32 %v12939_v11, %v12048_v44  ;;  %v7301_v11 = vld [vmem:[#allocation9 + $0x78] sm:$0xff] }
 0x677   :  { %7118 = vmatmul.bf16.gmra.mxu3 %v17221_v19  ;;  %12953 = vmatpush.bf16.msra.mxu2 %v17303_v27 }
 0x678   :  { %7302 = vmatpush.msra.mxu1 %v7301_v11 }
 0x679   :  { %7026 = vmatmul.bf16.gmra.mxu0 %v17213_v50 }
 0x67a   :  { %7084 = vmatmul.bf16.gmra.mxu2 %v17213_v50  ;;  %7133 = vmatpush.bf16.msra.mxu0 %v11949_v35 }
 0x67e   :  { %7134 = vmatpush.bf16.msra.mxu0 %v11929_v54 }
 0x689   :  { %7031 = vmatmul.bf16.gmra.mxu0 %v17221_v19 }
 0x68a   :  { %7089 = vmatmul.bf16.gmra.mxu2 %v17221_v19 }
 0x6b2   :  { %v6628_v55 = vpop.f32.mrf.mxu1 }
 0x6b8   :  { %v6654_v37 = vpop.f32.mrf.mxu3 }
 0x6ba   :  { %v6630_v30 = vpop.f32.mrf.mxu1 }
 0x6bb   :  { %v17316_v30 = vor.u32 %v12941_v60, %v12056_v8 }
 0x6bd   :  { %12954 = vmatpush.bf16.msra.mxu2 %v17316_v30 }
 0x6c0   :  { %v6656_v0 = vpop.f32.mrf.mxu3 }
 0x6c1   :  { %12955 = vmatpush.bf16.msra.mxu2 %v12049_v52 }
 0x6c2   :  { %v17245_v5 = vpop.f32.mrf.mxu1 }
 0x6c6   :  { %v6615_v23 = vpop.f32.mrf.mxu0 }
 0x6c7   :  { %v6616_v7 = vadd.f32 %v6615_v23, %v14428_v10  ;;  %v12082_v10 = vld [vmem:[%s18538_s12 + $0x68] sm:$0xf0] }
 0x6c8   :  { %v17250_v15 = vpop.f32.mrf.mxu3  ;;  %v17266_v41 = vor.u32 %v12946_v16, %v12082_v10 }
 0x6c9   :  { %v6629_v18 = vadd.f32 %v6628_v55, %v6616_v7 }
 0x6ca   :  { %v6682_v49 = vpop.f32.mrf.mxu1  ;;  %12959 = vmatpush.bf16.msra.mxu3 %v17266_v41 }
 0x6cb   :  { %v6715_v25 = vmul.f32 0.5, %v6629_v18  ;;  %v12050_v18 = vld [vmem:[%s18538_s12 + $0x28] sm:$0xf0] }
 0x6cc   :  { %v6641_v51 = vpop.f32.mrf.mxu2 }
 0x6cd   :  { %v6642_v62 = vadd.f32 %v6641_v51, %v14443_v32  ;;  %v12074_v32 = vld [vmem:[%s18538_s12 + $0x58] sm:$0xf0]  ;;  %13126 = vtanh.f32 %v6715_v25  ;;  %v11888_v51 = vld [vmem:[#allocation8 + $0x10] sm:$0xf]  ;;  %v12898_v25 = vld [vmem:[#allocation8 + $0x20] sm:$0xf0] }
 0x6ce   :  { %v6617_v33 = vpop.f32.mrf.mxu0  ;;  %v17285_v22 = vor.u32 %v12944_v13, %v12074_v32  ;;  %v12936_v13 = vld [vmem:[%s18538_s12 + $0x14] sm:$0xf]  ;;  %v12042_v32 = vld [vmem:[%s18538_s12 + $0x18] sm:$0xf0] }
 0x6cf   :  { %v6655_v42 = vadd.f32 %v6654_v37, %v6642_v62  ;;  %v11889_v33 = vor.u32 %v12898_v25, %v11888_v51  ;;  %v17360_v24 = vor.u32 %v12936_v13, %v12042_v32  ;;  %v7298_v51 = vld [vmem:[#allocation9 + $0x60] sm:$0xff] }
 0x6d0   :  { %v6708_v40 = vpop.f32.mrf.mxu3  ;;  %12960 = vmatpush.bf16.msra.mxu3 %v17285_v22 }
 0x6d1   :  { %v6710_v61 = vmul.f32 0.5, %v6655_v42  ;;  %v12041_v42 = vor.u32 %v12937_v1, %v12040_v63 }
 0x6d3   :  { %13128 = vtanh.f32 %v6710_v61  ;;  %v17301_v38 = vpop.f32.mrf.mxu1  ;;  %v13127_v34 = vpop.eup %13126  ;;  %12956 = vmatpush.bf16.msra.mxu2 %v12041_v42 }
 0x6d4   :  { %v6643_v55 = vpop.f32.mrf.mxu2  ;;  %12961 = vmatpush.bf16.msra.mxu3 %v17305_v4  ;;  %v6717_v49 = vmul.f32 0.5, %v13127_v34 }
 0x6d6   :  { %v6667_v56 = vpop.f32.mrf.mxu0  ;;  %v6718_v40 = vadd.f32 0.5, %v6717_v49 }
 0x6d7   :  { %v6668_v37 = vadd.f32 %v6667_v56, %v14541_v46  ;;  %v11909_v46 = vor.u32 %v12903_v3, %v11908_v28 }
 0x6d8   :  { %12962 = vmatpush.bf16.msra.mxu3 %v17324_v12 }
 0x6d9   :  { %v13129_v21 = vpop.eup %13128  ;;  %v6681_v0 = vadd.f32 %v17245_v5, %v6668_v37  ;;  %7135 = vmatpush.bf16.msra.mxu0 %v11909_v46  ;;  %v12938_v5 = vld [vmem:[%s18538_s12 + $0x24] sm:$0xf] }
 0x6da   :  { %v6712_v23 = vmul.f32 0.5, %v13129_v21  ;;  %v17343_v43 = vor.u32 %v12938_v5, %v12050_v18 }
 0x6db   :  { %13130 = vtanh.f32 %v6681_v0  ;;  %v17335_v7 = vpop.f32.mrf.mxu1 }
 0x6dc   :  { %v6693_v58 = vpop.f32.mrf.mxu2  ;;  %v6713_v16 = vadd.f32 0.5, %v6712_v23  ;;  %12963 = vmatpush.bf16.msra.mxu3 %v17343_v43  ;;  %v17409_v23 = vperm.slane %v17398_v6, 0 }
 0x6dd   :  { %v6694_v10 = vadd.f32 %v6693_v58, %v14570_v36  ;;  %7136 = vmatpush.bf16.msra.mxu0 %v11889_v33 }
 0x6de   :  { %v6669_v62 = vpop.f32.mrf.mxu0  ;;  %v6714_v61 = vmul.f32 %v6713_v16, %v17182_v57  ;;  %v12034_v57 = vld [vmem:[%s18538_s12 + $0x8] sm:$0xf0] }
 0x6df   :  { %v6707_v36 = vadd.f32 %v17250_v15, %v6694_v10  ;;  %v12032_v15 = vld [vmem:[%s18538_s12] sm:$0xf]  ;;  %v17379_v54 = vor.u32 %v12934_v14, %v12034_v57  ;;  %v7299_v10 = vld [vmem:[#allocation9 + $0x68] sm:$0xff]  ;;  %v7297_v62 = vld [vmem:[#allocation9 + $0x58] sm:$0xff] }
 0x6e0   :  { %12964 = vmatpush.bf16.msra.mxu3 %v17360_v24  ;;  %v7294_v57 = vld [vmem:[#allocation9 + $0x40] sm:$0xff] }
 0x6e1   :  { %v13131_v53 = vpop.eup %13130  ;;  %v6722_v39 = vmul.f32 0.5, %v6707_v36  ;;  %7501 = vmatpush.bf16.msrb.mxu0 %v17241_v59  ;;  %v12033_v59 = vor.u32 %v12935_v9, %v12032_v15  ;;  %v7295_v15 = vld [vmem:[#allocation9 + $0x48] sm:$0xff] }
 0x6e2   :  { %v6720_v35 = vmul.f32 %v13131_v53, %v6718_v40 }
 0x6e3   :  { %13132 = vtanh.f32 %v6722_v39  ;;  %v17374_v17 = vpop.f32.mrf.mxu1  ;;  %12957 = vmatpush.bf16.msra.mxu2 %v12033_v59 }
 0x6e4   :  { %v6721_v48 = vadd.f32 %v6720_v35, %v6714_v61  ;;  %v6695_v45 = vpop.f32.mrf.mxu2  ;;  %12965 = vmatpush.bf16.msra.mxu3 %v17379_v54  ;;  %v7296_v35 = vld [vmem:[#allocation9 + $0x50] sm:$0xff] }
 0x6e5   :  { %7502 = vmatpush.bf16.msrb.mxu0 %v17261_v2 }
 0x6e6   :  { %13134 = vtanh.f32 %v6721_v48  ;;  %6732 = vst [vmem:[%s18547_s21] sm:$0xff] %v6721_v48  ;;  %v7022_v0 = vpop.f32.mrf.mxu0  ;;  %v7293_v48 = vld [vmem:[#allocation9 + $0x38] sm:$0xff] }
 0x6e7   :  { %v7023_v5 = vadd.f32 %v7022_v0, %v17409_v23 }
 0x6e9   :  { %v13133_v55 = vpop.eup %13132  ;;  %7503 = vmatpush.bf16.msrb.mxu0 %v17280_v31 }
 0x6ea   :  { %v6724_v56 = vmul.f32 0.5, %v13133_v55 }
 0x6eb   :  { %v17387_v8 = vpop.f32.mrf.mxu1 }
 0x6ec   :  { %v13135_v60 = vpop.eup %13134  ;;  %v6725_v37 = vadd.f32 0.5, %v6724_v56 }
 0x6ed   :  { %7504 = vmatpush.bf16.msrb.mxu0 %v17303_v27  ;;  %v17401_v27 = vperm.slane %v17398_v6, 1  ;;  %v17415_v49 = vpop.f32.mrf.mxu2 }
 0x6ee   :  { %v6727_v29 = vmul.f32 %v13135_v60, %v6725_v37  ;;  %v7024_v46 = vpop.f32.mrf.mxu0 }
 0x6f0   :  { %6731 = vst [vmem:[%s18546_s20] sm:$0xff] %v6727_v29  ;;  %v6744_v2 = vpack.c.bf16 %v6727_v29, %v17194_v26 }
 0x6f1   :  { %7505 = vmatpush.bf16.msrb.mxu0 %v17316_v30 }
 0x6f2   :  { %7036 = vmatmul.bf16.gmra.mxu0 %v6744_v2  ;;  %7065 = vmatmul.bf16.gmra.mxu1 %v6744_v2 }
 0x6f3   :  { %7094 = vmatmul.bf16.gmra.mxu2 %v6744_v2  ;;  %7123 = vmatmul.bf16.gmra.mxu3 %v6744_v2  ;;  %v7061_v31 = vpop.f32.mrf.mxu1 }
 0x6f4   :  { %v7062_v34 = vadd.f32 %v7061_v31, %v17401_v27 }
 0x6f5   :  { %7506 = vmatpush.bf16.msrb.mxu0 %v12049_v52  ;;  %v7300_v52 = vld [vmem:[#allocation9 + $0x70] sm:$0xff]  ;;  %v17424_v13 = vpop.f32.mrf.mxu2 }
 0x6f6   :  { %13136 = vtanh.f32 %v7062_v34  ;;  %v7027_v44 = vpop.f32.mrf.mxu0  ;;  %7303 = vmatpush.msra.mxu1 %v7300_v52 }
 0x6f7   :  { %v7028_v33 = vadd.f32 %v7027_v44, %v17409_v23 }
 0x6f8   :  { %7304 = vmatpush.msra.mxu1 %v7299_v10  ;;  %v17460_v10 = vperm.slane %v17398_v6, 4 }
 0x6f9   :  { %7507 = vmatpush.bf16.msrb.mxu0 %v12041_v42 }
 0x6fa   :  { %7305 = vmatpush.msra.mxu1 %v7298_v51  ;;  %v7286_v51 = vld [vmem:[#allocation9] sm:$0xff] }
 0x6fb   :  { %v7063_v26 = vpop.f32.mrf.mxu1 }
 0x6fc   :  { %v7064_v30 = vadd.f32 %v7063_v26, %v17401_v27  ;;  %v13137_v28 = vpop.eup %13136  ;;  %7306 = vmatpush.msra.mxu1 %v7297_v62  ;;  %v7292_v26 = vld [vmem:[#allocation9 + $0x30] sm:$0xff] }
 0x6fd   :  { %7508 = vmatpush.bf16.msrb.mxu0 %v12033_v59  ;;  %v17430_v39 = vpop.f32.mrf.mxu2 }
 0x6fe   :  { %13138 = vtanh.f32 %v7064_v30  ;;  %v7029_v18 = vpop.f32.mrf.mxu0  ;;  %7307 = vmatpush.msra.mxu1 %v7296_v35  ;;  %v7291_v30 = vld [vmem:[#allocation9 + $0x28] sm:$0xff] }
 0x6ff   :  { %v7030_v25 = vadd.f32 %v7029_v18, %v17409_v23  ;;  %v7288_v18 = vld [vmem:[#allocation9 + $0x10] sm:$0xff] }
 0x700   :  { %7308 = vmatpush.msra.mxu1 %v7295_v15 }
 0x702   :  { %7137 = vmatmul.bf16.vlgmr.msra.gmra.mxu0 %v17207_v20  ;;  %v7025_v20 = vadd.f32 %v7024_v46, %v17409_v23  ;;  %7309 = vmatpush.msra.mxu1 %v7294_v57  ;;  %v7289_v46 = vld [vmem:[#allocation9 + $0x18] sm:$0xff]  ;;  %v17475_v57 = vperm.slane %v17398_v6, 2 }
 0x704   :  { %v13139_v3 = vpop.eup %13138  ;;  %13140 = vtanh.f32 %v7025_v20  ;;  %7310 = vmatpush.msra.mxu1 %v7293_v48 }
 0x705   :  { %v7389_v21 = vpack.c.bf16 %v13139_v3, %v13137_v28  ;;  %13142 = vtanh.f32 %v7023_v5  ;;  %v17437_v59 = vpop.f32.mrf.mxu2  ;;  %v7290_v28 = vld [vmem:[#allocation9 + $0x20] sm:$0xff] }
 0x706   :  { %v7032_v1 = vpop.f32.mrf.mxu0  ;;  %13144 = vtanh.f32 %v7030_v25  ;;  %7311 = vmatpush.msra.mxu1 %v7292_v26 }
 0x707   :  { %7539 = vmatmul.bf16.vlgmr.msra.gmra.mxu2 %v7389_v21  ;;  %7628 = vmatmul.bf16.vlgmr.msra.gmra.mxu3 %v7389_v21  ;;  %13146 = vtanh.f32 %v7028_v33  ;;  %v7033_v9 = vadd.f32 %v7032_v1, %v17409_v23 }
 0x708   :  { %7312 = vmatpush.msra.mxu1 %v7291_v30 }
 0x70a   :  { %7313 = vmatpush.msra.mxu1 %v7290_v28 }
 0x70c   :  { %7314 = vmatpush.msra.mxu1 %v7289_v46 }
 0x70d   :  { %v17444_v37 = vpop.f32.mrf.mxu2 }
 0x70e   :  { %v7034_v40 = vpop.f32.mrf.mxu0  ;;  %7315 = vmatpush.msra.mxu1 %v7288_v18 }
 0x70f   :  { %v7035_v61 = vadd.f32 %v7034_v40, %v17409_v23 }
 0x711   :  { %13148 = vtanh.f32 %v7035_v61 }
 0x712   :  { %7142 = vmatmul.bf16.gmra.mxu0 %v17213_v50  ;;  %v17413_v50 = vpop.f32.mrf.mxu3  ;;  %13150 = vtanh.f32 %v7033_v9 }
 0x715   :  { %v17448_v34 = vpop.f32.mrf.mxu2 }
 0x71a   :  { %v17422_v63 = vpop.f32.mrf.mxu3 }
 0x722   :  { %7147 = vmatmul.bf16.gmra.mxu0 %v17221_v19  ;;  %v13141_v19 = vpop.eup %13140  ;;  %v17426_v32 = vpop.f32.mrf.mxu3 }
 0x723   :  { %v13143_v58 = vpop.eup %13142 }
 0x724   :  { %v17417_v16 = vpack.c.bf16 %v13141_v19, %v13143_v58  ;;  %v13145_v36 = vpop.eup %13144  ;;  %v7287_v19 = vld [vmem:[#allocation9 + $0x8] sm:$0xff]  ;;  %v17457_v58 = vperm.slane %v17398_v6, 3  ;;  %v7052_v6 = vadd.f32 %v17301_v38, %v17401_v27 }
 0x725   :  { %v13147_v42 = vpop.eup %13146  ;;  %7316 = vmatpush.msra.mxu1 %v7287_v19 }
 0x726   :  { %v17428_v53 = vpack.c.bf16 %v13145_v36, %v13147_v42  ;;  %v13149_v45 = vpop.eup %13148 }
 0x727   :  { %v13151_v55 = vpop.eup %13150  ;;  %7317 = vmatpush.msra.mxu1 %v7286_v51 }
 0x728   :  { %v17439_v56 = vpack.c.bf16 %v13149_v45, %v13151_v55  ;;  %v7415_v45 = vld [vmem:[%s18539_s13] sm:$0x3]  ;;  %v7054_v55 = vadd.f32 %v17335_v7, %v17401_v27  ;;  %v7081_v7 = vadd.f32 %v17415_v49, %v17475_v57 }
 0x729   :  { %7590 = vmatpush.bf16.msrb.mxu1 %v17243_v47  ;;  %v17488_v26 = vperm.slane %v7415_v45, 0  ;;  %v17490_v30 = vperm.slane %v7415_v45, 1 }
 0x72a   :  { %v17435_v14 = vpop.f32.mrf.mxu3 }
 0x72d   :  { %7591 = vmatpush.bf16.msrb.mxu1 %v17266_v41 }
 0x731   :  { %7592 = vmatpush.bf16.msrb.mxu1 %v17285_v22 }
 0x732   :  { %7152 = vmatmul.bf16.gmra.mxu0 %v6744_v2  ;;  %v17442_v60 = vpop.f32.mrf.mxu3 }
 0x735   :  { %7593 = vmatpush.bf16.msrb.mxu1 %v17305_v4 }
 0x739   :  { %7594 = vmatpush.bf16.msrb.mxu1 %v17324_v12 }
 0x73a   :  { %v17446_v29 = vpop.f32.mrf.mxu3 }
 0x73d   :  { %7595 = vmatpush.bf16.msrb.mxu1 %v17343_v43 }
 0x741   :  { %7596 = vmatpush.bf16.msrb.mxu1 %v17360_v24 }
 0x742   :  { %7509 = vmatmul.bf16.vlgmr.msrb.gmra.mxu0 %v17417_v16 }
 0x745   :  { %7597 = vmatpush.bf16.msrb.mxu1 %v17379_v54 }
 0x752   :  { %7514 = vmatmul.bf16.gmra.mxu0 %v17428_v53 }
 0x762   :  { %7519 = vmatmul.bf16.gmra.mxu0 %v17439_v56 }
 0x76f   :  { %v7037_v2 = vpop.f32.mrf.mxu0  ;;  %v7066_v31 = vpop.f32.mrf.mxu1 }
 0x770   :  { %v7038_v3 = vadd.f32 %v7037_v2, %v17409_v23  ;;  %v7067_v21 = vadd.f32 %v7066_v31, %v17401_v27  ;;  %v7083_v2 = vadd.f32 %v17424_v13, %v17475_v57 }
 0x772   :  { %13152 = vtanh.f32 %v7038_v3 }
 0x773   :  { %13154 = vtanh.f32 %v7067_v21 }
 0x776   :  { %v7124_v0 = vpop.f32.mrf.mxu3  ;;  %v17452_v52 = vpop.f32.mrf.mxu2 }
 0x777   :  { %v7039_v44 = vpop.f32.mrf.mxu0  ;;  %v7068_v11 = vpop.f32.mrf.mxu1  ;;  %v7125_v25 = vadd.f32 %v7124_v0, %v17457_v58 }
 0x778   :  { %v7040_v20 = vadd.f32 %v7039_v44, %v17409_v23  ;;  %v7069_v5 = vadd.f32 %v7068_v11, %v17401_v27  ;;  %v13153_v62 = vpop.eup %13152 }
 0x779   :  { %v13155_v36 = vpop.eup %13154 }
 0x77a   :  { %13156 = vtanh.f32 %v7040_v20 }
 0x77b   :  { %13158 = vtanh.f32 %v7069_v5 }
 0x77c   :  { %13160 = vtanh.f32 %v7125_v25 }
 0x77e   :  { %v7126_v23 = vpop.f32.mrf.mxu3  ;;  %v17468_v35 = vpop.f32.mrf.mxu2 }
 0x77f   :  { %v7127_v33 = vadd.f32 %v7126_v23, %v17457_v58  ;;  %v7138_v1 = vpop.f32.mrf.mxu0 }
 0x780   :  { %v17466_v42 = vadd.f32 %v7138_v1, %v17460_v10  ;;  %v13157_v40 = vpop.eup %13156 }
 0x781   :  { %v13159_v61 = vpop.eup %13158  ;;  %13162 = vtanh.f32 %v7127_v33  ;;  %v17471_v9 = vpack.c.bf16 %v13157_v40, %v13153_v62 }
 0x782   :  { %v7166_v15 = vmin.f32 %v17466_v42, 20.0  ;;  %v7390_v47 = vpack.c.bf16 %v13159_v61, %v13155_v36  ;;  %v13161_v41 = vpop.eup %13160  ;;  %vm7158_vm1 = vcmp.gt.f32.partialorder %v17466_v42, 20.0 }
 0x783   :  { %7524 = vmatmul.bf16.gmra.mxu0 %v17471_v9 }
 0x784   :  { %v7174_v48 = vmul.f32 1.442695, %v7166_v15  ;;  %7544 = vmatmul.bf16.gmra.mxu2 %v7390_v47  ;;  %7633 = vmatmul.bf16.gmra.mxu3 %v7390_v47 }
 0x786   :  { %13164 = vpow2.f32 %v7174_v48 }
 0x787   :  { %v7140_v31 = vpop.f32.mrf.mxu0  ;;  %v13163_v28 = vpop.eup %13162  ;;  %13166 = vtanh.f32 %v7054_v55 }
 0x788   :  { %v17495_v3 = vadd.f32 %v7140_v31, %v17460_v10  ;;  %v17497_v13 = vpack.c.bf16 %v13163_v28, %v13161_v41  ;;  %13168 = vtanh.f32 %v7083_v2  ;;  %v7059_v2 = vadd.f32 %v17387_v8, %v17401_v27 }
 0x789   :  { %13170 = vtanh.f32 %v7052_v6  ;;  %v7088_v41 = vadd.f32 %v17437_v59, %v17475_v57  ;;  %v7086_v59 = vadd.f32 %v17430_v39, %v17475_v57 }
 0x78a   :  { %v7167_v22 = vmin.f32 %v17495_v3, 20.0  ;;  %v7540_v21 = vpop.f32.mrf.mxu2  ;;  %v7629_v38 = vpop.f32.mrf.mxu3  ;;  %13172 = vtanh.f32 %v7081_v7  ;;  %vm7159_vm3 = vcmp.gt.f32.partialorder %v17495_v3, 20.0 }
 0x78b   :  { %v17502_v0 = vadd.f32 %v7540_v21, %v17488_v26  ;;  %v17505_v46 = vadd.f32 %v7629_v38, %v17490_v30 }
 0x78c   :  { %v13165_v49 = vpop.eup %13164  ;;  %v7176_v44 = vmul.f32 1.442695, %v7167_v22  ;;  %v7057_v22 = vadd.f32 %v17374_v17, %v17401_v27 }
 0x78d   :  { %v7190_v11 = vadd.f32 1.0, %v13165_v49  ;;  %v7715_v20 = vmax.f32 %v17502_v0, %v17505_v46  ;;  %v7193_v5 = vmul.f32 -0.5, %v13165_v49  ;;  %v13167_v18 = vpop.eup %13166  ;;  %v7196_v12 = vand.u32 2147483647, %v13165_v49 }
 0x78e   :  { %13174 = vpow2.f32 %v7176_v44  ;;  %v13169_v19 = vpop.eup %13168 }
 0x78f   :  { %13176 = vlog2.f32 %v7190_v11  ;;  %7716 = vmax.xlane.f32.xlu0 %v7715_v20  ;;  %v7143_v4 = vpop.f32.mrf.mxu0  ;;  %v13171_v25 = vpop.eup %13170  ;;  %v7194_v62 = vadd.f32 1.0, %v7193_v5  ;;  %vm7197_vm0 = vcmp.lt.f32.partialorder %v7196_v12, 0.0004427343 }
 0x790   :  { %v17511_v51 = vadd.f32 %v7143_v4, %v17460_v10  ;;  %v13173_v23 = vpop.eup %13172  ;;  %v17514_v40 = vpack.c.bf16 %v13167_v18, %v13171_v25 }
 0x791   :  { %v7391_v47 = vpack.c.bf16 %v13169_v19, %v13173_v23  ;;  %v7195_v28 = vmul.f32 %v13165_v49, %v7194_v62 }
 0x792   :  { %v7168_v33 = vmin.f32 %v17511_v51, 20.0  ;;  %v7542_v1 = vpop.f32.mrf.mxu2  ;;  %v7631_v36 = vpop.f32.mrf.mxu3  ;;  %vm7160_vm5 = vcmp.gt.f32.partialorder %v17511_v51, 20.0 }
 0x793   :  { %v17518_v61 = vadd.f32 %v7542_v1, %v17488_v26  ;;  %v17521_v15 = vadd.f32 %v7631_v36, %v17490_v30  ;;  %7529 = vmatmul.bf16.gmra.mxu0 %v17514_v40 }
 0x794   :  { %v13175_v48 = vpop.eup %13174  ;;  %v7178_v45 = vmul.f32 1.442695, %v7168_v33  ;;  %7549 = vmatmul.bf16.gmra.mxu2 %v7391_v47  ;;  %7638 = vmatmul.bf16.gmra.mxu3 %v7391_v47 }
 0x795   :  { %v13177_v55 = vpop.eup %13176  ;;  %v7718_v43 = vmax.f32 %v17518_v61, %v17521_v15  ;;  %v7199_v6 = vadd.f32 1.0, %v13175_v48  ;;  %v7202_v7 = vmul.f32 -0.5, %v13175_v48  ;;  %v7205_v44 = vand.u32 2147483647, %v13175_v48 }
 0x796   :  { %v7192_v31 = vmul.f32 0.6931472, %v13177_v55  ;;  %13178 = vpow2.f32 %v7178_v45 }
 0x797   :  { %7719 = vmax.xlane.f32.xlu1 %v7718_v43  ;;  %v7145_v8 = vpop.f32.mrf.mxu0  ;;  %13180 = vlog2.f32 %v7199_v6  ;;  %v7203_v27 = vadd.f32 1.0, %v7202_v7  ;;  %vm7206_vm2 = vcmp.lt.f32.partialorder %v7205_v44, 0.0004427343 }
 0x798   :  { %v7198_v21 = vsel %vm7197_vm0, %v7195_v28, %v7192_v31  ;;  %v17537_v38 = vadd.f32 %v7145_v8, %v17460_v10  ;;  %13182 = vtanh.f32 %v7059_v2 }
 0x799   :  { %v7262_v49 = vsel %vm7158_vm1, %v17466_v42, %v7198_v21  ;;  %13184 = vtanh.f32 %v7088_v41  ;;  %v7204_v18 = vmul.f32 %v13175_v48, %v7203_v27 }
 0x79a   :  { %v7270_v24 = vadd.f32 1e-08, %v7262_v49  ;;  %v7169_v17 = vmin.f32 %v17537_v38, 20.0  ;;  %13186 = vtanh.f32 %v7057_v22  ;;  %vm7161_vm7 = vcmp.gt.f32.partialorder %v17537_v38, 20.0 }
 0x79b   :  { %13188 = vtanh.f32 %v7086_v59  ;;  %v7091_v59 = vadd.f32 %v17444_v37, %v17475_v57 }
 0x79c   :  { %v13179_v11 = vpop.eup %13178  ;;  %7278 = vst [vmem:[%s18542_s16] sm:$0xff] %v7270_v24  ;;  %v7180_v39 = vmul.f32 1.442695, %v7169_v17  ;;  %7318 = vmatmul.f32.vlgmr.msra.gmra.mxu1 %v7270_v24 }
 0x79d   :  { %v13181_v20 = vpop.eup %13180  ;;  %v7208_v5 = vadd.f32 1.0, %v13179_v11  ;;  %v7211_v4 = vmul.f32 -0.5, %v13179_v11  ;;  %v7214_v2 = vand.u32 2147483647, %v13179_v11 }
 0x79e   :  { %13190 = vpow2.f32 %v7180_v39  ;;  %v7201_v42 = vmul.f32 0.6931472, %v13181_v20  ;;  %v13183_v19 = vpop.eup %13182 }
 0x79f   :  { %v7148_v25 = vpop.f32.mrf.mxu0  ;;  %13192 = vlog2.f32 %v7208_v5  ;;  %v13185_v54 = vpop.eup %13184  ;;  %v7212_v45 = vadd.f32 1.0, %v7211_v4  ;;  %vm7215_vm4 = vcmp.lt.f32.partialorder %v7214_v2, 0.0004427343 }
 0x7a0   :  { %v17547_v23 = vadd.f32 %v7148_v25, %v17460_v10  ;;  %v7207_v62 = vsel %vm7206_vm2, %v7204_v18, %v7201_v42  ;;  %v13187_v33 = vpop.eup %13186 }
 0x7a1   :  { %v7263_v1 = vsel %vm7159_vm3, %v17495_v3, %v7207_v62  ;;  %v13189_v36 = vpop.eup %13188  ;;  %v17551_v47 = vpack.c.bf16 %v13183_v19, %v13187_v33  ;;  %v7093_v3 = vadd.f32 %v17448_v34, %v17475_v57  ;;  %v7213_v7 = vmul.f32 %v13179_v11, %v7212_v45 }
 0x7a2   :  { %v7170_v12 = vmin.f32 %v17547_v23, 20.0  ;;  %v7271_v48 = vadd.f32 1e-08, %v7263_v1  ;;  %v7392_v55 = vpack.c.bf16 %v13185_v54, %v13189_v36  ;;  %vm7162_vm9 = vcmp.gt.f32.partialorder %v17547_v23, 20.0 }
 0x7a3   :  { %7534 = vmatmul.bf16.gmra.mxu0 %v17551_v47 }
 0x7a4   :  { %v13191_v41 = vpop.eup %13190  ;;  %v7182_v43 = vmul.f32 1.442695, %v7170_v12  ;;  %7279 = vst [vmem:[%s18542_s16 + $0x8] sm:$0xff] %v7271_v48  ;;  %7321 = vmatmul.f32.gmra.mxu1 %v7271_v48  ;;  %7554 = vmatmul.bf16.gmra.mxu2 %v7392_v55 }
 0x7a5   :  { %v13193_v6 = vpop.eup %13192  ;;  %7643 = vmatmul.bf16.gmra.mxu3 %v7392_v55  ;;  %v7217_v31 = vadd.f32 1.0, %v13191_v41  ;;  %v7220_v22 = vmul.f32 -0.5, %v13191_v41  ;;  %v7223_v44 = vand.u32 2147483647, %v13191_v41 }
 0x7a6   :  { %13194 = vpow2.f32 %v7182_v43  ;;  %v7210_v28 = vmul.f32 0.6931472, %v13193_v6 }
 0x7a7   :  { %v7150_v8 = vpop.f32.mrf.mxu0  ;;  %13196 = vlog2.f32 %v7217_v31  ;;  %v7221_v27 = vadd.f32 1.0, %v7220_v22  ;;  %vm7224_vm6 = vcmp.lt.f32.partialorder %v7223_v44, 0.0004427343 }
 0x7a8   :  { %v17563_v21 = vadd.f32 %v7150_v8, %v17460_v10  ;;  %v7216_v49 = vsel %vm7215_vm4, %v7213_v7, %v7210_v28  ;;  %13198 = vtanh.f32 %v7093_v3  ;;  %v7096_v28 = vadd.f32 %v17452_v52, %v17475_v57 }
 0x7a9   :  { %v7264_v34 = vsel %vm7160_vm5, %v17511_v51, %v7216_v49  ;;  %13200 = vtanh.f32 %v7091_v59  ;;  %v7222_v42 = vmul.f32 %v13191_v41, %v7221_v27  ;;  %v7098_v41 = vadd.f32 %v17468_v35, %v17475_v57 }
 0x7aa   :  { %v7171_v24 = vmin.f32 %v17563_v21, 20.0  ;;  %v7272_v17 = vadd.f32 1e-08, %v7264_v34  ;;  %vm7163_vm11 = vcmp.gt.f32.partialorder %v17563_v21, 20.0 }
 0x7ac   :  { %v13195_v11 = vpop.eup %13194  ;;  %v7184_v39 = vmul.f32 1.442695, %v7171_v24  ;;  %7280 = vst [vmem:[%s18542_s16 + $0x10] sm:$0xff] %v7272_v17  ;;  %7324 = vmatmul.f32.gmra.mxu1 %v7272_v17 }
 0x7ad   :  { %v13197_v37 = vpop.eup %13196  ;;  %v7226_v20 = vadd.f32 1.0, %v13195_v11  ;;  %v7229_v51 = vmul.f32 -0.5, %v13195_v11  ;;  %v7232_v48 = vand.u32 2147483647, %v13195_v11 }
 0x7ae   :  { %13202 = vpow2.f32 %v7184_v39  ;;  %v7219_v5 = vmul.f32 0.6931472, %v13197_v37  ;;  %v13199_v4 = vpop.eup %13198 }
 0x7af   :  { %v7153_v18 = vpop.f32.mrf.mxu0  ;;  %13204 = vlog2.f32 %v7226_v20  ;;  %v13201_v62 = vpop.eup %13200  ;;  %v7230_v36 = vadd.f32 1.0, %v7229_v51  ;;  %vm7233_vm8 = vcmp.lt.f32.partialorder %v7232_v48, 0.0004427343 }
 0x7b0   :  { %v17572_v19 = vadd.f32 %v7153_v18, %v17460_v10  ;;  %v7225_v25 = vsel %vm7224_vm6, %v7222_v42, %v7219_v5  ;;  %v7393_v12 = vpack.c.bf16 %v13199_v4, %v13201_v62 }
 0x7b1   :  { %v7265_v54 = vsel %vm7161_vm7, %v17537_v38, %v7225_v25  ;;  %v7231_v6 = vmul.f32 %v13195_v11, %v7230_v36 }
 0x7b2   :  { %v7172_v33 = vmin.f32 %v17572_v19, 20.0  ;;  %v7273_v1 = vadd.f32 1e-08, %v7265_v54  ;;  %v7112_v54 = vadd.f32 %v17422_v63, %v17457_v58  ;;  %vm7164_vm13 = vcmp.gt.f32.partialorder %v17572_v19, 20.0 }
 0x7b4   :  { %v13203_v45 = vpop.eup %13202  ;;  %v7186_v55 = vmul.f32 1.442695, %v7172_v33  ;;  %7281 = vst [vmem:[%s18542_s16 + $0x18] sm:$0xff] %v7273_v1  ;;  %7327 = vmatmul.f32.gmra.mxu1 %v7273_v1  ;;  %7559 = vmatmul.bf16.gmra.mxu2 %v7393_v12  ;;  %v7110_v1 = vadd.f32 %v17413_v50, %v17457_v58 }
 0x7b5   :  { %v13205_v2 = vpop.eup %13204  ;;  %7648 = vmatmul.bf16.gmra.mxu3 %v7393_v12  ;;  %v7235_v38 = vadd.f32 1.0, %v13203_v45  ;;  %v7238_v3 = vmul.f32 -0.5, %v13203_v45  ;;  %v7241_v34 = vand.u32 2147483647, %v13203_v45 }
 0x7b6   :  { %13206 = vpow2.f32 %v7186_v55  ;;  %v7228_v43 = vmul.f32 0.6931472, %v13205_v2 }
 0x7b7   :  { %v7155_v31 = vpop.f32.mrf.mxu0  ;;  %13208 = vlog2.f32 %v7235_v38  ;;  %v7239_v49 = vadd.f32 1.0, %v7238_v3  ;;  %vm7242_vm10 = vcmp.lt.f32.partialorder %v7241_v34, 0.0004427343 }
 0x7b8   :  { %v7156_v7 = vadd.f32 %v7155_v31, %v17460_v10  ;;  %v7234_v22 = vsel %vm7233_vm8, %v7231_v6, %v7228_v43  ;;  %13210 = vtanh.f32 %v7098_v41  ;;  %v7117_v31 = vadd.f32 %v17435_v14, %v17457_v58 }
 0x7b9   :  { %v7266_v35 = vsel %vm7162_vm9, %v17547_v23, %v7234_v22  ;;  %13212 = vtanh.f32 %v7096_v28  ;;  %v7240_v27 = vmul.f32 %v13203_v45, %v7239_v49  ;;  %v7115_v28 = vadd.f32 %v17426_v32, %v17457_v58 }
 0x7ba   :  { %v7173_v8 = vmin.f32 %v7156_v7, 20.0  ;;  %v7274_v59 = vadd.f32 1e-08, %v7266_v35  ;;  %vm7165_vm15 = vcmp.gt.f32.partialorder %v7156_v7, 20.0 }
 0x7bc   :  { %v13207_v24 = vpop.eup %13206  ;;  %v7188_v17 = vmul.f32 1.442695, %v7173_v8  ;;  %7282 = vst [vmem:[%s18542_s16 + $0x20] sm:$0xff] %v7274_v59  ;;  %7330 = vmatmul.f32.gmra.mxu1 %v7274_v59  ;;  %v7122_v8 = vadd.f32 %v17446_v29, %v17457_v58  ;;  %v7120_v59 = vadd.f32 %v17442_v60, %v17457_v58 }
 0x7bd   :  { %v13209_v52 = vpop.eup %13208  ;;  %v7244_v57 = vadd.f32 1.0, %v13207_v24  ;;  %v7247_v44 = vmul.f32 -0.5, %v13207_v24  ;;  %v7250_v51 = vand.u32 2147483647, %v13207_v24 }
 0x7be   :  { %13214 = vpow2.f32 %v7188_v17  ;;  %v7237_v10 = vmul.f32 0.6931472, %v13209_v52  ;;  %v13211_v23 = vpop.eup %13210 }
 0x7bf   :  { %13216 = vlog2.f32 %v7244_v57  ;;  %v13213_v37 = vpop.eup %13212  ;;  %v7248_v5 = vadd.f32 1.0, %v7247_v44  ;;  %vm7251_vm12 = vcmp.lt.f32.partialorder %v7250_v51, 0.0004427343 }
 0x7c0   :  { %v7243_v11 = vsel %vm7242_vm10, %v7240_v27, %v7237_v10  ;;  %v7394_v42 = vpack.c.bf16 %v13211_v23, %v13213_v37 }
 0x7c1   :  { %v7267_v39 = vsel %vm7163_vm11, %v17563_v21, %v7243_v11  ;;  %v7249_v21 = vmul.f32 %v13207_v24, %v7248_v5 }
 0x7c2   :  { %v7275_v20 = vadd.f32 1e-08, %v7267_v39 }
 0x7c4   :  { %v13215_v18 = vpop.eup %13214  ;;  %7283 = vst [vmem:[%s18542_s16 + $0x28] sm:$0xff] %v7275_v20  ;;  %7333 = vmatmul.f32.gmra.mxu1 %v7275_v20  ;;  %7564 = vmatmul.bf16.gmra.mxu2 %v7394_v42 }
 0x7c5   :  { %v13217_v4 = vpop.eup %13216  ;;  %7653 = vmatmul.bf16.gmra.mxu3 %v7394_v42  ;;  %v7253_v25 = vadd.f32 1.0, %v13215_v18  ;;  %v7256_v33 = vmul.f32 -0.5, %v13215_v18  ;;  %v7259_v55 = vand.u32 2147483647, %v13215_v18 }
 0x7c6   :  { %v7246_v62 = vmul.f32 0.6931472, %v13217_v4 }
 0x7c7   :  { %13218 = vlog2.f32 %v7253_v25  ;;  %v7257_v45 = vadd.f32 1.0, %v7256_v33  ;;  %vm7260_vm14 = vcmp.lt.f32.partialorder %v7259_v55, 0.0004427343 }
 0x7c8   :  { %v7252_v36 = vsel %vm7251_vm12, %v7249_v21, %v7246_v62  ;;  %13220 = vtanh.f32 %v7112_v54 }
 0x7c9   :  { %v7268_v12 = vsel %vm7164_vm13, %v17572_v19, %v7252_v36  ;;  %13222 = vtanh.f32 %v7110_v1  ;;  %v7258_v41 = vmul.f32 %v13215_v18, %v7257_v45 }
 0x7ca   :  { %v7276_v48 = vadd.f32 1e-08, %v7268_v12  ;;  %13224 = vtanh.f32 %v7117_v31 }
 0x7cb   :  { %13226 = vtanh.f32 %v7115_v28 }
 0x7cc   :  { %7284 = vst [vmem:[%s18542_s16 + $0x30] sm:$0xff] %v7276_v48  ;;  %7336 = vmatmul.f32.gmra.mxu1 %v7276_v48  ;;  %13228 = vtanh.f32 %v7122_v8 }
 0x7cd   :  { %v13219_v63 = vpop.eup %13218  ;;  %13230 = vtanh.f32 %v7120_v59 }
 0x7ce   :  { %v7255_v2 = vmul.f32 0.6931472, %v13219_v63  ;;  %v13221_v50 = vpop.eup %13220 }
 0x7cf   :  { %v13223_v6 = vpop.eup %13222 }
 0x7d0   :  { %v7261_v38 = vsel %vm7260_vm14, %v7258_v41, %v7255_v2  ;;  %v7395_v3 = vpack.c.bf16 %v13221_v50, %v13223_v6 }
 0x7d1   :  { %v7269_v43 = vsel %vm7165_vm15, %v7156_v7, %v7261_v38  ;;  %v13225_v7 = vpop.eup %13224 }
 0x7d2   :  { %v7277_v19 = vadd.f32 1e-08, %v7269_v43  ;;  %v13227_v22 = vpop.eup %13226 }
 0x7d3   :  { %v7396_v35 = vpack.c.bf16 %v13225_v7, %v13227_v22  ;;  %v13229_v32 = vpop.eup %13228 }
 0x7d4   :  { %7285 = vst [vmem:[%s18542_s16 + $0x38] sm:$0xff] %v7277_v19  ;;  %7339 = vmatmul.f32.gmra.mxu1 %v7277_v19  ;;  %7569 = vmatmul.bf16.gmra.mxu2 %v7395_v3  ;;  %v13231_v14 = vpop.eup %13230 }
 0x7d5   :  { %7658 = vmatmul.bf16.gmra.mxu3 %v7395_v3  ;;  %v7397_v49 = vpack.c.bf16 %v13229_v32, %v13231_v14 }
 0x7dc   :  { %7598 = vmatmul.bf16.vlgmr.msrb.gmra.mxu1 %v17417_v16 }
 0x7e4   :  { %7574 = vmatmul.bf16.gmra.mxu2 %v7396_v35 }
 0x7e5   :  { %7663 = vmatmul.bf16.gmra.mxu3 %v7396_v35 }
 0x7ec   :  { %7603 = vmatmul.bf16.gmra.mxu1 %v17428_v53 }
 0x7f4   :  { %7579 = vmatmul.bf16.gmra.mxu2 %v7397_v49 }
 0x7f5   :  { %7668 = vmatmul.bf16.gmra.mxu3 %v7397_v49  ;;  %v7510_v49 = vpop.f32.mrf.mxu0 }
 0x7fc   :  { %7608 = vmatmul.bf16.gmra.mxu1 %v17439_v56 }
 0x802   :  { %v7717_v16 = vpop.xlane.xlu0 %7716 }
 0x803   :  { %v7799_v34 = vsub.f32 %v17502_v0, %v7717_v16  ;;  %v7800_v24 = vsub.f32 %v17505_v46, %v7717_v16 }
 0x804   :  { %7584 = vmatmul.bf16.gmra.mxu2 %v17497_v13 }
 0x805   :  { %v7887_v29 = vmul.f32 1.442695, %v7799_v34  ;;  %7673 = vmatmul.bf16.gmra.mxu3 %v17497_v13  ;;  %v7889_v60 = vmul.f32 1.442695, %v7800_v24 }
 0x807   :  { %v7545_v58 = vpop.f32.mrf.mxu2  ;;  %v7634_v53 = vpop.f32.mrf.mxu3  ;;  %13232 = vpow2.f32 %v7887_v29 }
 0x808   :  { %v17622_v17 = vadd.f32 %v7545_v58, %v17488_v26  ;;  %v17625_v52 = vadd.f32 %v7634_v53, %v17490_v30  ;;  %13234 = vpow2.f32 %v7889_v60 }
 0x80a   :  { %v7720_v56 = vpop.xlane.xlu1 %7719  ;;  %v7721_v57 = vmax.f32 %v17622_v17, %v17625_v52 }
 0x80b   :  { %v7801_v0 = vsub.f32 %v17518_v61, %v7720_v56  ;;  %v7802_v46 = vsub.f32 %v17521_v15, %v7720_v56  ;;  %v7512_v56 = vpop.f32.mrf.mxu0 }
 0x80c   :  { %7613 = vmatmul.bf16.gmra.mxu1 %v17471_v9  ;;  %7722 = vmax.xlane.f32.xlu2 %v7721_v57 }
 0x80d   :  { %v7891_v13 = vmul.f32 1.442695, %v7801_v0  ;;  %v7893_v10 = vmul.f32 1.442695, %v7802_v46  ;;  %v17632_v27 = vpop.eup %13232 }
 0x80e   :  { %v17634_v44 = vpop.eup %13234 }
 0x80f   :  { %v7547_v23 = vpop.f32.mrf.mxu2  ;;  %v7636_v11 = vpop.f32.mrf.mxu3  ;;  %13236 = vpow2.f32 %v7891_v13  ;;  %v8003_v15 = vadd.f32 %v17634_v44, %v17632_v27 }
 0x810   :  { %v17637_v39 = vadd.f32 %v7547_v23, %v17488_v26  ;;  %v17640_v61 = vadd.f32 %v7636_v11, %v17490_v30  ;;  %13238 = vpow2.f32 %v7893_v10 }
 0x812   :  { %v7724_v9 = vmax.f32 %v17637_v39, %v17640_v61 }
 0x813   :  { %v7515_v11 = vpop.f32.mrf.mxu0 }
 0x814   :  { %7725 = vmax.xlane.f32.xlu0 %v7724_v9  ;;  %8004 = vadd.xlane.f32.xlu2 %v8003_v15 }
 0x815   :  { %v17646_v37 = vpop.eup %13236 }
 0x816   :  { %v17648_v20 = vpop.eup %13238 }
 0x817   :  { %v7550_v5 = vpop.f32.mrf.mxu2  ;;  %v7639_v42 = vpop.f32.mrf.mxu3  ;;  %v8006_v54 = vadd.f32 %v17648_v20, %v17646_v37 }
 0x818   :  { %v17651_v51 = vadd.f32 %v7550_v5, %v17488_v26  ;;  %v17654_v18 = vadd.f32 %v7639_v42, %v17490_v30 }
 0x819   :  { %v7319_v4 = vpop.f32.mrf.mxu1 }
 0x81a   :  { %7343 = vst [vmem:[%s18589_s1] sm:$0xff] %v7319_v4  ;;  %v7727_v25 = vmax.f32 %v17651_v51, %v17654_v18 }
 0x81c   :  { %7618 = vmatmul.bf16.gmra.mxu1 %v17514_v40  ;;  %7728 = vmax.xlane.f32.xlu1 %v7727_v25 }
 0x81d   :  { %8007 = vadd.xlane.f32.xlu0 %v8006_v54 }
 0x81f   :  { %v7552_v62 = vpop.f32.mrf.mxu2  ;;  %v7641_v21 = vpop.f32.mrf.mxu3 }
 0x820   :  { %v17665_v33 = vadd.f32 %v7552_v62, %v17488_v26  ;;  %v17668_v1 = vadd.f32 %v7641_v21, %v17490_v30 }
 0x821   :  { %v7322_v36 = vpop.f32.mrf.mxu1 }
 0x822   :  { %7344 = vst [vmem:[%s18589_s1 + $0x8] sm:$0xff] %v7322_v36  ;;  %v7730_v12 = vmax.f32 %v17665_v33, %v17668_v1  ;;  %v17754_v36 = vadd.f32 %v7510_v49, %v17488_v26 }
 0x824   :  { %7731 = vmax.xlane.f32.xlu2 %v7730_v12  ;;  %v7517_v12 = vpop.f32.mrf.mxu0 }
 0x827   :  { %v7555_v40 = vpop.f32.mrf.mxu2 }
 0x828   :  { %v7644_v48 = vpop.f32.mrf.mxu3  ;;  %v17676_v45 = vadd.f32 %v7555_v40, %v17488_v26 }
 0x829   :  { %v17679_v55 = vadd.f32 %v7644_v48, %v17490_v30  ;;  %v7325_v63 = vpop.f32.mrf.mxu1 }
 0x82a   :  { %7345 = vst [vmem:[%s18589_s1 + $0x10] sm:$0xff] %v7325_v63 }
 0x82b   :  { %v7733_v2 = vmax.f32 %v17676_v45, %v17679_v55 }
 0x82c   :  { %7623 = vmatmul.bf16.gmra.mxu1 %v17551_v47 }
 0x82d   :  { %7734 = vmax.xlane.f32.xlu0 %v7733_v2 }
 0x82f   :  { %v7557_v41 = vpop.f32.mrf.mxu2 }
 0x830   :  { %v7646_v50 = vpop.f32.mrf.mxu3  ;;  %v17688_v38 = vadd.f32 %v7557_v41, %v17488_v26 }
 0x831   :  { %v17691_v43 = vadd.f32 %v7646_v50, %v17490_v30  ;;  %v7328_v6 = vpop.f32.mrf.mxu1 }
 0x832   :  { %7346 = vst [vmem:[%s18589_s1 + $0x18] sm:$0xff] %v7328_v6 }
 0x833   :  { %v7736_v19 = vmax.f32 %v17688_v38, %v17691_v43 }
 0x835   :  { %7737 = vmax.xlane.f32.xlu1 %v7736_v19 }
 0x837   :  { %v7560_v3 = vpop.f32.mrf.mxu2 }
 0x838   :  { %v7649_v47 = vpop.f32.mrf.mxu3  ;;  %v17699_v31 = vadd.f32 %v7560_v3, %v17488_v26  ;;  %v17770_v3 = vadd.f32 %v7512_v56, %v17488_v26 }
 0x839   :  { %v17702_v28 = vadd.f32 %v7649_v47, %v17490_v30  ;;  %v7331_v7 = vpop.f32.mrf.mxu1 }
 0x83a   :  { %7347 = vst [vmem:[%s18589_s1 + $0x20] sm:$0xff] %v7331_v7 }
 0x83b   :  { %v7739_v22 = vmax.f32 %v17699_v31, %v17702_v28 }
 0x83d   :  { %7740 = vmax.xlane.f32.xlu2 %v7739_v22 }
 0x83f   :  { %v7562_v35 = vpop.f32.mrf.mxu2 }
 0x840   :  { %v7651_v8 = vpop.f32.mrf.mxu3  ;;  %v17710_v59 = vadd.f32 %v7562_v35, %v17488_v26  ;;  %v17779_v35 = vadd.f32 %v7515_v11, %v17488_v26 }
 0x841   :  { %v17713_v32 = vadd.f32 %v7651_v8, %v17490_v30  ;;  %v7334_v14 = vpop.f32.mrf.mxu1 }
 0x842   :  { %7348 = vst [vmem:[%s18589_s1 + $0x28] sm:$0xff] %v7334_v14  ;;  %v7520_v14 = vpop.f32.mrf.mxu0 }
 0x843   :  { %v7742_v16 = vmax.f32 %v17710_v59, %v17713_v32 }
 0x845   :  { %7743 = vmax.xlane.f32.xlu0 %v7742_v16 }
 0x847   :  { %v7565_v34 = vpop.f32.mrf.mxu2 }
 0x848   :  { %v7654_v24 = vpop.f32.mrf.mxu3  ;;  %v17721_v29 = vadd.f32 %v7565_v34, %v17488_v26 }
 0x849   :  { %v17724_v60 = vadd.f32 %v7654_v24, %v17490_v30  ;;  %v7337_v58 = vpop.f32.mrf.mxu1 }
 0x84a   :  { %7349 = vst [vmem:[%s18589_s1 + $0x30] sm:$0xff] %v7337_v58 }
 0x84b   :  { %v7745_v53 = vmax.f32 %v17721_v29, %v17724_v60 }
 0x84d   :  { %7746 = vmax.xlane.f32.xlu1 %v7745_v53 }
 0x84f   :  { %v7567_v0 = vpop.f32.mrf.mxu2 }
 0x850   :  { %v7656_v46 = vpop.f32.mrf.mxu3  ;;  %v17732_v57 = vadd.f32 %v7567_v0, %v17488_v26 }
 0x851   :  { %v17735_v13 = vadd.f32 %v7656_v46, %v17490_v30  ;;  %v7340_v10 = vpop.f32.mrf.mxu1  ;;  %v17797_v46 = vadd.f32 %v7517_v12, %v17488_v26  ;;  %v17813_v12 = vadd.f32 %v7520_v14, %v17488_v26 }
 0x852   :  { %7350 = vst [vmem:[%s18589_s1 + $0x38] sm:$0xff] %v7340_v10 }
 0x853   :  { %v7748_v23 = vmax.f32 %v17732_v57, %v17735_v13 }
 0x855   :  { %7749 = vmax.xlane.f32.xlu2 %v7748_v23 }
 0x857   :  { %v7570_v9 = vpop.f32.mrf.mxu2 }
 0x858   :  { %v7659_v15 = vpop.f32.mrf.mxu3  ;;  %v17743_v5 = vadd.f32 %v7570_v9, %v17488_v26  ;;  %v7522_v9 = vpop.f32.mrf.mxu0 }
 0x859   :  { %v17746_v42 = vadd.f32 %v7659_v15, %v17490_v30  ;;  %v7599_v4 = vpop.f32.mrf.mxu1 }
 0x85a   :  { %v17751_v54 = vadd.f32 %v7599_v4, %v17490_v30 }
 0x85b   :  { %v7751_v25 = vmax.f32 %v17743_v5, %v17746_v42 }
 0x85c   :  { %v7679_v41 = vmax.f32 %v17754_v36, %v17751_v54 }
 0x85d   :  { %7752 = vmax.xlane.f32.xlu0 %v7751_v25 }
 0x85f   :  { %v7572_v62 = vpop.f32.mrf.mxu2 }
 0x860   :  { %v7661_v21 = vpop.f32.mrf.mxu3  ;;  %v17757_v40 = vadd.f32 %v7572_v62, %v17488_v26 }
 0x861   :  { %v17760_v48 = vadd.f32 %v7661_v21, %v17490_v30  ;;  %v7601_v63 = vpop.f32.mrf.mxu1 }
 0x862   :  { %v17767_v50 = vadd.f32 %v7601_v63, %v17490_v30 }
 0x863   :  { %v7754_v2 = vmax.f32 %v17757_v40, %v17760_v48 }
 0x864   :  { %v7682_v16 = vmax.f32 %v17770_v3, %v17767_v50 }
 0x865   :  { %7755 = vmax.xlane.f32.xlu1 %v7754_v2  ;;  %7680 = vmax.xlane.f32.xlu0 %v7679_v41 }
 0x867   :  { %v7575_v6 = vpop.f32.mrf.mxu2 }
 0x868   :  { %v7664_v19 = vpop.f32.mrf.mxu3  ;;  %v17773_v47 = vadd.f32 %v7575_v6, %v17488_v26  ;;  %v7525_v6 = vpop.f32.mrf.mxu0 }
 0x869   :  { %v17776_v7 = vadd.f32 %v7664_v19, %v17490_v30  ;;  %v7604_v22 = vpop.f32.mrf.mxu1 }
 0x86a   :  { %v17782_v8 = vadd.f32 %v7604_v22, %v17490_v30 }
 0x86b   :  { %v7757_v49 = vmax.f32 %v17773_v47, %v17776_v7 }
 0x86c   :  { %v7685_v34 = vmax.f32 %v17779_v35, %v17782_v8 }
 0x86d   :  { %7758 = vmax.xlane.f32.xlu2 %v7757_v49  ;;  %7683 = vmax.xlane.f32.xlu0 %v7682_v16 }
 0x86e   :  { %7686 = vmax.xlane.f32.xlu1 %v7685_v34 }
 0x86f   :  { %v7577_v24 = vpop.f32.mrf.mxu2 }
 0x870   :  { %v7666_v58 = vpop.f32.mrf.mxu3  ;;  %v17791_v53 = vadd.f32 %v7577_v24, %v17488_v26 }
 0x871   :  { %v17794_v56 = vadd.f32 %v7666_v58, %v17490_v30  ;;  %v7606_v0 = vpop.f32.mrf.mxu1 }
 0x872   :  { %v17800_v10 = vadd.f32 %v7606_v0, %v17490_v30 }
 0x873   :  { %v7760_v23 = vmax.f32 %v17791_v53, %v17794_v56 }
 0x874   :  { %v7688_v11 = vmax.f32 %v17797_v46, %v17800_v10 }
 0x875   :  { %7761 = vmax.xlane.f32.xlu0 %v7760_v23 }
 0x876   :  { %7689 = vmax.xlane.f32.xlu1 %v7688_v11 }
 0x877   :  { %v7580_v15 = vpop.f32.mrf.mxu2 }
 0x878   :  { %v7669_v4 = vpop.f32.mrf.mxu3  ;;  %v17807_v25 = vadd.f32 %v7580_v15, %v17488_v26  ;;  %v17832_v15 = vpop.f32.mrf.mxu0 }
 0x879   :  { %v17810_v62 = vadd.f32 %v7669_v4, %v17490_v30  ;;  %v7609_v21 = vpop.f32.mrf.mxu1 }
 0x87a   :  { %v17816_v63 = vadd.f32 %v7609_v21, %v17490_v30 }
 0x87b   :  { %v7763_v41 = vmax.f32 %v17807_v25, %v17810_v62 }
 0x87c   :  { %v7691_v2 = vmax.f32 %v17813_v12, %v17816_v63 }
 0x87e   :  { %7692 = vmax.xlane.f32.xlu2 %v7691_v2  ;;  %7764 = vmax.xlane.f32.xlu1 %v7763_v41 }
 0x87f   :  { %v7582_v19 = vpop.f32.mrf.mxu2  ;;  %v7723_v16 = vpop.xlane.xlu2 %7722 }
 0x880   :  { %v7671_v22 = vpop.f32.mrf.mxu3  ;;  %v17823_v49 = vadd.f32 %v7582_v19, %v17488_v26  ;;  %v7803_v24 = vsub.f32 %v17622_v17, %v7723_v16  ;;  %v7804_v58 = vsub.f32 %v17625_v52, %v7723_v16 }
 0x881   :  { %v17826_v14 = vadd.f32 %v7671_v22, %v17490_v30  ;;  %v7611_v34 = vpop.f32.mrf.mxu1  ;;  %v17844_v22 = vadd.f32 %v7522_v9, %v17488_v26 }
 0x882   :  { %18590 = vst [vmem:[#allocation14_spill] sm:$0xff] %v17823_v49  ;;  %v7895_v0 = vmul.f32 1.442695, %v7803_v24  ;;  %v7897_v23 = vmul.f32 1.442695, %v7804_v58  ;;  %v17835_v4 = vadd.f32 %v7611_v34, %v17490_v30 }
 0x883   :  { %18591 = vst [vmem:[#allocation15_spill] sm:$0xff] %v17826_v14  ;;  %v7766_v11 = vmax.f32 %v17823_v49, %v17826_v14 }
 0x884   :  { %13240 = vpow2.f32 %v7895_v0  ;;  %18592 = vst [vmem:[#allocation16_spill] sm:$0xff] %v17835_v4 }
 0x885   :  { %13242 = vpow2.f32 %v7897_v23  ;;  %18595 = vst [vmem:[#allocation19_spill] sm:$0xff] %v17844_v22 }
 0x886   :  { %7767 = vmax.xlane.f32.xlu2 %v7766_v11 }
 0x887   :  { %v7585_v21 = vpop.f32.mrf.mxu2  ;;  %v7726_v52 = vpop.xlane.xlu0 %7725 }
 0x888   :  { %v7674_v2 = vpop.f32.mrf.mxu3  ;;  %v17838_v41 = vadd.f32 %v7585_v21, %v17488_v26  ;;  %v8005_v19 = vpop.xlane.xlu2 %8004  ;;  %v7805_v16 = vsub.f32 %v17637_v39, %v7726_v52  ;;  %v7806_v24 = vsub.f32 %v17640_v61, %v7726_v52  ;;  %v7694_v21 = vmax.f32 %v17844_v22, %v17835_v4 }
 0x889   :  { %v17841_v17 = vadd.f32 %v7674_v2, %v17490_v30  ;;  %13244 = vrcp.f32 %v8005_v19  ;;  %v7614_v34 = vpop.f32.mrf.mxu1  ;;  %vm8236_vm1 = vweird.f32 %v8005_v19 }
 0x88a   :  { %18593 = vst [vmem:[#allocation17_spill] sm:$0xff] %v17838_v41  ;;  %v17850_v0 = vpop.eup %13240  ;;  %v7899_v23 = vmul.f32 1.442695, %v7805_v16  ;;  %v7901_v11 = vmul.f32 1.442695, %v7806_v24  ;;  %v17859_v61 = vadd.f32 %v7614_v34, %v17490_v30  ;;  %v17862_v24 = vadd.f32 %v7525_v6, %v17488_v26 }
 0x88b   :  { %18594 = vst [vmem:[#allocation18_spill] sm:$0xff] %v17841_v17  ;;  %v7769_v58 = vmax.f32 %v17838_v41, %v17841_v17  ;;  %v17854_v2 = vpop.eup %13242 }
 0x88c   :  { %18596 = vst [vmem:[#allocation20_spill] sm:$0xff] %v17850_v0  ;;  %13246 = vpow2.f32 %v7899_v23  ;;  %v8009_v39 = vadd.f32 %v17854_v2, %v17850_v0  ;;  %v7697_v41 = vmax.f32 %v17862_v24, %v17859_v61 }
 0x88d   :  { %18597 = vst [vmem:[#allocation21_spill] sm:$0xff] %v17854_v2  ;;  %7770 = vmax.xlane.f32.xlu0 %v7769_v58  ;;  %13248 = vpow2.f32 %v7901_v11  ;;  %v7530_v11 = vpop.f32.mrf.mxu0  ;;  %v8242_v2 = vand.u32 2147483648, %v8005_v19 }
 0x88e   :  { %7695 = vmax.xlane.f32.xlu2 %v7694_v21  ;;  %18598 = vst [vmem:[#allocation22_spill] sm:$0xff] %v17859_v61  ;;  %8010 = vadd.xlane.f32.xlu1 %v8009_v39 }
 0x88f   :  { %v13245_v9 = vpop.eup %13244  ;;  %v7587_v52 = vpop.f32.mrf.mxu2 }
 0x890   :  { %v7676_v16 = vpop.f32.mrf.mxu3  ;;  %v8232_v14 = vmul.f32 %v13245_v9, %v8005_v19  ;;  %v17865_v49 = vadd.f32 %v7587_v52, %v17488_v26  ;;  %v7729_v23 = vpop.xlane.xlu1 %7728  ;;  %vm8237_vm0 = vweird.f32 %v13245_v9 }
 0x891   :  { %v17868_v58 = vadd.f32 %v7676_v16, %v17490_v30  ;;  %v17870_v21 = vpop.xlane.xlu0 %8007  ;;  %v7807_v34 = vsub.f32 %v17651_v51, %v7729_v23  ;;  %v7808_v39 = vsub.f32 %v17654_v18, %v7729_v23  ;;  %v7616_v17 = vpop.f32.mrf.mxu1  ;;  %v8240_v18 = vand.u32 2147483647, %v8005_v19  ;;  %vm8238_vm2 = vmor %vm8236_vm1, %vm8237_vm0 }
 0x892   :  { %18599 = vst [vmem:[#allocation23_spill] sm:$0xff] %v17865_v49  ;;  %13250 = vrcp.f32 %v17870_v21  ;;  %v8233_v6 = vsub.f32 1.0, %v8232_v14  ;;  %v17877_v52 = vpop.eup %13246  ;;  %v17892_v19 = vadd.f32 %v7616_v17, %v17490_v30  ;;  %vm8250_vm5 = vweird.f32 %v17870_v21 }
 0x893   :  { %18600 = vst [vmem:[#allocation24_spill] sm:$0xff] %v17868_v58  ;;  %v7903_v16 = vmul.f32 1.442695, %v7807_v34  ;;  %v7905_v0 = vmul.f32 1.442695, %v7808_v39  ;;  %v7772_v4 = vmax.f32 %v17865_v49, %v17868_v58  ;;  %v17881_v22 = vpop.eup %13248  ;;  %v8243_v34 = vor.u32 1.1754944e-38, %v8242_v2 }
 0x894   :  { %v8234_v51 = vmul.f32 %v13245_v9, %v8233_v6  ;;  %v8012_v14 = vadd.f32 %v17881_v22, %v17877_v52  ;;  %vm8241_vm3 = vcmp.eq.f32.partialorder %v8240_v18, 8.507059e+37 }
 0x895   :  { %7698 = vmax.xlane.f32.xlu0 %v7697_v41  ;;  %13252 = vpow2.f32 %v7903_v16  ;;  %v17889_v41 = vadd.f32 %v17832_v15, %v17488_v26  ;;  %v7532_v15 = vpop.f32.mrf.mxu0 }
 0x896   :  { %v8235_v23 = vadd.f32 %v13245_v9, %v8234_v51  ;;  %13254 = vpow2.f32 %v7905_v0  ;;  %7773 = vmax.xlane.f32.xlu1 %v7772_v4  ;;  %8013 = vadd.xlane.f32.xlu2 %v8012_v14 }
 0x897   :  { %v7732_v39 = vpop.xlane.xlu2 %7731 }
 0x898   :  { %v13251_v61 = vpop.eup %13250  ;;  %v8239_v58 = vsel %vm8238_vm2, %v13245_v9, %v8235_v23  ;;  %v7809_v49 = vsub.f32 %v17665_v33, %v7732_v39  ;;  %v7810_v0 = vsub.f32 %v17668_v1, %v7732_v39  ;;  %v17900_v33 = vadd.f32 %v7530_v11, %v17488_v26 }
 0x899   :  { %v8246_v6 = vmul.f32 %v13251_v61, %v17870_v21  ;;  %v8244_v16 = vsel %vm8241_vm3, %v8243_v34, %v8239_v58  ;;  %v7619_v2 = vpop.f32.mrf.mxu1  ;;  %v8256_v58 = vand.u32 2147483648, %v17870_v21  ;;  %vm8251_vm4 = vweird.f32 %v13251_v61 }
 0x89a   :  { %v8535_v4 = vmul.f32 %v17632_v27, %v8244_v16  ;;  %v8536_v9 = vmul.f32 %v17634_v44, %v8244_v16  ;;  %v7907_v18 = vmul.f32 1.442695, %v7809_v49  ;;  %v7909_v23 = vmul.f32 1.442695, %v7810_v0  ;;  %vm8252_vm6 = vmor %vm8250_vm5, %vm8251_vm4 }
 0x89b   :  { %v8247_v51 = vsub.f32 1.0, %v8246_v6  ;;  %v17897_v14 = vpop.eup %13252  ;;  %v17904_v17 = vadd.f32 %v7619_v2, %v17490_v30  ;;  %v8254_v44 = vand.u32 2147483647, %v17870_v21  ;;  %v7700_v49 = vmax.f32 %v17889_v41, %v17892_v19 }
 0x89c   :  { %v17906_v1 = vpop.eup %13254  ;;  %8599 = vst [vmem:[%s18601_s30 + $0xc0] sm:$0xff] %v8535_v4  ;;  %13256 = vpow2.f32 %v7907_v18  ;;  %v8257_v6 = vor.u32 1.1754944e-38, %v8256_v58 }
 0x89d   :  { %v8248_v27 = vmul.f32 %v13251_v61, %v8247_v51  ;;  %8600 = vst [vmem:[%s18601_s30 + $0xc8] sm:$0xff] %v8536_v9  ;;  %13258 = vpow2.f32 %v7909_v23  ;;  %v8015_v11 = vadd.f32 %v17906_v1, %v17897_v14  ;;  %v7703_v34 = vmax.f32 %v17900_v33, %v17904_v17 }
 0x89e   :  { %7701 = vmax.xlane.f32.xlu1 %v7700_v49  ;;  %vm8255_vm7 = vcmp.eq.f32.partialorder %v8254_v44, 8.507059e+37 }
 0x89f   :  { %v8249_v39 = vadd.f32 %v13251_v61, %v8248_v27  ;;  %8016 = vadd.xlane.f32.xlu0 %v8015_v11  ;;  %7704 = vmax.xlane.f32.xlu2 %v7703_v34 }
 0x8a0   :  { %v7735_v16 = vpop.xlane.xlu0 %7734 }
 0x8a1   :  { %v8253_v0 = vsel %vm8252_vm6, %v13251_v61, %v8249_v39  ;;  %v7811_v2 = vsub.f32 %v17676_v45, %v7735_v16  ;;  %v7812_v4 = vsub.f32 %v17679_v55, %v7735_v16  ;;  %v7621_v51 = vpop.f32.mrf.mxu1  ;;  %v17931_v61 = vadd.f32 %v7532_v15, %v17488_v26  ;;  %v7535_v55 = vpop.f32.mrf.mxu0 }
 0x8a2   :  { %v8258_v9 = vsel %vm8255_vm7, %v8257_v6, %v8253_v0  ;;  %v17924_v18 = vpop.eup %13256  ;;  %v17934_v45 = vadd.f32 %v7621_v51, %v17490_v30  ;;  %v17951_v6 = vadd.f32 %v7535_v55, %v17488_v26 }
 0x8a3   :  { %v8537_v23 = vmul.f32 %v17646_v37, %v8258_v9  ;;  %v8538_v21 = vmul.f32 %v17648_v20, %v8258_v9  ;;  %v7911_v27 = vmul.f32 1.442695, %v7811_v2  ;;  %v7913_v58 = vmul.f32 1.442695, %v7812_v4  ;;  %v17928_v49 = vpop.eup %13258 }
 0x8a4   :  { %v8018_v37 = vadd.f32 %v17928_v49, %v17924_v18  ;;  %v7706_v20 = vmax.f32 %v17931_v61, %v17934_v45 }
 0x8a5   :  { %8601 = vst [vmem:[%s18601_s30 + $0xd0] sm:$0xff] %v8537_v23  ;;  %13260 = vpow2.f32 %v7911_v27 }
 0x8a6   :  { %8602 = vst [vmem:[%s18601_s30 + $0xd8] sm:$0xff] %v8538_v21  ;;  %13262 = vpow2.f32 %v7913_v58  ;;  %8019 = vadd.xlane.f32.xlu1 %v8018_v37 }
 0x8a7   :  { %7707 = vmax.xlane.f32.xlu0 %v7706_v20 }
 0x8a8   :  { %v7738_v15 = vpop.xlane.xlu1 %7737 }
 0x8a9   :  { %v7813_v44 = vsub.f32 %v17688_v38, %v7738_v15  ;;  %v7814_v11 = vsub.f32 %v17691_v43, %v7738_v15  ;;  %v7624_v34 = vpop.f32.mrf.mxu1  ;;  %v7537_v43 = vpop.f32.mrf.mxu0 }
 0x8aa   :  { %v17954_v2 = vadd.f32 %v7624_v34, %v17490_v30  ;;  %v17967_v37 = vadd.f32 %v7537_v43, %v17488_v26 }
 0x8ab   :  { %v17948_v39 = vpop.eup %13260  ;;  %v7915_v16 = vmul.f32 1.442695, %v7813_v44  ;;  %v7917_v0 = vmul.f32 1.442695, %v7814_v11 }
 0x8ac   :  { %v17956_v4 = vpop.eup %13262  ;;  %v7709_v38 = vmax.f32 %v17951_v6, %v17954_v2 }
 0x8ad   :  { %13264 = vpow2.f32 %v7915_v16  ;;  %v8021_v9 = vadd.f32 %v17956_v4, %v17948_v39 }
 0x8ae   :  { %13266 = vpow2.f32 %v7917_v0  ;;  %7710 = vmax.xlane.f32.xlu1 %v7709_v38 }
 0x8af   :  { %8022 = vadd.xlane.f32.xlu2 %v8021_v9 }
 0x8b0   :  { %v7741_v51 = vpop.xlane.xlu2 %7740 }
 0x8b1   :  { %v7815_v23 = vsub.f32 %v17699_v31, %v7741_v51  ;;  %v7816_v21 = vsub.f32 %v17702_v28, %v7741_v51  ;;  %v7626_v27 = vpop.f32.mrf.mxu1 }
 0x8b2   :  { %v17970_v15 = vadd.f32 %v7626_v27, %v17490_v30 }
 0x8b3   :  { %v17964_v58 = vpop.eup %13264  ;;  %v7919_v55 = vmul.f32 1.442695, %v7815_v23  ;;  %v7921_v20 = vmul.f32 1.442695, %v7816_v21 }
 0x8b4   :  { %v17972_v44 = vpop.eup %13266  ;;  %v7712_v31 = vmax.f32 %v17967_v37, %v17970_v15 }
 0x8b5   :  { %13268 = vpow2.f32 %v7919_v55  ;;  %v8024_v11 = vadd.f32 %v17972_v44, %v17964_v58 }
 0x8b6   :  { %13270 = vpow2.f32 %v7921_v20 }
 0x8b7   :  { %8025 = vadd.xlane.f32.xlu0 %v8024_v11  ;;  %7713 = vmax.xlane.f32.xlu2 %v7712_v31 }
 0x8b8   :  { %v7744_v28 = vpop.xlane.xlu0 %7743 }
 0x8b9   :  { %v7817_v26 = vsub.f32 %v17710_v59, %v7744_v28  ;;  %v7818_v34 = vsub.f32 %v17713_v32, %v7744_v28 }
 0x8bb   :  { %v17980_v16 = vpop.eup %13268  ;;  %v7923_v30 = vmul.f32 1.442695, %v7817_v26  ;;  %v7925_v0 = vmul.f32 1.442695, %v7818_v34 }
 0x8bc   :  { %v17982_v9 = vpop.eup %13270 }
 0x8bd   :  { %13272 = vpow2.f32 %v7923_v30  ;;  %v8027_v38 = vadd.f32 %v17982_v9, %v17980_v16 }
 0x8be   :  { %13274 = vpow2.f32 %v7925_v0 }
 0x8bf   :  { %8028 = vadd.xlane.f32.xlu1 %v8027_v38 }
 0x8c0   :  { %v7747_v43 = vpop.xlane.xlu1 %7746 }
 0x8c1   :  { %v7819_v51 = vsub.f32 %v17721_v29, %v7747_v43  ;;  %v7820_v23 = vsub.f32 %v17724_v60, %v7747_v43 }
 0x8c3   :  { %v17988_v59 = vpop.eup %13272  ;;  %v7927_v32 = vmul.f32 1.442695, %v7819_v51  ;;  %v7929_v21 = vmul.f32 1.442695, %v7820_v23 }
 0x8c4   :  { %v17990_v27 = vpop.eup %13274 }
 0x8c5   :  { %13276 = vpow2.f32 %v7927_v32  ;;  %v8030_v55 = vadd.f32 %v17990_v27, %v17988_v59 }
 0x8c6   :  { %13278 = vpow2.f32 %v7929_v21 }
 0x8c7   :  { %8031 = vadd.xlane.f32.xlu2 %v8030_v55 }
 0x8c8   :  { %v7750_v20 = vpop.xlane.xlu2 %7749 }
 0x8c9   :  { %v7821_v11 = vsub.f32 %v17732_v57, %v7750_v20  ;;  %v7822_v31 = vsub.f32 %v17735_v13, %v7750_v20 }
 0x8cb   :  { %v17996_v29 = vpop.eup %13276  ;;  %v7931_v60 = vmul.f32 1.442695, %v7821_v11  ;;  %v7933_v28 = vmul.f32 1.442695, %v7822_v31 }
 0x8cc   :  { %v17998_v26 = vpop.eup %13278 }
 0x8cd   :  { %13280 = vpow2.f32 %v7931_v60  ;;  %v8033_v34 = vadd.f32 %v17998_v26, %v17996_v29 }
 0x8ce   :  { %13282 = vpow2.f32 %v7933_v28 }
 0x8cf   :  { %8034 = vadd.xlane.f32.xlu0 %v8033_v34 }
 0x8d0   :  { %v7753_v30 = vpop.xlane.xlu0 %7752 }
 0x8d1   :  { %v7823_v0 = vsub.f32 %v17743_v5, %v7753_v30  ;;  %v7824_v38 = vsub.f32 %v17746_v42, %v7753_v30 }
 0x8d3   :  { %v18004_v57 = vpop.eup %13280  ;;  %v7935_v13 = vmul.f32 1.442695, %v7823_v0  ;;  %v7937_v43 = vmul.f32 1.442695, %v7824_v38 }
 0x8d4   :  { %v18006_v51 = vpop.eup %13282 }
 0x8d5   :  { %13284 = vpow2.f32 %v7935_v13  ;;  %v8036_v23 = vadd.f32 %v18006_v51, %v18004_v57 }
 0x8d6   :  { %13286 = vpow2.f32 %v7937_v43 }
 0x8d7   :  { %8037 = vadd.xlane.f32.xlu1 %v8036_v23 }
 0x8d8   :  { %v7756_v32 = vpop.xlane.xlu1 %7755  ;;  %v7681_v21 = vpop.xlane.xlu0 %7680 }
 0x8d9   :  { %v7825_v55 = vsub.f32 %v17757_v40, %v7756_v32  ;;  %v7826_v5 = vsub.f32 %v17760_v48, %v7756_v32  ;;  %v7775_v42 = vsub.f32 %v17754_v36, %v7681_v21  ;;  %v7776_v20 = vsub.f32 %v17751_v54, %v7681_v21 }
 0x8db   :  { %v18014_v11 = vpop.eup %13284  ;;  %v7939_v31 = vmul.f32 1.442695, %v7825_v55  ;;  %v7941_v60 = vmul.f32 1.442695, %v7826_v5  ;;  %v7839_v28 = vmul.f32 1.442695, %v7775_v42 }
 0x8dc   :  { %v18016_v34 = vpop.eup %13286  ;;  %v7841_v30 = vmul.f32 1.442695, %v7776_v20 }
 0x8dd   :  { %13288 = vpow2.f32 %v7939_v31  ;;  %v8039_v0 = vadd.f32 %v18016_v34, %v18014_v11 }
 0x8de   :  { %13290 = vpow2.f32 %v7941_v60 }
 0x8df   :  { %13292 = vpow2.f32 %v7839_v28  ;;  %8040 = vadd.xlane.f32.xlu2 %v8039_v0 }
 0x8e0   :  { %13294 = vpow2.f32 %v7841_v30  ;;  %v7759_v40 = vpop.xlane.xlu2 %7758  ;;  %v7684_v36 = vpop.xlane.xlu0 %7683 }
 0x8e1   :  { %v7827_v54 = vsub.f32 %v17773_v47, %v7759_v40  ;;  %v7828_v48 = vsub.f32 %v17776_v7, %v7759_v40  ;;  %v7777_v38 = vsub.f32 %v17770_v3, %v7684_v36  ;;  %v7778_v13 = vsub.f32 %v17767_v50, %v7684_v36  ;;  %v7687_v43 = vpop.xlane.xlu1 %7686 }
 0x8e2   :  { %v7779_v5 = vsub.f32 %v17779_v35, %v7687_v43  ;;  %v7780_v31 = vsub.f32 %v17782_v8, %v7687_v43 }
 0x8e3   :  { %v18024_v23 = vpop.eup %13288  ;;  %v7943_v32 = vmul.f32 1.442695, %v7827_v54  ;;  %v7945_v21 = vmul.f32 1.442695, %v7828_v48  ;;  %v7843_v55 = vmul.f32 1.442695, %v7777_v38 }
 0x8e4   :  { %v18027_v42 = vpop.eup %13290  ;;  %v7845_v20 = vmul.f32 1.442695, %v7778_v13  ;;  %v7847_v7 = vmul.f32 1.442695, %v7779_v5  ;;  %v7849_v35 = vmul.f32 1.442695, %v7780_v31 }
 0x8e5   :  { %v18030_v47 = vpop.eup %13292  ;;  %13296 = vpow2.f32 %v7943_v32  ;;  %v8042_v3 = vadd.f32 %v18027_v42, %v18024_v23 }
 0x8e6   :  { %v18034_v50 = vpop.eup %13294  ;;  %13298 = vpow2.f32 %v7945_v21 }
 0x8e7   :  { %13300 = vpow2.f32 %v7843_v55  ;;  %v7967_v60 = vadd.f32 %v18034_v50, %v18030_v47  ;;  %8043 = vadd.xlane.f32.xlu0 %v8042_v3 }
 0x8e8   :  { %13302 = vpow2.f32 %v7845_v20  ;;  %v7762_v28 = vpop.xlane.xlu0 %7761 }
 0x8e9   :  { %7968 = vadd.xlane.f32.xlu2 %v7967_v60  ;;  %v7829_v8 = vsub.f32 %v17791_v53, %v7762_v28  ;;  %v7830_v30 = vsub.f32 %v17794_v56, %v7762_v28  ;;  %v7690_v0 = vpop.xlane.xlu1 %7689  ;;  %13304 = vpow2.f32 %v7847_v7 }
 0x8ea   :  { %v7781_v48 = vsub.f32 %v17797_v46, %v7690_v0  ;;  %13306 = vpow2.f32 %v7849_v35  ;;  %v7782_v13 = vsub.f32 %v17800_v10, %v7690_v0 }
 0x8eb   :  { %v18040_v40 = vpop.eup %13296  ;;  %v7947_v36 = vmul.f32 1.442695, %v7829_v8  ;;  %v7949_v54 = vmul.f32 1.442695, %v7830_v30 }
 0x8ec   :  { %v18043_v38 = vpop.eup %13298  ;;  %v7851_v32 = vmul.f32 1.442695, %v7781_v48  ;;  %v7853_v46 = vmul.f32 1.442695, %v7782_v13 }
 0x8ed   :  { %v18046_v43 = vpop.eup %13300  ;;  %13308 = vpow2.f32 %v7947_v36  ;;  %v8045_v53 = vadd.f32 %v18043_v38, %v18040_v40 }
 0x8ee   :  { %v18050_v56 = vpop.eup %13302  ;;  %13310 = vpow2.f32 %v7949_v54 }
 0x8ef   :  { %8046 = vadd.xlane.f32.xlu1 %v8045_v53  ;;  %v7970_v21 = vadd.f32 %v18050_v56, %v18046_v43  ;;  %v18054_v55 = vpop.eup %13304  ;;  %13312 = vpow2.f32 %v7851_v32 }
 0x8f0   :  { %18602 = vst [vmem:[#allocation25_spill] sm:$0xff] %v18054_v55  ;;  %v18056_v20 = vpop.eup %13306  ;;  %13314 = vpow2.f32 %v7853_v46 }
 0x8f1   :  { %7971 = vadd.xlane.f32.xlu0 %v7970_v21  ;;  %v7693_v5 = vpop.xlane.xlu2 %7692  ;;  %v7765_v10 = vpop.xlane.xlu1 %7764  ;;  %18603 = vst [vmem:[#allocation26_spill] sm:$0xff] %v18056_v20  ;;  %v7973_v30 = vadd.f32 %v18056_v20, %v18054_v55 }
 0x8f2   :  { %v7831_v31 = vsub.f32 %v17807_v25, %v7765_v10  ;;  %v7832_v3 = vsub.f32 %v17810_v62, %v7765_v10  ;;  %v7783_v0 = vsub.f32 %v17813_v12, %v7693_v5  ;;  %v7784_v25 = vsub.f32 %v17816_v63, %v7693_v5  ;;  %v18610_v5 = vld [vmem:[#allocation19_spill] sm:$0xff] }
 0x8f3   :  { %v18060_v7 = vpop.eup %13308 }
 0x8f4   :  { %18604 = vst [vmem:[#allocation27_spill] sm:$0xff] %v18060_v7  ;;  %v18062_v60 = vpop.eup %13310  ;;  %v7951_v35 = vmul.f32 1.442695, %v7831_v31  ;;  %v7953_v28 = vmul.f32 1.442695, %v7832_v3  ;;  %v18611_v31 = vld [vmem:[#allocation16_spill] sm:$0xff] }
 0x8f5   :  { %18605 = vst [vmem:[#allocation28_spill] sm:$0xff] %v18062_v60  ;;  %v8048_v8 = vadd.f32 %v18062_v60, %v18060_v7  ;;  %v18070_v62 = vpop.eup %13312  ;;  %v7855_v48 = vmul.f32 1.442695, %v7783_v0  ;;  %v7857_v13 = vmul.f32 1.442695, %v7784_v25 }
 0x8f6   :  { %13316 = vpow2.f32 %v7951_v35  ;;  %18606 = vst [vmem:[#allocation29_spill] sm:$0xff] %v18070_v62  ;;  %v18074_v54 = vpop.eup %13314 }
 0x8f7   :  { %8049 = vadd.xlane.f32.xlu2 %v8048_v8  ;;  %7974 = vadd.xlane.f32.xlu1 %v7973_v30  ;;  %13318 = vpow2.f32 %v7953_v28  ;;  %18607 = vst [vmem:[#allocation30_spill] sm:$0xff] %v18074_v54  ;;  %v7976_v53 = vadd.f32 %v18074_v54, %v18070_v62 }
 0x8f8   :  { %13320 = vpow2.f32 %v7855_v48 }
 0x8f9   :  { %v18072_v36 = vpop.xlane.xlu2 %7767  ;;  %13322 = vpow2.f32 %v7857_v13 }
 0x8fc   :  { %v18078_v32 = vpop.eup %13316 }
 0x8fd   :  { %18608 = vst [vmem:[#allocation31_spill] sm:$0xff] %v18078_v32  ;;  %v18080_v12 = vpop.eup %13318 }
 0x8fe   :  { %18609 = vst [vmem:[#allocation32_spill] sm:$0xff] %v18080_v12  ;;  %v8051_v21 = vadd.f32 %v18080_v12, %v18078_v32  ;;  %v18088_v28 = vpop.eup %13320 }
 0x8ff   :  { %7977 = vadd.xlane.f32.xlu2 %v7976_v53  ;;  %18612 = vst [vmem:[#allocation19_spill] sm:$0xff] %v18088_v28  ;;  %v18090_v8 = vpop.eup %13322  ;;  %v18614_v53 = vld [vmem:[#allocation22_spill] sm:$0xff] }
 0x900   :  { %v18082_v63 = vpop.xlane.xlu0 %7770  ;;  %8052 = vadd.xlane.f32.xlu0 %v8051_v21  ;;  %18613 = vst [vmem:[#allocation16_spill] sm:$0xff] %v18090_v8  ;;  %v7979_v48 = vadd.f32 %v18090_v8, %v18088_v28 }
 0x901   :  { %v7696_v46 = vpop.xlane.xlu2 %7695  ;;  %v8011_v35 = vpop.xlane.xlu1 %8010 }
 0x902   :  { %v7785_v10 = vsub.f32 %v18610_v5, %v7696_v46  ;;  %v7786_v3 = vsub.f32 %v18611_v31, %v7696_v46  ;;  %13324 = vrcp.f32 %v8011_v35  ;;  %vm8264_vm9 = vweird.f32 %v8011_v35 }
 0x904   :  { %v7859_v30 = vmul.f32 1.442695, %v7785_v10  ;;  %v7861_v0 = vmul.f32 1.442695, %v7786_v3 }
 0x906   :  { %13326 = vpow2.f32 %v7859_v30 }
 0x907   :  { %13328 = vpow2.f32 %v7861_v0  ;;  %v8270_v0 = vand.u32 2147483648, %v8011_v35 }
 0x908   :  { %v7699_v25 = vpop.xlane.xlu0 %7698  ;;  %v13325_v5 = vpop.eup %13324  ;;  %7980 = vadd.xlane.f32.xlu0 %v7979_v48 }
 0x909   :  { %v7787_v13 = vsub.f32 %v17862_v24, %v7699_v25  ;;  %v7788_v21 = vsub.f32 %v18614_v53, %v7699_v25  ;;  %v8260_v46 = vmul.f32 %v13325_v5, %v8011_v35  ;;  %v18096_v32 = vpop.xlane.xlu1 %7773  ;;  %v8014_v54 = vpop.xlane.xlu2 %8013  ;;  %vm8265_vm8 = vweird.f32 %v13325_v5 }
 0x90a   :  { %13330 = vrcp.f32 %v8014_v54  ;;  %v8268_v25 = vand.u32 2147483647, %v8011_v35  ;;  %vm8266_vm10 = vmor %vm8264_vm9, %vm8265_vm8  ;;  %vm8278_vm13 = vweird.f32 %v8014_v54 }
 0x90b   :  { %v7863_v31 = vmul.f32 1.442695, %v7787_v13  ;;  %v7865_v12 = vmul.f32 1.442695, %v7788_v21  ;;  %v8261_v3 = vsub.f32 1.0, %v8260_v46  ;;  %v8271_v21 = vor.u32 1.1754944e-38, %v8270_v0 }
 0x90c   :  { %v18098_v10 = vpop.eup %13326  ;;  %vm8269_vm11 = vcmp.eq.f32.partialorder %v8268_v25, 8.507059e+37  ;;  %v8282_v25 = vand.u32 2147483647, %v8014_v54 }
 0x90d   :  { %18615 = vst [vmem:[#allocation22_spill] sm:$0xff] %v18098_v10  ;;  %13332 = vpow2.f32 %v7863_v31  ;;  %v18100_v30 = vpop.eup %13328  ;;  %v8262_v24 = vmul.f32 %v13325_v5, %v8261_v3 }
 0x90e   :  { %18616 = vst [vmem:[#allocation33_spill] sm:$0xff] %v18100_v30  ;;  %13334 = vpow2.f32 %v7865_v12  ;;  %v7982_v48 = vadd.f32 %v18100_v30, %v18098_v10  ;;  %v18618_v30 = vld [vmem:[#allocation21_spill] sm:$0xff]  ;;  %vm8283_vm15 = vcmp.eq.f32.partialorder %v8282_v25, 8.507059e+37 }
 0x90f   :  { %v8263_v13 = vadd.f32 %v13325_v5, %v8262_v24  ;;  %v18619_v25 = vld [vmem:[#allocation17_spill] sm:$0xff] }
 0x910   :  { %7983 = vadd.xlane.f32.xlu1 %v7982_v48  ;;  %v13331_v53 = vpop.eup %13330  ;;  %v18617_v48 = vld [vmem:[#allocation20_spill] sm:$0xff] }
 0x911   :  { %v8267_v46 = vsel %vm8266_vm10, %v13325_v5, %v8263_v13  ;;  %v8274_v31 = vmul.f32 %v13331_v53, %v8014_v54  ;;  %v7702_v28 = vpop.xlane.xlu1 %7701  ;;  %v8284_v13 = vand.u32 2147483648, %v8014_v54  ;;  %vm8279_vm12 = vweird.f32 %v13331_v53 }
 0x912   :  { %v18106_v62 = vpop.xlane.xlu0 %8016  ;;  %v8272_v3 = vsel %vm8269_vm11, %v8271_v21, %v8267_v46  ;;  %v7789_v20 = vsub.f32 %v17889_v41, %v7702_v28  ;;  %v7790_v24 = vsub.f32 %v17892_v19, %v7702_v28  ;;  %v7705_v35 = vpop.xlane.xlu2 %7704  ;;  %vm8280_vm14 = vmor %vm8278_vm13, %vm8279_vm12 }
 0x913   :  { %v18104_v8 = vpop.eup %13332  ;;  %13336 = vrcp.f32 %v18106_v62  ;;  %v8539_v0 = vmul.f32 %v18617_v48, %v8272_v3  ;;  %v8540_v10 = vmul.f32 %v18618_v30, %v8272_v3  ;;  %v8275_v5 = vsub.f32 1.0, %v8274_v31 }
 0x914   :  { %v18108_v12 = vpop.eup %13334  ;;  %v7867_v55 = vmul.f32 1.442695, %v7789_v20  ;;  %v7869_v60 = vmul.f32 1.442695, %v7790_v24  ;;  %v7791_v7 = vsub.f32 %v17900_v33, %v7705_v35  ;;  %v7792_v19 = vsub.f32 %v17904_v17, %v7705_v35 }
 0x915   :  { %8603 = vst [vmem:[%s18601_s30 + $0xe0] sm:$0xff] %v8539_v0  ;;  %v8276_v41 = vmul.f32 %v13331_v53, %v8275_v5  ;;  %v7985_v28 = vadd.f32 %v18108_v12, %v18104_v8  ;;  %v8285_v46 = vor.u32 1.1754944e-38, %v8284_v13  ;;  %v8298_v35 = vand.u32 2147483648, %v18106_v62 }
 0x916   :  { %8604 = vst [vmem:[%s18601_s30 + $0xe8] sm:$0xff] %v8540_v10  ;;  %13338 = vpow2.f32 %v7867_v55  ;;  %v7871_v20 = vmul.f32 1.442695, %v7791_v7  ;;  %v7873_v33 = vmul.f32 1.442695, %v7792_v19  ;;  %v7835_v13 = vsub.f32 %v18619_v25, %v18082_v63 }
 0x917   :  { %v8277_v30 = vadd.f32 %v13331_v53, %v8276_v41  ;;  %13340 = vpow2.f32 %v7869_v60  ;;  %7986 = vadd.xlane.f32.xlu2 %v7985_v28  ;;  %v18620_v28 = vld [vmem:[#allocation18_spill] sm:$0xff]  ;;  %vm8292_vm1 = vweird.f32 %v18106_v62 }
 0x918   :  { %13342 = vpow2.f32 %v7871_v20  ;;  %v7836_v20 = vsub.f32 %v18620_v28, %v18082_v63  ;;  %v7959_v63 = vmul.f32 1.442695, %v7835_v13 }
 0x919   :  { %v13337_v21 = vpop.eup %13336  ;;  %v8281_v31 = vsel %vm8280_vm14, %v13331_v53, %v8277_v30  ;;  %13344 = vpow2.f32 %v7873_v33  ;;  %v18126_v3 = vpop.xlane.xlu1 %8019 }
 0x91a   :  { %v8288_v17 = vmul.f32 %v13337_v21, %v18106_v62  ;;  %v7708_v24 = vpop.xlane.xlu0 %7707  ;;  %v8286_v10 = vsel %vm8283_vm15, %v8285_v46, %v8281_v31  ;;  %13346 = vrcp.f32 %v18126_v3  ;;  %vm8293_vm0 = vweird.f32 %v13337_v21 }
 0x91b   :  { %v8541_v55 = vmul.f32 %v17877_v52, %v8286_v10  ;;  %v8542_v7 = vmul.f32 %v17881_v22, %v8286_v10  ;;  %v7793_v53 = vsub.f32 %v17931_v61, %v7708_v24  ;;  %v7794_v48 = vsub.f32 %v17934_v45, %v7708_v24  ;;  %vm8294_vm2 = vmor %vm8292_vm1, %vm8293_vm0 }
 0x91c   :  { %v8289_v60 = vsub.f32 1.0, %v8288_v17  ;;  %v18131_v54 = vpop.eup %13338  ;;  %v8296_v52 = vand.u32 2147483647, %v18106_v62  ;;  %v8299_v46 = vor.u32 1.1754944e-38, %v8298_v35  ;;  %v7961_v62 = vmul.f32 1.442695, %v7836_v20 }
 0x91d   :  { %v18136_v0 = vpop.eup %13340  ;;  %8605 = vst [vmem:[%s18601_s30 + $0xf0] sm:$0xff] %v8541_v55  ;;  %v7875_v61 = vmul.f32 1.442695, %v7793_v53  ;;  %v7877_v45 = vmul.f32 1.442695, %v7794_v48  ;;  %v8312_v48 = vand.u32 2147483648, %v18126_v3  ;;  %vm8306_vm5 = vweird.f32 %v18126_v3 }
 0x91e   :  { %v8290_v5 = vmul.f32 %v13337_v21, %v8289_v60  ;;  %v18142_v22 = vpop.eup %13342  ;;  %8606 = vst [vmem:[%s18601_s30 + $0xf8] sm:$0xff] %v8542_v7  ;;  %v7988_v41 = vadd.f32 %v18136_v0, %v18131_v54  ;;  %vm8297_vm3 = vcmp.eq.f32.partialorder %v8296_v52, 8.507059e+37  ;;  %v8310_v25 = vand.u32 2147483647, %v18126_v3 }
 0x91f   :  { %v18151_v19 = vpop.eup %13344  ;;  %13348 = vpow2.f32 %v7875_v61 }
 0x920   :  { %v8291_v30 = vadd.f32 %v13337_v21, %v8290_v5  ;;  %v13347_v33 = vpop.eup %13346  ;;  %7989 = vadd.xlane.f32.xlu0 %v7988_v41  ;;  %v7991_v17 = vadd.f32 %v18151_v19, %v18142_v22  ;;  %13350 = vpow2.f32 %v7877_v45  ;;  %v18622_v45 = vld [vmem:[#allocation24_spill] sm:$0xff]  ;;  %vm8311_vm7 = vcmp.eq.f32.partialorder %v8310_v25, 8.507059e+37 }
 0x921   :  { %v8302_v10 = vmul.f32 %v13347_v33, %v18126_v3  ;;  %v7711_v55 = vpop.xlane.xlu1 %7710  ;;  %vm8307_vm4 = vweird.f32 %v13347_v33  ;;  %v7838_v41 = vsub.f32 %v18622_v45, %v18096_v32 }
 0x922   :  { %v18156_v31 = vpop.xlane.xlu2 %8022  ;;  %v8295_v24 = vsel %vm8294_vm2, %v13337_v21, %v8291_v30  ;;  %7992 = vadd.xlane.f32.xlu1 %v7991_v17  ;;  %v7795_v21 = vsub.f32 %v17951_v6, %v7711_v55  ;;  %v7796_v5 = vsub.f32 %v17954_v2, %v7711_v55  ;;  %vm8308_vm6 = vmor %vm8306_vm5, %vm8307_vm4  ;;  %v8313_v30 = vor.u32 1.1754944e-38, %v8312_v48 }
 0x923   :  { %v8300_v7 = vsel %vm8297_vm3, %v8299_v46, %v8295_v24  ;;  %13352 = vrcp.f32 %v18156_v31  ;;  %v8303_v53 = vsub.f32 1.0, %v8302_v10  ;;  %v7965_v3 = vmul.f32 1.442695, %v7838_v41 }
 0x924   :  { %v8543_v60 = vmul.f32 %v17897_v14, %v8300_v7  ;;  %v8544_v35 = vmul.f32 %v17906_v1, %v8300_v7  ;;  %13354 = vpow2.f32 %v7959_v63  ;;  %v18621_v14 = vld [vmem:[#allocation23_spill] sm:$0xff]  ;;  %v7879_v6 = vmul.f32 1.442695, %v7795_v21 }
 0x925   :  { %v8304_v52 = vmul.f32 %v13347_v33, %v8303_v53  ;;  %v18171_v13 = vpop.eup %13348  ;;  %v7837_v1 = vsub.f32 %v18621_v14, %v18096_v32  ;;  %v7881_v2 = vmul.f32 1.442695, %v7796_v5  ;;  %13356 = vpow2.f32 %v7961_v62 }
 0x926   :  { %8607 = vst [vmem:[%s18601_s30 + $0x100] sm:$0xff] %v8543_v60  ;;  %v18178_v61 = vpop.eup %13350  ;;  %13358 = vpow2.f32 %v7879_v6  ;;  %vm8320_vm9 = vweird.f32 %v18156_v31 }
 0x927   :  { %8608 = vst [vmem:[%s18601_s30 + $0x108] sm:$0xff] %v8544_v35  ;;  %v8305_v28 = vadd.f32 %v13347_v33, %v8304_v52  ;;  %v7994_v46 = vadd.f32 %v18178_v61, %v18171_v13  ;;  %13360 = vpow2.f32 %v7881_v2  ;;  %v7963_v63 = vmul.f32 1.442695, %v7837_v1  ;;  %v18623_v52 = vld [vmem:[#allocation14_spill] sm:$0xff]  ;;  %v18624_v1 = vld [vmem:[#allocation15_spill] sm:$0xff] }
 0x928   :  { %v7833_v25 = vsub.f32 %v18623_v52, %v18072_v36  ;;  %v7834_v6 = vsub.f32 %v18624_v1, %v18072_v36 }
 0x929   :  { %v13353_v20 = vpop.eup %13352  ;;  %v8309_v24 = vsel %vm8308_vm6, %v13347_v33, %v8305_v28  ;;  %7995 = vadd.xlane.f32.xlu2 %v7994_v46  ;;  %v8326_v33 = vand.u32 2147483648, %v18156_v31 }
 0x92a   :  { %v18185_v17 = vpop.xlane.xlu0 %8025  ;;  %v8316_v10 = vmul.f32 %v13353_v20, %v18156_v31  ;;  %v7714_v55 = vpop.xlane.xlu2 %7713  ;;  %v8314_v32 = vsel %vm8311_vm7, %v8313_v30, %v8309_v24  ;;  %vm8321_vm8 = vweird.f32 %v13353_v20 }
 0x92b   :  { %13362 = vrcp.f32 %v18185_v17  ;;  %v8545_v7 = vmul.f32 %v17924_v18, %v8314_v32  ;;  %v8546_v62 = vmul.f32 %v17928_v49, %v8314_v32  ;;  %v18191_v35 = vpop.eup %13354  ;;  %v7797_v53 = vsub.f32 %v17967_v37, %v7714_v55  ;;  %vm8322_vm10 = vmor %vm8320_vm9, %vm8321_vm8 }
 0x92c   :  { %v8317_v60 = vsub.f32 1.0, %v8316_v10  ;;  %v7798_v48 = vsub.f32 %v17970_v15, %v7714_v55  ;;  %v18196_v21 = vpop.eup %13356  ;;  %v8324_v18 = vand.u32 2147483647, %v18156_v31  ;;  %13364 = vpow2.f32 %v7963_v63 }
 0x92d   :  { %8609 = vst [vmem:[%s18601_s30 + $0x110] sm:$0xff] %v8545_v7  ;;  %v18202_v49 = vpop.eup %13358  ;;  %v7883_v37 = vmul.f32 1.442695, %v7797_v53  ;;  %13366 = vpow2.f32 %v7965_v3  ;;  %v8327_v41 = vor.u32 1.1754944e-38, %v8326_v33  ;;  %v8057_v46 = vadd.f32 %v18196_v21, %v18191_v35 }
 0x92e   :  { %v8318_v5 = vmul.f32 %v13353_v20, %v8317_v60  ;;  %8610 = vst [vmem:[%s18601_s30 + $0x118] sm:$0xff] %v8546_v62  ;;  %v7885_v15 = vmul.f32 1.442695, %v7798_v48  ;;  %v18209_v14 = vpop.eup %13360  ;;  %vm8325_vm11 = vcmp.eq.f32.partialorder %v8324_v18, 8.507059e+37  ;;  %v7955_v10 = vmul.f32 1.442695, %v7833_v25 }
 0x92f   :  { %13368 = vpow2.f32 %v7883_v37  ;;  %v7997_v30 = vadd.f32 %v18209_v14, %v18202_v49  ;;  %v7957_v31 = vmul.f32 1.442695, %v7834_v6  ;;  %v8338_v33 = vand.u32 2147483647, %v18185_v17 }
 0x930   :  { %v8319_v2 = vadd.f32 %v13353_v20, %v8318_v5  ;;  %13370 = vpow2.f32 %v7885_v15  ;;  %vm8334_vm13 = vweird.f32 %v18185_v17 }
 0x931   :  { %v13363_v45 = vpop.eup %13362  ;;  %7998 = vadd.xlane.f32.xlu0 %v7997_v30  ;;  %8058 = vadd.xlane.f32.xlu2 %v8057_v46  ;;  %vm8339_vm15 = vcmp.eq.f32.partialorder %v8338_v33, 8.507059e+37 }
 0x932   :  { %v18214_v28 = vpop.xlane.xlu1 %8028  ;;  %v8323_v24 = vsel %vm8322_vm10, %v13353_v20, %v8319_v2  ;;  %v8330_v36 = vmul.f32 %v13363_v45, %v18185_v17  ;;  %v18224_v7 = vpop.eup %13364  ;;  %v8340_v20 = vand.u32 2147483648, %v18185_v17  ;;  %vm8335_vm12 = vweird.f32 %v13363_v45 }
 0x933   :  { %v8328_v55 = vsel %vm8325_vm11, %v8327_v41, %v8323_v24  ;;  %13372 = vrcp.f32 %v18214_v28  ;;  %v18227_v62 = vpop.eup %13366  ;;  %vm8336_vm14 = vmor %vm8334_vm13, %vm8335_vm12  ;;  %v8354_v30 = vand.u32 2147483648, %v18214_v28  ;;  %v8352_v24 = vand.u32 2147483647, %v18214_v28 }
 0x934   :  { %v8547_v63 = vmul.f32 %v17948_v39, %v8328_v55  ;;  %v8548_v32 = vmul.f32 %v17956_v4, %v8328_v55  ;;  %v8331_v3 = vsub.f32 1.0, %v8330_v36  ;;  %13374 = vpow2.f32 %v7955_v10 }
 0x935   :  { %v18233_v53 = vpop.eup %13368  ;;  %13376 = vpow2.f32 %v7957_v31  ;;  %v8341_v5 = vor.u32 1.1754944e-38, %v8340_v20  ;;  %v8060_v25 = vadd.f32 %v18227_v62, %v18224_v7  ;;  %vm8348_vm1 = vweird.f32 %v18214_v28 }
 0x936   :  { %8611 = vst [vmem:[%s18601_s30 + $0x120] sm:$0xff] %v8547_v63  ;;  %v8332_v60 = vmul.f32 %v13363_v45, %v8331_v3  ;;  %v18238_v39 = vpop.eup %13370  ;;  %v8355_v36 = vor.u32 1.1754944e-38, %v8354_v30  ;;  %vm8353_vm3 = vcmp.eq.f32.partialorder %v8352_v24, 8.507059e+37 }
 0x937   :  { %8612 = vst [vmem:[%s18601_s30 + $0x128] sm:$0xff] %v8548_v32  ;;  %v8000_v52 = vadd.f32 %v18238_v39, %v18233_v53 }
 0x938   :  { %v8333_v4 = vadd.f32 %v13363_v45, %v8332_v60 }
 0x939   :  { %v13373_v48 = vpop.eup %13372  ;;  %8001 = vadd.xlane.f32.xlu1 %v8000_v52  ;;  %8061 = vadd.xlane.f32.xlu0 %v8060_v25 }
 0x93a   :  { %v8032_v18 = vpop.xlane.xlu2 %8031  ;;  %v8337_v37 = vsel %vm8336_vm14, %v13363_v45, %v8333_v4  ;;  %v8344_v15 = vmul.f32 %v13373_v48, %v18214_v28  ;;  %v18248_v41 = vpop.eup %13374  ;;  %vm8349_vm0 = vweird.f32 %v13373_v48 }
 0x93b   :  { %13378 = vrcp.f32 %v8032_v18  ;;  %v8342_v1 = vsel %vm8339_vm15, %v8341_v5, %v8337_v37  ;;  %v18251_v46 = vpop.eup %13376  ;;  %vm8350_vm2 = vmor %vm8348_vm1, %vm8349_vm0  ;;  %v8368_v33 = vand.u32 2147483648, %v8032_v18  ;;  %v8366_v28 = vand.u32 2147483647, %v8032_v18 }
 0x93c   :  { %v8549_v17 = vmul.f32 %v17964_v58, %v8342_v1  ;;  %v8550_v6 = vmul.f32 %v17972_v44, %v8342_v1  ;;  %v8345_v2 = vsub.f32 1.0, %v8344_v15  ;;  %v8054_v55 = vadd.f32 %v18251_v46, %v18248_v41 }
 0x93d   :  { %vm8362_vm5 = vweird.f32 %v8032_v18  ;;  %v8369_v52 = vor.u32 1.1754944e-38, %v8368_v33  ;;  %vm8367_vm7 = vcmp.eq.f32.partialorder %v8366_v28, 8.507059e+37 }
 0x93e   :  { %8613 = vst [vmem:[%s18601_s30 + $0x130] sm:$0xff] %v8549_v17  ;;  %v8346_v45 = vmul.f32 %v13373_v48, %v8345_v2 }
 0x93f   :  { %8614 = vst [vmem:[%s18601_s30 + $0x138] sm:$0xff] %v8550_v6 }
 0x940   :  { %v8347_v44 = vadd.f32 %v13373_v48, %v8346_v45 }
 0x941   :  { %v13379_v58 = vpop.eup %13378  ;;  %8055 = vadd.xlane.f32.xlu1 %v8054_v55 }
 0x942   :  { %v8358_v10 = vmul.f32 %v13379_v58, %v8032_v18  ;;  %v8035_v31 = vpop.xlane.xlu0 %8034  ;;  %v8351_v63 = vsel %vm8350_vm2, %v13373_v48, %v8347_v44  ;;  %vm8363_vm4 = vweird.f32 %v13379_v58 }
 0x943   :  { %13380 = vrcp.f32 %v8035_v31  ;;  %v8356_v32 = vsel %vm8353_vm3, %v8355_v36, %v8351_v63  ;;  %vm8364_vm6 = vmor %vm8362_vm5, %vm8363_vm4  ;;  %v8382_v6 = vand.u32 2147483648, %v8035_v31  ;;  %v8380_v2 = vand.u32 2147483647, %v8035_v31 }
 0x944   :  { %v8359_v3 = vsub.f32 1.0, %v8358_v10  ;;  %v8551_v20 = vmul.f32 %v17980_v16, %v8356_v32  ;;  %v8552_v60 = vmul.f32 %v17982_v9, %v8356_v32  ;;  %vm8376_vm9 = vweird.f32 %v8035_v31 }
 0x945   :  { %vm8381_vm11 = vcmp.eq.f32.partialorder %v8380_v2, 8.507059e+37 }
 0x946   :  { %v8360_v4 = vmul.f32 %v13379_v58, %v8359_v3  ;;  %8615 = vst [vmem:[%s18601_s30 + $0x140] sm:$0xff] %v8551_v20 }
 0x947   :  { %8616 = vst [vmem:[%s18601_s30 + $0x148] sm:$0xff] %v8552_v60 }
 0x948   :  { %v8361_v48 = vadd.f32 %v13379_v58, %v8360_v4 }
 0x949   :  { %v13381_v5 = vpop.eup %13380 }
 0x94a   :  { %v8365_v16 = vsel %vm8364_vm6, %v13379_v58, %v8361_v48  ;;  %v8372_v9 = vmul.f32 %v13381_v5, %v8035_v31  ;;  %v8038_v25 = vpop.xlane.xlu1 %8037  ;;  %vm8377_vm8 = vweird.f32 %v13381_v5 }
 0x94b   :  { %v8370_v37 = vsel %vm8367_vm7, %v8369_v52, %v8365_v16  ;;  %13382 = vrcp.f32 %v8038_v25  ;;  %vm8378_vm10 = vmor %vm8376_vm9, %vm8377_vm8  ;;  %v8396_v63 = vand.u32 2147483648, %v8038_v25  ;;  %v8394_v32 = vand.u32 2147483647, %v8038_v25 }
 0x94c   :  { %v8553_v15 = vmul.f32 %v17988_v59, %v8370_v37  ;;  %v8554_v1 = vmul.f32 %v17990_v27, %v8370_v37  ;;  %v8373_v17 = vsub.f32 1.0, %v8372_v9  ;;  %v8383_v59 = vor.u32 1.1754944e-38, %v8382_v6 }
 0x94d   :  { %vm8390_vm13 = vweird.f32 %v8038_v25  ;;  %vm8395_vm15 = vcmp.eq.f32.partialorder %v8394_v32, 8.507059e+37 }
 0x94e   :  { %8617 = vst [vmem:[%s18601_s30 + $0x150] sm:$0xff] %v8553_v15  ;;  %v8374_v18 = vmul.f32 %v13381_v5, %v8373_v17 }
 0x94f   :  { %8618 = vst [vmem:[%s18601_s30 + $0x158] sm:$0xff] %v8554_v1 }
 0x950   :  { %v8375_v30 = vadd.f32 %v13381_v5, %v8374_v18 }
 0x951   :  { %v13383_v45 = vpop.eup %13382 }
 0x952   :  { %v8379_v24 = vsel %vm8378_vm10, %v13381_v5, %v8375_v30  ;;  %v8386_v27 = vmul.f32 %v13383_v45, %v8038_v25  ;;  %v8041_v58 = vpop.xlane.xlu2 %8040  ;;  %vm8391_vm12 = vweird.f32 %v13383_v45 }
 0x953   :  { %v8384_v44 = vsel %vm8381_vm11, %v8383_v59, %v8379_v24  ;;  %13384 = vrcp.f32 %v8041_v58  ;;  %vm8392_vm14 = vmor %vm8390_vm13, %vm8391_vm12  ;;  %v8410_v16 = vand.u32 2147483648, %v8041_v58  ;;  %v8408_v25 = vand.u32 2147483647, %v8041_v58 }
 0x954   :  { %v8555_v36 = vmul.f32 %v17996_v29, %v8384_v44  ;;  %v8556_v10 = vmul.f32 %v17998_v26, %v8384_v44  ;;  %v8387_v55 = vsub.f32 1.0, %v8386_v27  ;;  %v8397_v29 = vor.u32 1.1754944e-38, %v8396_v63 }
 0x955   :  { %vm8404_vm1 = vweird.f32 %v8041_v58  ;;  %vm8409_vm3 = vcmp.eq.f32.partialorder %v8408_v25, 8.507059e+37 }
 0x956   :  { %8619 = vst [vmem:[%s18601_s30 + $0x160] sm:$0xff] %v8555_v36  ;;  %v8388_v31 = vmul.f32 %v13383_v45, %v8387_v55 }
 0x957   :  { %8620 = vst [vmem:[%s18601_s30 + $0x168] sm:$0xff] %v8556_v10 }
 0x958   :  { %v8389_v3 = vadd.f32 %v13383_v45, %v8388_v31 }
 0x959   :  { %v13385_v20 = vpop.eup %13384 }
 0x95a   :  { %v8393_v60 = vsel %vm8392_vm14, %v13383_v45, %v8389_v3  ;;  %v8400_v26 = vmul.f32 %v13385_v20, %v8041_v58  ;;  %v8044_v33 = vpop.xlane.xlu0 %8043  ;;  %vm8405_vm0 = vweird.f32 %v13385_v20 }
 0x95b   :  { %v8398_v4 = vsel %vm8395_vm15, %v8397_v29, %v8393_v60  ;;  %13386 = vrcp.f32 %v8044_v33  ;;  %vm8406_vm2 = vmor %vm8404_vm1, %vm8405_vm0  ;;  %v8422_v27 = vand.u32 2147483647, %v8044_v33  ;;  %v8424_v58 = vand.u32 2147483648, %v8044_v33 }
 0x95c   :  { %v8557_v28 = vmul.f32 %v18004_v57, %v8398_v4  ;;  %v8558_v48 = vmul.f32 %v18006_v51, %v8398_v4  ;;  %v8401_v5 = vsub.f32 1.0, %v8400_v26  ;;  %v7969_v52 = vpop.xlane.xlu2 %7968  ;;  %v8411_v51 = vor.u32 1.1754944e-38, %v8410_v16 }
 0x95d   :  { %13388 = vrcp.f32 %v7969_v52  ;;  %v8072_v36 = vand.u32 2147483647, %v7969_v52  ;;  %v8074_v10 = vand.u32 2147483648, %v7969_v52  ;;  %vm8418_vm6 = vweird.f32 %v8044_v33 }
 0x95e   :  { %8621 = vst [vmem:[%s18601_s30 + $0x170] sm:$0xff] %v8557_v28  ;;  %v8402_v9 = vmul.f32 %v13385_v20, %v8401_v5  ;;  %vm8068_vm7 = vweird.f32 %v7969_v52  ;;  %vm8423_vm8 = vcmp.eq.f32.partialorder %v8422_v27, 8.507059e+37  ;;  %v8425_v31 = vor.u32 1.1754944e-38, %v8424_v58 }
 0x95f   :  { %8622 = vst [vmem:[%s18601_s30 + $0x178] sm:$0xff] %v8558_v48  ;;  %vm18309_vm9 = vcmp.eq.f32.partialorder %v8072_v36, 8.507059e+37 }
 0x960   :  { %v8403_v37 = vadd.f32 %v13385_v20, %v8402_v9 }
 0x961   :  { %v13387_v57 = vpop.eup %13386 }
 0x962   :  { %v8407_v15 = vsel %vm8406_vm2, %v13385_v20, %v8403_v37  ;;  %v8414_v1 = vmul.f32 %v13387_v57, %v8044_v33  ;;  %v18295_v17 = vpop.xlane.xlu1 %8046  ;;  %vm8419_vm4 = vweird.f32 %v13387_v57  ;;  %v8075_v20 = vor.u32 1.1754944e-38, %v8074_v10 }
 0x963   :  { %v13389_v6 = vpop.eup %13388  ;;  %v8412_v18 = vsel %vm8409_vm3, %v8411_v51, %v8407_v15  ;;  %13390 = vrcp.f32 %v18295_v17  ;;  %vm8420_vm10 = vmor %vm8418_vm6, %vm8419_vm4  ;;  %v8436_v33 = vand.u32 2147483647, %v18295_v17  ;;  %v8438_v28 = vand.u32 2147483648, %v18295_v17 }
 0x964   :  { %v8559_v2 = vmul.f32 %v18014_v11, %v8412_v18  ;;  %v8560_v30 = vmul.f32 %v18016_v34, %v8412_v18  ;;  %v8064_v45 = vmul.f32 %v13389_v6, %v7969_v52  ;;  %v18300_v59 = vpop.xlane.xlu0 %7971  ;;  %v8415_v24 = vsub.f32 1.0, %v8414_v1 }
 0x965   :  { %13392 = vrcp.f32 %v18300_v59  ;;  %vm8069_vm5 = vweird.f32 %v13389_v6  ;;  %v8086_v18 = vand.u32 2147483647, %v18300_v59  ;;  %vm8432_vm13 = vweird.f32 %v18295_v17 }
 0x966   :  { %8623 = vst [vmem:[%s18601_s30 + $0x180] sm:$0xff] %v8559_v2  ;;  %v8065_v44 = vsub.f32 1.0, %v8064_v45  ;;  %v8416_v11 = vmul.f32 %v13387_v57, %v8415_v24  ;;  %vm8070_vm11 = vmor %vm8068_vm7, %vm8069_vm5  ;;  %v8088_v2 = vand.u32 2147483648, %v18300_v59  ;;  %vm8437_vm0 = vcmp.eq.f32.partialorder %v8436_v33, 8.507059e+37 }
 0x967   :  { %8624 = vst [vmem:[%s18601_s30 + $0x188] sm:$0xff] %v8560_v30  ;;  %vm8082_vm1 = vweird.f32 %v18300_v59  ;;  %vm8087_vm3 = vcmp.eq.f32.partialorder %v8086_v18, 8.507059e+37 }
 0x968   :  { %v8066_v34 = vmul.f32 %v13389_v6, %v8065_v44  ;;  %v8417_v63 = vadd.f32 %v13387_v57, %v8416_v11  ;;  %v8089_v58 = vor.u32 1.1754944e-38, %v8088_v2 }
 0x969   :  { %v13391_v55 = vpop.eup %13390 }
 0x96a   :  { %v8067_v32 = vadd.f32 %v13389_v6, %v8066_v34  ;;  %v8428_v29 = vmul.f32 %v13391_v55, %v18295_v17  ;;  %v18314_v60 = vpop.xlane.xlu2 %8049  ;;  %v8421_v4 = vsel %vm8420_vm10, %v13387_v57, %v8417_v63  ;;  %v18320_v9 = vpop.xlane.xlu1 %7974  ;;  %vm8433_vm12 = vweird.f32 %v13391_v55 }
 0x96b   :  { %v13393_v26 = vpop.eup %13392  ;;  %13394 = vrcp.f32 %v18314_v60  ;;  %v8426_v5 = vsel %vm8423_vm8, %v8425_v31, %v8421_v4  ;;  %vm8434_vm15 = vmor %vm8432_vm13, %vm8433_vm12  ;;  %v8452_v63 = vand.u32 2147483648, %v18314_v60  ;;  %vm8446_vm5 = vweird.f32 %v18314_v60 }
 0x96c   :  { %v8071_v48 = vsel %vm8070_vm11, %v13389_v6, %v8067_v32  ;;  %v8429_v52 = vsub.f32 1.0, %v8428_v29  ;;  %v8078_v16 = vmul.f32 %v13393_v26, %v18300_v59  ;;  %v8561_v37 = vmul.f32 %v18024_v23, %v8426_v5 }
 0x96d   :  { %v8076_v25 = vsel %vm18309_vm9, %v8075_v20, %v8071_v48  ;;  %v8562_v57 = vmul.f32 %v18027_v42, %v8426_v5  ;;  %13396 = vrcp.f32 %v18320_v9  ;;  %vm8083_vm14 = vweird.f32 %v13393_v26  ;;  %v18627_v5 = vld [vmem:[#allocation27_spill] sm:$0xff] }
 0x96e   :  { %v8511_v51 = vmul.f32 %v18030_v47, %v8076_v25  ;;  %v8512_v15 = vmul.f32 %v18034_v50, %v8076_v25  ;;  %v8430_v1 = vmul.f32 %v13391_v55, %v8429_v52  ;;  %v8079_v6 = vsub.f32 1.0, %v8078_v16  ;;  %8625 = vst [vmem:[%s18601_s30 + $0x190] sm:$0xff] %v8561_v37  ;;  %vm8084_vm2 = vmor %vm8082_vm1, %vm8083_vm14  ;;  %v18628_v16 = vld [vmem:[#allocation28_spill] sm:$0xff] }
 0x96f   :  { %v8439_v50 = vor.u32 1.1754944e-38, %v8438_v28  ;;  %8626 = vst [vmem:[%s18601_s30 + $0x198] sm:$0xff] %v8562_v57  ;;  %v8450_v59 = vand.u32 2147483647, %v18314_v60  ;;  %v8102_v4 = vand.u32 2147483648, %v18320_v9  ;;  %vm8096_vm9 = vweird.f32 %v18320_v9 }
 0x970   :  { %8575 = vst [vmem:[%s18601_s30] sm:$0xff] %v8511_v51  ;;  %v8431_v23 = vadd.f32 %v13391_v55, %v8430_v1  ;;  %v8080_v42 = vmul.f32 %v13393_v26, %v8079_v6 }
 0x971   :  { %v13395_v47 = vpop.eup %13394  ;;  %8576 = vst [vmem:[%s18601_s30 + $0x8] sm:$0xff] %v8512_v15  ;;  %vm8451_vm7 = vcmp.eq.f32.partialorder %v8450_v59, 8.507059e+37  ;;  %v8103_v15 = vor.u32 1.1754944e-38, %v8102_v4  ;;  %v18632_v59 = vld [vmem:[#allocation30_spill] sm:$0xff] }
 0x972   :  { %v8435_v30 = vsel %vm8434_vm15, %v13391_v55, %v8431_v23  ;;  %v8081_v45 = vadd.f32 %v13393_v26, %v8080_v42  ;;  %v8442_v17 = vmul.f32 %v13395_v47, %v18314_v60  ;;  %v18347_v24 = vpop.xlane.xlu2 %7977  ;;  %vm8447_vm4 = vweird.f32 %v13395_v47 }
 0x973   :  { %v8440_v27 = vsel %vm8437_vm0, %v8439_v50, %v8435_v30  ;;  %13398 = vrcp.f32 %v18347_v24  ;;  %v13397_v34 = vpop.eup %13396  ;;  %v18354_v31 = vpop.xlane.xlu0 %8052  ;;  %vm8448_vm6 = vmor %vm8446_vm5, %vm8447_vm4  ;;  %v8114_v1 = vand.u32 2147483647, %v18347_v24  ;;  %v8116_v6 = vand.u32 2147483648, %v18347_v24  ;;  %v18630_v30 = vld [vmem:[#allocation26_spill] sm:$0xff] }
 0x974   :  { %v8563_v44 = vmul.f32 %v18040_v40, %v8440_v27  ;;  %v8564_v36 = vmul.f32 %v18043_v38, %v8440_v27  ;;  %v8085_v10 = vsel %vm8084_vm2, %v13393_v26, %v8081_v45  ;;  %v8443_v11 = vsub.f32 1.0, %v8442_v17 }
 0x975   :  { %v8090_v55 = vsel %vm8087_vm3, %v8089_v58, %v8085_v10  ;;  %v8092_v3 = vmul.f32 %v13397_v34, %v18320_v9  ;;  %13400 = vrcp.f32 %v18354_v31  ;;  %v8100_v26 = vand.u32 2147483647, %v18320_v9 }
 0x976   :  { %8627 = vst [vmem:[%s18601_s30 + $0x1a0] sm:$0xff] %v8563_v44  ;;  %v8513_v32 = vmul.f32 %v18046_v43, %v8090_v55  ;;  %v8514_v40 = vmul.f32 %v18050_v56, %v8090_v55  ;;  %v8444_v38 = vmul.f32 %v13395_v47, %v8443_v11  ;;  %v8453_v56 = vor.u32 1.1754944e-38, %v8452_v63 }
 0x977   :  { %8628 = vst [vmem:[%s18601_s30 + $0x1a8] sm:$0xff] %v8564_v36  ;;  %v8093_v29 = vsub.f32 1.0, %v8092_v3  ;;  %vm8097_vm8 = vweird.f32 %v13397_v34  ;;  %vm8101_vm11 = vcmp.eq.f32.partialorder %v8100_v26, 8.507059e+37  ;;  %vm8110_vm13 = vweird.f32 %v18347_v24 }
 0x978   :  { %8577 = vst [vmem:[%s18601_s30 + $0x10] sm:$0xff] %v8513_v32  ;;  %v8445_v20 = vadd.f32 %v13395_v47, %v8444_v38  ;;  %vm8098_vm10 = vmor %vm8096_vm9, %vm8097_vm8  ;;  %vm8115_vm15 = vcmp.eq.f32.partialorder %v8114_v1, 8.507059e+37  ;;  %v8117_v58 = vor.u32 1.1754944e-38, %v8116_v6  ;;  %v8466_v44 = vand.u32 2147483648, %v18354_v31 }
 0x979   :  { %v13399_v43 = vpop.eup %13398  ;;  %8578 = vst [vmem:[%s18601_s30 + $0x18] sm:$0xff] %v8514_v40  ;;  %v8094_v28 = vmul.f32 %v13397_v34, %v8093_v29  ;;  %vm8460_vm1 = vweird.f32 %v18354_v31 }
 0x97a   :  { %v8449_v33 = vsel %vm8448_vm6, %v13395_v47, %v8445_v20  ;;  %v8106_v48 = vmul.f32 %v13399_v43, %v18347_v24  ;;  %vm8111_vm12 = vweird.f32 %v13399_v43  ;;  %v18629_v47 = vld [vmem:[#allocation25_spill] sm:$0xff]  ;;  %v8464_v24 = vand.u32 2147483647, %v18354_v31 }
 0x97b   :  { %v8454_v60 = vsel %vm8451_vm7, %v8453_v56, %v8449_v33  ;;  %v8095_v37 = vadd.f32 %v13397_v34, %v8094_v28  ;;  %v13401_v51 = vpop.eup %13400  ;;  %v7981_v18 = vpop.xlane.xlu0 %7980  ;;  %vm8112_vm14 = vmor %vm8110_vm13, %vm8111_vm12  ;;  %v8467_v3 = vor.u32 1.1754944e-38, %v8466_v44  ;;  %v18633_v56 = vld [vmem:[#allocation31_spill] sm:$0xff]  ;;  %v18637_v44 = vld [vmem:[#allocation22_spill] sm:$0xff] }
 0x97c   :  { %v8565_v52 = vmul.f32 %v18627_v5, %v8454_v60  ;;  %v8566_v25 = vmul.f32 %v18628_v16, %v8454_v60  ;;  %v8107_v57 = vsub.f32 1.0, %v8106_v48  ;;  %v8456_v23 = vmul.f32 %v13401_v51, %v18354_v31  ;;  %v18634_v31 = vld [vmem:[#allocation32_spill] sm:$0xff] }
 0x97d   :  { %v8099_v9 = vsel %vm8098_vm10, %v13397_v34, %v8095_v37  ;;  %13402 = vrcp.f32 %v7981_v18  ;;  %vm8461_vm0 = vweird.f32 %v13401_v51  ;;  %v18631_v34 = vld [vmem:[#allocation29_spill] sm:$0xff]  ;;  %vm8465_vm3 = vcmp.eq.f32.partialorder %v8464_v24, 8.507059e+37 }
 0x97e   :  { %8629 = vst [vmem:[%s18601_s30 + $0x1b0] sm:$0xff] %v8565_v52  ;;  %v8108_v2 = vmul.f32 %v13399_v43, %v8107_v57  ;;  %v8104_v42 = vsel %vm8101_vm11, %v8103_v15, %v8099_v9  ;;  %v8457_v27 = vsub.f32 1.0, %v8456_v23  ;;  %vm8462_vm2 = vmor %vm8460_vm1, %vm8461_vm0  ;;  %v8130_v28 = vand.u32 2147483648, %v7981_v18  ;;  %v18635_v9 = vld [vmem:[#allocation19_spill] sm:$0xff]  ;;  %v18636_v23 = vld [vmem:[#allocation16_spill] sm:$0xff] }
 0x97f   :  { %8630 = vst [vmem:[%s18601_s30 + $0x1b8] sm:$0xff] %v8566_v25  ;;  %v8515_v50 = vmul.f32 %v18629_v47, %v8104_v42  ;;  %v8516_v45 = vmul.f32 %v18630_v30, %v8104_v42  ;;  %v8128_v60 = vand.u32 2147483647, %v7981_v18  ;;  %vm8124_vm5 = vweird.f32 %v7981_v18 }
 0x980   :  { %v8109_v17 = vadd.f32 %v13399_v43, %v8108_v2  ;;  %v8458_v10 = vmul.f32 %v13401_v51, %v8457_v27  ;;  %v8131_v37 = vor.u32 1.1754944e-38, %v8130_v28 }
 0x981   :  { %8579 = vst [vmem:[%s18601_s30 + $0x20] sm:$0xff] %v8515_v50  ;;  %vm8129_vm7 = vcmp.eq.f32.partialorder %v8128_v60, 8.507059e+37 }
 0x982   :  { %v8113_v36 = vsel %vm8112_vm14, %v13399_v43, %v8109_v17  ;;  %8580 = vst [vmem:[%s18601_s30 + $0x28] sm:$0xff] %v8516_v45  ;;  %v8459_v32 = vadd.f32 %v13401_v51, %v8458_v10  ;;  %v18638_v10 = vld [vmem:[#allocation33_spill] sm:$0xff] }
 0x983   :  { %v8118_v11 = vsel %vm8115_vm15, %v8117_v58, %v8113_v36  ;;  %v7984_v40 = vpop.xlane.xlu1 %7983  ;;  %v13403_v38 = vpop.eup %13402 }
 0x984   :  { %v8517_v55 = vmul.f32 %v18631_v34, %v8118_v11  ;;  %v8518_v63 = vmul.f32 %v18632_v59, %v8118_v11  ;;  %13404 = vrcp.f32 %v7984_v40  ;;  %v8463_v20 = vsel %vm8462_vm2, %v13401_v51, %v8459_v32 }
 0x985   :  { %v8120_v29 = vmul.f32 %v13403_v38, %v7981_v18  ;;  %v8468_v43 = vsel %vm8465_vm3, %v8467_v3, %v8463_v20  ;;  %vm8125_vm4 = vweird.f32 %v13403_v38  ;;  %v8142_v1 = vand.u32 2147483647, %v7984_v40 }
 0x986   :  { %8581 = vst [vmem:[%s18601_s30 + $0x30] sm:$0xff] %v8517_v55  ;;  %v8567_v26 = vmul.f32 %v18633_v56, %v8468_v43  ;;  %v8568_v4 = vmul.f32 %v18634_v31, %v8468_v43  ;;  %vm8126_vm6 = vmor %vm8124_vm5, %vm8125_vm4  ;;  %v8144_v6 = vand.u32 2147483648, %v7984_v40  ;;  %vm8138_vm9 = vweird.f32 %v7984_v40 }
 0x987   :  { %8582 = vst [vmem:[%s18601_s30 + $0x38] sm:$0xff] %v8518_v63  ;;  %v8121_v33 = vsub.f32 1.0, %v8120_v29  ;;  %vm8143_vm11 = vcmp.eq.f32.partialorder %v8142_v1, 8.507059e+37 }
 0x988   :  { %8631 = vst [vmem:[%s18601_s30 + $0x1c0] sm:$0xff] %v8567_v26  ;;  %v8145_v30 = vor.u32 1.1754944e-38, %v8144_v6 }
 0x989   :  { %v8122_v48 = vmul.f32 %v13403_v38, %v8121_v33  ;;  %8632 = vst [vmem:[%s18601_s30 + $0x1c8] sm:$0xff] %v8568_v4 }
 0x98a   :  { %v13405_v5 = vpop.eup %13404  ;;  %v7987_v25 = vpop.xlane.xlu2 %7986 }
 0x98b   :  { %v8123_v52 = vadd.f32 %v13403_v38, %v8122_v48  ;;  %v8134_v16 = vmul.f32 %v13405_v5, %v7984_v40  ;;  %13406 = vrcp.f32 %v7987_v25  ;;  %vm8139_vm8 = vweird.f32 %v13405_v5 }
 0x98c   :  { %vm8140_vm10 = vmor %vm8138_vm9, %vm8139_vm8  ;;  %v8158_v34 = vand.u32 2147483648, %v7987_v25  ;;  %v8156_v63 = vand.u32 2147483647, %v7987_v25  ;;  %vm8152_vm13 = vweird.f32 %v7987_v25 }
 0x98d   :  { %v8127_v57 = vsel %vm8126_vm6, %v13403_v38, %v8123_v52  ;;  %v8135_v51 = vsub.f32 1.0, %v8134_v16 }
 0x98e   :  { %v8132_v15 = vsel %vm8129_vm7, %v8131_v37, %v8127_v57  ;;  %v8159_v40 = vor.u32 1.1754944e-38, %v8158_v34  ;;  %vm8157_vm15 = vcmp.eq.f32.partialorder %v8156_v63, 8.507059e+37 }
 0x98f   :  { %v8519_v2 = vmul.f32 %v18635_v9, %v8132_v15  ;;  %v8520_v42 = vmul.f32 %v18636_v23, %v8132_v15  ;;  %v8136_v47 = vmul.f32 %v13405_v5, %v8135_v51 }
 0x991   :  { %8583 = vst [vmem:[%s18601_s30 + $0x40] sm:$0xff] %v8519_v2  ;;  %v8137_v18 = vadd.f32 %v13405_v5, %v8136_v47  ;;  %v13407_v50 = vpop.eup %13406 }
 0x992   :  { %8584 = vst [vmem:[%s18601_s30 + $0x48] sm:$0xff] %v8520_v42  ;;  %v8148_v17 = vmul.f32 %v13407_v50, %v7987_v25  ;;  %vm8153_vm12 = vweird.f32 %v13407_v50 }
 0x993   :  { %v8141_v45 = vsel %vm8140_vm10, %v13405_v5, %v8137_v18  ;;  %v7990_v58 = vpop.xlane.xlu0 %7989  ;;  %vm8154_vm14 = vmor %vm8152_vm13, %vm8153_vm12 }
 0x994   :  { %v8146_v27 = vsel %vm8143_vm11, %v8145_v30, %v8141_v45  ;;  %v8149_v11 = vsub.f32 1.0, %v8148_v17  ;;  %13408 = vrcp.f32 %v7990_v58  ;;  %v8172_v28 = vand.u32 2147483648, %v7990_v58 }
 0x995   :  { %v8521_v36 = vmul.f32 %v18637_v44, %v8146_v27  ;;  %v8522_v24 = vmul.f32 %v18638_v10, %v8146_v27  ;;  %v7993_v55 = vpop.xlane.xlu1 %7992  ;;  %v8170_v60 = vand.u32 2147483647, %v7990_v58  ;;  %vm8166_vm1 = vweird.f32 %v7990_v58 }
 0x996   :  { %v8150_v59 = vmul.f32 %v13407_v50, %v8149_v11  ;;  %13410 = vrcp.f32 %v7993_v55  ;;  %v8186_v52 = vand.u32 2147483648, %v7993_v55  ;;  %v8173_v25 = vor.u32 1.1754944e-38, %v8172_v28 }
 0x997   :  { %8585 = vst [vmem:[%s18601_s30 + $0x50] sm:$0xff] %v8521_v36  ;;  %vm8171_vm4 = vcmp.eq.f32.partialorder %v8170_v60, 8.507059e+37  ;;  %vm8180_vm5 = vweird.f32 %v7993_v55 }
 0x998   :  { %8586 = vst [vmem:[%s18601_s30 + $0x58] sm:$0xff] %v8522_v24  ;;  %v8151_v32 = vadd.f32 %v13407_v50, %v8150_v59  ;;  %v8187_v1 = vor.u32 1.1754944e-38, %v8186_v52 }
 0x99a   :  { %v13409_v38 = vpop.eup %13408  ;;  %v8155_v3 = vsel %vm8154_vm14, %v13407_v50, %v8151_v32 }
 0x99b   :  { %v8160_v20 = vsel %vm8157_vm15, %v8159_v40, %v8155_v3  ;;  %v8162_v29 = vmul.f32 %v13409_v38, %v7990_v58  ;;  %vm8167_vm0 = vweird.f32 %v13409_v38 }
 0x99c   :  { %v13411_v43 = vpop.eup %13410  ;;  %v8523_v56 = vmul.f32 %v18104_v8, %v8160_v20  ;;  %v8524_v26 = vmul.f32 %v18108_v12, %v8160_v20  ;;  %v7996_v33 = vpop.xlane.xlu2 %7995  ;;  %v8184_v8 = vand.u32 2147483647, %v7993_v55  ;;  %vm8168_vm3 = vmor %vm8166_vm1, %vm8167_vm0 }
 0x99d   :  { %v8163_v31 = vsub.f32 1.0, %v8162_v29  ;;  %v8176_v4 = vmul.f32 %v13411_v43, %v7993_v55  ;;  %13412 = vrcp.f32 %v7996_v33  ;;  %vm8181_vm2 = vweird.f32 %v13411_v43 }
 0x99e   :  { %8587 = vst [vmem:[%s18601_s30 + $0x60] sm:$0xff] %v8523_v56  ;;  %vm8182_vm6 = vmor %vm8180_vm5, %vm8181_vm2  ;;  %vm8185_vm7 = vcmp.eq.f32.partialorder %v8184_v8, 8.507059e+37  ;;  %v8198_v17 = vand.u32 2147483647, %v7996_v33  ;;  %vm8194_vm9 = vweird.f32 %v7996_v33 }
 0x99f   :  { %8588 = vst [vmem:[%s18601_s30 + $0x68] sm:$0xff] %v8524_v26  ;;  %v8164_v48 = vmul.f32 %v13409_v38, %v8163_v31  ;;  %v8177_v5 = vsub.f32 1.0, %v8176_v4 }
 0x9a0   :  { %vm8199_vm11 = vcmp.eq.f32.partialorder %v8198_v17, 8.507059e+37 }
 0x9a1   :  { %v8165_v12 = vadd.f32 %v13409_v38, %v8164_v48  ;;  %v8178_v16 = vmul.f32 %v13411_v43, %v8177_v5 }
 0x9a3   :  { %v8169_v37 = vsel %vm8168_vm3, %v13409_v38, %v8165_v12  ;;  %v8179_v57 = vadd.f32 %v13411_v43, %v8178_v16  ;;  %v13413_v51 = vpop.eup %13412 }
 0x9a4   :  { %v8174_v15 = vsel %vm8171_vm4, %v8173_v25, %v8169_v37  ;;  %v8190_v23 = vmul.f32 %v13413_v51, %v7996_v33  ;;  %v8059_v42 = vpop.xlane.xlu2 %8058  ;;  %v7999_v47 = vpop.xlane.xlu0 %7998  ;;  %vm8195_vm8 = vweird.f32 %v13413_v51 }
 0x9a5   :  { %v8525_v6 = vmul.f32 %v18131_v54, %v8174_v15  ;;  %v8526_v9 = vmul.f32 %v18136_v0, %v8174_v15  ;;  %v8183_v2 = vsel %vm8182_vm6, %v13411_v43, %v8179_v57  ;;  %13414 = vrcp.f32 %v8059_v42  ;;  %vm8196_vm10 = vmor %vm8194_vm9, %vm8195_vm8 }
 0x9a6   :  { %v8188_v18 = vsel %vm8185_vm7, %v8187_v1, %v8183_v2  ;;  %v8191_v45 = vsub.f32 1.0, %v8190_v23  ;;  %v8200_v54 = vand.u32 2147483648, %v7996_v33  ;;  %13416 = vrcp.f32 %v7999_v47 }
 0x9a7   :  { %8589 = vst [vmem:[%s18601_s30 + $0x70] sm:$0xff] %v8525_v6  ;;  %v8527_v50 = vmul.f32 %v18142_v22, %v8188_v18  ;;  %v8528_v30 = vmul.f32 %v18151_v19, %v8188_v18  ;;  %v8494_v32 = vand.u32 2147483648, %v8059_v42  ;;  %v8492_v38 = vand.u32 2147483647, %v8059_v42 }
 0x9a8   :  { %8590 = vst [vmem:[%s18601_s30 + $0x78] sm:$0xff] %v8526_v9  ;;  %v8192_v0 = vmul.f32 %v13413_v51, %v8191_v45  ;;  %v8201_v27 = vor.u32 1.1754944e-38, %v8200_v54  ;;  %v8214_v20 = vand.u32 2147483648, %v7999_v47  ;;  %vm8488_vm13 = vweird.f32 %v8059_v42 }
 0x9a9   :  { %8591 = vst [vmem:[%s18601_s30 + $0x80] sm:$0xff] %v8527_v50  ;;  %v8495_v56 = vor.u32 1.1754944e-38, %v8494_v32  ;;  %vm8208_vm0 = vweird.f32 %v7999_v47  ;;  %vm8493_vm1 = vcmp.eq.f32.partialorder %v8492_v38, 8.507059e+37 }
 0x9aa   :  { %8592 = vst [vmem:[%s18601_s30 + $0x88] sm:$0xff] %v8528_v30  ;;  %v8193_v22 = vadd.f32 %v13413_v51, %v8192_v0  ;;  %v8215_v60 = vor.u32 1.1754944e-38, %v8214_v20 }
 0x9ab   :  { %v13415_v19 = vpop.eup %13414 }
 0x9ac   :  { %v8197_v58 = vsel %vm8196_vm10, %v13413_v51, %v8193_v22  ;;  %v8484_v44 = vmul.f32 %v13415_v19, %v8059_v42  ;;  %v18457_v36 = vpop.xlane.xlu1 %8001  ;;  %v18459_v10 = vpop.xlane.xlu0 %8061  ;;  %vm8489_vm12 = vweird.f32 %v13415_v19 }
 0x9ad   :  { %v13417_v24 = vpop.eup %13416  ;;  %v8202_v11 = vsel %vm8199_vm11, %v8201_v27, %v8197_v58  ;;  %13418 = vrcp.f32 %v18457_v36  ;;  %vm8490_vm15 = vmor %vm8488_vm13, %vm8489_vm12  ;;  %v8226_v25 = vand.u32 2147483647, %v18457_v36  ;;  %v8228_v37 = vand.u32 2147483648, %v18457_v36 }
 0x9ae   :  { %v8529_v34 = vmul.f32 %v18171_v13, %v8202_v11  ;;  %v8530_v55 = vmul.f32 %v18178_v61, %v8202_v11  ;;  %v8485_v59 = vsub.f32 1.0, %v8484_v44  ;;  %v8204_v63 = vmul.f32 %v13417_v24, %v7999_v47 }
 0x9af   :  { %13420 = vrcp.f32 %v18459_v10  ;;  %v8212_v13 = vand.u32 2147483647, %v7999_v47  ;;  %vm8209_vm14 = vweird.f32 %v13417_v24  ;;  %vm8222_vm5 = vweird.f32 %v18457_v36 }
 0x9b0   :  { %8593 = vst [vmem:[%s18601_s30 + $0x90] sm:$0xff] %v8529_v34  ;;  %v8486_v40 = vmul.f32 %v13415_v19, %v8485_v59  ;;  %v8205_v3 = vsub.f32 1.0, %v8204_v63  ;;  %vm8210_vm2 = vmor %vm8208_vm0, %vm8209_vm14  ;;  %v8508_v6 = vand.u32 2147483648, %v18459_v10  ;;  %v8506_v2 = vand.u32 2147483647, %v18459_v10 }
 0x9b1   :  { %8594 = vst [vmem:[%s18601_s30 + $0x98] sm:$0xff] %v8530_v55  ;;  %vm8213_vm3 = vcmp.eq.f32.partialorder %v8212_v13, 8.507059e+37  ;;  %vm8227_vm8 = vcmp.eq.f32.partialorder %v8226_v25, 8.507059e+37  ;;  %vm8502_vm9 = vweird.f32 %v18459_v10 }
 0x9b2   :  { %v8487_v61 = vadd.f32 %v13415_v19, %v8486_v40  ;;  %v8206_v29 = vmul.f32 %v13417_v24, %v8205_v3  ;;  %v8509_v45 = vor.u32 1.1754944e-38, %v8508_v6  ;;  %vm8507_vm11 = vcmp.eq.f32.partialorder %v8506_v2, 8.507059e+37 }
 0x9b3   :  { %v13419_v43 = vpop.eup %13418 }
 0x9b4   :  { %v8491_v26 = vsel %vm8490_vm15, %v13415_v19, %v8487_v61  ;;  %v8207_v31 = vadd.f32 %v13417_v24, %v8206_v29  ;;  %v8218_v4 = vmul.f32 %v13419_v43, %v18457_v36  ;;  %v18472_v33 = vpop.xlane.xlu1 %8055  ;;  %vm8223_vm4 = vweird.f32 %v13419_v43 }
 0x9b5   :  { %v13421_v28 = vpop.eup %13420  ;;  %v8496_v48 = vsel %vm8493_vm1, %v8495_v56, %v8491_v26  ;;  %13422 = vrcp.f32 %v18472_v33  ;;  %vm8224_vm6 = vmor %vm8222_vm5, %vm8223_vm4  ;;  %v8480_v17 = vand.u32 2147483648, %v18472_v33  ;;  %v8478_v27 = vand.u32 2147483647, %v18472_v33 }
 0x9b6   :  { %v8571_v5 = vmul.f32 %v18191_v35, %v8496_v48  ;;  %v8572_v8 = vmul.f32 %v18196_v21, %v8496_v48  ;;  %v8211_v52 = vsel %vm8210_vm2, %v13417_v24, %v8207_v31  ;;  %v8219_v12 = vsub.f32 1.0, %v8218_v4 }
 0x9b7   :  { %v8216_v16 = vsel %vm8213_vm3, %v8215_v60, %v8211_v52  ;;  %v8498_v57 = vmul.f32 %v13421_v28, %v18459_v10  ;;  %vm8503_vm7 = vweird.f32 %v13421_v28  ;;  %vm8474_vm13 = vweird.f32 %v18472_v33 }
 0x9b8   :  { %8635 = vst [vmem:[%s18601_s30 + $0x1e0] sm:$0xff] %v8571_v5  ;;  %v8531_v51 = vmul.f32 %v18202_v49, %v8216_v16  ;;  %v8532_v15 = vmul.f32 %v18209_v14, %v8216_v16  ;;  %v8220_v35 = vmul.f32 %v13419_v43, %v8219_v12  ;;  %v8229_v49 = vor.u32 1.1754944e-38, %v8228_v37  ;;  %vm8504_vm10 = vmor %vm8502_vm9, %vm8503_vm7 }
 0x9b9   :  { %8636 = vst [vmem:[%s18601_s30 + $0x1e8] sm:$0xff] %v8572_v8  ;;  %v8499_v21 = vsub.f32 1.0, %v8498_v57  ;;  %v8481_v44 = vor.u32 1.1754944e-38, %v8480_v17  ;;  %vm8479_vm15 = vcmp.eq.f32.partialorder %v8478_v27, 8.507059e+37 }
 0x9ba   :  { %8595 = vst [vmem:[%s18601_s30 + $0xa0] sm:$0xff] %v8531_v51  ;;  %v8221_v1 = vadd.f32 %v13419_v43, %v8220_v35 }
 0x9bb   :  { %v13423_v9 = vpop.eup %13422  ;;  %8596 = vst [vmem:[%s18601_s30 + $0xa8] sm:$0xff] %v8532_v15  ;;  %v8500_v14 = vmul.f32 %v13421_v28, %v8499_v21 }
 0x9bc   :  { %v8225_v23 = vsel %vm8224_vm6, %v13419_v43, %v8221_v1  ;;  %v8470_v42 = vmul.f32 %v13423_v9, %v18472_v33  ;;  %vm8475_vm12 = vweird.f32 %v13423_v9 }
 0x9bd   :  { %v8230_v47 = vsel %vm8227_vm8, %v8229_v49, %v8225_v23  ;;  %v8501_v18 = vadd.f32 %v13421_v28, %v8500_v14  ;;  %vm8476_vm14 = vmor %vm8474_vm13, %vm8475_vm12 }
 0x9be   :  { %v8533_v50 = vmul.f32 %v18233_v53, %v8230_v47  ;;  %v8534_v30 = vmul.f32 %v18238_v39, %v8230_v47  ;;  %v8471_v54 = vsub.f32 1.0, %v8470_v42 }
 0x9bf   :  { %v8505_v0 = vsel %vm8504_vm10, %v13421_v28, %v8501_v18 }
 0x9c0   :  { %8597 = vst [vmem:[%s18601_s30 + $0xb0] sm:$0xff] %v8533_v50  ;;  %v8510_v22 = vsel %vm8507_vm11, %v8509_v45, %v8505_v0  ;;  %v8472_v19 = vmul.f32 %v13423_v9, %v8471_v54 }
 0x9c1   :  { %8598 = vst [vmem:[%s18601_s30 + $0xb8] sm:$0xff] %v8534_v30  ;;  %v8573_v53 = vmul.f32 %v18224_v7, %v8510_v22  ;;  %v8574_v39 = vmul.f32 %v18227_v62, %v8510_v22 }
 0x9c2   :  { %v8473_v58 = vadd.f32 %v13423_v9, %v8472_v19 }
 0x9c3   :  { %8637 = vst [vmem:[%s18601_s30 + $0x1f0] sm:$0xff] %v8573_v53 }
 0x9c4   :  { %8638 = vst [vmem:[%s18601_s30 + $0x1f8] sm:$0xff] %v8574_v39  ;;  %v8477_v36 = vsel %vm8476_vm14, %v13423_v9, %v8473_v58 }
 0x9c5   :  { %v8482_v10 = vsel %vm8479_vm15, %v8481_v44, %v8477_v36 }
 0x9c6   :  { %v8569_v7 = vmul.f32 %v18248_v41, %v8482_v10  ;;  %v8570_v62 = vmul.f32 %v18251_v46, %v8482_v10 }
 0x9c8   :  { %8633 = vst [vmem:[%s18601_s30 + $0x1d0] sm:$0xff] %v8569_v7 }
 0x9c9   :  { %8634 = vst [vmem:[%s18601_s30 + $0x1d8] sm:$0xff] %v8570_v62 }
 0x9ca   :  { %8667 = vsyncpa [#allocation5], 1 }
 0x9cb   :  { %8668 = vsyncpa [#allocation7], 1 }
 0x9cc   :  { %8669 = vsyncpa [#allocation10], 1 }

</bundles_post_ra>
